<compile_context>
chip_gen: v7x
topology: tpu7x:2x2x1
jax: 0.10.0
libtpu: 0.0.40
codegen_flags: <defaults>
</compile_context>

<pallas_src>
from functools import partial

import jax
import jax.numpy as jnp
from jax import lax
from jax.experimental import pallas as pl
from jax.experimental.pallas import tpu as pltpu

_F32 = 4  # bytes


def _round_up(x, m):
    return (x + m - 1) // m * m


def _vmem_capacity_bytes():
    """Physical VMEM of the local TPU generation (v5e/v6e 128 MiB, v7x 64 MiB/TC)."""
    try:
        return int(pltpu.get_tpu_info().vmem_capacity_bytes)
    except Exception:  # interpret mode / unknown chip -> conservative v7x figure
        return 64 * 1024 * 1024


def _buf_bytes(rows, cols, nbuf=1):
    """VMEM footprint of `nbuf` f32 buffers of (rows, cols), (8,128)-layout padded."""
    return (nbuf * _round_up(max(int(rows), 1), 8)
            * _round_up(max(int(cols), 1), 128) * _F32)


def _pick_tile(n_rows, in_dim, out_dim_p, requested, budget):
    """Largest multiple-of-8 row tile whose double-buffered x/out tiles fit `budget`."""
    per_row = 2 * _F32 * (_round_up(in_dim, 128) + out_dim_p)
    tn = max(8, _round_up(min(int(requested), _round_up(n_rows, 8)), 8))
    while tn > 8 and tn * per_row > budget:
        tn = max(8, _round_up(tn // 2, 8))
    return tn


# ---------------------------------------------------------------------------
# Kernel bodies
# ---------------------------------------------------------------------------
def _bn_single_tile_kernel(x_ref, w_ref, gamma_ref, beta_ref, o_ref, *,
                           inv_n, eps, negative_slope, apply_relu):
    """Whole problem in one grid step: matmul, batch stats, BN, LeakyReLU."""
    # Linear bias is omitted: it cancels exactly under BatchNorm.
    y = jnp.dot(x_ref[...], w_ref[...], preferred_element_type=jnp.float32)
    mean = jnp.sum(y, axis=0, keepdims=True) * inv_n
    var = jnp.sum(y * y, axis=0, keepdims=True) * inv_n - mean * mean  # biased
    scale = gamma_ref[...] * lax.rsqrt(var + eps)
    shift = beta_ref[...] - mean * scale
    z = y * scale + shift
    if apply_relu:
        z = jnp.where(z >= 0.0, z, negative_slope * z)
    o_ref[...] = z


def _bn_two_pass_kernel(x_ref, w_ref, gamma_ref, beta_ref, o_ref,
                        sum_ref, sq_ref, scale_ref, shift_ref, aux_ref, *,
                        tn, n_rows, inv_n, eps, negative_slope, apply_relu,
                        ragged, cache_y):
    """grid=(2, n_tiles): pass 0 = statistics, pass 1 = normalize/activate.

    aux_ref is the y cache (n_tiles*tn, out) when cache_y, else the folded
    weight scale*W^T (in_dim, out).
    """
    p = pl.program_id(0)   # 0 = stats pass, 1 = apply pass
    i = pl.program_id(1)   # row-tile index

    @pl.when(p == 0)
    def _stats_pass():
        @pl.when(i == 0)
        def _init():
            sum_ref[...] = jnp.zeros_like(sum_ref)
            sq_ref[...] = jnp.zeros_like(sq_ref)
            # The output block is parked at row-block 0 for the whole stats
            # pass; give it deterministic contents (it is rewritten with real
            # data at pass-1 i=0 before it can ever be flushed).
            o_ref[...] = jnp.zeros_like(o_ref)

        # Bias-free linear output: the Linear bias cancels under BatchNorm.
        y = jnp.dot(x_ref[...], w_ref[...], preferred_element_type=jnp.float32)
        if ragged:
            # Partial last tile: rows past n_rows hold unspecified data — mask
            # them out of the statistics (their output rows are dropped by the
            # masked store anyway).
            row = lax.broadcasted_iota(jnp.int32, (tn, 1), 0)
            ys = jnp.where(row < (n_rows - i * tn), y, 0.0)
        else:
            ys = y
        # TODO(synk): E[y^2]-E[y]^2 in f32 can cancel for activations with a
        # very large mean; fine within the reference tolerance here.
        sum_ref[...] += jnp.sum(ys, axis=0, keepdims=True)
        sq_ref[...] += jnp.sum(ys * ys, axis=0, keepdims=True)
        if cache_y:
            # Park y in VMEM so pass 1 never re-reads x nor re-runs the matmul.
            aux_ref[pl.ds(pl.multiple_of(i * tn, tn), tn), :] = y

        @pl.when(i == pl.num_programs(1) - 1)
        def _finalize():
            mean = sum_ref[...] * inv_n
            var = sq_ref[...] * inv_n - mean * mean      # biased (training mode)
            inv_std = lax.rsqrt(var + eps)
            scale = gamma_ref[...] * inv_std
            scale_ref[...] = scale
            shift_ref[...] = beta_ref[...] - mean * scale
            if not cache_y:
                # Fold the BN scale into the weight once so the apply pass is a
                # single matmul + add (no per-tile VALU multiply).
                aux_ref[...] = w_ref[...] * scale

    @pl.when(p == 1)
    def _apply_pass():
        if cache_y:
            y = aux_ref[pl.ds(pl.multiple_of(i * tn, tn), tn), :]
            z = y * scale_ref[...] + shift_ref[...]
        else:
            z = (jnp.dot(x_ref[...], aux_ref[...],
                         preferred_element_type=jnp.float32) + shift_ref[...])
        if apply_relu:
            z = jnp.where(z >= 0.0, z, negative_slope * z)
        o_ref[...] = z


def _linear_bias_kernel(x_ref, w_ref, b_ref, o_ref, *, negative_slope, apply_relu):
    """use_bn=False path: linear + (linear bias + learnable bias) + LeakyReLU."""
    z = jnp.dot(x_ref[...], w_ref[...], preferred_element_type=jnp.float32) + b_ref[...]
    if apply_relu:
        z = jnp.where(z >= 0.0, z, negative_slope * z)
    o_ref[...] = z


# ---------------------------------------------------------------------------
# Wrapper
# ---------------------------------------------------------------------------
def unary_block_epn(x, params, *, use_bn=True, no_relu=False, eps=1e-5,
                    negative_slope=0.1, tile_n=2048, cache_y=None):
    """Pallas implementation of UnaryBlockEPN.forward.

    x: (n_points, n_anchors, in_dim) float32
    params:
      'w'        : (out_dim, in_dim)  Linear weight (torch layout)
      'b'        : (out_dim,)         Linear bias
      'bn_gamma' : (out_dim,)         BatchNorm weight   (used if use_bn)
      'bn_beta'  : (out_dim,)         BatchNorm bias     (used if use_bn)
      'bn_bias'  : (out_dim,)         bias used when use_bn=False
    cache_y: None = auto (cache when it fits VMEM), True/False = force (False
             always honored; True only if it fits).
    """
    n_pts, n_anc, in_dim = x.shape
    w = params["w"].astype(jnp.float32)              # (out, in), torch layout
    out_dim = w.shape[0]
    out_dim_p = _round_up(out_dim, 128)              # lane-dense stores
    wt = w.T                                         # (in, out)
    if out_dim_p != out_dim:
        wt = jnp.pad(wt, ((0, 0), (0, out_dim_p - out_dim)))

    n_rows = n_pts * n_anc
    x2 = x.reshape(n_rows, in_dim).astype(jnp.float32)   # no row padding: ragged
                                                         # tails handled in-kernel
    apply_relu = not no_relu

    cap = _vmem_capacity_bytes()
    usable = int(cap * 0.8)                          # headroom for compiler scratch
    per_row = 2 * _F32 * (_round_up(in_dim, 128) + out_dim_p)

    if use_bn:
        def _pad_ch(v):
            v = v.astype(jnp.float32)
            if out_dim_p != out_dim:
                v = jnp.pad(v, (0, out_dim_p - out_dim))
            return v.reshape(1, out_dim_p)

        gamma = _pad_ch(params["bn_gamma"])
        beta = _pad_ch(params["bn_beta"])

        fixed = (_buf_bytes(in_dim, out_dim_p, 2)        # W^T double buffer
                 + 2 * _buf_bytes(1, out_dim_p, 2)       # gamma, beta
                 + 4 * _buf_bytes(1, out_dim_p))         # sum / sq / scale / shift

        # Candidate A: cache y in VMEM (x read once, matmul once).
        tn_a = _pick_tile(n_rows, in_dim, out_dim_p, tile_n,
                          max(8 * per_row, (usable - fixed) // 2))
        n_tiles_a = pl.cdiv(n_rows, tn_a)
        cache_bytes = _buf_bytes(n_tiles_a * tn_a, out_dim_p)
        total_a = fixed + tn_a * per_row + cache_bytes
        can_cache = total_a <= usable
        use_cache = can_cache if cache_y is None else bool(cache_y and can_cache)

        if use_cache:
            tn, total = tn_a, total_a
        else:
            wfold_bytes = _buf_bytes(in_dim, out_dim_p)
            tn = _pick_tile(n_rows, in_dim, out_dim_p, tile_n,
                            max(8 * per_row, usable - fixed - wfold_bytes))
            total = fixed + wfold_bytes + tn * per_row

        n_tiles = pl.cdiv(n_rows, tn)
        ragged = (n_tiles * tn != n_rows)
        vmem_limit = int(min(cap, max(total + (8 << 20), 32 << 20)))

        if n_tiles == 1:
            # ---- single-tile fast path: blocks cover the full row extent ----
            kern = partial(_bn_single_tile_kernel,
                           inv_n=1.0 / float(n_rows), eps=float(eps),
                           negative_slope=float(negative_slope),
                           apply_relu=apply_relu)
            out = pl.pallas_call(
                kern,
                out_shape=jax.ShapeDtypeStruct((n_rows, out_dim_p), jnp.float32),
                grid_spec=pltpu.PrefetchScalarGridSpec(
                    num_scalar_prefetch=0,
                    grid=(1,),
                    in_specs=[
                        pl.BlockSpec((n_rows, in_dim), lambda i: (0, 0)),
                        pl.BlockSpec((in_dim, out_dim_p), lambda i: (0, 0)),
                        pl.BlockSpec((1, out_dim_p), lambda i: (0, 0)),
                        pl.BlockSpec((1, out_dim_p), lambda i: (0, 0)),
                    ],
                    out_specs=pl.BlockSpec((n_rows, out_dim_p), lambda i: (0, 0)),
                ),
                compiler_params=pltpu.CompilerParams(
                    dimension_semantics=("arbitrary",),
                    vmem_limit_bytes=vmem_limit),
            )(x2, wt, gamma, beta)
        else:
            # ---- 2-pass path ----
            if use_cache:
                aux = pltpu.VMEM((n_tiles * tn, out_dim_p), jnp.float32)  # y cache
                # Pass 1 never touches x: keep its block parked on the last
                # pass-0 block so no x DMA is issued during the apply pass.
                x_map = lambda p, i, nt=n_tiles: ((1 - p) * i + p * (nt - 1), 0)
            else:
                aux = pltpu.VMEM((in_dim, out_dim_p), jnp.float32)        # scale*W^T
                x_map = lambda p, i: (i, 0)

            kern = partial(_bn_two_pass_kernel, tn=tn, n_rows=n_rows,
                           inv_n=1.0 / float(n_rows), eps=float(eps),
                           negative_slope=float(negative_slope),
                           apply_relu=apply_relu, ragged=ragged,
                           cache_y=use_cache)
            out = pl.pallas_call(
                kern,
                out_shape=jax.ShapeDtypeStruct((n_rows, out_dim_p), jnp.float32),
                grid_spec=pltpu.PrefetchScalarGridSpec(
                    num_scalar_prefetch=0,
                    grid=(2, n_tiles),
                    in_specs=[
                        pl.BlockSpec((tn, in_dim), x_map),
                        pl.BlockSpec((in_dim, out_dim_p), lambda p, i: (0, 0)),
                        pl.BlockSpec((1, out_dim_p), lambda p, i: (0, 0)),
                        pl.BlockSpec((1, out_dim_p), lambda p, i: (0, 0)),
                    ],
                    # Parked at row-block 0 (zero-inited, never flushed) during
                    # the stats pass; sweeps the rows in the apply pass so each
                    # output block is written exactly once.
                    out_specs=pl.BlockSpec((tn, out_dim_p), lambda p, i: (p * i, 0)),
                    scratch_shapes=[
                        pltpu.VMEM((1, out_dim_p), jnp.float32),   # sum
                        pltpu.VMEM((1, out_dim_p), jnp.float32),   # sum of squares
                        pltpu.VMEM((1, out_dim_p), jnp.float32),   # scale
                        pltpu.VMEM((1, out_dim_p), jnp.float32),   # shift
                        aux,                                       # y cache / scale*W^T
                    ],
                ),
                compiler_params=pltpu.CompilerParams(
                    dimension_semantics=("arbitrary", "arbitrary"),
                    vmem_limit_bytes=vmem_limit),
            )(x2, wt, gamma, beta)
    else:
        # Linear bias + the zero-init learnable bias of BatchNormBlockEPN.
        bias = (params["b"].astype(jnp.float32)
                + params["bn_bias"].astype(jnp.float32))
        if out_dim_p != out_dim:
            bias = jnp.pad(bias, (0, out_dim_p - out_dim))
        bias = bias.reshape(1, out_dim_p)

        fixed = _buf_bytes(in_dim, out_dim_p, 2) + _buf_bytes(1, out_dim_p, 2)
        tn = _pick_tile(n_rows, in_dim, out_dim_p, tile_n,
                        max(8 * per_row, usable - fixed))
        n_tiles = pl.cdiv(n_rows, tn)
        tn_block = n_rows if n_tiles == 1 else tn       # full-extent block when single tile
        vmem_limit = int(min(cap, max(fixed + tn * per_row + (8 << 20), 32 << 20)))

        kern = partial(_linear_bias_kernel,
                       negative_slope=float(negative_slope),
                       apply_relu=apply_relu)
        out = pl.pallas_call(
            kern,
            out_shape=jax.ShapeDtypeStruct((n_rows, out_dim_p), jnp.float32),
            grid_spec=pltpu.PrefetchScalarGridSpec(
                num_scalar_prefetch=0,
                grid=(n_tiles,),
                in_specs=[
                    pl.BlockSpec((tn_block, in_dim), lambda i: (i, 0)),
                    pl.BlockSpec((in_dim, out_dim_p), lambda i: (0, 0)),
                    pl.BlockSpec((1, out_dim_p), lambda i: (0, 0)),
                ],
                out_specs=pl.BlockSpec((tn_block, out_dim_p), lambda i: (i, 0)),
            ),
            compiler_params=pltpu.CompilerParams(
                dimension_semantics=("parallel",),       # megacore-friendly
                vmem_limit_bytes=vmem_limit),
        )(x2, wt, bias)

    if out_dim_p != out_dim:
        out = out[:, :out_dim]
    return out.reshape(n_pts, n_anc, out_dim)


# ---------------------------------------------------------------------------
# Pure-JAX reference matching the PyTorch forward.
# ---------------------------------------------------------------------------
def _reference(x, params, *, use_bn=True, no_relu=False,
               eps=1e-5, negative_slope=0.1):
    y = jnp.einsum("pac,oc->pao", x, params["w"],
                   precision=jax.lax.Precision.HIGHEST) + params["b"]
    if use_bn:
        mean = jnp.mean(y, axis=(0, 1))
        var = jnp.mean((y - mean) ** 2, axis=(0, 1))   # biased variance
        y = (y - mean) / jnp.sqrt(var + eps)
        y = y * params["bn_gamma"] + params["bn_beta"]
    else:
        y = y + params["bn_bias"]
    if not no_relu:
        y = jnp.where(y >= 0.0, y, negative_slope * y)
    return y


if __name__ == "__main__":
    key = jax.random.PRNGKey(0)
    keys = jax.random.split(key, 11)
    kx, kw, kb, kg, kbt, kbb, kw2, kb2, kg2, kbt2, kbb2 = keys

    # Shapes implied by the forward: x is (n_points, n_anchors, in_dim).
    n_pts, n_anc, in_dim, out_dim = 512, 4, 64, 128
    x = jax.random.normal(kx, (n_pts, n_anc, in_dim), dtype=jnp.float32)

    def make_params(kw_, kb_, kg_, kbt_, kbb_, in_d, out_d):
        w_bound = (6.0 / in_d) ** 0.5
        b_bound = 1.0 / (in_d ** 0.5)
        return {
            "w": jax.random.uniform(kw_, (out_d, in_d), jnp.float32, -w_bound, w_bound),
            "b": jax.random.uniform(kb_, (out_d,), jnp.float32, -b_bound, b_bound),
            "bn_gamma": 1.0 + 0.1 * jax.random.normal(kg_, (out_d,), dtype=jnp.float32),
            "bn_beta": 0.1 * jax.random.normal(kbt_, (out_d,), dtype=jnp.float32),
            "bn_bias": jax.random.uniform(kbb_, (out_d,), jnp.float32, -0.1, 0.1),
        }

    params = make_params(kw, kb, kg, kbt, kbb, in_dim, out_dim)

    def _check(x_in, prm, **kw_):
        out = jax.block_until_ready(unary_block_epn(x_in, prm, **kw_))
        ref = _reference(x_in, prm, use_bn=kw_.get("use_bn", True),
                         no_relu=kw_.get("no_relu", False))
        assert out.shape == ref.shape, (out.shape, ref.shape)
        err = float(jnp.max(jnp.abs(out - ref)))
        assert jnp.allclose(out, ref, atol=1e-4, rtol=1e-4), err
        return out

    # Single-tile fast path (whole problem in one grid step).
    _check(x, params, use_bn=True, no_relu=False)
    # Multi-tile 2-pass path with y cached in VMEM (default).
    _check(x, params, use_bn=True, no_relu=False, tile_n=256)
    # Multi-tile 2-pass path, recompute fallback (folded-weight apply pass).
    _check(x, params, use_bn=True, no_relu=False, tile_n=256, cache_y=False)
    # No-BN (bias-only) path.
    _check(x, params, use_bn=False, no_relu=False)

    # Ragged row count (in-kernel tail masking, no host pad/slice) + no_relu.
    x_small = jax.random.normal(kx, (37, 3, in_dim), dtype=jnp.float32)
    _check(x_small, params, use_bn=True, no_relu=True)                 # fast path
    _check(x_small, params, use_bn=True, no_relu=True, tile_n=64)      # 2-pass, ragged
    _check(x_small, params, use_bn=False, no_relu=True, tile_n=64)     # bias path, ragged

    # out_dim not a multiple of 128 -> zero-padded channels, lane-dense stores.
    params96 = make_params(kw2, kb2, kg2, kbt2, kbb2, in_dim, 96)
    _check(x_small, params96, use_bn=True, no_relu=False, tile_n=64)

    print("KERNEL_OK")
</pallas_src>

<mosaic_0001>
module attributes {stable_mosaic.version = 11 : i64} {
  func.func @_bn_single_tile_kernel(%arg0: i32, %arg1: memref<2048x64xf32, #tpu.memory_space<vmem>>, %arg2: memref<64x128xf32, #tpu.memory_space<vmem>>, %arg3: memref<1x128xf32, #tpu.memory_space<vmem>>, %arg4: memref<1x128xf32, #tpu.memory_space<vmem>>, %arg5: memref<2048x128xf32, #tpu.memory_space<vmem>>) attributes {dimension_semantics = [#tpu.dimension_semantics<arbitrary>], iteration_bounds = array<i64: 1>, scalar_prefetch = 0 : i64, scratch_operands = 0 : i64, tpu.core_type = #tpu.core_type<tc>, window_params = [{pipeline_mode = #tpu.pipeline_mode<synchronous>, transform_indices = @transform_0, window_bounds = array<i64: 2048, 64>}, {pipeline_mode = #tpu.pipeline_mode<synchronous>, transform_indices = @transform_1, window_bounds = array<i64: 64, 128>}, {pipeline_mode = #tpu.pipeline_mode<synchronous>, transform_indices = @transform_2, window_bounds = array<i64: 1, 128>}, {pipeline_mode = #tpu.pipeline_mode<synchronous>, transform_indices = @transform_3, window_bounds = array<i64: 1, 128>}, {pipeline_mode = #tpu.pipeline_mode<synchronous>, transform_indices = @transform_4, window_bounds = array<i64: 2048, 128>}]} {
    %c0 = arith.constant 0 : index
    %c0_0 = arith.constant 0 : index
    %0 = vector.load %arg1[%c0, %c0_0] : memref<2048x64xf32, #tpu.memory_space<vmem>>, vector<2048x64xf32>
    %c0_1 = arith.constant 0 : index
    %c0_2 = arith.constant 0 : index
    %1 = vector.load %arg2[%c0_1, %c0_2] : memref<64x128xf32, #tpu.memory_space<vmem>>, vector<64x128xf32>
    %cst = arith.constant dense<0.000000e+00> : vector<2048x128xf32>
    %2 = tpu.matmul %0, %1, %cst {dimension_numbers = #tpu.dot_dimension_numbers<[1], [0], [0], [1], [0, 0, 1, 1], [], []>} : vector<2048x64xf32>, vector<64x128xf32>, vector<2048x128xf32> -> vector<2048x128xf32>
    %cst_3 = arith.constant dense<0.000000e+00> : vector<128xf32>
    %3 = vector.multi_reduction <add>, %2, %cst_3 [0] : vector<2048x128xf32> to vector<128xf32>
    %4 = vector.shape_cast %3 : vector<128xf32> to vector<1x128xf32>
    %cst_4 = arith.constant 4.8828125E-4 : f32
    %5 = vector.broadcast %cst_4 : f32 to vector<1x128xf32>
    %6 = arith.mulf %4, %5 : vector<1x128xf32>
    %7 = arith.mulf %2, %2 : vector<2048x128xf32>
    %cst_5 = arith.constant dense<0.000000e+00> : vector<128xf32>
    %8 = vector.multi_reduction <add>, %7, %cst_5 [0] : vector<2048x128xf32> to vector<128xf32>
    %9 = vector.shape_cast %8 : vector<128xf32> to vector<1x128xf32>
    %cst_6 = arith.constant 4.8828125E-4 : f32
    %10 = vector.broadcast %cst_6 : f32 to vector<1x128xf32>
    %11 = arith.mulf %9, %10 : vector<1x128xf32>
    %12 = arith.mulf %6, %6 : vector<1x128xf32>
    %13 = arith.subf %11, %12 : vector<1x128xf32>
    %c0_7 = arith.constant 0 : index
    %c0_8 = arith.constant 0 : index
    %14 = vector.load %arg3[%c0_7, %c0_8] : memref<1x128xf32, #tpu.memory_space<vmem>>, vector<1x128xf32>
    %cst_9 = arith.constant 9.99999974E-6 : f32
    %15 = vector.broadcast %cst_9 : f32 to vector<1x128xf32>
    %16 = arith.addf %13, %15 : vector<1x128xf32>
    %17 = math.rsqrt %16 : vector<1x128xf32>
    %18 = arith.mulf %14, %17 : vector<1x128xf32>
    %c0_10 = arith.constant 0 : index
    %c0_11 = arith.constant 0 : index
    %19 = vector.load %arg4[%c0_10, %c0_11] : memref<1x128xf32, #tpu.memory_space<vmem>>, vector<1x128xf32>
    %20 = arith.mulf %6, %18 : vector<1x128xf32>
    %21 = arith.subf %19, %20 : vector<1x128xf32>
    %22 = vector.broadcast %18 : vector<1x128xf32> to vector<2048x128xf32>
    %23 = arith.mulf %2, %22 : vector<2048x128xf32>
    %24 = vector.broadcast %21 : vector<1x128xf32> to vector<2048x128xf32>
    %25 = arith.addf %23, %24 : vector<2048x128xf32>
    %cst_12 = arith.constant 0.000000e+00 : f32
    %26 = vector.broadcast %cst_12 : f32 to vector<2048x128xf32>
    %27 = arith.cmpf oge, %25, %26 : vector<2048x128xf32>
    %cst_13 = arith.constant 1.000000e-01 : f32
    %28 = vector.broadcast %cst_13 : f32 to vector<2048x128xf32>
    %29 = arith.mulf %28, %25 : vector<2048x128xf32>
    %30 = arith.select %27, %25, %29 : vector<2048x128xi1>, vector<2048x128xf32>
    %c0_14 = arith.constant 0 : index
    %c0_15 = arith.constant 0 : index
    %31 = vector.load %arg5[%c0_14, %c0_15] : memref<2048x128xf32, #tpu.memory_space<vmem>>, vector<2048x128xf32>
    tpu.vector_store %arg5[%c0_14, %c0_15], %30 {strides = array<i32>} : memref<2048x128xf32, #tpu.memory_space<vmem>>, vector<2048x128xf32>,
    return
  }
  func.func @transform_0(%arg0: i32) -> (i32, i32) {
    %c0_i32 = arith.constant 0 : i32
    %c0_i32_0 = arith.constant 0 : i32
    %c0_i32_1 = arith.constant 0 : i32
    return %c0_i32, %c0_i32_0 : i32, i32
  }
  func.func @transform_1(%arg0: i32) -> (i32, i32) {
    %c0_i32 = arith.constant 0 : i32
    %c0_i32_0 = arith.constant 0 : i32
    %c0_i32_1 = arith.constant 0 : i32
    return %c0_i32, %c0_i32_0 : i32, i32
  }
  func.func @transform_2(%arg0: i32) -> (i32, i32) {
    %c0_i32 = arith.constant 0 : i32
    %c0_i32_0 = arith.constant 0 : i32
    %c0_i32_1 = arith.constant 0 : i32
    return %c0_i32, %c0_i32_0 : i32, i32
  }
  func.func @transform_3(%arg0: i32) -> (i32, i32) {
    %c0_i32 = arith.constant 0 : i32
    %c0_i32_0 = arith.constant 0 : i32
    %c0_i32_1 = arith.constant 0 : i32
    return %c0_i32, %c0_i32_0 : i32, i32
  }
  func.func @transform_4(%arg0: i32) -> (i32, i32) {
    %c0_i32 = arith.constant 0 : i32
    %c0_i32_0 = arith.constant 0 : i32
    %c0_i32_1 = arith.constant 0 : i32
    return %c0_i32, %c0_i32_0 : i32, i32
  }
}

</mosaic_0001>

<bundles_post_ra>
// kernel: tpu_custom_call.1
= control target key start
LH: loop header
LB: loop body
LE: loop exit
PB: predicated region body
PF: predicated region fallthrough
CT: control target
= control target key end

     0   :  { %vm282_vm0 = vcmask 523264   ;;  %s12154_s0 = inlined_call_operand.vmem [shape: f32[2048,64], index: 0, kind: input, shape index: {}]   ;;  %s12155_s1 = inlined_call_operand.vmem [shape: f32[64,128], index: 1, kind: input, shape index: {}]   ;;  %s12156_s2 = inlined_call_operand.vmem [shape: f32[1,128], index: 2, kind: input, shape index: {}]   ;;  %s12157_s3 = inlined_call_operand.vmem [shape: f32[1,128], index: 3, kind: input, shape index: {}]   ;;  %s12158_s4 = inlined_call_operand.hbm [shape: f32[2048,128], index: 4, kind: output, shape index: {}]  }
   0x1   :  { %v274_v0 = vld [vmem:[%s12155_s1] sm:$0xff]  ;;  %v275_v1 = vld [vmem:[%s12155_s1 + $0x8] sm:$0xff]  ;;  %v276_v2 = vld [vmem:[%s12155_s1 + $0x10] sm:$0xff] }
   0x2   :  { %v5669_v3 = vpack.c.bf16 %v275_v1, %v274_v0  ;;  %v277_v4 = vld [vmem:[%s12155_s1 + $0x18] sm:$0xff]  ;;  %v278_v6 = vld [vmem:[%s12155_s1 + $0x20] sm:$0xff]  ;;  %v279_v7 = vld [vmem:[%s12155_s1 + $0x28] sm:$0xff] }
   0x3   :  { %v5673_v5 = vpack.c.bf16 %v277_v4, %v276_v2  ;;  %v18_v8 = vld [vmem:[%s12154_s0] sm:$0xff]  ;;  %v5677_v9 = vpack.c.bf16 %v279_v7, %v278_v6  ;;  %v280_v10 = vld [vmem:[%s12155_s1 + $0x30] sm:$0xff]  ;;  %v281_v11 = vld [vmem:[%s12155_s1 + $0x38] sm:$0xff] }
   0x4   :  { %5670 = vmatprep.subr.bf16.mxu0 %v5669_v3  ;;  %5285 = vmatprep.mubr.msk.f32.mxu0 %vm282_vm0, %v18_v8  ;;  %v5681_v12 = vpack.c.bf16 %v281_v11, %v280_v10  ;;  %v19_v13 = vld [vmem:[%s12154_s0 + $0x8] sm:$0xff]  ;;  %v20_v14 = vld [vmem:[%s12154_s0 + $0x10] sm:$0xff]  ;;  %v21_v15 = vld [vmem:[%s12154_s0 + $0x18] sm:$0xff] }
   0x5   :  { %5672 = vmatpush3.bf16.msra.mxu0 %v5669_v3  ;;  %5685 = vmatprep.subr.bf16.mxu1 %v5669_v3  ;;  %v22_v16 = vld [vmem:[%s12154_s0 + $0x20] sm:$0xff]  ;;  %v23_v17 = vld [vmem:[%s12154_s0 + $0x28] sm:$0xff]  ;;  %v24_v18 = vld [vmem:[%s12154_s0 + $0x30] sm:$0xff] }
   0x6   :  { %5674 = vmatprep.subr.bf16.mxu0 %v5673_v5  ;;  %5689 = vmatpush3.bf16.msra.mxu1 %v5669_v3 }
   0x7   :  { %5686 = vmatprep.subr.bf16.mxu1 %v5673_v5 }
   0x9   :  { %5676 = vmatpush3.bf16.msra.mxu0 %v5673_v5 }
   0xa   :  { %5678 = vmatprep.subr.bf16.mxu0 %v5677_v9  ;;  %5690 = vmatpush3.bf16.msra.mxu1 %v5673_v5 }
   0xb   :  { %5687 = vmatprep.subr.bf16.mxu1 %v5677_v9 }
   0xd   :  { %5680 = vmatpush3.bf16.msra.mxu0 %v5677_v9 }
   0xe   :  { %5682 = vmatprep.subr.bf16.mxu0 %v5681_v12  ;;  %5691 = vmatpush3.bf16.msra.mxu1 %v5677_v9 }
   0xf   :  { %5688 = vmatprep.subr.bf16.mxu1 %v5681_v12 }
  0x11   :  { %5684 = vmatpush3.bf16.msra.mxu0 %v5681_v12 }
  0x12   :  { %5692 = vmatpush3.bf16.msra.mxu1 %v5681_v12 }
  0x14   :  { %5286 = vmatmul.mubr.msk.f32.vlgmr.msra.gmra.mrb[0].mxu0 %vm282_vm0, %v19_v13 }
  0x15   :  { %5288 = vmatprep.mubr.msk.f32.mxu0 %vm282_vm0, %v20_v14 }
  0x18   :  { %5289 = vmatmul.mubr.msk.f32.gmra.mrb[2].mxu0 %vm282_vm0, %v21_v15 }
  0x19   :  { %5291 = vmatprep.mubr.msk.f32.mxu0 %vm282_vm0, %v22_v16 }
  0x1a   :  { %9 = vsyncpa [#allocation3], 0  ;;  %v25_v19 = vld [vmem:[%s12154_s0 + $0x38] sm:$0xff]  ;;  %v26_v20 = vld [vmem:[%s12154_s0 + $0x40] sm:$0xff] }
  0x1b   :  { %v27_v21 = vld [vmem:[%s12154_s0 + $0x48] sm:$0xff]  ;;  %v28_v22 = vld [vmem:[%s12154_s0 + $0x50] sm:$0xff]  ;;  %v29_v23 = vld [vmem:[%s12154_s0 + $0x58] sm:$0xff] }
  0x1c   :  { %5292 = vmatmul.mubr.msk.f32.gmra.mrb[4].mxu0 %vm282_vm0, %v23_v17  ;;  %v30_v24 = vld [vmem:[%s12154_s0 + $0x60] sm:$0xff]  ;;  %v31_v25 = vld [vmem:[%s12154_s0 + $0x68] sm:$0xff]  ;;  %v32_v26 = vld [vmem:[%s12154_s0 + $0x70] sm:$0xff] }
  0x1d   :  { %5294 = vmatprep.mubr.msk.f32.mxu0 %vm282_vm0, %v24_v18  ;;  %v33_v27 = vld [vmem:[%s12154_s0 + $0x78] sm:$0xff]  ;;  %v34_v28 = vld [vmem:[%s12154_s0 + $0x80] sm:$0xff]  ;;  %v35_v29 = vld [vmem:[%s12154_s0 + $0x88] sm:$0xff] }
  0x1e   :  { %v36_v30 = vld [vmem:[%s12154_s0 + $0x90] sm:$0xff]  ;;  %v37_v31 = vld [vmem:[%s12154_s0 + $0x98] sm:$0xff]  ;;  %v38_v32 = vld [vmem:[%s12154_s0 + $0xa0] sm:$0xff] }
  0x1f   :  { %v39_v33 = vld [vmem:[%s12154_s0 + $0xa8] sm:$0xff]  ;;  %v40_v34 = vld [vmem:[%s12154_s0 + $0xb0] sm:$0xff]  ;;  %v41_v35 = vld [vmem:[%s12154_s0 + $0xb8] sm:$0xff] }
  0x20   :  { %5295 = vmatmul.mubr.msk.f32.gmra.mrb[6].mxu0 %vm282_vm0, %v25_v19  ;;  %v42_v36 = vld [vmem:[%s12154_s0 + $0xc0] sm:$0xff]  ;;  %v43_v37 = vld [vmem:[%s12154_s0 + $0xc8] sm:$0xff]  ;;  %v44_v38 = vld [vmem:[%s12154_s0 + $0xd0] sm:$0xff] }
  0x21   :  { %5297 = vmatprep.mubr.msk.f32.mxu0 %vm282_vm0, %v26_v20  ;;  %v45_v39 = vld [vmem:[%s12154_s0 + $0xd8] sm:$0xff]  ;;  %v46_v40 = vld [vmem:[%s12154_s0 + $0xe0] sm:$0xff]  ;;  %v47_v41 = vld [vmem:[%s12154_s0 + $0xe8] sm:$0xff] }
  0x22   :  { %v48_v42 = vld [vmem:[%s12154_s0 + $0xf0] sm:$0xff]  ;;  %v49_v43 = vld [vmem:[%s12154_s0 + $0xf8] sm:$0xff]  ;;  %v50_v44 = vld [vmem:[%s12154_s0 + $0x100] sm:$0xff] }
  0x23   :  { %v51_v45 = vld [vmem:[%s12154_s0 + $0x108] sm:$0xff]  ;;  %v52_v46 = vld [vmem:[%s12154_s0 + $0x110] sm:$0xff]  ;;  %v53_v47 = vld [vmem:[%s12154_s0 + $0x118] sm:$0xff] }
  0x24   :  { %5298 = vmatmul.mubr.msk.f32.gmra.mrb[8].mxu0 %vm282_vm0, %v27_v21  ;;  %v54_v48 = vld [vmem:[%s12154_s0 + $0x120] sm:$0xff]  ;;  %v55_v49 = vld [vmem:[%s12154_s0 + $0x128] sm:$0xff]  ;;  %v56_v50 = vld [vmem:[%s12154_s0 + $0x130] sm:$0xff] }
  0x25   :  { %5300 = vmatprep.mubr.msk.f32.mxu0 %vm282_vm0, %v28_v22  ;;  %v57_v51 = vld [vmem:[%s12154_s0 + $0x138] sm:$0xff]  ;;  %v58_v52 = vld [vmem:[%s12154_s0 + $0x140] sm:$0xff]  ;;  %v59_v53 = vld [vmem:[%s12154_s0 + $0x148] sm:$0xff] }
  0x26   :  { %v60_v54 = vld [vmem:[%s12154_s0 + $0x150] sm:$0xff]  ;;  %v61_v55 = vld [vmem:[%s12154_s0 + $0x158] sm:$0xff]  ;;  %v62_v56 = vld [vmem:[%s12154_s0 + $0x160] sm:$0xff] }
  0x27   :  { %v63_v57 = vld [vmem:[%s12154_s0 + $0x168] sm:$0xff]  ;;  %v64_v58 = vld [vmem:[%s12154_s0 + $0x170] sm:$0xff]  ;;  %v65_v59 = vld [vmem:[%s12154_s0 + $0x178] sm:$0xff] }
  0x28   :  { %5301 = vmatmul.mubr.msk.f32.gmra.mrb[10].mxu0 %vm282_vm0, %v29_v23  ;;  %v66_v60 = vld [vmem:[%s12154_s0 + $0x180] sm:$0xff]  ;;  %v67_v61 = vld [vmem:[%s12154_s0 + $0x188] sm:$0xff]  ;;  %v68_v62 = vld [vmem:[%s12154_s0 + $0x190] sm:$0xff] }
  0x29   :  { %5303 = vmatprep.mubr.msk.f32.mxu0 %vm282_vm0, %v30_v24  ;;  %v69_v63 = vld [vmem:[%s12154_s0 + $0x198] sm:$0xff]  ;;  %v70_v0 = vld [vmem:[%s12154_s0 + $0x1a0] sm:$0xff]  ;;  %v71_v1 = vld [vmem:[%s12154_s0 + $0x1a8] sm:$0xff] }
  0x2a   :  { %v72_v2 = vld [vmem:[%s12154_s0 + $0x1b0] sm:$0xff]  ;;  %v73_v3 = vld [vmem:[%s12154_s0 + $0x1b8] sm:$0xff]  ;;  %v74_v4 = vld [vmem:[%s12154_s0 + $0x1c0] sm:$0xff] }
  0x2b   :  { %v75_v5 = vld [vmem:[%s12154_s0 + $0x1c8] sm:$0xff]  ;;  %v76_v6 = vld [vmem:[%s12154_s0 + $0x1d0] sm:$0xff]  ;;  %v77_v7 = vld [vmem:[%s12154_s0 + $0x1d8] sm:$0xff] }
  0x2c   :  { %5304 = vmatmul.mubr.msk.f32.gmra.mrb[12].mxu0 %vm282_vm0, %v31_v25  ;;  %v78_v8 = vld [vmem:[%s12154_s0 + $0x1e0] sm:$0xff]  ;;  %v79_v9 = vld [vmem:[%s12154_s0 + $0x1e8] sm:$0xff]  ;;  %v80_v10 = vld [vmem:[%s12154_s0 + $0x1f0] sm:$0xff] }
  0x2d   :  { %5306 = vmatprep.mubr.msk.f32.mxu0 %vm282_vm0, %v32_v26  ;;  %v81_v11 = vld [vmem:[%s12154_s0 + $0x1f8] sm:$0xff]  ;;  %v82_v12 = vld [vmem:[%s12154_s0 + $0x200] sm:$0xff]  ;;  %v83_v13 = vld [vmem:[%s12154_s0 + $0x208] sm:$0xff] }
  0x2e   :  { %v146_v14 = vld [vmem:[%s12154_s0 + $0x400] sm:$0xff]  ;;  %v84_v15 = vld [vmem:[%s12154_s0 + $0x210] sm:$0xff]  ;;  %v147_v16 = vld [vmem:[%s12154_s0 + $0x408] sm:$0xff] }
  0x2f   :  { %5477 = vmatprep.mubr.msk.f32.mxu1 %vm282_vm0, %v146_v14  ;;  %v85_v17 = vld [vmem:[%s12154_s0 + $0x218] sm:$0xff]  ;;  %v148_v18 = vld [vmem:[%s12154_s0 + $0x410] sm:$0xff]  ;;  %v86_v19 = vld [vmem:[%s12154_s0 + $0x220] sm:$0xff] }
  0x30   :  { %5307 = vmatmul.mubr.msk.f32.gmra.mrb[14].mxu0 %vm282_vm0, %v33_v27  ;;  %5478 = vmatmul.mubr.msk.f32.vlgmr.msra.gmra.mrb[0].mxu1 %vm282_vm0, %v147_v16  ;;  %v149_v20 = vld [vmem:[%s12154_s0 + $0x418] sm:$0xff]  ;;  %v87_v21 = vld [vmem:[%s12154_s0 + $0x228] sm:$0xff]  ;;  %v150_v22 = vld [vmem:[%s12154_s0 + $0x420] sm:$0xff] }
  0x31   :  { %5309 = vmatprep.mubr.msk.f32.mxu0 %vm282_vm0, %v34_v28  ;;  %5480 = vmatprep.mubr.msk.f32.mxu1 %vm282_vm0, %v148_v18  ;;  %v88_v23 = vld [vmem:[%s12154_s0 + $0x230] sm:$0xff]  ;;  %v151_v24 = vld [vmem:[%s12154_s0 + $0x428] sm:$0xff]  ;;  %v89_v25 = vld [vmem:[%s12154_s0 + $0x238] sm:$0xff] }
  0x32   :  { %v152_v26 = vld [vmem:[%s12154_s0 + $0x430] sm:$0xff]  ;;  %v90_v27 = vld [vmem:[%s12154_s0 + $0x240] sm:$0xff]  ;;  %v153_v28 = vld [vmem:[%s12154_s0 + $0x438] sm:$0xff] }
  0x33   :  { %v178_v14 = vld [vmem:[%s12154_s0 + $0x500] sm:$0xff]  ;;  %v179_v16 = vld [vmem:[%s12154_s0 + $0x508] sm:$0xff]  ;;  %v180_v18 = vld [vmem:[%s12154_s0 + $0x510] sm:$0xff] }
  0x34   :  { %5310 = vmatmul.mubr.msk.f32.gmra.mrb[16].mxu0 %vm282_vm0, %v35_v29  ;;  %5481 = vmatmul.mubr.msk.f32.gmra.mrb[2].mxu1 %vm282_vm0, %v149_v20  ;;  %v91_v29 = vld [vmem:[%s12154_s0 + $0x248] sm:$0xff]  ;;  %v181_v20 = vld [vmem:[%s12154_s0 + $0x518] sm:$0xff] }
  0x35   :  { %5312 = vmatprep.mubr.msk.f32.mxu0 %vm282_vm0, %v36_v30  ;;  %5483 = vmatprep.mubr.msk.f32.mxu1 %vm282_vm0, %v150_v22  ;;  %v154_v30 = vld [vmem:[%s12154_s0 + $0x440] sm:$0xff] }
  0x36   :  { %v182_v22 = vld [vmem:[%s12154_s0 + $0x520] sm:$0xff] }
  0x38   :  { %5313 = vmatmul.mubr.msk.f32.gmra.mrb[18].mxu0 %vm282_vm0, %v37_v31  ;;  %5484 = vmatmul.mubr.msk.f32.gmra.mrb[4].mxu1 %vm282_vm0, %v151_v24  ;;  %v92_v31 = vld [vmem:[%s12154_s0 + $0x250] sm:$0xff]  ;;  %v183_v24 = vld [vmem:[%s12154_s0 + $0x528] sm:$0xff] }
  0x39   :  { %5315 = vmatprep.mubr.msk.f32.mxu0 %vm282_vm0, %v38_v32  ;;  %5486 = vmatprep.mubr.msk.f32.mxu1 %vm282_vm0, %v152_v26  ;;  %v155_v32 = vld [vmem:[%s12154_s0 + $0x448] sm:$0xff]  ;;  %v184_v26 = vld [vmem:[%s12154_s0 + $0x530] sm:$0xff] }
  0x3c   :  { %5316 = vmatmul.mubr.msk.f32.gmra.mrb[20].mxu0 %vm282_vm0, %v39_v33  ;;  %5487 = vmatmul.mubr.msk.f32.gmra.mrb[6].mxu1 %vm282_vm0, %v153_v28  ;;  %v93_v33 = vld [vmem:[%s12154_s0 + $0x258] sm:$0xff] }
  0x3d   :  { %5318 = vmatprep.mubr.msk.f32.mxu0 %vm282_vm0, %v40_v34  ;;  %5489 = vmatprep.mubr.msk.f32.mxu1 %vm282_vm0, %v154_v30  ;;  %v156_v34 = vld [vmem:[%s12154_s0 + $0x450] sm:$0xff]  ;;  %v185_v28 = vld [vmem:[%s12154_s0 + $0x538] sm:$0xff]  ;;  %v186_v30 = vld [vmem:[%s12154_s0 + $0x540] sm:$0xff] }
  0x40   :  { %5319 = vmatmul.mubr.msk.f32.gmra.mrb[22].mxu0 %vm282_vm0, %v41_v35  ;;  %5490 = vmatmul.mubr.msk.f32.gmra.mrb[8].mxu1 %vm282_vm0, %v155_v32  ;;  %v94_v35 = vld [vmem:[%s12154_s0 + $0x260] sm:$0xff]  ;;  %v187_v32 = vld [vmem:[%s12154_s0 + $0x548] sm:$0xff] }
  0x41   :  { %5321 = vmatprep.mubr.msk.f32.mxu0 %vm282_vm0, %v42_v36  ;;  %5492 = vmatprep.mubr.msk.f32.mxu1 %vm282_vm0, %v156_v34  ;;  %v157_v36 = vld [vmem:[%s12154_s0 + $0x458] sm:$0xff]  ;;  %v188_v34 = vld [vmem:[%s12154_s0 + $0x550] sm:$0xff] }
  0x44   :  { %5322 = vmatmul.mubr.msk.f32.gmra.mrb[24].mxu0 %vm282_vm0, %v43_v37  ;;  %5493 = vmatmul.mubr.msk.f32.gmra.mrb[10].mxu1 %vm282_vm0, %v157_v36  ;;  %v95_v37 = vld [vmem:[%s12154_s0 + $0x268] sm:$0xff]  ;;  %v189_v36 = vld [vmem:[%s12154_s0 + $0x558] sm:$0xff] }
  0x45   :  { %5324 = vmatprep.mubr.msk.f32.mxu0 %vm282_vm0, %v44_v38  ;;  %v158_v38 = vld [vmem:[%s12154_s0 + $0x460] sm:$0xff] }
  0x46   :  { %5495 = vmatprep.mubr.msk.f32.mxu1 %vm282_vm0, %v158_v38 }
  0x48   :  { %5325 = vmatmul.mubr.msk.f32.gmra.mrb[26].mxu0 %vm282_vm0, %v45_v39  ;;  %v96_v39 = vld [vmem:[%s12154_s0 + $0x270] sm:$0xff] }
  0x49   :  { %5327 = vmatprep.mubr.msk.f32.mxu0 %vm282_vm0, %v46_v40  ;;  %v159_v40 = vld [vmem:[%s12154_s0 + $0x468] sm:$0xff] }
  0x4a   :  { %5496 = vmatmul.mubr.msk.f32.gmra.mrb[12].mxu1 %vm282_vm0, %v159_v40 }
  0x4c   :  { %5328 = vmatmul.mubr.msk.f32.gmra.mrb[28].mxu0 %vm282_vm0, %v47_v41  ;;  %v97_v41 = vld [vmem:[%s12154_s0 + $0x278] sm:$0xff] }
  0x4d   :  { %5330 = vmatprep.mubr.msk.f32.mxu0 %vm282_vm0, %v48_v42  ;;  %v160_v42 = vld [vmem:[%s12154_s0 + $0x470] sm:$0xff] }
  0x4e   :  { %5498 = vmatprep.mubr.msk.f32.mxu1 %vm282_vm0, %v160_v42  ;;  %v127_v42 = vld [vmem:[%s12154_s0 + $0x368] sm:$0xff] }
  0x50   :  { %5331 = vmatmul.mubr.msk.f32.gmra.mrb[30].mxu0 %vm282_vm0, %v49_v43  ;;  %v98_v43 = vld [vmem:[%s12154_s0 + $0x280] sm:$0xff] }
  0x51   :  { %5333 = vmatprep.mubr.msk.f32.mxu0 %vm282_vm0, %v50_v44  ;;  %v161_v44 = vld [vmem:[%s12154_s0 + $0x478] sm:$0xff] }
  0x52   :  { %5499 = vmatmul.mubr.msk.f32.gmra.mrb[14].mxu1 %vm282_vm0, %v161_v44  ;;  %v128_v44 = vld [vmem:[%s12154_s0 + $0x370] sm:$0xff] }
  0x54   :  { %5334 = vmatmul.mubr.msk.f32.gmra.mrb[32].mxu0 %vm282_vm0, %v51_v45  ;;  %v99_v45 = vld [vmem:[%s12154_s0 + $0x288] sm:$0xff] }
  0x55   :  { %5336 = vmatprep.mubr.msk.f32.mxu0 %vm282_vm0, %v52_v46  ;;  %v162_v46 = vld [vmem:[%s12154_s0 + $0x480] sm:$0xff] }
  0x56   :  { %5501 = vmatprep.mubr.msk.f32.mxu1 %vm282_vm0, %v162_v46 }
  0x58   :  { %5337 = vmatmul.mubr.msk.f32.gmra.mrb[34].mxu0 %vm282_vm0, %v53_v47  ;;  %v100_v47 = vld [vmem:[%s12154_s0 + $0x290] sm:$0xff] }
  0x59   :  { %5339 = vmatprep.mubr.msk.f32.mxu0 %vm282_vm0, %v54_v48  ;;  %v163_v48 = vld [vmem:[%s12154_s0 + $0x488] sm:$0xff] }
  0x5a   :  { %5502 = vmatmul.mubr.msk.f32.gmra.mrb[16].mxu1 %vm282_vm0, %v163_v48 }
  0x5c   :  { %5340 = vmatmul.mubr.msk.f32.gmra.mrb[36].mxu0 %vm282_vm0, %v55_v49  ;;  %v101_v49 = vld [vmem:[%s12154_s0 + $0x298] sm:$0xff] }
  0x5d   :  { %5342 = vmatprep.mubr.msk.f32.mxu0 %vm282_vm0, %v56_v50  ;;  %v164_v50 = vld [vmem:[%s12154_s0 + $0x490] sm:$0xff] }
  0x5e   :  { %5504 = vmatprep.mubr.msk.f32.mxu1 %vm282_vm0, %v164_v50 }
  0x60   :  { %5343 = vmatmul.mubr.msk.f32.gmra.mrb[38].mxu0 %vm282_vm0, %v57_v51  ;;  %v102_v51 = vld [vmem:[%s12154_s0 + $0x2a0] sm:$0xff] }
  0x61   :  { %5345 = vmatprep.mubr.msk.f32.mxu0 %vm282_vm0, %v58_v52  ;;  %v165_v52 = vld [vmem:[%s12154_s0 + $0x498] sm:$0xff] }
  0x62   :  { %5505 = vmatmul.mubr.msk.f32.gmra.mrb[18].mxu1 %vm282_vm0, %v165_v52  ;;  %v192_v52 = vld [vmem:[%s12154_s0 + $0x570] sm:$0xff] }
  0x64   :  { %5346 = vmatmul.mubr.msk.f32.gmra.mrb[40].mxu0 %vm282_vm0, %v59_v53  ;;  %v103_v53 = vld [vmem:[%s12154_s0 + $0x2a8] sm:$0xff] }
  0x65   :  { %5348 = vmatprep.mubr.msk.f32.mxu0 %vm282_vm0, %v60_v54  ;;  %v166_v54 = vld [vmem:[%s12154_s0 + $0x4a0] sm:$0xff] }
  0x66   :  { %5507 = vmatprep.mubr.msk.f32.mxu1 %vm282_vm0, %v166_v54  ;;  %v193_v54 = vld [vmem:[%s12154_s0 + $0x578] sm:$0xff] }
  0x68   :  { %5349 = vmatmul.mubr.msk.f32.gmra.mrb[42].mxu0 %vm282_vm0, %v61_v55  ;;  %v104_v55 = vld [vmem:[%s12154_s0 + $0x2b0] sm:$0xff] }
  0x69   :  { %5351 = vmatprep.mubr.msk.f32.mxu0 %vm282_vm0, %v62_v56  ;;  %v167_v56 = vld [vmem:[%s12154_s0 + $0x4a8] sm:$0xff] }
  0x6a   :  { %5508 = vmatmul.mubr.msk.f32.gmra.mrb[20].mxu1 %vm282_vm0, %v167_v56 }
  0x6c   :  { %5352 = vmatmul.mubr.msk.f32.gmra.mrb[44].mxu0 %vm282_vm0, %v63_v57  ;;  %v105_v57 = vld [vmem:[%s12154_s0 + $0x2b8] sm:$0xff] }
  0x6d   :  { %5354 = vmatprep.mubr.msk.f32.mxu0 %vm282_vm0, %v64_v58  ;;  %v168_v58 = vld [vmem:[%s12154_s0 + $0x4b0] sm:$0xff] }
  0x6e   :  { %5510 = vmatprep.mubr.msk.f32.mxu1 %vm282_vm0, %v168_v58 }
  0x70   :  { %5355 = vmatmul.mubr.msk.f32.gmra.mrb[46].mxu0 %vm282_vm0, %v65_v59  ;;  %v106_v59 = vld [vmem:[%s12154_s0 + $0x2c0] sm:$0xff] }
  0x71   :  { %5357 = vmatprep.mubr.msk.f32.mxu0 %vm282_vm0, %v66_v60  ;;  %v169_v60 = vld [vmem:[%s12154_s0 + $0x4b8] sm:$0xff] }
  0x72   :  { %5511 = vmatmul.mubr.msk.f32.gmra.mrb[22].mxu1 %vm282_vm0, %v169_v60 }
  0x74   :  { %5358 = vmatmul.mubr.msk.f32.gmra.mrb[48].mxu0 %vm282_vm0, %v67_v61  ;;  %v107_v61 = vld [vmem:[%s12154_s0 + $0x2c8] sm:$0xff] }
  0x75   :  { %5360 = vmatprep.mubr.msk.f32.mxu0 %vm282_vm0, %v68_v62  ;;  %v170_v62 = vld [vmem:[%s12154_s0 + $0x4c0] sm:$0xff] }
  0x76   :  { %5513 = vmatprep.mubr.msk.f32.mxu1 %vm282_vm0, %v170_v62 }
  0x78   :  { %5361 = vmatmul.mubr.msk.f32.gmra.mrb[50].mxu0 %vm282_vm0, %v69_v63  ;;  %v108_v63 = vld [vmem:[%s12154_s0 + $0x2d0] sm:$0xff] }
  0x79   :  { %5363 = vmatprep.mubr.msk.f32.mxu0 %vm282_vm0, %v70_v0  ;;  %v171_v0 = vld [vmem:[%s12154_s0 + $0x4c8] sm:$0xff] }
  0x7a   :  { %5514 = vmatmul.mubr.msk.f32.gmra.mrb[24].mxu1 %vm282_vm0, %v171_v0  ;;  %v194_v0 = vld [vmem:[%s12154_s0 + $0x580] sm:$0xff] }
  0x7c   :  { %5364 = vmatmul.mubr.msk.f32.gmra.mrb[52].mxu0 %vm282_vm0, %v71_v1  ;;  %v109_v1 = vld [vmem:[%s12154_s0 + $0x2d8] sm:$0xff] }
  0x7d   :  { %5366 = vmatprep.mubr.msk.f32.mxu0 %vm282_vm0, %v72_v2  ;;  %v172_v2 = vld [vmem:[%s12154_s0 + $0x4d0] sm:$0xff] }
  0x7e   :  { %5516 = vmatprep.mubr.msk.f32.mxu1 %vm282_vm0, %v172_v2  ;;  %v195_v2 = vld [vmem:[%s12154_s0 + $0x588] sm:$0xff] }
  0x80   :  { %5367 = vmatmul.mubr.msk.f32.gmra.mrb[54].mxu0 %vm282_vm0, %v73_v3  ;;  %v110_v3 = vld [vmem:[%s12154_s0 + $0x2e0] sm:$0xff] }
  0x81   :  { %5369 = vmatprep.mubr.msk.f32.mxu0 %vm282_vm0, %v74_v4  ;;  %v173_v4 = vld [vmem:[%s12154_s0 + $0x4d8] sm:$0xff] }
  0x82   :  { %5517 = vmatmul.mubr.msk.f32.gmra.mrb[26].mxu1 %vm282_vm0, %v173_v4 }
  0x84   :  { %5370 = vmatmul.mubr.msk.f32.gmra.mrb[56].mxu0 %vm282_vm0, %v75_v5  ;;  %v111_v5 = vld [vmem:[%s12154_s0 + $0x2e8] sm:$0xff] }
  0x85   :  { %5372 = vmatprep.mubr.msk.f32.mxu0 %vm282_vm0, %v76_v6  ;;  %v174_v6 = vld [vmem:[%s12154_s0 + $0x4e0] sm:$0xff] }
  0x86   :  { %5519 = vmatprep.mubr.msk.f32.mxu1 %vm282_vm0, %v174_v6 }
  0x88   :  { %5373 = vmatmul.mubr.msk.f32.gmra.mrb[58].mxu0 %vm282_vm0, %v77_v7  ;;  %v112_v7 = vld [vmem:[%s12154_s0 + $0x2f0] sm:$0xff] }
  0x89   :  { %5375 = vmatprep.mubr.msk.f32.mxu0 %vm282_vm0, %v78_v8  ;;  %v175_v8 = vld [vmem:[%s12154_s0 + $0x4e8] sm:$0xff] }
  0x8a   :  { %5520 = vmatmul.mubr.msk.f32.gmra.mrb[28].mxu1 %vm282_vm0, %v175_v8 }
  0x8c   :  { %5376 = vmatmul.mubr.msk.f32.gmra.mrb[60].mxu0 %vm282_vm0, %v79_v9  ;;  %v113_v9 = vld [vmem:[%s12154_s0 + $0x2f8] sm:$0xff] }
  0x8d   :  { %5378 = vmatprep.mubr.msk.f32.mxu0 %vm282_vm0, %v80_v10  ;;  %v176_v10 = vld [vmem:[%s12154_s0 + $0x4f0] sm:$0xff] }
  0x8e   :  { %5522 = vmatprep.mubr.msk.f32.mxu1 %vm282_vm0, %v176_v10 }
  0x90   :  { %5379 = vmatmul.mubr.msk.f32.gmra.mrb[62].mxu0 %vm282_vm0, %v81_v11  ;;  %v114_v11 = vld [vmem:[%s12154_s0 + $0x300] sm:$0xff] }
  0x91   :  { %5381 = vmatprep.mubr.msk.f32.mxu0 %vm282_vm0, %v82_v12  ;;  %v177_v12 = vld [vmem:[%s12154_s0 + $0x4f8] sm:$0xff] }
  0x92   :  { %5523 = vmatmul.mubr.msk.f32.gmra.mrb[30].mxu1 %vm282_vm0, %v177_v12  ;;  %v196_v12 = vld [vmem:[%s12154_s0 + $0x590] sm:$0xff] }
  0x93   :  { %5525 = vmatprep.mubr.msk.f32.mxu1 %vm282_vm0, %v178_v14  ;;  %v197_v14 = vld [vmem:[%s12154_s0 + $0x598] sm:$0xff] }
  0x94   :  { %5382 = vmatmul.mubr.msk.f32.gmra.mrb[64].mxu0 %vm282_vm0, %v83_v13  ;;  %v115_v13 = vld [vmem:[%s12154_s0 + $0x308] sm:$0xff] }
  0x95   :  { %5384 = vmatprep.mubr.msk.f32.mxu0 %vm282_vm0, %v84_v15  ;;  %v116_v15 = vld [vmem:[%s12154_s0 + $0x310] sm:$0xff] }
  0x96   :  { %5526 = vmatmul.mubr.msk.f32.gmra.mrb[32].mxu1 %vm282_vm0, %v179_v16 }
  0x97   :  { %5528 = vmatprep.mubr.msk.f32.mxu1 %vm282_vm0, %v180_v18 }
  0x98   :  { %5385 = vmatmul.mubr.msk.f32.gmra.mrb[66].mxu0 %vm282_vm0, %v85_v17  ;;  %v117_v17 = vld [vmem:[%s12154_s0 + $0x318] sm:$0xff] }
  0x99   :  { %5387 = vmatprep.mubr.msk.f32.mxu0 %vm282_vm0, %v86_v19  ;;  %v118_v19 = vld [vmem:[%s12154_s0 + $0x320] sm:$0xff] }
  0x9a   :  { %5529 = vmatmul.mubr.msk.f32.gmra.mrb[34].mxu1 %vm282_vm0, %v181_v20 }
  0x9b   :  { %5531 = vmatprep.mubr.msk.f32.mxu1 %vm282_vm0, %v182_v22 }
  0x9c   :  { %5388 = vmatmul.mubr.msk.f32.gmra.mrb[68].mxu0 %vm282_vm0, %v87_v21  ;;  %v119_v21 = vld [vmem:[%s12154_s0 + $0x328] sm:$0xff] }
  0x9d   :  { %5390 = vmatprep.mubr.msk.f32.mxu0 %vm282_vm0, %v88_v23  ;;  %v120_v23 = vld [vmem:[%s12154_s0 + $0x330] sm:$0xff] }
  0x9e   :  { %5532 = vmatmul.mubr.msk.f32.gmra.mrb[36].mxu1 %vm282_vm0, %v183_v24  ;;  %v198_v24 = vld [vmem:[%s12154_s0 + $0x5a0] sm:$0xff] }
  0x9f   :  { %5534 = vmatprep.mubr.msk.f32.mxu1 %vm282_vm0, %v184_v26  ;;  %v199_v26 = vld [vmem:[%s12154_s0 + $0x5a8] sm:$0xff] }
  0xa0   :  { %5391 = vmatmul.mubr.msk.f32.gmra.mrb[70].mxu0 %vm282_vm0, %v89_v25  ;;  %v121_v25 = vld [vmem:[%s12154_s0 + $0x338] sm:$0xff] }
  0xa1   :  { %5393 = vmatprep.mubr.msk.f32.mxu0 %vm282_vm0, %v90_v27  ;;  %v122_v27 = vld [vmem:[%s12154_s0 + $0x340] sm:$0xff] }
  0xa2   :  { %5535 = vmatmul.mubr.msk.f32.gmra.mrb[38].mxu1 %vm282_vm0, %v185_v28 }
  0xa3   :  { %5537 = vmatprep.mubr.msk.f32.mxu1 %vm282_vm0, %v186_v30 }
  0xa4   :  { %5394 = vmatmul.mubr.msk.f32.gmra.mrb[72].mxu0 %vm282_vm0, %v91_v29  ;;  %v123_v29 = vld [vmem:[%s12154_s0 + $0x348] sm:$0xff] }
  0xa5   :  { %5396 = vmatprep.mubr.msk.f32.mxu0 %vm282_vm0, %v92_v31  ;;  %v124_v31 = vld [vmem:[%s12154_s0 + $0x350] sm:$0xff] }
  0xa6   :  { %5538 = vmatmul.mubr.msk.f32.gmra.mrb[40].mxu1 %vm282_vm0, %v187_v32 }
  0xa7   :  { %5540 = vmatprep.mubr.msk.f32.mxu1 %vm282_vm0, %v188_v34 }
  0xa8   :  { %5397 = vmatmul.mubr.msk.f32.gmra.mrb[74].mxu0 %vm282_vm0, %v93_v33  ;;  %v125_v33 = vld [vmem:[%s12154_s0 + $0x358] sm:$0xff] }
  0xa9   :  { %5399 = vmatprep.mubr.msk.f32.mxu0 %vm282_vm0, %v94_v35  ;;  %v126_v35 = vld [vmem:[%s12154_s0 + $0x360] sm:$0xff] }
  0xaa   :  { %5541 = vmatmul.mubr.msk.f32.gmra.mrb[42].mxu1 %vm282_vm0, %v189_v36  ;;  %v200_v36 = vld [vmem:[%s12154_s0 + $0x5b0] sm:$0xff] }
  0xac   :  { %5400 = vmatmul.mubr.msk.f32.gmra.mrb[76].mxu0 %vm282_vm0, %v95_v37 }
  0xad   :  { %5402 = vmatprep.mubr.msk.f32.mxu0 %vm282_vm0, %v96_v39 }
  0xb0   :  { %5403 = vmatmul.mubr.msk.f32.gmra.mrb[78].mxu0 %vm282_vm0, %v97_v41 }
  0xb1   :  { %5405 = vmatprep.mubr.msk.f32.mxu0 %vm282_vm0, %v98_v43  ;;  %v190_v43 = vld [vmem:[%s12154_s0 + $0x560] sm:$0xff] }
  0xb2   :  { %5543 = vmatprep.mubr.msk.f32.mxu1 %vm282_vm0, %v190_v43 }
  0xb4   :  { %5406 = vmatmul.mubr.msk.f32.gmra.mrb[80].mxu0 %vm282_vm0, %v99_v45  ;;  %v191_v45 = vld [vmem:[%s12154_s0 + $0x568] sm:$0xff] }
  0xb5   :  { %5408 = vmatprep.mubr.msk.f32.mxu0 %vm282_vm0, %v100_v47  ;;  %5544 = vmatmul.mubr.msk.f32.gmra.mrb[44].mxu1 %vm282_vm0, %v191_v45 }
  0xb6   :  { %5546 = vmatprep.mubr.msk.f32.mxu1 %vm282_vm0, %v192_v52  ;;  %v202_v52 = vld [vmem:[%s12154_s0 + $0x5c0] sm:$0xff] }
  0xb8   :  { %5409 = vmatmul.mubr.msk.f32.gmra.mrb[82].mxu0 %vm282_vm0, %v101_v49 }
  0xb9   :  { %5411 = vmatprep.mubr.msk.f32.mxu0 %vm282_vm0, %v102_v51  ;;  %v129_v51 = vld [vmem:[%s12154_s0 + $0x378] sm:$0xff]  ;;  %5547 = vmatmul.mubr.msk.f32.gmra.mrb[46].mxu1 %vm282_vm0, %v193_v54  ;;  %v203_v54 = vld [vmem:[%s12154_s0 + $0x5c8] sm:$0xff] }
  0xba   :  { %5549 = vmatprep.mubr.msk.f32.mxu1 %vm282_vm0, %v194_v0 }
  0xbc   :  { %5412 = vmatmul.mubr.msk.f32.gmra.mrb[84].mxu0 %vm282_vm0, %v103_v53  ;;  %v130_v53 = vld [vmem:[%s12154_s0 + $0x380] sm:$0xff] }
  0xbd   :  { %5414 = vmatprep.mubr.msk.f32.mxu0 %vm282_vm0, %v104_v55  ;;  %5550 = vmatmul.mubr.msk.f32.gmra.mrb[48].mxu1 %vm282_vm0, %v195_v2  ;;  %v204_v2 = vld [vmem:[%s12154_s0 + $0x5d0] sm:$0xff] }
  0xbe   :  { %5552 = vmatprep.mubr.msk.f32.mxu1 %vm282_vm0, %v196_v12 }
  0xc0   :  { %5415 = vmatmul.mubr.msk.f32.gmra.mrb[86].mxu0 %vm282_vm0, %v105_v57 }
  0xc1   :  { %5417 = vmatprep.mubr.msk.f32.mxu0 %vm282_vm0, %v106_v59  ;;  %5553 = vmatmul.mubr.msk.f32.gmra.mrb[50].mxu1 %vm282_vm0, %v197_v14 }
  0xc2   :  { %5555 = vmatprep.mubr.msk.f32.mxu1 %vm282_vm0, %v198_v24 }
  0xc4   :  { %5418 = vmatmul.mubr.msk.f32.gmra.mrb[88].mxu0 %vm282_vm0, %v107_v61 }
  0xc5   :  { %5420 = vmatprep.mubr.msk.f32.mxu0 %vm282_vm0, %v108_v63  ;;  %v131_v63 = vld [vmem:[%s12154_s0 + $0x388] sm:$0xff]  ;;  %5556 = vmatmul.mubr.msk.f32.gmra.mrb[52].mxu1 %vm282_vm0, %v199_v26 }
  0xc6   :  { %5558 = vmatprep.mubr.msk.f32.mxu1 %vm282_vm0, %v200_v36 }
  0xc8   :  { %5421 = vmatmul.mubr.msk.f32.gmra.mrb[90].mxu0 %vm282_vm0, %v109_v1  ;;  %v132_v1 = vld [vmem:[%s12154_s0 + $0x390] sm:$0xff] }
  0xc9   :  { %5423 = vmatprep.mubr.msk.f32.mxu0 %vm282_vm0, %v110_v3 }
  0xcc   :  { %5424 = vmatmul.mubr.msk.f32.gmra.mrb[92].mxu0 %vm282_vm0, %v111_v5 }
  0xcd   :  { %5426 = vmatprep.mubr.msk.f32.mxu0 %vm282_vm0, %v112_v7 }
  0xd0   :  { %5427 = vmatmul.mubr.msk.f32.gmra.mrb[94].mxu0 %vm282_vm0, %v113_v9 }
  0xd1   :  { %5429 = vmatprep.mubr.msk.f32.mxu0 %vm282_vm0, %v114_v11  ;;  %v133_v11 = vld [vmem:[%s12154_s0 + $0x398] sm:$0xff] }
  0xd4   :  { %5430 = vmatmul.mubr.msk.f32.gmra.mrb[96].mxu0 %vm282_vm0, %v115_v13  ;;  %v134_v13 = vld [vmem:[%s12154_s0 + $0x3a0] sm:$0xff] }
  0xd5   :  { %5432 = vmatprep.mubr.msk.f32.mxu0 %vm282_vm0, %v116_v15 }
  0xd8   :  { %5433 = vmatmul.mubr.msk.f32.gmra.mrb[98].mxu0 %vm282_vm0, %v117_v17 }
  0xd9   :  { %5435 = vmatprep.mubr.msk.f32.mxu0 %vm282_vm0, %v118_v19 }
  0xdc   :  { %5436 = vmatmul.mubr.msk.f32.gmra.mrb[100].mxu0 %vm282_vm0, %v119_v21 }
  0xdd   :  { %5438 = vmatprep.mubr.msk.f32.mxu0 %vm282_vm0, %v120_v23  ;;  %v135_v23 = vld [vmem:[%s12154_s0 + $0x3a8] sm:$0xff] }
  0xe0   :  { %5439 = vmatmul.mubr.msk.f32.gmra.mrb[102].mxu0 %vm282_vm0, %v121_v25  ;;  %v136_v25 = vld [vmem:[%s12154_s0 + $0x3b0] sm:$0xff] }
  0xe1   :  { %5441 = vmatprep.mubr.msk.f32.mxu0 %vm282_vm0, %v122_v27 }
  0xe4   :  { %5442 = vmatmul.mubr.msk.f32.gmra.mrb[104].mxu0 %vm282_vm0, %v123_v29 }
  0xe5   :  { %5444 = vmatprep.mubr.msk.f32.mxu0 %vm282_vm0, %v124_v31 }
  0xe7   :  { %v6383_v37 = vpop.f32.mrb[0].mxu0 }
  0xe8   :  { %12655 = vst [vmem:[#allocation5_spill] sm:$0xff] %v6383_v37  ;;  %v2659_v38 = vmul.f32 %v6383_v37, %v6383_v37  ;;  %v6388_v39 = vpop.f32.mrb[1].mxu0  ;;  %5445 = vmatmul.mubr.msk.f32.gmra.mrb[106].mxu0 %vm282_vm0, %v125_v33 }
  0xe9   :  { %12656 = vst [vmem:[#allocation6_spill] sm:$0xff] %v6388_v39  ;;  %v2396_v40 = vadd.f32 %v6383_v37, %v6388_v39  ;;  %v2658_v41 = vmul.f32 %v6388_v39, %v6388_v39  ;;  %5447 = vmatprep.mubr.msk.f32.mxu0 %vm282_vm0, %v126_v35  ;;  %v137_v35 = vld [vmem:[%s12154_s0 + $0x3b8] sm:$0xff] }
  0xeb   :  { %v2914_v46 = vadd.f32 %v2659_v38, %v2658_v41  ;;  %v6409_v47 = vpop.f32.mrb[2].mxu0  ;;  %v138_v38 = vld [vmem:[%s12154_s0 + $0x3c0] sm:$0xff] }
  0xec   :  { %12657 = vst [vmem:[#allocation7_spill] sm:$0xff] %v6409_v47  ;;  %v6412_v48 = vpop.f32.mrb[3].mxu0  ;;  %5448 = vmatmul.mubr.msk.f32.gmra.mrb[108].mxu0 %vm282_vm0, %v127_v42  ;;  %v2661_v55 = vmul.f32 %v6409_v47, %v6409_v47 }
  0xed   :  { %12658 = vst [vmem:[#allocation8_spill] sm:$0xff] %v6412_v48  ;;  %v2397_v49 = vadd.f32 %v2396_v40, %v6412_v48  ;;  %v2660_v50 = vmul.f32 %v6412_v48, %v6412_v48  ;;  %5450 = vmatprep.mubr.msk.f32.mxu0 %vm282_vm0, %v128_v44  ;;  %v201_v40 = vld [vmem:[%s12154_s0 + $0x5b8] sm:$0xff] }
  0xee   :  { %5559 = vmatmul.mubr.msk.f32.gmra.mrb[54].mxu1 %vm282_vm0, %v201_v40 }
  0xef   :  { %v2398_v56 = vadd.f32 %v6409_v47, %v2397_v49  ;;  %v2915_v57 = vadd.f32 %v2914_v46, %v2660_v50  ;;  %v6435_v58 = vpop.f32.mrb[4].mxu0  ;;  %5561 = vmatprep.mubr.msk.f32.mxu1 %vm282_vm0, %v202_v52 }
  0xf0   :  { %12659 = vst [vmem:[#allocation9_spill] sm:$0xff] %v6435_v58  ;;  %v6438_v59 = vpop.f32.mrb[5].mxu0  ;;  %5451 = vmatmul.mubr.msk.f32.gmra.mrb[110].mxu0 %vm282_vm0, %v129_v51  ;;  %v2663_v3 = vmul.f32 %v6435_v58, %v6435_v58  ;;  %v139_v51 = vld [vmem:[%s12154_s0 + $0x3c8] sm:$0xff] }
  0xf1   :  { %12660 = vst [vmem:[#allocation10_spill] sm:$0xff] %v6438_v59  ;;  %v2916_v60 = vadd.f32 %v2915_v57, %v2661_v55  ;;  %v2399_v61 = vadd.f32 %v2398_v56, %v6438_v59  ;;  %v2662_v62 = vmul.f32 %v6438_v59, %v6438_v59  ;;  %5453 = vmatprep.mubr.msk.f32.mxu0 %vm282_vm0, %v130_v53  ;;  %v140_v53 = vld [vmem:[%s12154_s0 + $0x3d0] sm:$0xff] }
  0xf2   :  { %5562 = vmatmul.mubr.msk.f32.gmra.mrb[56].mxu1 %vm282_vm0, %v203_v54 }
  0xf3   :  { %v2400_v4 = vadd.f32 %v6435_v58, %v2399_v61  ;;  %v2917_v5 = vadd.f32 %v2916_v60, %v2662_v62  ;;  %v6461_v6 = vpop.f32.mrb[6].mxu0  ;;  %5564 = vmatprep.mubr.msk.f32.mxu1 %vm282_vm0, %v204_v2 }
  0xf4   :  { %12661 = vst [vmem:[#allocation11_spill] sm:$0xff] %v6461_v6  ;;  %v6464_v7 = vpop.f32.mrb[7].mxu0  ;;  %5454 = vmatmul.mubr.msk.f32.gmra.mrb[112].mxu0 %vm282_vm0, %v131_v63  ;;  %v2665_v15 = vmul.f32 %v6461_v6, %v6461_v6 }
  0xf5   :  { %12662 = vst [vmem:[#allocation12_spill] sm:$0xff] %v6464_v7  ;;  %v2918_v8 = vadd.f32 %v2917_v5, %v2663_v3  ;;  %v2401_v9 = vadd.f32 %v2400_v4, %v6464_v7  ;;  %v2664_v10 = vmul.f32 %v6464_v7, %v6464_v7  ;;  %5456 = vmatprep.mubr.msk.f32.mxu0 %vm282_vm0, %v132_v1  ;;  %v141_v1 = vld [vmem:[%s12154_s0 + $0x3d8] sm:$0xff]  ;;  %v142_v3 = vld [vmem:[%s12154_s0 + $0x3e0] sm:$0xff] }
  0xf6   :  { %v205_v4 = vld [vmem:[%s12154_s0 + $0x5d8] sm:$0xff] }
  0xf7   :  { %v2402_v16 = vadd.f32 %v6461_v6, %v2401_v9  ;;  %v2919_v17 = vadd.f32 %v2918_v8, %v2664_v10  ;;  %v6487_v18 = vpop.f32.mrb[8].mxu0  ;;  %5565 = vmatmul.mubr.msk.f32.gmra.mrb[58].mxu1 %vm282_vm0, %v205_v4 }
  0xf8   :  { %12663 = vst [vmem:[#allocation13_spill] sm:$0xff] %v6487_v18  ;;  %v6490_v19 = vpop.f32.mrb[9].mxu0  ;;  %5457 = vmatmul.mubr.msk.f32.gmra.mrb[114].mxu0 %vm282_vm0, %v133_v11  ;;  %v2667_v27 = vmul.f32 %v6487_v18, %v6487_v18 }
  0xf9   :  { %12664 = vst [vmem:[#allocation14_spill] sm:$0xff] %v6490_v19  ;;  %v2920_v20 = vadd.f32 %v2919_v17, %v2665_v15  ;;  %v2403_v21 = vadd.f32 %v2402_v16, %v6490_v19  ;;  %v2666_v22 = vmul.f32 %v6490_v19, %v6490_v19  ;;  %5459 = vmatprep.mubr.msk.f32.mxu0 %vm282_vm0, %v134_v13  ;;  %v143_v15 = vld [vmem:[%s12154_s0 + $0x3e8] sm:$0xff]  ;;  %v206_v16 = vld [vmem:[%s12154_s0 + $0x5e0] sm:$0xff]  ;;  %v144_v17 = vld [vmem:[%s12154_s0 + $0x3f0] sm:$0xff] }
  0xfa   :  { %5567 = vmatprep.mubr.msk.f32.mxu1 %vm282_vm0, %v206_v16 }
  0xfb   :  { %v2404_v28 = vadd.f32 %v6487_v18, %v2403_v21  ;;  %v2921_v29 = vadd.f32 %v2920_v20, %v2666_v22  ;;  %v6513_v30 = vpop.f32.mrb[10].mxu0  ;;  %v207_v20 = vld [vmem:[%s12154_s0 + $0x5e8] sm:$0xff] }
  0xfc   :  { %12665 = vst [vmem:[#allocation15_spill] sm:$0xff] %v6513_v30  ;;  %v6516_v31 = vpop.f32.mrb[11].mxu0  ;;  %5460 = vmatmul.mubr.msk.f32.gmra.mrb[116].mxu0 %vm282_vm0, %v135_v23  ;;  %v2669_v41 = vmul.f32 %v6513_v30, %v6513_v30  ;;  %5568 = vmatmul.mubr.msk.f32.gmra.mrb[60].mxu1 %vm282_vm0, %v207_v20 }
  0xfd   :  { %12666 = vst [vmem:[#allocation16_spill] sm:$0xff] %v6516_v31  ;;  %v2922_v32 = vadd.f32 %v2921_v29, %v2667_v27  ;;  %v2405_v33 = vadd.f32 %v2404_v28, %v6516_v31  ;;  %v2668_v34 = vmul.f32 %v6516_v31, %v6516_v31  ;;  %5462 = vmatprep.mubr.msk.f32.mxu0 %vm282_vm0, %v136_v25  ;;  %v145_v29 = vld [vmem:[%s12154_s0 + $0x3f8] sm:$0xff] }
  0xff   :  { %v2406_v42 = vadd.f32 %v6513_v30, %v2405_v33  ;;  %v2923_v43 = vadd.f32 %v2922_v32, %v2668_v34  ;;  %v6539_v44 = vpop.f32.mrb[12].mxu0  ;;  %v208_v32 = vld [vmem:[%s12154_s0 + $0x5f0] sm:$0xff]  ;;  %v209_v33 = vld [vmem:[%s12154_s0 + $0x5f8] sm:$0xff] }
 0x100   :  { %12667 = vst [vmem:[#allocation17_spill] sm:$0xff] %v6539_v44  ;;  %v6542_v45 = vpop.f32.mrb[13].mxu0  ;;  %5463 = vmatmul.mubr.msk.f32.gmra.mrb[118].mxu0 %vm282_vm0, %v137_v35  ;;  %v2671_v55 = vmul.f32 %v6539_v44, %v6539_v44  ;;  %5570 = vmatprep.mubr.msk.f32.mxu1 %vm282_vm0, %v208_v32 }
 0x101   :  { %12668 = vst [vmem:[#allocation18_spill] sm:$0xff] %v6542_v45  ;;  %v2924_v46 = vadd.f32 %v2923_v43, %v2669_v41  ;;  %v2407_v49 = vadd.f32 %v2406_v42, %v6542_v45  ;;  %v2670_v50 = vmul.f32 %v6542_v45, %v6542_v45  ;;  %5465 = vmatprep.mubr.msk.f32.mxu0 %vm282_vm0, %v138_v38 }
 0x102   :  { %5571 = vmatmul.mubr.msk.f32.gmra.mrb[62].mxu1 %vm282_vm0, %v209_v33 }
 0x103   :  { %v2408_v56 = vadd.f32 %v6539_v44, %v2407_v49  ;;  %v2925_v57 = vadd.f32 %v2924_v46, %v2670_v50  ;;  %v6565_v60 = vpop.f32.mrb[14].mxu0  ;;  %v210_v46 = vld [vmem:[%s12154_s0 + $0x600] sm:$0xff]  ;;  %v211_v49 = vld [vmem:[%s12154_s0 + $0x608] sm:$0xff] }
 0x104   :  { %12669 = vst [vmem:[#allocation19_spill] sm:$0xff] %v6565_v60  ;;  %v6568_v61 = vpop.f32.mrb[15].mxu0  ;;  %5466 = vmatmul.mubr.msk.f32.gmra.mrb[120].mxu0 %vm282_vm0, %v139_v51  ;;  %v2673_v5 = vmul.f32 %v6565_v60, %v6565_v60  ;;  %5573 = vmatprep.mubr.msk.f32.mxu1 %vm282_vm0, %v210_v46 }
 0x105   :  { %12670 = vst [vmem:[#allocation20_spill] sm:$0xff] %v6568_v61  ;;  %v2926_v62 = vadd.f32 %v2925_v57, %v2671_v55  ;;  %v2409_v63 = vadd.f32 %v2408_v56, %v6568_v61  ;;  %v2672_v0 = vmul.f32 %v6568_v61, %v6568_v61  ;;  %5468 = vmatprep.mubr.msk.f32.mxu0 %vm282_vm0, %v140_v53 }
 0x106   :  { %5574 = vmatmul.mubr.msk.f32.gmra.mrb[64].mxu1 %vm282_vm0, %v211_v49 }
 0x107   :  { %v2410_v8 = vadd.f32 %v6565_v60, %v2409_v63  ;;  %v2927_v9 = vadd.f32 %v2926_v62, %v2672_v0  ;;  %v6591_v10 = vpop.f32.mrb[16].mxu0  ;;  %v212_v62 = vld [vmem:[%s12154_s0 + $0x610] sm:$0xff]  ;;  %v213_v63 = vld [vmem:[%s12154_s0 + $0x618] sm:$0xff] }
 0x108   :  { %12671 = vst [vmem:[#allocation21_spill] sm:$0xff] %v6591_v10  ;;  %v6594_v11 = vpop.f32.mrb[17].mxu0  ;;  %5469 = vmatmul.mubr.msk.f32.gmra.mrb[122].mxu0 %vm282_vm0, %v141_v1  ;;  %v2675_v21 = vmul.f32 %v6591_v10, %v6591_v10  ;;  %5576 = vmatprep.mubr.msk.f32.mxu1 %vm282_vm0, %v212_v62  ;;  %v220_v62 = vld [vmem:[%s12154_s0 + $0x650] sm:$0xff] }
 0x109   :  { %12672 = vst [vmem:[#allocation22_spill] sm:$0xff] %v6594_v11  ;;  %v2928_v12 = vadd.f32 %v2927_v9, %v2673_v5  ;;  %v2411_v13 = vadd.f32 %v2410_v8, %v6594_v11  ;;  %v2674_v14 = vmul.f32 %v6594_v11, %v6594_v11  ;;  %5471 = vmatprep.mubr.msk.f32.mxu0 %vm282_vm0, %v142_v3 }
 0x10a   :  { %5577 = vmatmul.mubr.msk.f32.gmra.mrb[66].mxu1 %vm282_vm0, %v213_v63  ;;  %v221_v63 = vld [vmem:[%s12154_s0 + $0x658] sm:$0xff] }
 0x10b   :  { %v2412_v22 = vadd.f32 %v6591_v10, %v2411_v13  ;;  %v2929_v23 = vadd.f32 %v2928_v12, %v2674_v14  ;;  %v6617_v24 = vpop.f32.mrb[18].mxu0  ;;  %v214_v12 = vld [vmem:[%s12154_s0 + $0x620] sm:$0xff]  ;;  %v215_v13 = vld [vmem:[%s12154_s0 + $0x628] sm:$0xff] }
 0x10c   :  { %12673 = vst [vmem:[#allocation23_spill] sm:$0xff] %v6617_v24  ;;  %v6620_v25 = vpop.f32.mrb[19].mxu0  ;;  %5472 = vmatmul.mubr.msk.f32.gmra.mrb[124].mxu0 %vm282_vm0, %v143_v15  ;;  %v2677_v34 = vmul.f32 %v6617_v24, %v6617_v24  ;;  %5579 = vmatprep.mubr.msk.f32.mxu1 %vm282_vm0, %v214_v12 }
 0x10d   :  { %12674 = vst [vmem:[#allocation24_spill] sm:$0xff] %v6620_v25  ;;  %v2930_v26 = vadd.f32 %v2929_v23, %v2675_v21  ;;  %v2413_v27 = vadd.f32 %v2412_v22, %v6620_v25  ;;  %v2676_v28 = vmul.f32 %v6620_v25, %v6620_v25  ;;  %5474 = vmatprep.mubr.msk.f32.mxu0 %vm282_vm0, %v144_v17 }
 0x10e   :  { %5580 = vmatmul.mubr.msk.f32.gmra.mrb[68].mxu1 %vm282_vm0, %v215_v13 }
 0x10f   :  { %v2414_v35 = vadd.f32 %v6617_v24, %v2413_v27  ;;  %v2931_v36 = vadd.f32 %v2930_v26, %v2676_v28  ;;  %v6640_v38 = vpop.f32.mrb[20].mxu0  ;;  %v216_v26 = vld [vmem:[%s12154_s0 + $0x630] sm:$0xff]  ;;  %v217_v27 = vld [vmem:[%s12154_s0 + $0x638] sm:$0xff] }
 0x110   :  { %12675 = vst [vmem:[#allocation25_spill] sm:$0xff] %v6640_v38  ;;  %v6643_v40 = vpop.f32.mrb[21].mxu0  ;;  %5475 = vmatmul.mubr.msk.f32.gmra.mrb[126].mxu0 %vm282_vm0, %v145_v29  ;;  %v2679_v50 = vmul.f32 %v6640_v38, %v6640_v38  ;;  %5582 = vmatprep.mubr.msk.f32.mxu1 %vm282_vm0, %v216_v26 }
 0x111   :  { %12676 = vst [vmem:[#allocation26_spill] sm:$0xff] %v6643_v40  ;;  %v2932_v41 = vadd.f32 %v2931_v36, %v2677_v34  ;;  %v2415_v42 = vadd.f32 %v2414_v35, %v6643_v40  ;;  %v2678_v43 = vmul.f32 %v6643_v40, %v6643_v40 }
 0x112   :  { %5583 = vmatmul.mubr.msk.f32.gmra.mrb[70].mxu1 %vm282_vm0, %v217_v27 }
 0x113   :  { %v2416_v51 = vadd.f32 %v6640_v38, %v2415_v42  ;;  %v2933_v52 = vadd.f32 %v2932_v41, %v2678_v43  ;;  %v6659_v53 = vpop.f32.mrb[22].mxu0  ;;  %v218_v42 = vld [vmem:[%s12154_s0 + $0x640] sm:$0xff]  ;;  %v219_v43 = vld [vmem:[%s12154_s0 + $0x648] sm:$0xff] }
 0x114   :  { %12677 = vst [vmem:[#allocation27_spill] sm:$0xff] %v6659_v53  ;;  %v6662_v54 = vpop.f32.mrb[23].mxu0  ;;  %v2681_v0 = vmul.f32 %v6659_v53, %v6659_v53  ;;  %5585 = vmatprep.mubr.msk.f32.mxu1 %vm282_vm0, %v218_v42 }
 0x115   :  { %12678 = vst [vmem:[#allocation28_spill] sm:$0xff] %v6662_v54  ;;  %v2934_v55 = vadd.f32 %v2933_v52, %v2679_v50  ;;  %v2417_v56 = vadd.f32 %v2416_v51, %v6662_v54  ;;  %v2680_v57 = vmul.f32 %v6662_v54, %v6662_v54 }
 0x116   :  { %5586 = vmatmul.mubr.msk.f32.gmra.mrb[72].mxu1 %vm282_vm0, %v219_v43 }
 0x117   :  { %v2418_v1 = vadd.f32 %v6659_v53, %v2417_v56  ;;  %v2935_v2 = vadd.f32 %v2934_v55, %v2680_v57  ;;  %v6677_v3 = vpop.f32.mrb[24].mxu0  ;;  %5588 = vmatprep.mubr.msk.f32.mxu1 %vm282_vm0, %v220_v62 }
 0x118   :  { %12679 = vst [vmem:[#allocation29_spill] sm:$0xff] %v6677_v3  ;;  %v6680_v4 = vpop.f32.mrb[25].mxu0  ;;  %v2683_v14 = vmul.f32 %v6677_v3, %v6677_v3 }
 0x119   :  { %12680 = vst [vmem:[#allocation30_spill] sm:$0xff] %v6680_v4  ;;  %v2936_v5 = vadd.f32 %v2935_v2, %v2681_v0  ;;  %v2419_v8 = vadd.f32 %v2418_v1, %v6680_v4  ;;  %v2682_v9 = vmul.f32 %v6680_v4, %v6680_v4 }
 0x11a   :  { %5589 = vmatmul.mubr.msk.f32.gmra.mrb[74].mxu1 %vm282_vm0, %v221_v63 }
 0x11b   :  { %v2420_v15 = vadd.f32 %v6677_v3, %v2419_v8  ;;  %v2937_v16 = vadd.f32 %v2936_v5, %v2682_v9  ;;  %v6695_v17 = vpop.f32.mrb[26].mxu0 }
 0x11c   :  { %12681 = vst [vmem:[#allocation31_spill] sm:$0xff] %v6695_v17  ;;  %v6698_v20 = vpop.f32.mrb[27].mxu0  ;;  %v2685_v28 = vmul.f32 %v6695_v17, %v6695_v17 }
 0x11d   :  { %12682 = vst [vmem:[#allocation32_spill] sm:$0xff] %v6698_v20  ;;  %v2938_v21 = vadd.f32 %v2937_v16, %v2683_v14  ;;  %v2421_v22 = vadd.f32 %v2420_v15, %v6698_v20  ;;  %v2684_v23 = vmul.f32 %v6698_v20, %v6698_v20  ;;  %v222_v14 = vld [vmem:[%s12154_s0 + $0x660] sm:$0xff]  ;;  %v223_v15 = vld [vmem:[%s12154_s0 + $0x668] sm:$0xff] }
 0x11e   :  { %5591 = vmatprep.mubr.msk.f32.mxu1 %vm282_vm0, %v222_v14  ;;  %v228_v14 = vld [vmem:[%s12154_s0 + $0x690] sm:$0xff] }
 0x11f   :  { %v2422_v29 = vadd.f32 %v6695_v17, %v2421_v22  ;;  %v2939_v32 = vadd.f32 %v2938_v21, %v2684_v23  ;;  %v6713_v33 = vpop.f32.mrb[28].mxu0  ;;  %5592 = vmatmul.mubr.msk.f32.gmra.mrb[76].mxu1 %vm282_vm0, %v223_v15  ;;  %v229_v15 = vld [vmem:[%s12154_s0 + $0x698] sm:$0xff] }
 0x120   :  { %12683 = vst [vmem:[#allocation33_spill] sm:$0xff] %v6713_v33  ;;  %v6716_v34 = vpop.f32.mrb[29].mxu0  ;;  %v2687_v46 = vmul.f32 %v6713_v33, %v6713_v33 }
 0x121   :  { %12684 = vst [vmem:[#allocation34_spill] sm:$0xff] %v6716_v34  ;;  %v2940_v35 = vadd.f32 %v2939_v32, %v2685_v28  ;;  %v2423_v36 = vadd.f32 %v2422_v29, %v6716_v34  ;;  %v2686_v41 = vmul.f32 %v6716_v34, %v6716_v34  ;;  %v224_v32 = vld [vmem:[%s12154_s0 + $0x670] sm:$0xff] }
 0x122   :  { %5594 = vmatprep.mubr.msk.f32.mxu1 %vm282_vm0, %v224_v32 }
 0x123   :  { %v2424_v49 = vadd.f32 %v6713_v33, %v2423_v36  ;;  %v2941_v50 = vadd.f32 %v2940_v35, %v2686_v41  ;;  %v6731_v51 = vpop.f32.mrb[30].mxu0  ;;  %v225_v35 = vld [vmem:[%s12154_s0 + $0x678] sm:$0xff] }
 0x124   :  { %12685 = vst [vmem:[#allocation35_spill] sm:$0xff] %v6731_v51  ;;  %v6734_v52 = vpop.f32.mrb[31].mxu0  ;;  %v2689_v0 = vmul.f32 %v6731_v51, %v6731_v51  ;;  %5595 = vmatmul.mubr.msk.f32.gmra.mrb[78].mxu1 %vm282_vm0, %v225_v35 }
 0x125   :  { %12686 = vst [vmem:[#allocation36_spill] sm:$0xff] %v6734_v52  ;;  %v2942_v55 = vadd.f32 %v2941_v50, %v2687_v46  ;;  %v2425_v56 = vadd.f32 %v2424_v49, %v6734_v52  ;;  %v2688_v57 = vmul.f32 %v6734_v52, %v6734_v52 }
 0x127   :  { %v2426_v1 = vadd.f32 %v6731_v51, %v2425_v56  ;;  %v2943_v2 = vadd.f32 %v2942_v55, %v2688_v57  ;;  %v6749_v5 = vpop.f32.mrb[32].mxu0  ;;  %v226_v56 = vld [vmem:[%s12154_s0 + $0x680] sm:$0xff]  ;;  %v227_v57 = vld [vmem:[%s12154_s0 + $0x688] sm:$0xff] }
 0x128   :  { %12687 = vst [vmem:[#allocation37_spill] sm:$0xff] %v6749_v5  ;;  %v6752_v8 = vpop.f32.mrb[33].mxu0  ;;  %v2691_v16 = vmul.f32 %v6749_v5, %v6749_v5  ;;  %5597 = vmatprep.mubr.msk.f32.mxu1 %vm282_vm0, %v226_v56 }
 0x129   :  { %12688 = vst [vmem:[#allocation38_spill] sm:$0xff] %v6752_v8  ;;  %v2944_v9 = vadd.f32 %v2943_v2, %v2689_v0  ;;  %v2427_v12 = vadd.f32 %v2426_v1, %v6752_v8  ;;  %v2690_v13 = vmul.f32 %v6752_v8, %v6752_v8  ;;  %5598 = vmatmul.mubr.msk.f32.gmra.mrb[80].mxu1 %vm282_vm0, %v227_v57 }
 0x12a   :  { %5600 = vmatprep.mubr.msk.f32.mxu1 %vm282_vm0, %v228_v14 }
 0x12b   :  { %v2428_v21 = vadd.f32 %v6749_v5, %v2427_v12  ;;  %v2945_v22 = vadd.f32 %v2944_v9, %v2690_v13  ;;  %v6767_v23 = vpop.f32.mrb[34].mxu0 }
 0x12c   :  { %12689 = vst [vmem:[#allocation39_spill] sm:$0xff] %v6767_v23  ;;  %v6770_v26 = vpop.f32.mrb[35].mxu0  ;;  %v2693_v36 = vmul.f32 %v6767_v23, %v6767_v23 }
 0x12d   :  { %12690 = vst [vmem:[#allocation40_spill] sm:$0xff] %v6770_v26  ;;  %v2946_v27 = vadd.f32 %v2945_v22, %v2691_v16  ;;  %v2429_v28 = vadd.f32 %v2428_v21, %v6770_v26  ;;  %v2692_v29 = vmul.f32 %v6770_v26, %v6770_v26  ;;  %5601 = vmatmul.mubr.msk.f32.gmra.mrb[82].mxu1 %vm282_vm0, %v229_v15 }
 0x12f   :  { %v2430_v41 = vadd.f32 %v6767_v23, %v2429_v28  ;;  %v2947_v42 = vadd.f32 %v2946_v27, %v2692_v29  ;;  %v6785_v43 = vpop.f32.mrb[36].mxu0 }
 0x130   :  { %12691 = vst [vmem:[#allocation41_spill] sm:$0xff] %v6785_v43  ;;  %v6788_v46 = vpop.f32.mrb[37].mxu0  ;;  %v2695_v62 = vmul.f32 %v6785_v43, %v6785_v43 }
 0x131   :  { %12692 = vst [vmem:[#allocation42_spill] sm:$0xff] %v6788_v46  ;;  %v2948_v49 = vadd.f32 %v2947_v42, %v2693_v36  ;;  %v2431_v50 = vadd.f32 %v2430_v41, %v6788_v46  ;;  %v2694_v55 = vmul.f32 %v6788_v46, %v6788_v46  ;;  %v230_v36 = vld [vmem:[%s12154_s0 + $0x6a0] sm:$0xff]  ;;  %v231_v41 = vld [vmem:[%s12154_s0 + $0x6a8] sm:$0xff] }
 0x132   :  { %5603 = vmatprep.mubr.msk.f32.mxu1 %vm282_vm0, %v230_v36 }
 0x133   :  { %v2432_v63 = vadd.f32 %v6785_v43, %v2431_v50  ;;  %v2949_v0 = vadd.f32 %v2948_v49, %v2694_v55  ;;  %v6803_v1 = vpop.f32.mrb[38].mxu0  ;;  %5604 = vmatmul.mubr.msk.f32.gmra.mrb[84].mxu1 %vm282_vm0, %v231_v41 }
 0x134   :  { %12693 = vst [vmem:[#allocation43_spill] sm:$0xff] %v6803_v1  ;;  %v6806_v2 = vpop.f32.mrb[39].mxu0  ;;  %v2697_v16 = vmul.f32 %v6803_v1, %v6803_v1 }
 0x135   :  { %12694 = vst [vmem:[#allocation44_spill] sm:$0xff] %v6806_v2  ;;  %v2950_v9 = vadd.f32 %v2949_v0, %v2695_v62  ;;  %v2433_v12 = vadd.f32 %v2432_v63, %v6806_v2  ;;  %v2696_v13 = vmul.f32 %v6806_v2, %v6806_v2  ;;  %v232_v0 = vld [vmem:[%s12154_s0 + $0x6b0] sm:$0xff] }
 0x136   :  { %5606 = vmatprep.mubr.msk.f32.mxu1 %vm282_vm0, %v232_v0  ;;  %v236_v0 = vld [vmem:[%s12154_s0 + $0x6d0] sm:$0xff] }
 0x137   :  { %v2434_v21 = vadd.f32 %v6803_v1, %v2433_v12  ;;  %v2951_v22 = vadd.f32 %v2950_v9, %v2696_v13  ;;  %v6821_v27 = vpop.f32.mrb[40].mxu0  ;;  %v233_v9 = vld [vmem:[%s12154_s0 + $0x6b8] sm:$0xff] }
 0x138   :  { %12695 = vst [vmem:[#allocation45_spill] sm:$0xff] %v6821_v27  ;;  %v6824_v28 = vpop.f32.mrb[41].mxu0  ;;  %v2699_v42 = vmul.f32 %v6821_v27, %v6821_v27  ;;  %5607 = vmatmul.mubr.msk.f32.gmra.mrb[86].mxu1 %vm282_vm0, %v233_v9  ;;  %v237_v9 = vld [vmem:[%s12154_s0 + $0x6d8] sm:$0xff] }
 0x139   :  { %12696 = vst [vmem:[#allocation46_spill] sm:$0xff] %v6824_v28  ;;  %v2952_v29 = vadd.f32 %v2951_v22, %v2697_v16  ;;  %v2435_v32 = vadd.f32 %v2434_v21, %v6824_v28  ;;  %v2698_v35 = vmul.f32 %v6824_v28, %v6824_v28 }
 0x13b   :  { %v2436_v49 = vadd.f32 %v6821_v27, %v2435_v32  ;;  %v2953_v50 = vadd.f32 %v2952_v29, %v2698_v35  ;;  %v6839_v55 = vpop.f32.mrb[42].mxu0  ;;  %v234_v32 = vld [vmem:[%s12154_s0 + $0x6c0] sm:$0xff]  ;;  %v235_v35 = vld [vmem:[%s12154_s0 + $0x6c8] sm:$0xff] }
 0x13c   :  { %12697 = vst [vmem:[#allocation47_spill] sm:$0xff] %v6839_v55  ;;  %v6842_v56 = vpop.f32.mrb[43].mxu0  ;;  %v2701_v12 = vmul.f32 %v6839_v55, %v6839_v55  ;;  %5609 = vmatprep.mubr.msk.f32.mxu1 %vm282_vm0, %v234_v32 }
 0x13d   :  { %12698 = vst [vmem:[#allocation48_spill] sm:$0xff] %v6842_v56  ;;  %v2954_v57 = vadd.f32 %v2953_v50, %v2699_v42  ;;  %v2437_v62 = vadd.f32 %v2436_v49, %v6842_v56  ;;  %v2700_v63 = vmul.f32 %v6842_v56, %v6842_v56  ;;  %5610 = vmatmul.mubr.msk.f32.gmra.mrb[88].mxu1 %vm282_vm0, %v235_v35  ;;  %v260_v56 = vld [vmem:[%s12154_s0 + $0x790] sm:$0xff] }
 0x13e   :  { %5612 = vmatprep.mubr.msk.f32.mxu1 %vm282_vm0, %v236_v0 }
 0x13f   :  { %v2438_v13 = vadd.f32 %v6839_v55, %v2437_v62  ;;  %v2955_v14 = vadd.f32 %v2954_v57, %v2700_v63  ;;  %v6857_v15 = vpop.f32.mrb[44].mxu0 }
 0x140   :  { %12699 = vst [vmem:[#allocation49_spill] sm:$0xff] %v6857_v15  ;;  %v6860_v16 = vpop.f32.mrb[45].mxu0  ;;  %v2703_v36 = vmul.f32 %v6857_v15, %v6857_v15 }
 0x141   :  { %12700 = vst [vmem:[#allocation50_spill] sm:$0xff] %v6860_v16  ;;  %v2956_v21 = vadd.f32 %v2955_v14, %v2701_v12  ;;  %v2439_v22 = vadd.f32 %v2438_v13, %v6860_v16  ;;  %v2702_v29 = vmul.f32 %v6860_v16, %v6860_v16  ;;  %5613 = vmatmul.mubr.msk.f32.gmra.mrb[90].mxu1 %vm282_vm0, %v237_v9  ;;  %v258_v16 = vld [vmem:[%s12154_s0 + $0x780] sm:$0xff] }
 0x143   :  { %v2440_v41 = vadd.f32 %v6857_v15, %v2439_v22  ;;  %v2957_v42 = vadd.f32 %v2956_v21, %v2702_v29  ;;  %v6875_v49 = vpop.f32.mrb[46].mxu0 }
 0x144   :  { %12701 = vst [vmem:[#allocation51_spill] sm:$0xff] %v6875_v49  ;;  %v6878_v50 = vpop.f32.mrb[47].mxu0  ;;  %v2705_v12 = vmul.f32 %v6875_v49, %v6875_v49 }
 0x145   :  { %12702 = vst [vmem:[#allocation52_spill] sm:$0xff] %v6878_v50  ;;  %v2958_v57 = vadd.f32 %v2957_v42, %v2703_v36  ;;  %v2441_v62 = vadd.f32 %v2440_v41, %v6878_v50  ;;  %v2704_v63 = vmul.f32 %v6878_v50, %v6878_v50  ;;  %v238_v36 = vld [vmem:[%s12154_s0 + $0x6e0] sm:$0xff]  ;;  %v239_v41 = vld [vmem:[%s12154_s0 + $0x6e8] sm:$0xff]  ;;  %v256_v50 = vld [vmem:[%s12154_s0 + $0x770] sm:$0xff] }
 0x146   :  { %5615 = vmatprep.mubr.msk.f32.mxu1 %vm282_vm0, %v238_v36 }
 0x147   :  { %v2442_v13 = vadd.f32 %v6875_v49, %v2441_v62  ;;  %v2959_v14 = vadd.f32 %v2958_v57, %v2704_v63  ;;  %v6893_v21 = vpop.f32.mrb[48].mxu0  ;;  %5616 = vmatmul.mubr.msk.f32.gmra.mrb[92].mxu1 %vm282_vm0, %v239_v41 }
 0x148   :  { %12703 = vst [vmem:[#allocation53_spill] sm:$0xff] %v6893_v21  ;;  %v6896_v22 = vpop.f32.mrb[49].mxu0  ;;  %v2707_v42 = vmul.f32 %v6893_v21, %v6893_v21 }
 0x149   :  { %12704 = vst [vmem:[#allocation54_spill] sm:$0xff] %v6896_v22  ;;  %v2960_v29 = vadd.f32 %v2959_v14, %v2705_v12  ;;  %v2443_v32 = vadd.f32 %v2442_v13, %v6896_v22  ;;  %v2706_v35 = vmul.f32 %v6896_v22, %v6896_v22  ;;  %v240_v14 = vld [vmem:[%s12154_s0 + $0x6f0] sm:$0xff]  ;;  %v254_v22 = vld [vmem:[%s12154_s0 + $0x760] sm:$0xff] }
 0x14a   :  { %5618 = vmatprep.mubr.msk.f32.mxu1 %vm282_vm0, %v240_v14 }
 0x14b   :  { %v2444_v57 = vadd.f32 %v6893_v21, %v2443_v32  ;;  %v2961_v62 = vadd.f32 %v2960_v29, %v2706_v35  ;;  %v6911_v63 = vpop.f32.mrb[50].mxu0  ;;  %v241_v29 = vld [vmem:[%s12154_s0 + $0x6f8] sm:$0xff]  ;;  %v7030_v21 = vpop.f32.mrb[0].mxu1 }
 0x14c   :  { %12705 = vst [vmem:[#allocation55_spill] sm:$0xff] %v6911_v63  ;;  %v6914_v0 = vpop.f32.mrb[51].mxu0  ;;  %v2709_v32 = vmul.f32 %v6911_v63, %v6911_v63  ;;  %5619 = vmatmul.mubr.msk.f32.gmra.mrb[94].mxu1 %vm282_vm0, %v241_v29  ;;  %12719 = vst [vmem:[#allocation69_spill] sm:$0xff] %v7030_v21 }
 0x14d   :  { %12706 = vst [vmem:[#allocation56_spill] sm:$0xff] %v6914_v0  ;;  %v2962_v9 = vadd.f32 %v2961_v62, %v2707_v42  ;;  %v2445_v12 = vadd.f32 %v2444_v57, %v6914_v0  ;;  %v2708_v13 = vmul.f32 %v6914_v0, %v6914_v0  ;;  %v242_v0 = vld [vmem:[%s12154_s0 + $0x700] sm:$0xff] }
 0x14e   :  { %5621 = vmatprep.mubr.msk.f32.mxu1 %vm282_vm0, %v242_v0 }
 0x14f   :  { %v2446_v35 = vadd.f32 %v6911_v63, %v2445_v12  ;;  %v2963_v36 = vadd.f32 %v2962_v9, %v2708_v13  ;;  %v6929_v41 = vpop.f32.mrb[52].mxu0  ;;  %v243_v9 = vld [vmem:[%s12154_s0 + $0x708] sm:$0xff]  ;;  %v244_v63 = vld [vmem:[%s12154_s0 + $0x710] sm:$0xff] }
 0x150   :  { %12707 = vst [vmem:[#allocation57_spill] sm:$0xff] %v6929_v41  ;;  %v6932_v42 = vpop.f32.mrb[53].mxu0  ;;  %v2711_v12 = vmul.f32 %v6929_v41, %v6929_v41  ;;  %5622 = vmatmul.mubr.msk.f32.gmra.mrb[96].mxu1 %vm282_vm0, %v243_v9 }
 0x151   :  { %12708 = vst [vmem:[#allocation58_spill] sm:$0xff] %v6932_v42  ;;  %v2964_v57 = vadd.f32 %v2963_v36, %v2709_v32  ;;  %v2447_v62 = vadd.f32 %v2446_v35, %v6932_v42  ;;  %v2710_v14 = vmul.f32 %v6932_v42, %v6932_v42  ;;  %5624 = vmatprep.mubr.msk.f32.mxu1 %vm282_vm0, %v244_v63 }
 0x153   :  { %v2448_v13 = vadd.f32 %v6929_v41, %v2447_v62  ;;  %v2965_v29 = vadd.f32 %v2964_v57, %v2710_v14  ;;  %v6947_v32 = vpop.f32.mrb[54].mxu0  ;;  %v245_v57 = vld [vmem:[%s12154_s0 + $0x718] sm:$0xff]  ;;  %v246_v41 = vld [vmem:[%s12154_s0 + $0x720] sm:$0xff] }
 0x154   :  { %12709 = vst [vmem:[#allocation59_spill] sm:$0xff] %v6947_v32  ;;  %v6950_v35 = vpop.f32.mrb[55].mxu0  ;;  %v2713_v62 = vmul.f32 %v6947_v32, %v6947_v32  ;;  %5625 = vmatmul.mubr.msk.f32.gmra.mrb[98].mxu1 %vm282_vm0, %v245_v57 }
 0x155   :  { %12710 = vst [vmem:[#allocation60_spill] sm:$0xff] %v6950_v35  ;;  %v2966_v36 = vadd.f32 %v2965_v29, %v2711_v12  ;;  %v2449_v42 = vadd.f32 %v2448_v13, %v6950_v35  ;;  %v2712_v0 = vmul.f32 %v6950_v35, %v6950_v35  ;;  %5627 = vmatprep.mubr.msk.f32.mxu1 %vm282_vm0, %v246_v41 }
 0x157   :  { %v2450_v14 = vadd.f32 %v6947_v32, %v2449_v42  ;;  %v2967_v9 = vadd.f32 %v2966_v36, %v2712_v0  ;;  %v6965_v12 = vpop.f32.mrb[56].mxu0  ;;  %v247_v42 = vld [vmem:[%s12154_s0 + $0x728] sm:$0xff]  ;;  %v248_v32 = vld [vmem:[%s12154_s0 + $0x730] sm:$0xff] }
 0x158   :  { %12711 = vst [vmem:[#allocation61_spill] sm:$0xff] %v6965_v12  ;;  %v6968_v13 = vpop.f32.mrb[57].mxu0  ;;  %v2715_v36 = vmul.f32 %v6965_v12, %v6965_v12  ;;  %5628 = vmatmul.mubr.msk.f32.gmra.mrb[100].mxu1 %vm282_vm0, %v247_v42 }
 0x159   :  { %12712 = vst [vmem:[#allocation62_spill] sm:$0xff] %v6968_v13  ;;  %v2968_v29 = vadd.f32 %v2967_v9, %v2713_v62  ;;  %v2451_v35 = vadd.f32 %v2450_v14, %v6968_v13  ;;  %v2714_v63 = vmul.f32 %v6968_v13, %v6968_v13  ;;  %5630 = vmatprep.mubr.msk.f32.mxu1 %vm282_vm0, %v248_v32 }
 0x15b   :  { %v2452_v0 = vadd.f32 %v6965_v12, %v2451_v35  ;;  %v2969_v57 = vadd.f32 %v2968_v29, %v2714_v63  ;;  %v6983_v62 = vpop.f32.mrb[58].mxu0  ;;  %v249_v35 = vld [vmem:[%s12154_s0 + $0x738] sm:$0xff]  ;;  %v250_v12 = vld [vmem:[%s12154_s0 + $0x740] sm:$0xff] }
 0x15c   :  { %12713 = vst [vmem:[#allocation63_spill] sm:$0xff] %v6983_v62  ;;  %v6986_v14 = vpop.f32.mrb[59].mxu0  ;;  %v2717_v29 = vmul.f32 %v6983_v62, %v6983_v62  ;;  %5631 = vmatmul.mubr.msk.f32.gmra.mrb[102].mxu1 %vm282_vm0, %v249_v35 }
 0x15d   :  { %12714 = vst [vmem:[#allocation64_spill] sm:$0xff] %v6986_v14  ;;  %v2970_v9 = vadd.f32 %v2969_v57, %v2715_v36  ;;  %v2453_v13 = vadd.f32 %v2452_v0, %v6986_v14  ;;  %v2716_v41 = vmul.f32 %v6986_v14, %v6986_v14  ;;  %5633 = vmatprep.mubr.msk.f32.mxu1 %vm282_vm0, %v250_v12 }
 0x15f   :  { %v2454_v63 = vadd.f32 %v6983_v62, %v2453_v13  ;;  %v2971_v42 = vadd.f32 %v2970_v9, %v2716_v41  ;;  %v7001_v36 = vpop.f32.mrb[60].mxu0  ;;  %v251_v13 = vld [vmem:[%s12154_s0 + $0x748] sm:$0xff]  ;;  %v252_v62 = vld [vmem:[%s12154_s0 + $0x750] sm:$0xff] }
 0x160   :  { %12715 = vst [vmem:[#allocation65_spill] sm:$0xff] %v7001_v36  ;;  %v7004_v0 = vpop.f32.mrb[61].mxu0  ;;  %v2719_v9 = vmul.f32 %v7001_v36, %v7001_v36  ;;  %5634 = vmatmul.mubr.msk.f32.gmra.mrb[104].mxu1 %vm282_vm0, %v251_v13 }
 0x161   :  { %12716 = vst [vmem:[#allocation66_spill] sm:$0xff] %v7004_v0  ;;  %v2972_v57 = vadd.f32 %v2971_v42, %v2717_v29  ;;  %v2455_v14 = vadd.f32 %v2454_v63, %v7004_v0  ;;  %v2718_v32 = vmul.f32 %v7004_v0, %v7004_v0  ;;  %5636 = vmatprep.mubr.msk.f32.mxu1 %vm282_vm0, %v252_v62 }
 0x163   :  { %v2456_v41 = vadd.f32 %v7001_v36, %v2455_v14  ;;  %v2973_v35 = vadd.f32 %v2972_v57, %v2718_v32  ;;  %v7019_v29 = vpop.f32.mrb[62].mxu0  ;;  %v253_v14 = vld [vmem:[%s12154_s0 + $0x758] sm:$0xff] }
 0x164   :  { %12717 = vst [vmem:[#allocation67_spill] sm:$0xff] %v7019_v29  ;;  %v7022_v63 = vpop.f32.mrb[63].mxu0  ;;  %v2721_v57 = vmul.f32 %v7019_v29, %v7019_v29  ;;  %5637 = vmatmul.mubr.msk.f32.gmra.mrb[106].mxu1 %vm282_vm0, %v253_v14 }
 0x165   :  { %12718 = vst [vmem:[#allocation68_spill] sm:$0xff] %v7022_v63  ;;  %v2974_v42 = vadd.f32 %v2973_v35, %v2719_v9  ;;  %v2457_v0 = vadd.f32 %v2456_v41, %v7022_v63  ;;  %v2720_v12 = vmul.f32 %v7022_v63, %v7022_v63  ;;  %v7041_v41 = vpop.f32.mrb[1].mxu1  ;;  %5639 = vmatprep.mubr.msk.f32.mxu1 %vm282_vm0, %v254_v22 }
 0x166   :  { %12721 = vst [vmem:[#allocation71_spill] sm:$0xff] %v7041_v41 }
 0x167   :  { %v2458_v32 = vadd.f32 %v7019_v29, %v2457_v0  ;;  %v2975_v13 = vadd.f32 %v2974_v42, %v2720_v12  ;;  %v7039_v9 = vpop.f32.mrb[64].mxu0  ;;  %v7052_v0 = vpop.f32.mrb[2].mxu1  ;;  %v255_v42 = vld [vmem:[%s12154_s0 + $0x768] sm:$0xff] }
 0x168   :  { %12720 = vst [vmem:[#allocation70_spill] sm:$0xff] %v7039_v9  ;;  %v7044_v35 = vpop.f32.mrb[65].mxu0  ;;  %12723 = vst [vmem:[#allocation73_spill] sm:$0xff] %v7052_v0  ;;  %v2723_v12 = vmul.f32 %v7039_v9, %v7039_v9  ;;  %5640 = vmatmul.mubr.msk.f32.gmra.mrb[108].mxu1 %vm282_vm0, %v255_v42 }
 0x169   :  { %12722 = vst [vmem:[#allocation72_spill] sm:$0xff] %v7044_v35  ;;  %v2976_v63 = vadd.f32 %v2975_v13, %v2721_v57  ;;  %v2459_v62 = vadd.f32 %v2458_v32, %v7044_v35  ;;  %v2722_v36 = vmul.f32 %v7044_v35, %v7044_v35  ;;  %v7063_v13 = vpop.f32.mrb[3].mxu1  ;;  %5642 = vmatprep.mubr.msk.f32.mxu1 %vm282_vm0, %v256_v50 }
 0x16a   :  { %12725 = vst [vmem:[#allocation75_spill] sm:$0xff] %v7063_v13 }
 0x16b   :  { %v2460_v14 = vadd.f32 %v7039_v9, %v2459_v62  ;;  %v2977_v57 = vadd.f32 %v2976_v63, %v2722_v36  ;;  %v7061_v32 = vpop.f32.mrb[66].mxu0  ;;  %v7074_v62 = vpop.f32.mrb[4].mxu1  ;;  %v257_v36 = vld [vmem:[%s12154_s0 + $0x778] sm:$0xff] }
 0x16c   :  { %12724 = vst [vmem:[#allocation74_spill] sm:$0xff] %v7061_v32  ;;  %v7066_v35 = vpop.f32.mrb[67].mxu0  ;;  %12727 = vst [vmem:[#allocation77_spill] sm:$0xff] %v7074_v62  ;;  %v2725_v63 = vmul.f32 %v7061_v32, %v7061_v32  ;;  %5643 = vmatmul.mubr.msk.f32.gmra.mrb[110].mxu1 %vm282_vm0, %v257_v36 }
 0x16d   :  { %12726 = vst [vmem:[#allocation76_spill] sm:$0xff] %v7066_v35  ;;  %v2978_v29 = vadd.f32 %v2977_v57, %v2723_v12  ;;  %v2461_v22 = vadd.f32 %v2460_v14, %v7066_v35  ;;  %v2724_v49 = vmul.f32 %v7066_v35, %v7066_v35  ;;  %v7085_v57 = vpop.f32.mrb[5].mxu1  ;;  %5645 = vmatprep.mubr.msk.f32.mxu1 %vm282_vm0, %v258_v16 }
 0x16e   :  { %12729 = vst [vmem:[#allocation79_spill] sm:$0xff] %v7085_v57 }
 0x16f   :  { %v2462_v42 = vadd.f32 %v7061_v32, %v2461_v22  ;;  %v2979_v12 = vadd.f32 %v2978_v29, %v2724_v49  ;;  %v7083_v14 = vpop.f32.mrb[68].mxu0  ;;  %v7096_v22 = vpop.f32.mrb[6].mxu1  ;;  %v259_v49 = vld [vmem:[%s12154_s0 + $0x788] sm:$0xff] }
 0x170   :  { %12728 = vst [vmem:[#allocation78_spill] sm:$0xff] %v7083_v14  ;;  %v7088_v35 = vpop.f32.mrb[69].mxu0  ;;  %12731 = vst [vmem:[#allocation81_spill] sm:$0xff] %v7096_v22  ;;  %v2727_v29 = vmul.f32 %v7083_v14, %v7083_v14  ;;  %5646 = vmatmul.mubr.msk.f32.gmra.mrb[112].mxu1 %vm282_vm0, %v259_v49 }
 0x171   :  { %12730 = vst [vmem:[#allocation80_spill] sm:$0xff] %v7088_v35  ;;  %v2980_v9 = vadd.f32 %v2979_v12, %v2725_v63  ;;  %v2463_v50 = vadd.f32 %v2462_v42, %v7088_v35  ;;  %v2726_v15 = vmul.f32 %v7088_v35, %v7088_v35  ;;  %v7107_v12 = vpop.f32.mrb[7].mxu1  ;;  %5648 = vmatprep.mubr.msk.f32.mxu1 %vm282_vm0, %v260_v56 }
 0x172   :  { %12733 = vst [vmem:[#allocation83_spill] sm:$0xff] %v7107_v12 }
 0x173   :  { %v2464_v36 = vadd.f32 %v7083_v14, %v2463_v50  ;;  %v2981_v63 = vadd.f32 %v2980_v9, %v2726_v15  ;;  %v7105_v42 = vpop.f32.mrb[70].mxu0  ;;  %v7118_v50 = vpop.f32.mrb[8].mxu1  ;;  %v261_v15 = vld [vmem:[%s12154_s0 + $0x798] sm:$0xff] }
 0x174   :  { %12732 = vst [vmem:[#allocation82_spill] sm:$0xff] %v7105_v42  ;;  %v7110_v35 = vpop.f32.mrb[71].mxu0  ;;  %12735 = vst [vmem:[#allocation85_spill] sm:$0xff] %v7118_v50  ;;  %v2729_v9 = vmul.f32 %v7105_v42, %v7105_v42  ;;  %5649 = vmatmul.mubr.msk.f32.gmra.mrb[114].mxu1 %vm282_vm0, %v261_v15 }
 0x175   :  { %12734 = vst [vmem:[#allocation84_spill] sm:$0xff] %v7110_v35  ;;  %v2982_v32 = vadd.f32 %v2981_v63, %v2727_v29  ;;  %v2465_v16 = vadd.f32 %v2464_v36, %v7110_v35  ;;  %v2728_v55 = vmul.f32 %v7110_v35, %v7110_v35  ;;  %v7129_v63 = vpop.f32.mrb[9].mxu1 }
 0x176   :  { %12737 = vst [vmem:[#allocation87_spill] sm:$0xff] %v7129_v63 }
 0x177   :  { %v2983_v49 = vadd.f32 %v2982_v32, %v2728_v55  ;;  %v7126_v29 = vpop.f32.mrb[72].mxu0  ;;  %v2466_v36 = vadd.f32 %v7105_v42, %v2465_v16  ;;  %v262_v55 = vld [vmem:[%s12154_s0 + $0x7a0] sm:$0xff]  ;;  %v7140_v32 = vpop.f32.mrb[10].mxu1  ;;  %v263_v16 = vld [vmem:[%s12154_s0 + $0x7a8] sm:$0xff] }
 0x178   :  { %12736 = vst [vmem:[#allocation86_spill] sm:$0xff] %v7126_v29  ;;  %v7132_v35 = vpop.f32.mrb[73].mxu0  ;;  %12739 = vst [vmem:[#allocation89_spill] sm:$0xff] %v7140_v32  ;;  %5651 = vmatprep.mubr.msk.f32.mxu1 %vm282_vm0, %v262_v55  ;;  %v2731_v15 = vmul.f32 %v7126_v29, %v7126_v29 }
 0x179   :  { %12738 = vst [vmem:[#allocation88_spill] sm:$0xff] %v7132_v35  ;;  %v2467_v56 = vadd.f32 %v2466_v36, %v7132_v35  ;;  %v2730_v14 = vmul.f32 %v7132_v35, %v7132_v35  ;;  %v2984_v27 = vadd.f32 %v2983_v49, %v2729_v9  ;;  %v7151_v49 = vpop.f32.mrb[11].mxu1  ;;  %5652 = vmatmul.mubr.msk.f32.gmra.mrb[116].mxu1 %vm282_vm0, %v263_v16 }
 0x17a   :  { %12741 = vst [vmem:[#allocation91_spill] sm:$0xff] %v7151_v49 }
 0x17b   :  { %v2985_v36 = vadd.f32 %v2984_v27, %v2730_v14  ;;  %v7148_v42 = vpop.f32.mrb[74].mxu0  ;;  %v2468_v9 = vadd.f32 %v7126_v29, %v2467_v56  ;;  %v264_v27 = vld [vmem:[%s12154_s0 + $0x7b0] sm:$0xff]  ;;  %v7162_v14 = vpop.f32.mrb[12].mxu1  ;;  %v265_v56 = vld [vmem:[%s12154_s0 + $0x7b8] sm:$0xff] }
 0x17c   :  { %12740 = vst [vmem:[#allocation90_spill] sm:$0xff] %v7148_v42  ;;  %v7154_v35 = vpop.f32.mrb[75].mxu0  ;;  %12743 = vst [vmem:[#allocation93_spill] sm:$0xff] %v7162_v14  ;;  %5654 = vmatprep.mubr.msk.f32.mxu1 %vm282_vm0, %v264_v27  ;;  %v2733_v16 = vmul.f32 %v7148_v42, %v7148_v42 }
 0x17d   :  { %12742 = vst [vmem:[#allocation92_spill] sm:$0xff] %v7154_v35  ;;  %v2469_v55 = vadd.f32 %v2468_v9, %v7154_v35  ;;  %v2732_v28 = vmul.f32 %v7154_v35, %v7154_v35  ;;  %v2986_v1 = vadd.f32 %v2985_v36, %v2731_v15  ;;  %v7173_v36 = vpop.f32.mrb[13].mxu1  ;;  %5655 = vmatmul.mubr.msk.f32.gmra.mrb[118].mxu1 %vm282_vm0, %v265_v56 }
 0x17e   :  { %12745 = vst [vmem:[#allocation95_spill] sm:$0xff] %v7173_v36 }
 0x17f   :  { %v2987_v9 = vadd.f32 %v2986_v1, %v2732_v28  ;;  %v7170_v29 = vpop.f32.mrb[76].mxu0  ;;  %v2470_v15 = vadd.f32 %v7148_v42, %v2469_v55  ;;  %v266_v1 = vld [vmem:[%s12154_s0 + $0x7c0] sm:$0xff]  ;;  %v7184_v28 = vpop.f32.mrb[14].mxu1  ;;  %v267_v55 = vld [vmem:[%s12154_s0 + $0x7c8] sm:$0xff] }
 0x180   :  { %12744 = vst [vmem:[#allocation94_spill] sm:$0xff] %v7170_v29  ;;  %v7176_v35 = vpop.f32.mrb[77].mxu0  ;;  %12747 = vst [vmem:[#allocation97_spill] sm:$0xff] %v7184_v28  ;;  %5657 = vmatprep.mubr.msk.f32.mxu1 %vm282_vm0, %v266_v1  ;;  %v2735_v56 = vmul.f32 %v7170_v29, %v7170_v29 }
 0x181   :  { %12746 = vst [vmem:[#allocation96_spill] sm:$0xff] %v7176_v35  ;;  %v2471_v27 = vadd.f32 %v2470_v15, %v7176_v35  ;;  %v2734_v2 = vmul.f32 %v7176_v35, %v7176_v35  ;;  %v2988_v43 = vadd.f32 %v2987_v9, %v2733_v16  ;;  %v7195_v9 = vpop.f32.mrb[15].mxu1  ;;  %5658 = vmatmul.mubr.msk.f32.gmra.mrb[120].mxu1 %vm282_vm0, %v267_v55 }
 0x182   :  { %12749 = vst [vmem:[#allocation99_spill] sm:$0xff] %v7195_v9 }
 0x183   :  { %v2989_v15 = vadd.f32 %v2988_v43, %v2734_v2  ;;  %v7192_v42 = vpop.f32.mrb[78].mxu0  ;;  %v2472_v16 = vadd.f32 %v7170_v29, %v2471_v27  ;;  %v268_v43 = vld [vmem:[%s12154_s0 + $0x7d0] sm:$0xff]  ;;  %v7206_v2 = vpop.f32.mrb[16].mxu1  ;;  %v269_v27 = vld [vmem:[%s12154_s0 + $0x7d8] sm:$0xff] }
 0x184   :  { %12748 = vst [vmem:[#allocation98_spill] sm:$0xff] %v7192_v42  ;;  %v7198_v35 = vpop.f32.mrb[79].mxu0  ;;  %12751 = vst [vmem:[#allocation101_spill] sm:$0xff] %v7206_v2  ;;  %5660 = vmatprep.mubr.msk.f32.mxu1 %vm282_vm0, %v268_v43  ;;  %v2737_v55 = vmul.f32 %v7192_v42, %v7192_v42 }
 0x185   :  { %12750 = vst [vmem:[#allocation100_spill] sm:$0xff] %v7198_v35  ;;  %v2473_v1 = vadd.f32 %v2472_v16, %v7198_v35  ;;  %v2736_v46 = vmul.f32 %v7198_v35, %v7198_v35  ;;  %v2990_v23 = vadd.f32 %v2989_v15, %v2735_v56  ;;  %v7217_v15 = vpop.f32.mrb[17].mxu1  ;;  %5661 = vmatmul.mubr.msk.f32.gmra.mrb[122].mxu1 %vm282_vm0, %v269_v27 }
 0x186   :  { %12753 = vst [vmem:[#allocation103_spill] sm:$0xff] %v7217_v15 }
 0x187   :  { %v2991_v16 = vadd.f32 %v2990_v23, %v2736_v46  ;;  %v7214_v29 = vpop.f32.mrb[80].mxu0  ;;  %v2474_v56 = vadd.f32 %v7192_v42, %v2473_v1  ;;  %v270_v23 = vld [vmem:[%s12154_s0 + $0x7e0] sm:$0xff]  ;;  %v7228_v46 = vpop.f32.mrb[18].mxu1  ;;  %v271_v1 = vld [vmem:[%s12154_s0 + $0x7e8] sm:$0xff] }
 0x188   :  { %12752 = vst [vmem:[#allocation102_spill] sm:$0xff] %v7214_v29  ;;  %v7220_v35 = vpop.f32.mrb[81].mxu0  ;;  %12755 = vst [vmem:[#allocation105_spill] sm:$0xff] %v7228_v46  ;;  %5663 = vmatprep.mubr.msk.f32.mxu1 %vm282_vm0, %v270_v23  ;;  %v2739_v27 = vmul.f32 %v7214_v29, %v7214_v29 }
 0x189   :  { %12754 = vst [vmem:[#allocation104_spill] sm:$0xff] %v7220_v35  ;;  %v2475_v43 = vadd.f32 %v2474_v56, %v7220_v35  ;;  %v2738_v26 = vmul.f32 %v7220_v35, %v7220_v35  ;;  %v2992_v5 = vadd.f32 %v2991_v16, %v2737_v55  ;;  %v7239_v16 = vpop.f32.mrb[19].mxu1  ;;  %5664 = vmatmul.mubr.msk.f32.gmra.mrb[124].mxu1 %vm282_vm0, %v271_v1 }
 0x18a   :  { %12757 = vst [vmem:[#allocation107_spill] sm:$0xff] %v7239_v16 }
 0x18b   :  { %v2993_v56 = vadd.f32 %v2992_v5, %v2738_v26  ;;  %v7236_v42 = vpop.f32.mrb[82].mxu0  ;;  %v2476_v55 = vadd.f32 %v7214_v29, %v2475_v43  ;;  %v272_v5 = vld [vmem:[%s12154_s0 + $0x7f0] sm:$0xff]  ;;  %v7250_v26 = vpop.f32.mrb[20].mxu1  ;;  %v273_v43 = vld [vmem:[%s12154_s0 + $0x7f8] sm:$0xff] }
 0x18c   :  { %12756 = vst [vmem:[#allocation106_spill] sm:$0xff] %v7236_v42  ;;  %v7242_v35 = vpop.f32.mrb[83].mxu0  ;;  %12759 = vst [vmem:[#allocation109_spill] sm:$0xff] %v7250_v26  ;;  %5666 = vmatprep.mubr.msk.f32.mxu1 %vm282_vm0, %v272_v5  ;;  %v2741_v1 = vmul.f32 %v7236_v42, %v7236_v42 }
 0x18d   :  { %12758 = vst [vmem:[#allocation108_spill] sm:$0xff] %v7242_v35  ;;  %v2477_v23 = vadd.f32 %v2476_v55, %v7242_v35  ;;  %v2740_v8 = vmul.f32 %v7242_v35, %v7242_v35  ;;  %v2994_v51 = vadd.f32 %v2993_v56, %v2739_v27  ;;  %v7261_v56 = vpop.f32.mrb[21].mxu1  ;;  %5667 = vmatmul.mubr.msk.f32.gmra.mrb[126].mxu1 %vm282_vm0, %v273_v43 }
 0x18e   :  { %12761 = vst [vmem:[#allocation111_spill] sm:$0xff] %v7261_v56  ;;  %v7269_v34 = vpop.f32.mrb[22].mxu1 }
 0x18f   :  { %v2995_v55 = vadd.f32 %v2994_v51, %v2740_v8  ;;  %v7258_v29 = vpop.f32.mrb[84].mxu0  ;;  %v2478_v27 = vadd.f32 %v7236_v42, %v2477_v23  ;;  %12763 = vst [vmem:[#allocation113_spill] sm:$0xff] %v7269_v34  ;;  %v7276_v42 = vpop.f32.mrb[23].mxu1 }
 0x190   :  { %12760 = vst [vmem:[#allocation110_spill] sm:$0xff] %v7258_v29  ;;  %v7264_v35 = vpop.f32.mrb[85].mxu0  ;;  %v2743_v51 = vmul.f32 %v7258_v29, %v7258_v29  ;;  %12765 = vst [vmem:[#allocation115_spill] sm:$0xff] %v7276_v42 }
 0x191   :  { %12762 = vst [vmem:[#allocation112_spill] sm:$0xff] %v7264_v35  ;;  %v2479_v5 = vadd.f32 %v2478_v27, %v7264_v35  ;;  %v2742_v52 = vmul.f32 %v7264_v35, %v7264_v35  ;;  %v2996_v33 = vadd.f32 %v2995_v55, %v2741_v1  ;;  %v7283_v55 = vpop.f32.mrb[24].mxu1 }
 0x192   :  { %12767 = vst [vmem:[#allocation117_spill] sm:$0xff] %v7283_v55 }
 0x193   :  { %v2997_v8 = vadd.f32 %v2996_v33, %v2742_v52  ;;  %v7273_v17 = vpop.f32.mrb[86].mxu0  ;;  %v2480_v23 = vadd.f32 %v7258_v29, %v2479_v5  ;;  %v7290_v29 = vpop.f32.mrb[25].mxu1 }
 0x194   :  { %12764 = vst [vmem:[#allocation114_spill] sm:$0xff] %v7273_v17  ;;  %v7278_v43 = vpop.f32.mrb[87].mxu0  ;;  %v2745_v20 = vmul.f32 %v7273_v17, %v7273_v17  ;;  %12769 = vst [vmem:[#allocation119_spill] sm:$0xff] %v7290_v29 }
 0x195   :  { %12766 = vst [vmem:[#allocation116_spill] sm:$0xff] %v7278_v43  ;;  %v2481_v27 = vadd.f32 %v2480_v23, %v7278_v43  ;;  %v2744_v35 = vmul.f32 %v7278_v43, %v7278_v43  ;;  %v2998_v1 = vadd.f32 %v2997_v8, %v2743_v51  ;;  %v7297_v8 = vpop.f32.mrb[26].mxu1 }
 0x196   :  { %12771 = vst [vmem:[#allocation121_spill] sm:$0xff] %v7297_v8 }
 0x197   :  { %v2999_v33 = vadd.f32 %v2998_v1, %v2744_v35  ;;  %v7287_v52 = vpop.f32.mrb[88].mxu0  ;;  %v2482_v5 = vadd.f32 %v7273_v17, %v2481_v27  ;;  %v7304_v17 = vpop.f32.mrb[27].mxu1 }
 0x198   :  { %12768 = vst [vmem:[#allocation118_spill] sm:$0xff] %v7287_v52  ;;  %v7292_v3 = vpop.f32.mrb[89].mxu0  ;;  %v2747_v4 = vmul.f32 %v7287_v52, %v7287_v52  ;;  %12773 = vst [vmem:[#allocation123_spill] sm:$0xff] %v7304_v17 }
 0x199   :  { %12770 = vst [vmem:[#allocation120_spill] sm:$0xff] %v7292_v3  ;;  %v2483_v23 = vadd.f32 %v2482_v5, %v7292_v3  ;;  %v2746_v43 = vmul.f32 %v7292_v3, %v7292_v3  ;;  %v3000_v51 = vadd.f32 %v2999_v33, %v2745_v20  ;;  %v7311_v33 = vpop.f32.mrb[28].mxu1 }
 0x19a   :  { %12775 = vst [vmem:[#allocation125_spill] sm:$0xff] %v7311_v33 }
 0x19b   :  { %v3001_v35 = vadd.f32 %v3000_v51, %v2746_v43  ;;  %v7301_v1 = vpop.f32.mrb[90].mxu0  ;;  %v2484_v27 = vadd.f32 %v7287_v52, %v2483_v23  ;;  %v7318_v52 = vpop.f32.mrb[29].mxu1 }
 0x19c   :  { %12772 = vst [vmem:[#allocation122_spill] sm:$0xff] %v7301_v1  ;;  %v7306_v53 = vpop.f32.mrb[91].mxu0  ;;  %v2749_v54 = vmul.f32 %v7301_v1, %v7301_v1  ;;  %12777 = vst [vmem:[#allocation127_spill] sm:$0xff] %v7318_v52 }
 0x19d   :  { %12774 = vst [vmem:[#allocation124_spill] sm:$0xff] %v7306_v53  ;;  %v2485_v5 = vadd.f32 %v2484_v27, %v7306_v53  ;;  %v2748_v3 = vmul.f32 %v7306_v53, %v7306_v53  ;;  %v3002_v20 = vadd.f32 %v3001_v35, %v2747_v4  ;;  %v7325_v35 = vpop.f32.mrb[30].mxu1 }
 0x19e   :  { %12779 = vst [vmem:[#allocation129_spill] sm:$0xff] %v7325_v35 }
 0x19f   :  { %v3003_v43 = vadd.f32 %v3002_v20, %v2748_v3  ;;  %v7315_v51 = vpop.f32.mrb[92].mxu0  ;;  %v2486_v23 = vadd.f32 %v7301_v1, %v2485_v5  ;;  %v7332_v1 = vpop.f32.mrb[31].mxu1 }
 0x1a0   :  { %12776 = vst [vmem:[#allocation126_spill] sm:$0xff] %v7315_v51  ;;  %v7320_v38 = vpop.f32.mrb[93].mxu0  ;;  %v2751_v40 = vmul.f32 %v7315_v51, %v7315_v51  ;;  %12781 = vst [vmem:[#allocation131_spill] sm:$0xff] %v7332_v1 }
 0x1a1   :  { %12778 = vst [vmem:[#allocation128_spill] sm:$0xff] %v7320_v38  ;;  %v2487_v27 = vadd.f32 %v2486_v23, %v7320_v38  ;;  %v2750_v53 = vmul.f32 %v7320_v38, %v7320_v38  ;;  %v3004_v4 = vadd.f32 %v3003_v43, %v2749_v54  ;;  %v7339_v43 = vpop.f32.mrb[32].mxu1 }
 0x1a2   :  { %12783 = vst [vmem:[#allocation133_spill] sm:$0xff] %v7339_v43 }
 0x1a3   :  { %v3005_v3 = vadd.f32 %v3004_v4, %v2750_v53  ;;  %v7329_v20 = vpop.f32.mrb[94].mxu0  ;;  %v2488_v5 = vadd.f32 %v7315_v51, %v2487_v27  ;;  %v7346_v51 = vpop.f32.mrb[33].mxu1 }
 0x1a4   :  { %12780 = vst [vmem:[#allocation130_spill] sm:$0xff] %v7329_v20  ;;  %v7334_v24 = vpop.f32.mrb[95].mxu0  ;;  %v2753_v25 = vmul.f32 %v7329_v20, %v7329_v20  ;;  %12785 = vst [vmem:[#allocation135_spill] sm:$0xff] %v7346_v51 }
 0x1a5   :  { %12782 = vst [vmem:[#allocation132_spill] sm:$0xff] %v7334_v24  ;;  %v2489_v23 = vadd.f32 %v2488_v5, %v7334_v24  ;;  %v2752_v38 = vmul.f32 %v7334_v24, %v7334_v24  ;;  %v3006_v54 = vadd.f32 %v3005_v3, %v2751_v40  ;;  %v7353_v3 = vpop.f32.mrb[34].mxu1 }
 0x1a6   :  { %12787 = vst [vmem:[#allocation137_spill] sm:$0xff] %v7353_v3 }
 0x1a7   :  { %v3007_v53 = vadd.f32 %v3006_v54, %v2752_v38  ;;  %v7343_v4 = vpop.f32.mrb[96].mxu0  ;;  %v2490_v27 = vadd.f32 %v7329_v20, %v2489_v23  ;;  %v7360_v20 = vpop.f32.mrb[35].mxu1 }
 0x1a8   :  { %12784 = vst [vmem:[#allocation134_spill] sm:$0xff] %v7343_v4  ;;  %v7348_v10 = vpop.f32.mrb[97].mxu0  ;;  %v2755_v11 = vmul.f32 %v7343_v4, %v7343_v4  ;;  %12789 = vst [vmem:[#allocation139_spill] sm:$0xff] %v7360_v20 }
 0x1a9   :  { %12786 = vst [vmem:[#allocation136_spill] sm:$0xff] %v7348_v10  ;;  %v2491_v5 = vadd.f32 %v2490_v27, %v7348_v10  ;;  %v2754_v24 = vmul.f32 %v7348_v10, %v7348_v10  ;;  %v3008_v40 = vadd.f32 %v3007_v53, %v2753_v25  ;;  %v7367_v53 = vpop.f32.mrb[36].mxu1 }
 0x1aa   :  { %12791 = vst [vmem:[#allocation141_spill] sm:$0xff] %v7367_v53 }
 0x1ab   :  { %v3009_v38 = vadd.f32 %v3008_v40, %v2754_v24  ;;  %v7357_v54 = vpop.f32.mrb[98].mxu0  ;;  %v2492_v23 = vadd.f32 %v7343_v4, %v2491_v5  ;;  %v7374_v4 = vpop.f32.mrb[37].mxu1 }
 0x1ac   :  { %12788 = vst [vmem:[#allocation138_spill] sm:$0xff] %v7357_v54  ;;  %v7362_v60 = vpop.f32.mrb[99].mxu0  ;;  %v2757_v61 = vmul.f32 %v7357_v54, %v7357_v54  ;;  %12793 = vst [vmem:[#allocation143_spill] sm:$0xff] %v7374_v4 }
 0x1ad   :  { %12790 = vst [vmem:[#allocation140_spill] sm:$0xff] %v7362_v60  ;;  %v2493_v27 = vadd.f32 %v2492_v23, %v7362_v60  ;;  %v2756_v10 = vmul.f32 %v7362_v60, %v7362_v60  ;;  %v3010_v25 = vadd.f32 %v3009_v38, %v2755_v11  ;;  %v7381_v38 = vpop.f32.mrb[38].mxu1 }
 0x1ae   :  { %12795 = vst [vmem:[#allocation145_spill] sm:$0xff] %v7381_v38 }
 0x1af   :  { %v3011_v24 = vadd.f32 %v3010_v25, %v2756_v10  ;;  %v7371_v40 = vpop.f32.mrb[100].mxu0  ;;  %v2494_v5 = vadd.f32 %v7357_v54, %v2493_v27  ;;  %v7388_v54 = vpop.f32.mrb[39].mxu1 }
 0x1b0   :  { %12792 = vst [vmem:[#allocation142_spill] sm:$0xff] %v7371_v40  ;;  %v7376_v44 = vpop.f32.mrb[101].mxu0  ;;  %v2759_v45 = vmul.f32 %v7371_v40, %v7371_v40  ;;  %12797 = vst [vmem:[#allocation147_spill] sm:$0xff] %v7388_v54 }
 0x1b1   :  { %12794 = vst [vmem:[#allocation144_spill] sm:$0xff] %v7376_v44  ;;  %v2495_v23 = vadd.f32 %v2494_v5, %v7376_v44  ;;  %v2758_v60 = vmul.f32 %v7376_v44, %v7376_v44  ;;  %v3012_v11 = vadd.f32 %v3011_v24, %v2757_v61  ;;  %v7395_v24 = vpop.f32.mrb[40].mxu1 }
 0x1b2   :  { %12799 = vst [vmem:[#allocation149_spill] sm:$0xff] %v7395_v24 }
 0x1b3   :  { %v3013_v10 = vadd.f32 %v3012_v11, %v2758_v60  ;;  %v7385_v25 = vpop.f32.mrb[102].mxu0  ;;  %v2496_v27 = vadd.f32 %v7371_v40, %v2495_v23  ;;  %v7402_v40 = vpop.f32.mrb[41].mxu1 }
 0x1b4   :  { %12796 = vst [vmem:[#allocation146_spill] sm:$0xff] %v7385_v25  ;;  %v7390_v30 = vpop.f32.mrb[103].mxu0  ;;  %v2761_v31 = vmul.f32 %v7385_v25, %v7385_v25  ;;  %12801 = vst [vmem:[#allocation151_spill] sm:$0xff] %v7402_v40 }
 0x1b5   :  { %12798 = vst [vmem:[#allocation148_spill] sm:$0xff] %v7390_v30  ;;  %v2497_v5 = vadd.f32 %v2496_v27, %v7390_v30  ;;  %v2760_v44 = vmul.f32 %v7390_v30, %v7390_v30  ;;  %v3014_v61 = vadd.f32 %v3013_v10, %v2759_v45  ;;  %v7409_v10 = vpop.f32.mrb[42].mxu1 }
 0x1b6   :  { %12803 = vst [vmem:[#allocation153_spill] sm:$0xff] %v7409_v10 }
 0x1b7   :  { %v3015_v60 = vadd.f32 %v3014_v61, %v2760_v44  ;;  %v7399_v11 = vpop.f32.mrb[104].mxu0  ;;  %v2498_v23 = vadd.f32 %v7385_v25, %v2497_v5  ;;  %v7416_v25 = vpop.f32.mrb[43].mxu1 }
 0x1b8   :  { %12800 = vst [vmem:[#allocation150_spill] sm:$0xff] %v7399_v11  ;;  %v7404_v18 = vpop.f32.mrb[105].mxu0  ;;  %v2763_v19 = vmul.f32 %v7399_v11, %v7399_v11  ;;  %12805 = vst [vmem:[#allocation155_spill] sm:$0xff] %v7416_v25 }
 0x1b9   :  { %12802 = vst [vmem:[#allocation152_spill] sm:$0xff] %v7404_v18  ;;  %v2499_v27 = vadd.f32 %v2498_v23, %v7404_v18  ;;  %v2762_v30 = vmul.f32 %v7404_v18, %v7404_v18  ;;  %v3016_v45 = vadd.f32 %v3015_v60, %v2761_v31  ;;  %v7423_v60 = vpop.f32.mrb[44].mxu1 }
 0x1ba   :  { %12807 = vst [vmem:[#allocation157_spill] sm:$0xff] %v7423_v60 }
 0x1bb   :  { %v3017_v44 = vadd.f32 %v3016_v45, %v2762_v30  ;;  %v7413_v61 = vpop.f32.mrb[106].mxu0  ;;  %v2500_v5 = vadd.f32 %v7399_v11, %v2499_v27  ;;  %v7430_v11 = vpop.f32.mrb[45].mxu1 }
 0x1bc   :  { %12804 = vst [vmem:[#allocation154_spill] sm:$0xff] %v7413_v61  ;;  %v7418_v6 = vpop.f32.mrb[107].mxu0  ;;  %v2765_v7 = vmul.f32 %v7413_v61, %v7413_v61  ;;  %12809 = vst [vmem:[#allocation159_spill] sm:$0xff] %v7430_v11 }
 0x1bd   :  { %12806 = vst [vmem:[#allocation156_spill] sm:$0xff] %v7418_v6  ;;  %v2501_v23 = vadd.f32 %v2500_v5, %v7418_v6  ;;  %v2764_v18 = vmul.f32 %v7418_v6, %v7418_v6  ;;  %v3018_v31 = vadd.f32 %v3017_v44, %v2763_v19  ;;  %v7437_v44 = vpop.f32.mrb[46].mxu1 }
 0x1be   :  { %12811 = vst [vmem:[#allocation161_spill] sm:$0xff] %v7437_v44 }
 0x1bf   :  { %v3019_v30 = vadd.f32 %v3018_v31, %v2764_v18  ;;  %v7427_v45 = vpop.f32.mrb[108].mxu0  ;;  %v2502_v27 = vadd.f32 %v7413_v61, %v2501_v23  ;;  %v7444_v61 = vpop.f32.mrb[47].mxu1 }
 0x1c0   :  { %12808 = vst [vmem:[#allocation158_spill] sm:$0xff] %v7427_v45  ;;  %v7432_v58 = vpop.f32.mrb[109].mxu0  ;;  %v2767_v59 = vmul.f32 %v7427_v45, %v7427_v45  ;;  %12813 = vst [vmem:[#allocation163_spill] sm:$0xff] %v7444_v61 }
 0x1c1   :  { %12810 = vst [vmem:[#allocation160_spill] sm:$0xff] %v7432_v58  ;;  %v2503_v5 = vadd.f32 %v2502_v27, %v7432_v58  ;;  %v2766_v6 = vmul.f32 %v7432_v58, %v7432_v58  ;;  %v3020_v19 = vadd.f32 %v3019_v30, %v2765_v7  ;;  %v7451_v30 = vpop.f32.mrb[48].mxu1 }
 0x1c2   :  { %12815 = vst [vmem:[#allocation165_spill] sm:$0xff] %v7451_v30 }
 0x1c3   :  { %v3021_v18 = vadd.f32 %v3020_v19, %v2766_v6  ;;  %v7441_v31 = vpop.f32.mrb[110].mxu0  ;;  %v2504_v23 = vadd.f32 %v7427_v45, %v2503_v5  ;;  %v7458_v45 = vpop.f32.mrb[49].mxu1 }
 0x1c4   :  { %12812 = vst [vmem:[#allocation162_spill] sm:$0xff] %v7441_v31  ;;  %v7446_v47 = vpop.f32.mrb[111].mxu0  ;;  %v2769_v48 = vmul.f32 %v7441_v31, %v7441_v31  ;;  %12817 = vst [vmem:[#allocation167_spill] sm:$0xff] %v7458_v45 }
 0x1c5   :  { %12814 = vst [vmem:[#allocation164_spill] sm:$0xff] %v7446_v47  ;;  %v2505_v27 = vadd.f32 %v2504_v23, %v7446_v47  ;;  %v2768_v58 = vmul.f32 %v7446_v47, %v7446_v47  ;;  %v3022_v7 = vadd.f32 %v3021_v18, %v2767_v59  ;;  %v7465_v18 = vpop.f32.mrb[50].mxu1 }
 0x1c6   :  { %12819 = vst [vmem:[#allocation169_spill] sm:$0xff] %v7465_v18 }
 0x1c7   :  { %v3023_v6 = vadd.f32 %v3022_v7, %v2768_v58  ;;  %v7455_v19 = vpop.f32.mrb[112].mxu0  ;;  %v2506_v5 = vadd.f32 %v7441_v31, %v2505_v27  ;;  %v7472_v31 = vpop.f32.mrb[51].mxu1 }
 0x1c8   :  { %12816 = vst [vmem:[#allocation166_spill] sm:$0xff] %v7455_v19  ;;  %v7460_v37 = vpop.f32.mrb[113].mxu0  ;;  %v2771_v39 = vmul.f32 %v7455_v19, %v7455_v19  ;;  %12821 = vst [vmem:[#allocation171_spill] sm:$0xff] %v7472_v31 }
 0x1c9   :  { %12818 = vst [vmem:[#allocation168_spill] sm:$0xff] %v7460_v37  ;;  %v2507_v23 = vadd.f32 %v2506_v5, %v7460_v37  ;;  %v2770_v47 = vmul.f32 %v7460_v37, %v7460_v37  ;;  %v3024_v59 = vadd.f32 %v3023_v6, %v2769_v48  ;;  %v7479_v6 = vpop.f32.mrb[52].mxu1 }
 0x1ca   :  { %12823 = vst [vmem:[#allocation173_spill] sm:$0xff] %v7479_v6 }
 0x1cb   :  { %v3025_v58 = vadd.f32 %v3024_v59, %v2770_v47  ;;  %v7469_v7 = vpop.f32.mrb[114].mxu0  ;;  %v2508_v27 = vadd.f32 %v7455_v19, %v2507_v23  ;;  %v7486_v19 = vpop.f32.mrb[53].mxu1 }
 0x1cc   :  { %12820 = vst [vmem:[#allocation170_spill] sm:$0xff] %v7469_v7  ;;  %v7474_v30 = vpop.f32.mrb[115].mxu0  ;;  %v2773_v18 = vmul.f32 %v7469_v7, %v7469_v7  ;;  %12825 = vst [vmem:[#allocation175_spill] sm:$0xff] %v7486_v19 }
 0x1cd   :  { %12822 = vst [vmem:[#allocation172_spill] sm:$0xff] %v7474_v30  ;;  %v2509_v5 = vadd.f32 %v2508_v27, %v7474_v30  ;;  %v2772_v37 = vmul.f32 %v7474_v30, %v7474_v30  ;;  %v3026_v48 = vadd.f32 %v3025_v58, %v2771_v39  ;;  %v7493_v58 = vpop.f32.mrb[54].mxu1 }
 0x1ce   :  { %12827 = vst [vmem:[#allocation177_spill] sm:$0xff] %v7493_v58 }
 0x1cf   :  { %v3027_v47 = vadd.f32 %v3026_v48, %v2772_v37  ;;  %v7483_v59 = vpop.f32.mrb[116].mxu0  ;;  %v2510_v23 = vadd.f32 %v7469_v7, %v2509_v5  ;;  %v7500_v7 = vpop.f32.mrb[55].mxu1 }
 0x1d0   :  { %12824 = vst [vmem:[#allocation174_spill] sm:$0xff] %v7483_v59  ;;  %v7488_v31 = vpop.f32.mrb[117].mxu0  ;;  %v2775_v6 = vmul.f32 %v7483_v59, %v7483_v59  ;;  %12829 = vst [vmem:[#allocation179_spill] sm:$0xff] %v7500_v7 }
 0x1d1   :  { %12826 = vst [vmem:[#allocation176_spill] sm:$0xff] %v7488_v31  ;;  %v2511_v27 = vadd.f32 %v2510_v23, %v7488_v31  ;;  %v2774_v30 = vmul.f32 %v7488_v31, %v7488_v31  ;;  %v3028_v39 = vadd.f32 %v3027_v47, %v2773_v18  ;;  %v7507_v47 = vpop.f32.mrb[56].mxu1 }
 0x1d2   :  { %12831 = vst [vmem:[#allocation181_spill] sm:$0xff] %v7507_v47 }
 0x1d3   :  { %v3029_v37 = vadd.f32 %v3028_v39, %v2774_v30  ;;  %v7497_v48 = vpop.f32.mrb[118].mxu0  ;;  %v2512_v5 = vadd.f32 %v7483_v59, %v2511_v27  ;;  %v7514_v59 = vpop.f32.mrb[57].mxu1 }
 0x1d4   :  { %12828 = vst [vmem:[#allocation178_spill] sm:$0xff] %v7497_v48  ;;  %v7502_v19 = vpop.f32.mrb[119].mxu0  ;;  %v2777_v58 = vmul.f32 %v7497_v48, %v7497_v48  ;;  %12833 = vst [vmem:[#allocation183_spill] sm:$0xff] %v7514_v59 }
 0x1d5   :  { %12830 = vst [vmem:[#allocation180_spill] sm:$0xff] %v7502_v19  ;;  %v2513_v23 = vadd.f32 %v2512_v5, %v7502_v19  ;;  %v2776_v31 = vmul.f32 %v7502_v19, %v7502_v19  ;;  %v3030_v18 = vadd.f32 %v3029_v37, %v2775_v6  ;;  %v7521_v37 = vpop.f32.mrb[58].mxu1 }
 0x1d6   :  { %12835 = vst [vmem:[#allocation185_spill] sm:$0xff] %v7521_v37 }
 0x1d7   :  { %v3031_v30 = vadd.f32 %v3030_v18, %v2776_v31  ;;  %v7511_v39 = vpop.f32.mrb[120].mxu0  ;;  %v2514_v27 = vadd.f32 %v7497_v48, %v2513_v23  ;;  %v7528_v48 = vpop.f32.mrb[59].mxu1 }
 0x1d8   :  { %12832 = vst [vmem:[#allocation182_spill] sm:$0xff] %v7511_v39  ;;  %v7516_v7 = vpop.f32.mrb[121].mxu0  ;;  %v2779_v47 = vmul.f32 %v7511_v39, %v7511_v39  ;;  %12837 = vst [vmem:[#allocation187_spill] sm:$0xff] %v7528_v48 }
 0x1d9   :  { %12834 = vst [vmem:[#allocation184_spill] sm:$0xff] %v7516_v7  ;;  %v2515_v5 = vadd.f32 %v2514_v27, %v7516_v7  ;;  %v2778_v19 = vmul.f32 %v7516_v7, %v7516_v7  ;;  %v3032_v6 = vadd.f32 %v3031_v30, %v2777_v58  ;;  %v7535_v30 = vpop.f32.mrb[60].mxu1 }
 0x1da   :  { %12839 = vst [vmem:[#allocation189_spill] sm:$0xff] %v7535_v30 }
 0x1db   :  { %v3033_v31 = vadd.f32 %v3032_v6, %v2778_v19  ;;  %v7525_v18 = vpop.f32.mrb[122].mxu0  ;;  %v2516_v23 = vadd.f32 %v7511_v39, %v2515_v5  ;;  %v7542_v39 = vpop.f32.mrb[61].mxu1 }
 0x1dc   :  { %12836 = vst [vmem:[#allocation186_spill] sm:$0xff] %v7525_v18  ;;  %v7530_v59 = vpop.f32.mrb[123].mxu0  ;;  %v2781_v37 = vmul.f32 %v7525_v18, %v7525_v18  ;;  %12841 = vst [vmem:[#allocation191_spill] sm:$0xff] %v7542_v39 }
 0x1dd   :  { %12838 = vst [vmem:[#allocation188_spill] sm:$0xff] %v7530_v59  ;;  %v2517_v27 = vadd.f32 %v2516_v23, %v7530_v59  ;;  %v2780_v7 = vmul.f32 %v7530_v59, %v7530_v59  ;;  %v3034_v58 = vadd.f32 %v3033_v31, %v2779_v47  ;;  %v7549_v31 = vpop.f32.mrb[62].mxu1 }
 0x1de   :  { %12843 = vst [vmem:[#allocation193_spill] sm:$0xff] %v7549_v31 }
 0x1df   :  { %v3035_v19 = vadd.f32 %v3034_v58, %v2780_v7  ;;  %v7539_v6 = vpop.f32.mrb[124].mxu0  ;;  %v2518_v5 = vadd.f32 %v7525_v18, %v2517_v27  ;;  %v7556_v18 = vpop.f32.mrb[63].mxu1 }
 0x1e0   :  { %12840 = vst [vmem:[#allocation190_spill] sm:$0xff] %v7539_v6  ;;  %v7544_v48 = vpop.f32.mrb[125].mxu0  ;;  %v2783_v30 = vmul.f32 %v7539_v6, %v7539_v6  ;;  %12845 = vst [vmem:[#allocation195_spill] sm:$0xff] %v7556_v18 }
 0x1e1   :  { %12842 = vst [vmem:[#allocation192_spill] sm:$0xff] %v7544_v48  ;;  %v2519_v23 = vadd.f32 %v2518_v5, %v7544_v48  ;;  %v2782_v59 = vmul.f32 %v7544_v48, %v7544_v48  ;;  %v3036_v47 = vadd.f32 %v3035_v19, %v2781_v37  ;;  %v7563_v19 = vpop.f32.mrb[64].mxu1 }
 0x1e2   :  { %12847 = vst [vmem:[#allocation197_spill] sm:$0xff] %v7563_v19 }
 0x1e3   :  { %v3037_v7 = vadd.f32 %v3036_v47, %v2782_v59  ;;  %v7553_v58 = vpop.f32.mrb[126].mxu0  ;;  %v2520_v27 = vadd.f32 %v7539_v6, %v2519_v23  ;;  %v2786_v23 = vmul.f32 %v7041_v41, %v7041_v41  ;;  %v7570_v6 = vpop.f32.mrb[65].mxu1 }
 0x1e4   :  { %12844 = vst [vmem:[#allocation194_spill] sm:$0xff] %v7553_v58  ;;  %v7558_v39 = vpop.f32.mrb[127].mxu0  ;;  %v2785_v31 = vmul.f32 %v7553_v58, %v7553_v58  ;;  %v7573_v45 = vpop.f32.mrb[66].mxu1 }
 0x1e5   :  { %12846 = vst [vmem:[#allocation196_spill] sm:$0xff] %v7558_v39  ;;  %v2521_v5 = vadd.f32 %v2520_v27, %v7558_v39  ;;  %v2784_v48 = vmul.f32 %v7558_v39, %v7558_v39  ;;  %v3038_v37 = vadd.f32 %v3037_v7, %v2783_v30  ;;  %v2787_v30 = vmul.f32 %v7030_v21, %v7030_v21 }
 0x1e7   :  { %v2522_v59 = vadd.f32 %v7553_v58, %v2521_v5  ;;  %v3039_v47 = vadd.f32 %v3038_v37, %v2784_v48  ;;  %v2788_v5 = vmul.f32 %v7063_v13, %v7063_v13  ;;  %v7580_v48 = vpop.f32.mrb[67].mxu1 }
 0x1e8   :  { %v7583_v19 = vpop.f32.mrb[68].mxu1 }
 0x1e9   :  { %v3040_v18 = vadd.f32 %v3039_v47, %v2785_v31  ;;  %v2523_v27 = vadd.f32 %v2522_v59, %v7041_v41  ;;  %v2789_v31 = vmul.f32 %v7052_v0, %v7052_v0 }
 0x1eb   :  { %v2524_v7 = vadd.f32 %v7030_v21, %v2523_v27  ;;  %v3041_v39 = vadd.f32 %v3040_v18, %v2786_v23  ;;  %v2790_v27 = vmul.f32 %v7085_v57, %v7085_v57  ;;  %v7590_v18 = vpop.f32.mrb[69].mxu1 }
 0x1ec   :  { %v7593_v41 = vpop.f32.mrb[70].mxu1 }
 0x1ed   :  { %v3042_v37 = vadd.f32 %v3041_v39, %v2787_v30  ;;  %v2525_v58 = vadd.f32 %v2524_v7, %v7063_v13  ;;  %v2791_v39 = vmul.f32 %v7074_v62, %v7074_v62 }
 0x1ef   :  { %v2526_v59 = vadd.f32 %v7052_v0, %v2525_v58  ;;  %v3043_v47 = vadd.f32 %v3042_v37, %v2788_v5  ;;  %v2792_v58 = vmul.f32 %v7107_v12, %v7107_v12  ;;  %v7600_v5 = vpop.f32.mrb[71].mxu1 }
 0x1f0   :  { %v7603_v13 = vpop.f32.mrb[72].mxu1 }
 0x1f1   :  { %v3044_v23 = vadd.f32 %v3043_v47, %v2789_v31  ;;  %v2527_v21 = vadd.f32 %v2526_v59, %v7085_v57  ;;  %v2793_v31 = vmul.f32 %v7096_v22, %v7096_v22 }
 0x1f3   :  { %v2528_v30 = vadd.f32 %v7074_v62, %v2527_v21  ;;  %v3045_v7 = vadd.f32 %v3044_v23, %v2790_v27  ;;  %v2794_v21 = vmul.f32 %v7129_v63, %v7129_v63  ;;  %v7610_v27 = vpop.f32.mrb[73].mxu1 }
 0x1f4   :  { %v7613_v57 = vpop.f32.mrb[74].mxu1 }
 0x1f5   :  { %v3046_v37 = vadd.f32 %v3045_v7, %v2791_v39  ;;  %v2529_v0 = vadd.f32 %v2528_v30, %v7107_v12  ;;  %v2795_v39 = vmul.f32 %v7118_v50, %v7118_v50 }
 0x1f7   :  { %v2530_v59 = vadd.f32 %v7096_v22, %v2529_v0  ;;  %v3047_v47 = vadd.f32 %v3046_v37, %v2792_v58  ;;  %v2796_v0 = vmul.f32 %v7151_v49, %v7151_v49  ;;  %v7620_v58 = vpop.f32.mrb[75].mxu1 }
 0x1f8   :  { %v7623_v12 = vpop.f32.mrb[76].mxu1 }
 0x1f9   :  { %v3048_v23 = vadd.f32 %v3047_v47, %v2793_v31  ;;  %v2531_v62 = vadd.f32 %v2530_v59, %v7129_v63  ;;  %v2797_v31 = vmul.f32 %v7140_v32, %v7140_v32 }
 0x1fb   :  { %v2532_v30 = vadd.f32 %v7118_v50, %v2531_v62  ;;  %v3049_v7 = vadd.f32 %v3048_v23, %v2794_v21  ;;  %v2798_v62 = vmul.f32 %v7173_v36, %v7173_v36  ;;  %v7630_v21 = vpop.f32.mrb[77].mxu1 }
 0x1fc   :  { %v7633_v63 = vpop.f32.mrb[78].mxu1 }
 0x1fd   :  { %v3050_v37 = vadd.f32 %v3049_v7, %v2795_v39  ;;  %v2533_v22 = vadd.f32 %v2532_v30, %v7151_v49  ;;  %v2799_v39 = vmul.f32 %v7162_v14, %v7162_v14 }
 0x1ff   :  { %v2534_v59 = vadd.f32 %v7140_v32, %v2533_v22  ;;  %v3051_v47 = vadd.f32 %v3050_v37, %v2796_v0  ;;  %v2800_v22 = vmul.f32 %v7195_v9, %v7195_v9  ;;  %v7640_v0 = vpop.f32.mrb[79].mxu1 }
 0x200   :  { %v7643_v49 = vpop.f32.mrb[80].mxu1 }
 0x201   :  { %v3052_v23 = vadd.f32 %v3051_v47, %v2797_v31  ;;  %v2535_v50 = vadd.f32 %v2534_v59, %v7173_v36  ;;  %v2801_v31 = vmul.f32 %v7184_v28, %v7184_v28 }
 0x203   :  { %v2536_v30 = vadd.f32 %v7162_v14, %v2535_v50  ;;  %v3053_v7 = vadd.f32 %v3052_v23, %v2798_v62  ;;  %v2802_v50 = vmul.f32 %v7217_v15, %v7217_v15  ;;  %v7650_v62 = vpop.f32.mrb[81].mxu1 }
 0x204   :  { %v7653_v36 = vpop.f32.mrb[82].mxu1 }
 0x205   :  { %v3054_v37 = vadd.f32 %v3053_v7, %v2799_v39  ;;  %v2537_v32 = vadd.f32 %v2536_v30, %v7195_v9  ;;  %v2803_v39 = vmul.f32 %v7206_v2, %v7206_v2 }
 0x207   :  { %v2538_v59 = vadd.f32 %v7184_v28, %v2537_v32  ;;  %v3055_v47 = vadd.f32 %v3054_v37, %v2800_v22  ;;  %v2804_v32 = vmul.f32 %v7239_v16, %v7239_v16  ;;  %v7660_v22 = vpop.f32.mrb[83].mxu1 }
 0x208   :  { %v7663_v9 = vpop.f32.mrb[84].mxu1 }
 0x209   :  { %v3056_v23 = vadd.f32 %v3055_v47, %v2801_v31  ;;  %v2539_v14 = vadd.f32 %v2538_v59, %v7217_v15  ;;  %v2805_v31 = vmul.f32 %v7228_v46, %v7228_v46 }
 0x20b   :  { %v2540_v30 = vadd.f32 %v7206_v2, %v2539_v14  ;;  %v3057_v7 = vadd.f32 %v3056_v23, %v2802_v50  ;;  %v2806_v14 = vmul.f32 %v7261_v56, %v7261_v56  ;;  %v7670_v50 = vpop.f32.mrb[85].mxu1 }
 0x20c   :  { %v7673_v15 = vpop.f32.mrb[86].mxu1 }
 0x20d   :  { %v3058_v37 = vadd.f32 %v3057_v7, %v2803_v39  ;;  %v2541_v28 = vadd.f32 %v2540_v30, %v7239_v16  ;;  %v2807_v39 = vmul.f32 %v7250_v26, %v7250_v26 }
 0x20f   :  { %v2542_v59 = vadd.f32 %v7228_v46, %v2541_v28  ;;  %v3059_v47 = vadd.f32 %v3058_v37, %v2804_v32  ;;  %v2808_v28 = vmul.f32 %v7276_v42, %v7276_v42  ;;  %v7680_v32 = vpop.f32.mrb[87].mxu1 }
 0x210   :  { %v7683_v16 = vpop.f32.mrb[88].mxu1 }
 0x211   :  { %v3060_v23 = vadd.f32 %v3059_v47, %v2805_v31  ;;  %v2543_v2 = vadd.f32 %v2542_v59, %v7261_v56  ;;  %v2809_v31 = vmul.f32 %v7269_v34, %v7269_v34 }
 0x213   :  { %v2544_v30 = vadd.f32 %v7250_v26, %v2543_v2  ;;  %v3061_v7 = vadd.f32 %v3060_v23, %v2806_v14  ;;  %v2810_v2 = vmul.f32 %v7290_v29, %v7290_v29  ;;  %v7690_v14 = vpop.f32.mrb[89].mxu1 }
 0x214   :  { %v7693_v56 = vpop.f32.mrb[90].mxu1 }
 0x215   :  { %v3062_v37 = vadd.f32 %v3061_v7, %v2807_v39  ;;  %v2545_v46 = vadd.f32 %v2544_v30, %v7276_v42  ;;  %v2811_v39 = vmul.f32 %v7283_v55, %v7283_v55 }
 0x217   :  { %v2546_v59 = vadd.f32 %v7269_v34, %v2545_v46  ;;  %v3063_v47 = vadd.f32 %v3062_v37, %v2808_v28  ;;  %v2812_v46 = vmul.f32 %v7304_v17, %v7304_v17  ;;  %v7700_v28 = vpop.f32.mrb[91].mxu1 }
 0x219   :  { %v3064_v23 = vadd.f32 %v3063_v47, %v2809_v31  ;;  %v2547_v26 = vadd.f32 %v2546_v59, %v7290_v29  ;;  %v2813_v31 = vmul.f32 %v7297_v8, %v7297_v8 }
 0x21a   :  { %v7703_v42 = vpop.f32.mrb[92].mxu1 }
 0x21b   :  { %v2548_v30 = vadd.f32 %v7283_v55, %v2547_v26  ;;  %v3065_v7 = vadd.f32 %v3064_v23, %v2810_v2  ;;  %v2814_v26 = vmul.f32 %v7318_v52, %v7318_v52  ;;  %v7710_v2 = vpop.f32.mrb[93].mxu1 }
 0x21d   :  { %v3066_v37 = vadd.f32 %v3065_v7, %v2811_v39  ;;  %v2549_v34 = vadd.f32 %v2548_v30, %v7304_v17  ;;  %v2815_v39 = vmul.f32 %v7311_v33, %v7311_v33 }
 0x21f   :  { %v2550_v59 = vadd.f32 %v7297_v8, %v2549_v34  ;;  %v3067_v47 = vadd.f32 %v3066_v37, %v2812_v46  ;;  %v7713_v29 = vpop.f32.mrb[94].mxu1  ;;  %v2816_v34 = vmul.f32 %v7332_v1, %v7332_v1 }
 0x220   :  { %v7720_v46 = vpop.f32.mrb[95].mxu1 }
 0x221   :  { %v3068_v23 = vadd.f32 %v3067_v47, %v2813_v31  ;;  %v2551_v55 = vadd.f32 %v2550_v59, %v7318_v52  ;;  %v2817_v31 = vmul.f32 %v7325_v35, %v7325_v35 }
 0x223   :  { %v2552_v30 = vadd.f32 %v7311_v33, %v2551_v55  ;;  %v3069_v7 = vadd.f32 %v3068_v23, %v2814_v26  ;;  %v7723_v17 = vpop.f32.mrb[96].mxu1  ;;  %v2818_v55 = vmul.f32 %v7346_v51, %v7346_v51 }
 0x224   :  { %v7730_v26 = vpop.f32.mrb[97].mxu1 }
 0x225   :  { %v3070_v37 = vadd.f32 %v3069_v7, %v2815_v39  ;;  %v2553_v8 = vadd.f32 %v2552_v30, %v7332_v1  ;;  %v2819_v39 = vmul.f32 %v7339_v43, %v7339_v43 }
 0x227   :  { %v2554_v59 = vadd.f32 %v7325_v35, %v2553_v8  ;;  %v3071_v47 = vadd.f32 %v3070_v37, %v2816_v34  ;;  %v7733_v52 = vpop.f32.mrb[98].mxu1  ;;  %v2820_v8 = vmul.f32 %v7360_v20, %v7360_v20 }
 0x228   :  { %v7740_v34 = vpop.f32.mrb[99].mxu1 }
 0x229   :  { %v3072_v23 = vadd.f32 %v3071_v47, %v2817_v31  ;;  %v2555_v33 = vadd.f32 %v2554_v59, %v7346_v51  ;;  %v2821_v31 = vmul.f32 %v7353_v3, %v7353_v3 }
 0x22b   :  { %v2556_v30 = vadd.f32 %v7339_v43, %v2555_v33  ;;  %v3073_v7 = vadd.f32 %v3072_v23, %v2818_v55  ;;  %v7743_v1 = vpop.f32.mrb[100].mxu1  ;;  %v2822_v33 = vmul.f32 %v7374_v4, %v7374_v4 }
 0x22c   :  { %12848 = vst [vmem:[#allocation198_spill] sm:$0xff] %v7743_v1  ;;  %v7750_v55 = vpop.f32.mrb[101].mxu1 }
 0x22d   :  { %v3074_v37 = vadd.f32 %v3073_v7, %v2819_v39  ;;  %v2557_v35 = vadd.f32 %v2556_v30, %v7360_v20  ;;  %v2823_v39 = vmul.f32 %v7367_v53, %v7367_v53 }
 0x22f   :  { %v2558_v59 = vadd.f32 %v7353_v3, %v2557_v35  ;;  %v3075_v47 = vadd.f32 %v3074_v37, %v2820_v8  ;;  %v7753_v51 = vpop.f32.mrb[102].mxu1  ;;  %v2824_v35 = vmul.f32 %v7388_v54, %v7388_v54 }
 0x230   :  { %12849 = vst [vmem:[#allocation199_spill] sm:$0xff] %v7753_v51  ;;  %v7760_v8 = vpop.f32.mrb[103].mxu1 }
 0x231   :  { %v3076_v23 = vadd.f32 %v3075_v47, %v2821_v31  ;;  %v2559_v43 = vadd.f32 %v2558_v59, %v7374_v4  ;;  %12850 = vst [vmem:[#allocation200_spill] sm:$0xff] %v7760_v8  ;;  %v2825_v31 = vmul.f32 %v7381_v38, %v7381_v38 }
 0x233   :  { %v2560_v30 = vadd.f32 %v7367_v53, %v2559_v43  ;;  %v3077_v7 = vadd.f32 %v3076_v23, %v2822_v33  ;;  %v7763_v20 = vpop.f32.mrb[104].mxu1  ;;  %v2826_v43 = vmul.f32 %v7402_v40, %v7402_v40 }
 0x234   :  { %12851 = vst [vmem:[#allocation201_spill] sm:$0xff] %v7763_v20  ;;  %v7770_v33 = vpop.f32.mrb[105].mxu1 }
 0x235   :  { %v3078_v37 = vadd.f32 %v3077_v7, %v2823_v39  ;;  %v2561_v3 = vadd.f32 %v2560_v30, %v7388_v54  ;;  %12852 = vst [vmem:[#allocation202_spill] sm:$0xff] %v7770_v33  ;;  %v2827_v39 = vmul.f32 %v7395_v24, %v7395_v24 }
 0x237   :  { %v2562_v59 = vadd.f32 %v7381_v38, %v2561_v3  ;;  %v3079_v47 = vadd.f32 %v3078_v37, %v2824_v35  ;;  %v7773_v4 = vpop.f32.mrb[106].mxu1  ;;  %v2828_v3 = vmul.f32 %v7416_v25, %v7416_v25 }
 0x238   :  { %12853 = vst [vmem:[#allocation203_spill] sm:$0xff] %v7773_v4  ;;  %v7780_v35 = vpop.f32.mrb[107].mxu1 }
 0x239   :  { %v3080_v23 = vadd.f32 %v3079_v47, %v2825_v31  ;;  %v2563_v53 = vadd.f32 %v2562_v59, %v7402_v40  ;;  %12854 = vst [vmem:[#allocation204_spill] sm:$0xff] %v7780_v35  ;;  %v2829_v31 = vmul.f32 %v7409_v10, %v7409_v10 }
 0x23b   :  { %v2564_v30 = vadd.f32 %v7395_v24, %v2563_v53  ;;  %v3081_v7 = vadd.f32 %v3080_v23, %v2826_v43  ;;  %v7783_v54 = vpop.f32.mrb[108].mxu1  ;;  %v2830_v53 = vmul.f32 %v7430_v11, %v7430_v11 }
 0x23c   :  { %12855 = vst [vmem:[#allocation205_spill] sm:$0xff] %v7783_v54  ;;  %v7790_v43 = vpop.f32.mrb[109].mxu1 }
 0x23d   :  { %v3082_v37 = vadd.f32 %v3081_v7, %v2827_v39  ;;  %v2565_v38 = vadd.f32 %v2564_v30, %v7416_v25  ;;  %12856 = vst [vmem:[#allocation206_spill] sm:$0xff] %v7790_v43  ;;  %v2831_v39 = vmul.f32 %v7423_v60, %v7423_v60 }
 0x23f   :  { %v2566_v59 = vadd.f32 %v7409_v10, %v2565_v38  ;;  %v3083_v47 = vadd.f32 %v3082_v37, %v2828_v3  ;;  %v7793_v40 = vpop.f32.mrb[110].mxu1  ;;  %v2832_v38 = vmul.f32 %v7444_v61, %v7444_v61 }
 0x240   :  { %12857 = vst [vmem:[#allocation207_spill] sm:$0xff] %v7793_v40  ;;  %v7800_v3 = vpop.f32.mrb[111].mxu1 }
 0x241   :  { %v3084_v23 = vadd.f32 %v3083_v47, %v2829_v31  ;;  %v2567_v24 = vadd.f32 %v2566_v59, %v7430_v11  ;;  %12858 = vst [vmem:[#allocation208_spill] sm:$0xff] %v7800_v3  ;;  %v2833_v31 = vmul.f32 %v7437_v44, %v7437_v44  ;;  %v12860_v11 = vld [vmem:[#allocation167_spill] sm:$0xff] }
 0x243   :  { %v2568_v30 = vadd.f32 %v7423_v60, %v2567_v24  ;;  %v3085_v7 = vadd.f32 %v3084_v23, %v2830_v53  ;;  %v7803_v25 = vpop.f32.mrb[112].mxu1  ;;  %v2834_v24 = vmul.f32 %v12860_v11, %v12860_v11 }
 0x244   :  { %12859 = vst [vmem:[#allocation209_spill] sm:$0xff] %v7803_v25  ;;  %v7810_v53 = vpop.f32.mrb[113].mxu1  ;;  %v12864_v25 = vld [vmem:[#allocation171_spill] sm:$0xff] }
 0x245   :  { %v3086_v37 = vadd.f32 %v3085_v7, %v2831_v39  ;;  %v2569_v10 = vadd.f32 %v2568_v30, %v7444_v61  ;;  %12861 = vst [vmem:[#allocation210_spill] sm:$0xff] %v7810_v53  ;;  %v12863_v39 = vld [vmem:[#allocation165_spill] sm:$0xff] }
 0x246   :  { %v2835_v30 = vmul.f32 %v12863_v39, %v12863_v39 }
 0x247   :  { %v2570_v59 = vadd.f32 %v7437_v44, %v2569_v10  ;;  %v3087_v47 = vadd.f32 %v3086_v37, %v2832_v38  ;;  %v7813_v40 = vpop.f32.mrb[114].mxu1  ;;  %v2836_v10 = vmul.f32 %v12864_v25, %v12864_v25 }
 0x248   :  { %12862 = vst [vmem:[#allocation211_spill] sm:$0xff] %v7813_v40  ;;  %v7820_v38 = vpop.f32.mrb[115].mxu1  ;;  %v12868_v40 = vld [vmem:[#allocation175_spill] sm:$0xff] }
 0x249   :  { %v3088_v23 = vadd.f32 %v3087_v47, %v2833_v31  ;;  %v2571_v60 = vadd.f32 %v2570_v59, %v12860_v11  ;;  %12865 = vst [vmem:[#allocation212_spill] sm:$0xff] %v7820_v38  ;;  %v12867_v31 = vld [vmem:[#allocation169_spill] sm:$0xff] }
 0x24a   :  { %v2837_v59 = vmul.f32 %v12867_v31, %v12867_v31 }
 0x24b   :  { %v2572_v7 = vadd.f32 %v12863_v39, %v2571_v60  ;;  %v3089_v61 = vadd.f32 %v3088_v23, %v2834_v24  ;;  %v2838_v60 = vmul.f32 %v12868_v40, %v12868_v40 }
 0x24c   :  { %v7823_v53 = vpop.f32.mrb[116].mxu1 }
 0x24d   :  { %v3090_v37 = vadd.f32 %v3089_v61, %v2835_v30  ;;  %v2573_v44 = vadd.f32 %v2572_v7, %v12864_v25  ;;  %12866 = vst [vmem:[#allocation213_spill] sm:$0xff] %v7823_v53  ;;  %v7830_v24 = vpop.f32.mrb[117].mxu1  ;;  %v12871_v61 = vld [vmem:[#allocation173_spill] sm:$0xff]  ;;  %v12872_v53 = vld [vmem:[#allocation179_spill] sm:$0xff] }
 0x24e   :  { %12869 = vst [vmem:[#allocation214_spill] sm:$0xff] %v7830_v24  ;;  %v2839_v30 = vmul.f32 %v12871_v61, %v12871_v61 }
 0x24f   :  { %v2574_v47 = vadd.f32 %v12867_v31, %v2573_v44  ;;  %v3091_v11 = vadd.f32 %v3090_v37, %v2836_v10  ;;  %v2840_v44 = vmul.f32 %v12872_v53, %v12872_v53 }
 0x250   :  { %v7833_v38 = vpop.f32.mrb[118].mxu1 }
 0x251   :  { %v3092_v23 = vadd.f32 %v3091_v11, %v2837_v59  ;;  %v2575_v39 = vadd.f32 %v2574_v47, %v12868_v40  ;;  %12870 = vst [vmem:[#allocation215_spill] sm:$0xff] %v7833_v38  ;;  %v7840_v10 = vpop.f32.mrb[119].mxu1  ;;  %v12875_v11 = vld [vmem:[#allocation177_spill] sm:$0xff]  ;;  %v12876_v38 = vld [vmem:[#allocation183_spill] sm:$0xff] }
 0x252   :  { %12873 = vst [vmem:[#allocation216_spill] sm:$0xff] %v7840_v10  ;;  %v2841_v59 = vmul.f32 %v12875_v11, %v12875_v11 }
 0x253   :  { %v2576_v7 = vadd.f32 %v12871_v61, %v2575_v39  ;;  %v3093_v25 = vadd.f32 %v3092_v23, %v2838_v60  ;;  %v2842_v39 = vmul.f32 %v12876_v38, %v12876_v38 }
 0x254   :  { %v7843_v24 = vpop.f32.mrb[120].mxu1 }
 0x255   :  { %v3094_v37 = vadd.f32 %v3093_v25, %v2839_v30  ;;  %v2577_v31 = vadd.f32 %v2576_v7, %v12872_v53  ;;  %12874 = vst [vmem:[#allocation217_spill] sm:$0xff] %v7843_v24  ;;  %v7850_v60 = vpop.f32.mrb[121].mxu1  ;;  %v12879_v25 = vld [vmem:[#allocation181_spill] sm:$0xff]  ;;  %v12880_v24 = vld [vmem:[#allocation187_spill] sm:$0xff] }
 0x256   :  { %12877 = vst [vmem:[#allocation218_spill] sm:$0xff] %v7850_v60  ;;  %v2843_v30 = vmul.f32 %v12879_v25, %v12879_v25 }
 0x257   :  { %v2578_v47 = vadd.f32 %v12875_v11, %v2577_v31  ;;  %v3095_v40 = vadd.f32 %v3094_v37, %v2840_v44  ;;  %v2844_v31 = vmul.f32 %v12880_v24, %v12880_v24 }
 0x258   :  { %v7853_v10 = vpop.f32.mrb[122].mxu1 }
 0x259   :  { %v3096_v23 = vadd.f32 %v3095_v40, %v2841_v59  ;;  %v2579_v61 = vadd.f32 %v2578_v47, %v12876_v38  ;;  %12878 = vst [vmem:[#allocation219_spill] sm:$0xff] %v7853_v10  ;;  %v7860_v44 = vpop.f32.mrb[123].mxu1  ;;  %v12883_v40 = vld [vmem:[#allocation185_spill] sm:$0xff]  ;;  %v12884_v10 = vld [vmem:[#allocation191_spill] sm:$0xff] }
 0x25a   :  { %12881 = vst [vmem:[#allocation220_spill] sm:$0xff] %v7860_v44  ;;  %v2845_v59 = vmul.f32 %v12883_v40, %v12883_v40 }
 0x25b   :  { %v2580_v7 = vadd.f32 %v12879_v25, %v2579_v61  ;;  %v3097_v53 = vadd.f32 %v3096_v23, %v2842_v39  ;;  %v2846_v61 = vmul.f32 %v12884_v10, %v12884_v10 }
 0x25c   :  { %v7863_v60 = vpop.f32.mrb[124].mxu1 }
 0x25d   :  { %v3098_v37 = vadd.f32 %v3097_v53, %v2843_v30  ;;  %v2581_v11 = vadd.f32 %v2580_v7, %v12880_v24  ;;  %12882 = vst [vmem:[#allocation221_spill] sm:$0xff] %v7863_v60  ;;  %v7870_v39 = vpop.f32.mrb[125].mxu1  ;;  %v12887_v53 = vld [vmem:[#allocation189_spill] sm:$0xff]  ;;  %v12888_v60 = vld [vmem:[#allocation195_spill] sm:$0xff] }
 0x25e   :  { %12885 = vst [vmem:[#allocation222_spill] sm:$0xff] %v7870_v39  ;;  %v2847_v30 = vmul.f32 %v12887_v53, %v12887_v53  ;;  %v12889_v39 = vld [vmem:[#allocation193_spill] sm:$0xff] }
 0x25f   :  { %v2582_v47 = vadd.f32 %v12883_v40, %v2581_v11  ;;  %v3099_v38 = vadd.f32 %v3098_v37, %v2844_v31  ;;  %v2848_v11 = vmul.f32 %v12888_v60, %v12888_v60 }
 0x260   :  { %v7873_v44 = vpop.f32.mrb[126].mxu1 }
 0x261   :  { %v3100_v23 = vadd.f32 %v3099_v38, %v2845_v59  ;;  %v2583_v25 = vadd.f32 %v2582_v47, %v12884_v10  ;;  %12886 = vst [vmem:[#allocation223_spill] sm:$0xff] %v7873_v44  ;;  %v7880_v31 = vpop.f32.mrb[127].mxu1  ;;  %v2849_v38 = vmul.f32 %v12889_v39, %v12889_v39  ;;  %v2850_v10 = vmul.f32 %v7570_v6, %v7570_v6 }
 0x263   :  { %v2584_v7 = vadd.f32 %v12887_v53, %v2583_v25  ;;  %v3101_v24 = vadd.f32 %v3100_v23, %v2846_v61  ;;  %v12890_v61 = vld [vmem:[#allocation197_spill] sm:$0xff] }
 0x264   :  { %v2851_v23 = vmul.f32 %v12890_v61, %v12890_v61 }
 0x265   :  { %v3102_v37 = vadd.f32 %v3101_v24, %v2847_v30  ;;  %v2585_v40 = vadd.f32 %v2584_v7, %v12888_v60  ;;  %v2852_v30 = vmul.f32 %v7580_v48, %v7580_v48 }
 0x267   :  { %v2586_v59 = vadd.f32 %v12889_v39, %v2585_v40  ;;  %v3103_v47 = vadd.f32 %v3102_v37, %v2848_v11  ;;  %v2853_v40 = vmul.f32 %v7573_v45, %v7573_v45 }
 0x269   :  { %v3104_v44 = vadd.f32 %v3103_v47, %v2849_v38  ;;  %v2587_v25 = vadd.f32 %v2586_v59, %v7570_v6  ;;  %v2854_v38 = vmul.f32 %v7590_v18, %v7590_v18 }
 0x26b   :  { %v2588_v53 = vadd.f32 %v12890_v61, %v2587_v25  ;;  %v3105_v24 = vadd.f32 %v3104_v44, %v2850_v10  ;;  %v2855_v10 = vmul.f32 %v7583_v19, %v7583_v19 }
 0x26d   :  { %v3106_v7 = vadd.f32 %v3105_v24, %v2851_v23  ;;  %v2589_v60 = vadd.f32 %v2588_v53, %v7580_v48  ;;  %v2856_v53 = vmul.f32 %v7600_v5, %v7600_v5 }
 0x26f   :  { %v2590_v11 = vadd.f32 %v7573_v45, %v2589_v60  ;;  %v3107_v37 = vadd.f32 %v3106_v7, %v2852_v30  ;;  %v2857_v60 = vmul.f32 %v7593_v41, %v7593_v41 }
 0x271   :  { %v3108_v59 = vadd.f32 %v3107_v37, %v2853_v40  ;;  %v2591_v47 = vadd.f32 %v2590_v11, %v7590_v18  ;;  %v2858_v40 = vmul.f32 %v7610_v27, %v7610_v27 }
 0x273   :  { %v3109_v44 = vadd.f32 %v3108_v59, %v2854_v38  ;;  %v2592_v25 = vadd.f32 %v7583_v19, %v2591_v47  ;;  %v2859_v38 = vmul.f32 %v7603_v13, %v7603_v13 }
 0x275   :  { %v2593_v23 = vadd.f32 %v2592_v25, %v7600_v5  ;;  %v3110_v24 = vadd.f32 %v3109_v44, %v2855_v10  ;;  %v2860_v10 = vmul.f32 %v7620_v58, %v7620_v58 }
 0x277   :  { %v3111_v30 = vadd.f32 %v3110_v24, %v2856_v53  ;;  %v2594_v7 = vadd.f32 %v7593_v41, %v2593_v23  ;;  %v2861_v53 = vmul.f32 %v7613_v57, %v7613_v57 }
 0x279   :  { %v2595_v11 = vadd.f32 %v2594_v7, %v7610_v27  ;;  %v3112_v37 = vadd.f32 %v3111_v30, %v2857_v60  ;;  %v2862_v60 = vmul.f32 %v7630_v21, %v7630_v21 }
 0x27b   :  { %v3113_v59 = vadd.f32 %v3112_v37, %v2858_v40  ;;  %v2596_v47 = vadd.f32 %v7603_v13, %v2595_v11  ;;  %v2863_v40 = vmul.f32 %v7623_v12, %v7623_v12 }
 0x27d   :  { %v2597_v44 = vadd.f32 %v2596_v47, %v7620_v58  ;;  %v3114_v25 = vadd.f32 %v3113_v59, %v2859_v38  ;;  %v2864_v38 = vmul.f32 %v7640_v0, %v7640_v0 }
 0x27f   :  { %v3115_v23 = vadd.f32 %v3114_v25, %v2860_v10  ;;  %v2598_v24 = vadd.f32 %v7613_v57, %v2597_v44  ;;  %v2865_v10 = vmul.f32 %v7633_v63, %v7633_v63 }
 0x281   :  { %v2599_v30 = vadd.f32 %v2598_v24, %v7630_v21  ;;  %v3116_v7 = vadd.f32 %v3115_v23, %v2861_v53  ;;  %v2866_v53 = vmul.f32 %v7650_v62, %v7650_v62 }
 0x283   :  { %v3117_v11 = vadd.f32 %v3116_v7, %v2862_v60  ;;  %v2600_v37 = vadd.f32 %v7623_v12, %v2599_v30  ;;  %v2867_v60 = vmul.f32 %v7643_v49, %v7643_v49 }
 0x285   :  { %v2601_v59 = vadd.f32 %v2600_v37, %v7640_v0  ;;  %v3118_v47 = vadd.f32 %v3117_v11, %v2863_v40  ;;  %v2868_v40 = vmul.f32 %v7660_v22, %v7660_v22 }
 0x287   :  { %v3119_v44 = vadd.f32 %v3118_v47, %v2864_v38  ;;  %v2602_v25 = vadd.f32 %v7633_v63, %v2601_v59  ;;  %v2869_v38 = vmul.f32 %v7653_v36, %v7653_v36 }
 0x289   :  { %v2603_v23 = vadd.f32 %v2602_v25, %v7650_v62  ;;  %v3120_v24 = vadd.f32 %v3119_v44, %v2865_v10  ;;  %v2870_v10 = vmul.f32 %v7670_v50, %v7670_v50 }
 0x28b   :  { %v3121_v30 = vadd.f32 %v3120_v24, %v2866_v53  ;;  %v2604_v7 = vadd.f32 %v7643_v49, %v2603_v23  ;;  %v2871_v53 = vmul.f32 %v7663_v9, %v7663_v9 }
 0x28d   :  { %v2605_v11 = vadd.f32 %v2604_v7, %v7660_v22  ;;  %v3122_v37 = vadd.f32 %v3121_v30, %v2867_v60  ;;  %v2872_v60 = vmul.f32 %v7680_v32, %v7680_v32 }
 0x28f   :  { %v3123_v59 = vadd.f32 %v3122_v37, %v2868_v40  ;;  %v2606_v47 = vadd.f32 %v7653_v36, %v2605_v11  ;;  %v2873_v40 = vmul.f32 %v7673_v15, %v7673_v15 }
 0x291   :  { %v2607_v44 = vadd.f32 %v2606_v47, %v7670_v50  ;;  %v3124_v25 = vadd.f32 %v3123_v59, %v2869_v38  ;;  %v2874_v38 = vmul.f32 %v7690_v14, %v7690_v14 }
 0x293   :  { %v3125_v23 = vadd.f32 %v3124_v25, %v2870_v10  ;;  %v2608_v24 = vadd.f32 %v7663_v9, %v2607_v44  ;;  %v2875_v10 = vmul.f32 %v7683_v16, %v7683_v16 }
 0x295   :  { %v2609_v30 = vadd.f32 %v2608_v24, %v7680_v32  ;;  %v3126_v7 = vadd.f32 %v3125_v23, %v2871_v53  ;;  %v2876_v53 = vmul.f32 %v7700_v28, %v7700_v28 }
 0x297   :  { %v3127_v11 = vadd.f32 %v3126_v7, %v2872_v60  ;;  %v2610_v37 = vadd.f32 %v7673_v15, %v2609_v30  ;;  %v2877_v60 = vmul.f32 %v7693_v56, %v7693_v56 }
 0x299   :  { %v2611_v59 = vadd.f32 %v2610_v37, %v7690_v14  ;;  %v3128_v47 = vadd.f32 %v3127_v11, %v2873_v40  ;;  %v2878_v40 = vmul.f32 %v7710_v2, %v7710_v2 }
 0x29b   :  { %v3129_v44 = vadd.f32 %v3128_v47, %v2874_v38  ;;  %v2612_v25 = vadd.f32 %v7683_v16, %v2611_v59  ;;  %v2879_v38 = vmul.f32 %v7703_v42, %v7703_v42 }
 0x29d   :  { %v2613_v23 = vadd.f32 %v2612_v25, %v7700_v28  ;;  %v3130_v24 = vadd.f32 %v3129_v44, %v2875_v10  ;;  %v2880_v10 = vmul.f32 %v7720_v46, %v7720_v46 }
 0x29f   :  { %v3131_v30 = vadd.f32 %v3130_v24, %v2876_v53  ;;  %v2614_v7 = vadd.f32 %v7693_v56, %v2613_v23  ;;  %v2881_v53 = vmul.f32 %v7713_v29, %v7713_v29 }
 0x2a1   :  { %v2615_v11 = vadd.f32 %v2614_v7, %v7710_v2  ;;  %v3132_v37 = vadd.f32 %v3131_v30, %v2877_v60  ;;  %v2882_v60 = vmul.f32 %v7730_v26, %v7730_v26 }
 0x2a3   :  { %v3133_v59 = vadd.f32 %v3132_v37, %v2878_v40  ;;  %v2616_v47 = vadd.f32 %v7703_v42, %v2615_v11  ;;  %v2883_v40 = vmul.f32 %v7723_v17, %v7723_v17 }
 0x2a5   :  { %v2617_v44 = vadd.f32 %v2616_v47, %v7720_v46  ;;  %v3134_v25 = vadd.f32 %v3133_v59, %v2879_v38  ;;  %v2884_v38 = vmul.f32 %v7740_v34, %v7740_v34 }
 0x2a7   :  { %v3135_v23 = vadd.f32 %v3134_v25, %v2880_v10  ;;  %v2618_v24 = vadd.f32 %v7713_v29, %v2617_v44  ;;  %v2885_v10 = vmul.f32 %v7733_v52, %v7733_v52 }
 0x2a9   :  { %v2619_v30 = vadd.f32 %v2618_v24, %v7730_v26  ;;  %v3136_v7 = vadd.f32 %v3135_v23, %v2881_v53  ;;  %v2886_v53 = vmul.f32 %v7750_v55, %v7750_v55 }
 0x2ab   :  { %v3137_v11 = vadd.f32 %v3136_v7, %v2882_v60  ;;  %v2620_v37 = vadd.f32 %v7723_v17, %v2619_v30  ;;  %v2887_v60 = vmul.f32 %v7743_v1, %v7743_v1 }
 0x2ad   :  { %v2621_v59 = vadd.f32 %v2620_v37, %v7740_v34  ;;  %v3138_v47 = vadd.f32 %v3137_v11, %v2883_v40  ;;  %v2888_v40 = vmul.f32 %v7760_v8, %v7760_v8 }
 0x2af   :  { %v3139_v44 = vadd.f32 %v3138_v47, %v2884_v38  ;;  %v2622_v25 = vadd.f32 %v7733_v52, %v2621_v59  ;;  %v2889_v38 = vmul.f32 %v7753_v51, %v7753_v51 }
 0x2b1   :  { %v2623_v23 = vadd.f32 %v2622_v25, %v7750_v55  ;;  %v3140_v24 = vadd.f32 %v3139_v44, %v2885_v10  ;;  %v2890_v10 = vmul.f32 %v7770_v33, %v7770_v33 }
 0x2b3   :  { %v3141_v30 = vadd.f32 %v3140_v24, %v2886_v53  ;;  %v2624_v7 = vadd.f32 %v7743_v1, %v2623_v23  ;;  %v2891_v53 = vmul.f32 %v7763_v20, %v7763_v20 }
 0x2b5   :  { %v2625_v11 = vadd.f32 %v2624_v7, %v7760_v8  ;;  %v3142_v37 = vadd.f32 %v3141_v30, %v2887_v60  ;;  %v2892_v60 = vmul.f32 %v7780_v35, %v7780_v35 }
 0x2b7   :  { %v3143_v59 = vadd.f32 %v3142_v37, %v2888_v40  ;;  %v2626_v47 = vadd.f32 %v7753_v51, %v2625_v11  ;;  %v2893_v40 = vmul.f32 %v7773_v4, %v7773_v4 }
 0x2b9   :  { %v2627_v44 = vadd.f32 %v2626_v47, %v7770_v33  ;;  %v3144_v25 = vadd.f32 %v3143_v59, %v2889_v38  ;;  %v2894_v38 = vmul.f32 %v7790_v43, %v7790_v43 }
 0x2bb   :  { %v3145_v23 = vadd.f32 %v3144_v25, %v2890_v10  ;;  %v2628_v24 = vadd.f32 %v7763_v20, %v2627_v44  ;;  %v2895_v10 = vmul.f32 %v7783_v54, %v7783_v54 }
 0x2bd   :  { %v2629_v30 = vadd.f32 %v2628_v24, %v7780_v35  ;;  %v3146_v7 = vadd.f32 %v3145_v23, %v2891_v53  ;;  %v2896_v53 = vmul.f32 %v7800_v3, %v7800_v3 }
 0x2bf   :  { %v3147_v11 = vadd.f32 %v3146_v7, %v2892_v60  ;;  %v2630_v37 = vadd.f32 %v7773_v4, %v2629_v30  ;;  %v12891_v60 = vld [vmem:[#allocation207_spill] sm:$0xff] }
 0x2c0   :  { %v2897_v30 = vmul.f32 %v12891_v60, %v12891_v60 }
 0x2c1   :  { %v2631_v59 = vadd.f32 %v2630_v37, %v7790_v43  ;;  %v3148_v47 = vadd.f32 %v3147_v11, %v2893_v40  ;;  %v12892_v37 = vld [vmem:[#allocation210_spill] sm:$0xff] }
 0x2c2   :  { %v2898_v40 = vmul.f32 %v12892_v37, %v12892_v37 }
 0x2c3   :  { %v3149_v44 = vadd.f32 %v3148_v47, %v2894_v38  ;;  %v2632_v25 = vadd.f32 %v7783_v54, %v2631_v59  ;;  %v12893_v47 = vld [vmem:[#allocation209_spill] sm:$0xff] }
 0x2c4   :  { %v2899_v59 = vmul.f32 %v12893_v47, %v12893_v47 }
 0x2c5   :  { %v2633_v23 = vadd.f32 %v2632_v25, %v7800_v3  ;;  %v3150_v24 = vadd.f32 %v3149_v44, %v2895_v10  ;;  %v12894_v25 = vld [vmem:[#allocation212_spill] sm:$0xff] }
 0x2c6   :  { %v2900_v10 = vmul.f32 %v12894_v25, %v12894_v25 }
 0x2c7   :  { %v3151_v7 = vadd.f32 %v3150_v24, %v2896_v53  ;;  %v2634_v4 = vadd.f32 %v12891_v60, %v2633_v23  ;;  %v12895_v24 = vld [vmem:[#allocation211_spill] sm:$0xff] }
 0x2c8   :  { %v2901_v23 = vmul.f32 %v12895_v24, %v12895_v24 }
 0x2c9   :  { %v2635_v11 = vadd.f32 %v2634_v4, %v12892_v37  ;;  %v3152_v38 = vadd.f32 %v3151_v7, %v2897_v30  ;;  %v12896_v4 = vld [vmem:[#allocation214_spill] sm:$0xff] }
 0x2ca   :  { %v2902_v30 = vmul.f32 %v12896_v4, %v12896_v4 }
 0x2cb   :  { %v3153_v54 = vadd.f32 %v3152_v38, %v2898_v40  ;;  %v2636_v43 = vadd.f32 %v12893_v47, %v2635_v11  ;;  %v12897_v38 = vld [vmem:[#allocation213_spill] sm:$0xff] }
 0x2cc   :  { %v2903_v11 = vmul.f32 %v12897_v38, %v12897_v38 }
 0x2cd   :  { %v2637_v44 = vadd.f32 %v2636_v43, %v12894_v25  ;;  %v3154_v53 = vadd.f32 %v3153_v54, %v2899_v59  ;;  %v12898_v43 = vld [vmem:[#allocation216_spill] sm:$0xff] }
 0x2ce   :  { %v2904_v54 = vmul.f32 %v12898_v43, %v12898_v43 }
 0x2cf   :  { %v3155_v60 = vadd.f32 %v3154_v53, %v2900_v10  ;;  %v2638_v3 = vadd.f32 %v12895_v24, %v2637_v44  ;;  %v12899_v53 = vld [vmem:[#allocation215_spill] sm:$0xff] }
 0x2d0   :  { %v2905_v44 = vmul.f32 %v12899_v53, %v12899_v53 }
 0x2d1   :  { %v2639_v7 = vadd.f32 %v2638_v3, %v12896_v4  ;;  %v3156_v40 = vadd.f32 %v3155_v60, %v2901_v23  ;;  %v12900_v3 = vld [vmem:[#allocation218_spill] sm:$0xff] }
 0x2d2   :  { %v2906_v60 = vmul.f32 %v12900_v3, %v12900_v3 }
 0x2d3   :  { %v3157_v47 = vadd.f32 %v3156_v40, %v2902_v30  ;;  %v2640_v37 = vadd.f32 %v12897_v38, %v2639_v7  ;;  %v12901_v40 = vld [vmem:[#allocation217_spill] sm:$0xff] }
 0x2d4   :  { %v2907_v7 = vmul.f32 %v12901_v40, %v12901_v40 }
 0x2d5   :  { %v2641_v59 = vadd.f32 %v2640_v37, %v12898_v43  ;;  %v3158_v10 = vadd.f32 %v3157_v47, %v2903_v11  ;;  %v12902_v37 = vld [vmem:[#allocation220_spill] sm:$0xff] }
 0x2d6   :  { %v2908_v47 = vmul.f32 %v12902_v37, %v12902_v37 }
 0x2d7   :  { %v3159_v24 = vadd.f32 %v3158_v10, %v2904_v54  ;;  %v2642_v25 = vadd.f32 %v12899_v53, %v2641_v59  ;;  %v12903_v10 = vld [vmem:[#allocation219_spill] sm:$0xff] }
 0x2d8   :  { %v2909_v59 = vmul.f32 %v12903_v10, %v12903_v10 }
 0x2d9   :  { %v2643_v23 = vadd.f32 %v2642_v25, %v12900_v3  ;;  %v3160_v30 = vadd.f32 %v3159_v24, %v2905_v44  ;;  %v12904_v25 = vld [vmem:[#allocation222_spill] sm:$0xff] }
 0x2da   :  { %v2910_v24 = vmul.f32 %v12904_v25, %v12904_v25 }
 0x2db   :  { %v3161_v38 = vadd.f32 %v3160_v30, %v2906_v60  ;;  %v2644_v4 = vadd.f32 %v12901_v40, %v2643_v23  ;;  %v12905_v30 = vld [vmem:[#allocation221_spill] sm:$0xff] }
 0x2dc   :  { %v2911_v23 = vmul.f32 %v12905_v30, %v12905_v30 }
 0x2dd   :  { %v2645_v11 = vadd.f32 %v2644_v4, %v12902_v37  ;;  %v3162_v54 = vadd.f32 %v3161_v38, %v2907_v7  ;;  %v2912_v4 = vmul.f32 %v7880_v31, %v7880_v31 }
 0x2df   :  { %v3163_v53 = vadd.f32 %v3162_v54, %v2908_v47  ;;  %v2646_v43 = vadd.f32 %v12903_v10, %v2645_v11  ;;  %v12906_v47 = vld [vmem:[#allocation223_spill] sm:$0xff] }
 0x2e0   :  { %v2913_v11 = vmul.f32 %v12906_v47, %v12906_v47 }
 0x2e1   :  { %v2647_v44 = vadd.f32 %v2646_v43, %v12904_v25  ;;  %v3164_v60 = vadd.f32 %v3163_v53, %v2909_v59 }
 0x2e3   :  { %v3165_v40 = vadd.f32 %v3164_v60, %v2910_v24  ;;  %v2648_v3 = vadd.f32 %v12905_v30, %v2647_v44 }
 0x2e5   :  { %v2649_v38 = vadd.f32 %v2648_v3, %v7880_v31  ;;  %v3166_v7 = vadd.f32 %v3165_v40, %v2911_v23 }
 0x2e7   :  { %v2650_v54 = vadd.f32 %v12906_v47, %v2649_v38  ;;  %v3167_v10 = vadd.f32 %v3166_v7, %v2912_v4  ;;  %v3186_v4 = vlaneseq }
 0x2e9   :  { %v2651_v43 = vrot.slane %v2650_v54, 4  ;;  %v3168_v53 = vadd.f32 %v3167_v10, %v2913_v11  ;;  %v3187_v38 = vshrl.u32 %v3186_v4, 7  ;;  %v3178_v10 = vld [vmem:[%s12156_s2] sm:$0x1]  ;;  %s5722_s2 = smov [#allocation2]  }
 0x2ea   :  { %v12912_v4 = vld [vmem:[#allocation9_spill] sm:$0xff] }
 0x2eb   :  { %v2652_v59 = vadd.f32 %v2651_v43, %v2650_v54  ;;  %v3169_v25 = vrot.slane %v3168_v53, 4  ;;  %v12907_v43 = vld [vmem:[#allocation6_spill] sm:$0xff] }
 0x2ed   :  { %v2653_v37 = vrot.slane %v2652_v59, 2  ;;  %v3170_v24 = vadd.f32 %v3169_v25, %v3168_v53  ;;  %v3188_v25 = vsub.s32 0, %v3187_v38 }
 0x2ef   :  { %v2654_v60 = vadd.f32 %v2653_v37, %v2652_v59  ;;  %v3171_v44 = vrot.slane %v3170_v24, 2  ;;  %v12908_v59 = vld [vmem:[#allocation5_spill] sm:$0xff] }
 0x2f1   :  { %v2655_v30 = vrot.slane %v2654_v60, 1  ;;  %v3172_v35 = vadd.f32 %v3171_v44, %v3170_v24 }
 0x2f3   :  { %v2656_v20 = vadd.f32 %v2655_v30, %v2654_v60  ;;  %v3173_v33 = vrot.slane %v3172_v35, 1  ;;  %v3182_v30 = vld [vmem:[%s12157_s3] sm:$0x1]  ;;  %v12909_v60 = vld [vmem:[#allocation8_spill] sm:$0xff]  ;;  %s4738_s3 = sshll.u32 %s5722_s2, 4  ;;  %s12103_s3 = int_to_ptr.vmem [resolvable:$true] %s4738_s3 }
 0x2f4   :  { %s5698_s7 = scalar_lea.vmem %s12103_s3, 32768  ;;  %p5703_p1 = scmp.lt.s32.totalorder %s12103_s3, %s12103_s3 }
 0x2f5   :  { %v2657_v3 = vmul.f32 0.00048828125, %v2656_v20  ;;  %v3174_v40 = vadd.f32 %v3173_v33, %v3172_v35  ;;  %p5699_p0 = scmp.ne.s32.totalorder %s12103_s3, %s5698_s7  ;;  %p5704_p2 = scmp.lt.s32.totalorder %s5698_s7, %s5698_s7 }
 0x2f7   :  { %v3175_v23 = vmul.f32 0.00048828125, %v3174_v40  ;;  %v3176_v51 = vmul.f32 %v2657_v3, %v2657_v3  ;;  %v12911_v40 = vld [vmem:[#allocation10_spill] sm:$0xff]  ;;  %p5705_p3 = por %p5704_p2, %p5703_p1 }
 0x2f9   :  { %v3177_v8 = vsub.f32 %v3175_v23, %v3176_v51  ;;  %p5706_p4 = pnand %p5705_p3, %p5699_p0 }
 0x2fb   :  { %v3179_v1 = vadd.f32 1e-05, %v3177_v8 }
 0x2fd   :  { %5696 = vrsqrt.f32 %v3179_v1 }
 0x307   :  { %v5697_v37 = vpop.eup %5696 }
 0x308   :  { %v3181_v7 = vmul.f32 %v5697_v37, %v3178_v10  ;;  %v12913_v10 = vld [vmem:[#allocation12_spill] sm:$0xff]  ;;  %v12914_v37 = vld [vmem:[#allocation11_spill] sm:$0xff] }
 0x30a   :  { %v3183_v20 = vmul.f32 %v3181_v7, %v2657_v3  ;;  %v8084_v33 = vrot.slane %v3181_v7, %v3188_v25 }
 0x30c   :  { %v3184_v35 = vsub.f32 %v3182_v30, %v3183_v20  ;;  %v3445_v1 = vmul.f32 %v8084_v33, %v7880_v31  ;;  %v8093_v53 = vmul.f32 %v8084_v33, %v12907_v43  ;;  %v8097_v24 = vmul.f32 %v12908_v59, %v8084_v33  ;;  %v12910_v31 = vld [vmem:[#allocation7_spill] sm:$0xff]  ;;  %v12915_v30 = vld [vmem:[#allocation14_spill] sm:$0xff] }
 0x30d   :  { %v8101_v44 = vmul.f32 %v8084_v33, %v12909_v60  ;;  %v8105_v3 = vmul.f32 %v12910_v31, %v8084_v33  ;;  %v8109_v23 = vmul.f32 %v8084_v33, %v12911_v40  ;;  %v8113_v38 = vmul.f32 %v12912_v4, %v8084_v33  ;;  %v12919_v59 = vld [vmem:[#allocation18_spill] sm:$0xff]  ;;  %v12921_v31 = vld [vmem:[#allocation17_spill] sm:$0xff]  ;;  %v12923_v4 = vld [vmem:[#allocation20_spill] sm:$0xff] }
 0x30e   :  { %v8088_v51 = vrot.slane %v3184_v35, %v3188_v25  ;;  %v8117_v25 = vmul.f32 %v8084_v33, %v12913_v10  ;;  %v8121_v7 = vmul.f32 %v12914_v37, %v8084_v33  ;;  %v8125_v20 = vmul.f32 %v8084_v33, %v12915_v30  ;;  %v12916_v35 = vld [vmem:[#allocation13_spill] sm:$0xff]  ;;  %v12925_v37 = vld [vmem:[#allocation19_spill] sm:$0xff] }
 0x30f   :  { %v8141_v60 = vmul.f32 %v8084_v33, %v12919_v59  ;;  %v8145_v40 = vmul.f32 %v12921_v31, %v8084_v33  ;;  %v8149_v10 = vmul.f32 %v8084_v33, %v12923_v4  ;;  %v8153_v30 = vmul.f32 %v12925_v37, %v8084_v33 }
 0x310   :  { %v3707_v8 = vadd.f32 %v8088_v51, %v3445_v1  ;;  %v8129_v1 = vmul.f32 %v12916_v35, %v8084_v33  ;;  %v12927_v35 = vld [vmem:[#allocation22_spill] sm:$0xff] }
 0x311   :  { %12920 = vst [vmem:[#allocation193_spill] sm:$0xff] %v8141_v60  ;;  %12922 = vst [vmem:[#allocation197_spill] sm:$0xff] %v8145_v40  ;;  %v12931_v60 = vld [vmem:[#allocation24_spill] sm:$0xff]  ;;  %v12933_v40 = vld [vmem:[#allocation23_spill] sm:$0xff] }
 0x312   :  { %vm3963_vm1 = vcmp.ge.f32.partialorder %v3707_v8, 0.0  ;;  %v4219_v11 = vmul.f32 0.1, %v3707_v8  ;;  %12924 = vst [vmem:[#allocation223_spill] sm:$0xff] %v8149_v10  ;;  %12926 = vst [vmem:[#allocation6_spill] sm:$0xff] %v8153_v30  ;;  %v8165_v31 = vmul.f32 %v8084_v33, %v12931_v60  ;;  %v8169_v4 = vmul.f32 %v12933_v40, %v8084_v33  ;;  %v12935_v10 = vld [vmem:[#allocation26_spill] sm:$0xff] }
 0x313   :  { %v8173_v37 = vmul.f32 %v8084_v33, %v12935_v10  ;;  %v12937_v30 = vld [vmem:[#allocation25_spill] sm:$0xff] }
 0x314   :  { %v4475_v54 = vsel %vm3963_vm1, %v3707_v8, %v4219_v11  ;;  %v12917_v8 = vld [vmem:[#allocation16_spill] sm:$0xff]  ;;  %12932 = vst [vmem:[#allocation7_spill] sm:$0xff] %v8165_v31  ;;  %12934 = vst [vmem:[#allocation10_spill] sm:$0xff] %v8169_v4  ;;  %v12943_v31 = vld [vmem:[#allocation30_spill] sm:$0xff] }
 0x315   :  { %4731 = vst [vmem:[#allocation2 + $0x7f0] sm:$0xff] %v4475_v54  ;;  %v8133_v11 = vmul.f32 %v8084_v33, %v12917_v8  ;;  %v12918_v54 = vld [vmem:[#allocation15_spill] sm:$0xff]  ;;  %v8157_v8 = vmul.f32 %v8084_v33, %v12927_v35  ;;  %12936 = vst [vmem:[#allocation9_spill] sm:$0xff] %v8173_v37  ;;  %v8177_v35 = vmul.f32 %v12937_v30, %v8084_v33  ;;  %v12945_v4 = vld [vmem:[#allocation29_spill] sm:$0xff] }
 0x316   :  { %v8137_v43 = vmul.f32 %v12918_v54, %v8084_v33  ;;  %v12929_v54 = vld [vmem:[#allocation21_spill] sm:$0xff]  ;;  %v8189_v40 = vmul.f32 %v8084_v33, %v12943_v31  ;;  %v8193_v10 = vmul.f32 %v12945_v4, %v8084_v33  ;;  %v12947_v37 = vld [vmem:[#allocation32_spill] sm:$0xff] }
 0x317   :  { %12928 = vst [vmem:[#allocation5_spill] sm:$0xff] %v8157_v8  ;;  %v8161_v59 = vmul.f32 %v12929_v54, %v8084_v33  ;;  %12938 = vst [vmem:[#allocation12_spill] sm:$0xff] %v8177_v35  ;;  %v12939_v8 = vld [vmem:[#allocation28_spill] sm:$0xff]  ;;  %v8197_v30 = vmul.f32 %v8084_v33, %v12947_v37  ;;  %v12949_v35 = vld [vmem:[#allocation31_spill] sm:$0xff] }
 0x318   :  { %v8181_v54 = vmul.f32 %v8084_v33, %v12939_v8  ;;  %12944 = vst [vmem:[#allocation13_spill] sm:$0xff] %v8189_v40  ;;  %12946 = vst [vmem:[#allocation16_spill] sm:$0xff] %v8193_v10  ;;  %v8201_v8 = vmul.f32 %v12949_v35, %v8084_v33  ;;  %v12955_v40 = vld [vmem:[#allocation36_spill] sm:$0xff]  ;;  %v12957_v10 = vld [vmem:[#allocation35_spill] sm:$0xff] }
 0x319   :  { %12930 = vst [vmem:[#allocation8_spill] sm:$0xff] %v8161_v59  ;;  %v12941_v59 = vld [vmem:[#allocation27_spill] sm:$0xff]  ;;  %12948 = vst [vmem:[#allocation15_spill] sm:$0xff] %v8197_v30  ;;  %v8213_v4 = vmul.f32 %v8084_v33, %v12955_v40  ;;  %v8217_v37 = vmul.f32 %v12957_v10, %v8084_v33  ;;  %v12959_v30 = vld [vmem:[#allocation38_spill] sm:$0xff] }
 0x31a   :  { %12940 = vst [vmem:[#allocation11_spill] sm:$0xff] %v8181_v54  ;;  %v8185_v60 = vmul.f32 %v12941_v59, %v8084_v33  ;;  %12950 = vst [vmem:[#allocation18_spill] sm:$0xff] %v8201_v8  ;;  %v12951_v54 = vld [vmem:[#allocation34_spill] sm:$0xff]  ;;  %v8221_v35 = vmul.f32 %v8084_v33, %v12959_v30  ;;  %v12961_v8 = vld [vmem:[#allocation37_spill] sm:$0xff] }
 0x31b   :  { %v8205_v59 = vmul.f32 %v8084_v33, %v12951_v54  ;;  %12956 = vst [vmem:[#allocation19_spill] sm:$0xff] %v8213_v4  ;;  %12958 = vst [vmem:[#allocation22_spill] sm:$0xff] %v8217_v37  ;;  %v8225_v54 = vmul.f32 %v12961_v8, %v8084_v33  ;;  %v12967_v4 = vld [vmem:[#allocation42_spill] sm:$0xff]  ;;  %v12969_v37 = vld [vmem:[#allocation41_spill] sm:$0xff] }
 0x31c   :  { %12942 = vst [vmem:[#allocation14_spill] sm:$0xff] %v8185_v60  ;;  %v12953_v60 = vld [vmem:[#allocation33_spill] sm:$0xff]  ;;  %12960 = vst [vmem:[#allocation21_spill] sm:$0xff] %v8221_v35  ;;  %v8237_v10 = vmul.f32 %v8084_v33, %v12967_v4  ;;  %v8241_v30 = vmul.f32 %v12969_v37, %v8084_v33  ;;  %v12971_v35 = vld [vmem:[#allocation44_spill] sm:$0xff] }
 0x31d   :  { %12952 = vst [vmem:[#allocation17_spill] sm:$0xff] %v8205_v59  ;;  %v8209_v31 = vmul.f32 %v12953_v60, %v8084_v33  ;;  %12962 = vst [vmem:[#allocation24_spill] sm:$0xff] %v8225_v54  ;;  %v12963_v59 = vld [vmem:[#allocation40_spill] sm:$0xff]  ;;  %v8245_v8 = vmul.f32 %v8084_v33, %v12971_v35  ;;  %v12973_v54 = vld [vmem:[#allocation43_spill] sm:$0xff] }
 0x31e   :  { %v8229_v60 = vmul.f32 %v8084_v33, %v12963_v59  ;;  %12968 = vst [vmem:[#allocation25_spill] sm:$0xff] %v8237_v10  ;;  %12970 = vst [vmem:[#allocation28_spill] sm:$0xff] %v8241_v30  ;;  %v8249_v59 = vmul.f32 %v12973_v54, %v8084_v33  ;;  %v12979_v10 = vld [vmem:[#allocation48_spill] sm:$0xff]  ;;  %v12981_v30 = vld [vmem:[#allocation47_spill] sm:$0xff] }
 0x31f   :  { %12954 = vst [vmem:[#allocation20_spill] sm:$0xff] %v8209_v31  ;;  %v12965_v31 = vld [vmem:[#allocation39_spill] sm:$0xff]  ;;  %12972 = vst [vmem:[#allocation27_spill] sm:$0xff] %v8245_v8  ;;  %v8261_v37 = vmul.f32 %v8084_v33, %v12979_v10  ;;  %v8265_v35 = vmul.f32 %v12981_v30, %v8084_v33  ;;  %v12983_v8 = vld [vmem:[#allocation50_spill] sm:$0xff] }
 0x320   :  { %12964 = vst [vmem:[#allocation23_spill] sm:$0xff] %v8229_v60  ;;  %v8233_v40 = vmul.f32 %v12965_v31, %v8084_v33  ;;  %12974 = vst [vmem:[#allocation30_spill] sm:$0xff] %v8249_v59  ;;  %v12975_v60 = vld [vmem:[#allocation46_spill] sm:$0xff]  ;;  %v8269_v54 = vmul.f32 %v8084_v33, %v12983_v8  ;;  %v12985_v59 = vld [vmem:[#allocation49_spill] sm:$0xff] }
 0x321   :  { %v8253_v31 = vmul.f32 %v8084_v33, %v12975_v60  ;;  %12980 = vst [vmem:[#allocation31_spill] sm:$0xff] %v8261_v37  ;;  %12982 = vst [vmem:[#allocation34_spill] sm:$0xff] %v8265_v35  ;;  %v8273_v60 = vmul.f32 %v12985_v59, %v8084_v33  ;;  %v12991_v37 = vld [vmem:[#allocation54_spill] sm:$0xff]  ;;  %v12993_v35 = vld [vmem:[#allocation53_spill] sm:$0xff] }
 0x322   :  { %12966 = vst [vmem:[#allocation26_spill] sm:$0xff] %v8233_v40  ;;  %v12977_v40 = vld [vmem:[#allocation45_spill] sm:$0xff]  ;;  %12984 = vst [vmem:[#allocation33_spill] sm:$0xff] %v8269_v54  ;;  %v8285_v30 = vmul.f32 %v8084_v33, %v12991_v37  ;;  %v8289_v8 = vmul.f32 %v12993_v35, %v8084_v33  ;;  %v12995_v54 = vld [vmem:[#allocation56_spill] sm:$0xff] }
 0x323   :  { %12976 = vst [vmem:[#allocation29_spill] sm:$0xff] %v8253_v31  ;;  %v8257_v4 = vmul.f32 %v12977_v40, %v8084_v33  ;;  %12986 = vst [vmem:[#allocation36_spill] sm:$0xff] %v8273_v60  ;;  %v12987_v31 = vld [vmem:[#allocation52_spill] sm:$0xff]  ;;  %v8293_v59 = vmul.f32 %v8084_v33, %v12995_v54  ;;  %v12997_v60 = vld [vmem:[#allocation55_spill] sm:$0xff] }
 0x324   :  { %v8277_v40 = vmul.f32 %v8084_v33, %v12987_v31  ;;  %12992 = vst [vmem:[#allocation37_spill] sm:$0xff] %v8285_v30  ;;  %12994 = vst [vmem:[#allocation40_spill] sm:$0xff] %v8289_v8  ;;  %v8297_v31 = vmul.f32 %v12997_v60, %v8084_v33  ;;  %v13003_v30 = vld [vmem:[#allocation60_spill] sm:$0xff]  ;;  %v13005_v8 = vld [vmem:[#allocation59_spill] sm:$0xff] }
 0x325   :  { %12978 = vst [vmem:[#allocation32_spill] sm:$0xff] %v8257_v4  ;;  %v12989_v4 = vld [vmem:[#allocation51_spill] sm:$0xff]  ;;  %12996 = vst [vmem:[#allocation39_spill] sm:$0xff] %v8293_v59  ;;  %v8309_v35 = vmul.f32 %v8084_v33, %v13003_v30  ;;  %v8313_v54 = vmul.f32 %v13005_v8, %v8084_v33  ;;  %v13007_v59 = vld [vmem:[#allocation62_spill] sm:$0xff] }
 0x326   :  { %12988 = vst [vmem:[#allocation35_spill] sm:$0xff] %v8277_v40  ;;  %v8281_v10 = vmul.f32 %v12989_v4, %v8084_v33  ;;  %12998 = vst [vmem:[#allocation42_spill] sm:$0xff] %v8297_v31  ;;  %v12999_v40 = vld [vmem:[#allocation58_spill] sm:$0xff]  ;;  %v8317_v60 = vmul.f32 %v8084_v33, %v13007_v59  ;;  %v13009_v31 = vld [vmem:[#allocation61_spill] sm:$0xff] }
 0x327   :  { %v8301_v4 = vmul.f32 %v8084_v33, %v12999_v40  ;;  %13004 = vst [vmem:[#allocation43_spill] sm:$0xff] %v8309_v35  ;;  %13006 = vst [vmem:[#allocation46_spill] sm:$0xff] %v8313_v54  ;;  %v8321_v40 = vmul.f32 %v13009_v31, %v8084_v33  ;;  %v13015_v35 = vld [vmem:[#allocation66_spill] sm:$0xff]  ;;  %v13017_v54 = vld [vmem:[#allocation65_spill] sm:$0xff] }
 0x328   :  { %12990 = vst [vmem:[#allocation38_spill] sm:$0xff] %v8281_v10  ;;  %v13001_v10 = vld [vmem:[#allocation57_spill] sm:$0xff]  ;;  %13008 = vst [vmem:[#allocation45_spill] sm:$0xff] %v8317_v60  ;;  %v8333_v8 = vmul.f32 %v8084_v33, %v13015_v35  ;;  %v8337_v59 = vmul.f32 %v13017_v54, %v8084_v33  ;;  %v13019_v60 = vld [vmem:[#allocation68_spill] sm:$0xff] }
 0x329   :  { %13000 = vst [vmem:[#allocation41_spill] sm:$0xff] %v8301_v4  ;;  %v8305_v37 = vmul.f32 %v13001_v10, %v8084_v33  ;;  %13010 = vst [vmem:[#allocation48_spill] sm:$0xff] %v8321_v40  ;;  %v13011_v4 = vld [vmem:[#allocation64_spill] sm:$0xff]  ;;  %v8341_v31 = vmul.f32 %v8084_v33, %v13019_v60  ;;  %v13021_v40 = vld [vmem:[#allocation67_spill] sm:$0xff] }
 0x32a   :  { %v8325_v10 = vmul.f32 %v8084_v33, %v13011_v4  ;;  %13016 = vst [vmem:[#allocation49_spill] sm:$0xff] %v8333_v8  ;;  %13018 = vst [vmem:[#allocation52_spill] sm:$0xff] %v8337_v59  ;;  %v8345_v4 = vmul.f32 %v13021_v40, %v8084_v33  ;;  %v13027_v8 = vld [vmem:[#allocation76_spill] sm:$0xff]  ;;  %v13029_v59 = vld [vmem:[#allocation74_spill] sm:$0xff] }
 0x32b   :  { %13002 = vst [vmem:[#allocation44_spill] sm:$0xff] %v8305_v37  ;;  %v13013_v37 = vld [vmem:[#allocation63_spill] sm:$0xff]  ;;  %13020 = vst [vmem:[#allocation51_spill] sm:$0xff] %v8341_v31  ;;  %v8357_v54 = vmul.f32 %v8084_v33, %v13027_v8  ;;  %v8361_v60 = vmul.f32 %v13029_v59, %v8084_v33  ;;  %v13031_v31 = vld [vmem:[#allocation80_spill] sm:$0xff] }
 0x32c   :  { %13012 = vst [vmem:[#allocation47_spill] sm:$0xff] %v8325_v10  ;;  %v8329_v30 = vmul.f32 %v13013_v37, %v8084_v33  ;;  %13022 = vst [vmem:[#allocation54_spill] sm:$0xff] %v8345_v4  ;;  %v13023_v10 = vld [vmem:[#allocation72_spill] sm:$0xff]  ;;  %v8365_v40 = vmul.f32 %v8084_v33, %v13031_v31  ;;  %v13033_v4 = vld [vmem:[#allocation78_spill] sm:$0xff] }
 0x32d   :  { %v8349_v37 = vmul.f32 %v8084_v33, %v13023_v10  ;;  %13028 = vst [vmem:[#allocation55_spill] sm:$0xff] %v8357_v54  ;;  %13030 = vst [vmem:[#allocation58_spill] sm:$0xff] %v8361_v60  ;;  %v8369_v10 = vmul.f32 %v13033_v4, %v8084_v33  ;;  %v13039_v54 = vld [vmem:[#allocation88_spill] sm:$0xff]  ;;  %v13041_v60 = vld [vmem:[#allocation86_spill] sm:$0xff] }
 0x32e   :  { %13014 = vst [vmem:[#allocation50_spill] sm:$0xff] %v8329_v30  ;;  %v13025_v30 = vld [vmem:[#allocation70_spill] sm:$0xff]  ;;  %13032 = vst [vmem:[#allocation57_spill] sm:$0xff] %v8365_v40  ;;  %v8381_v59 = vmul.f32 %v8084_v33, %v13039_v54  ;;  %v8385_v31 = vmul.f32 %v13041_v60, %v8084_v33  ;;  %v13043_v40 = vld [vmem:[#allocation92_spill] sm:$0xff] }
 0x32f   :  { %13024 = vst [vmem:[#allocation53_spill] sm:$0xff] %v8349_v37  ;;  %v8353_v35 = vmul.f32 %v13025_v30, %v8084_v33  ;;  %13034 = vst [vmem:[#allocation60_spill] sm:$0xff] %v8369_v10  ;;  %v13035_v37 = vld [vmem:[#allocation84_spill] sm:$0xff]  ;;  %v8389_v4 = vmul.f32 %v8084_v33, %v13043_v40  ;;  %v13045_v10 = vld [vmem:[#allocation90_spill] sm:$0xff] }
 0x330   :  { %v8373_v30 = vmul.f32 %v8084_v33, %v13035_v37  ;;  %13040 = vst [vmem:[#allocation61_spill] sm:$0xff] %v8381_v59  ;;  %13042 = vst [vmem:[#allocation64_spill] sm:$0xff] %v8385_v31  ;;  %v8393_v37 = vmul.f32 %v13045_v10, %v8084_v33  ;;  %v13051_v59 = vld [vmem:[#allocation100_spill] sm:$0xff]  ;;  %v13053_v31 = vld [vmem:[#allocation98_spill] sm:$0xff] }
 0x331   :  { %13026 = vst [vmem:[#allocation56_spill] sm:$0xff] %v8353_v35  ;;  %v13037_v35 = vld [vmem:[#allocation82_spill] sm:$0xff]  ;;  %13044 = vst [vmem:[#allocation63_spill] sm:$0xff] %v8389_v4  ;;  %v8405_v60 = vmul.f32 %v8084_v33, %v13051_v59  ;;  %v8409_v40 = vmul.f32 %v13053_v31, %v8084_v33  ;;  %v13055_v4 = vld [vmem:[#allocation104_spill] sm:$0xff] }
 0x332   :  { %13036 = vst [vmem:[#allocation59_spill] sm:$0xff] %v8373_v30  ;;  %v8377_v8 = vmul.f32 %v13037_v35, %v8084_v33  ;;  %13046 = vst [vmem:[#allocation66_spill] sm:$0xff] %v8393_v37  ;;  %v13047_v30 = vld [vmem:[#allocation96_spill] sm:$0xff]  ;;  %v8413_v10 = vmul.f32 %v8084_v33, %v13055_v4  ;;  %v13057_v37 = vld [vmem:[#allocation102_spill] sm:$0xff] }
 0x333   :  { %v8397_v35 = vmul.f32 %v8084_v33, %v13047_v30  ;;  %13052 = vst [vmem:[#allocation67_spill] sm:$0xff] %v8405_v60  ;;  %13054 = vst [vmem:[#allocation72_spill] sm:$0xff] %v8409_v40  ;;  %v8417_v30 = vmul.f32 %v13057_v37, %v8084_v33  ;;  %v13063_v60 = vld [vmem:[#allocation112_spill] sm:$0xff]  ;;  %v13065_v40 = vld [vmem:[#allocation110_spill] sm:$0xff] }
 0x334   :  { %13038 = vst [vmem:[#allocation62_spill] sm:$0xff] %v8377_v8  ;;  %v13049_v8 = vld [vmem:[#allocation94_spill] sm:$0xff]  ;;  %13056 = vst [vmem:[#allocation70_spill] sm:$0xff] %v8413_v10  ;;  %v8429_v31 = vmul.f32 %v8084_v33, %v13063_v60  ;;  %v8433_v4 = vmul.f32 %v13065_v40, %v8084_v33  ;;  %v13067_v10 = vld [vmem:[#allocation116_spill] sm:$0xff] }
 0x335   :  { %13048 = vst [vmem:[#allocation65_spill] sm:$0xff] %v8397_v35  ;;  %v8401_v54 = vmul.f32 %v13049_v8, %v8084_v33  ;;  %13058 = vst [vmem:[#allocation76_spill] sm:$0xff] %v8417_v30  ;;  %v13059_v35 = vld [vmem:[#allocation108_spill] sm:$0xff]  ;;  %v8437_v37 = vmul.f32 %v8084_v33, %v13067_v10  ;;  %v13069_v30 = vld [vmem:[#allocation114_spill] sm:$0xff] }
 0x336   :  { %v8421_v8 = vmul.f32 %v8084_v33, %v13059_v35  ;;  %13064 = vst [vmem:[#allocation78_spill] sm:$0xff] %v8429_v31  ;;  %13066 = vst [vmem:[#allocation84_spill] sm:$0xff] %v8433_v4  ;;  %v8441_v35 = vmul.f32 %v13069_v30, %v8084_v33  ;;  %v13075_v31 = vld [vmem:[#allocation124_spill] sm:$0xff]  ;;  %v13077_v4 = vld [vmem:[#allocation122_spill] sm:$0xff] }
 0x337   :  { %13050 = vst [vmem:[#allocation68_spill] sm:$0xff] %v8401_v54  ;;  %v13061_v54 = vld [vmem:[#allocation106_spill] sm:$0xff]  ;;  %13068 = vst [vmem:[#allocation82_spill] sm:$0xff] %v8437_v37  ;;  %v8453_v40 = vmul.f32 %v8084_v33, %v13075_v31  ;;  %v8457_v10 = vmul.f32 %v13077_v4, %v8084_v33  ;;  %v13079_v37 = vld [vmem:[#allocation128_spill] sm:$0xff] }
 0x338   :  { %13060 = vst [vmem:[#allocation74_spill] sm:$0xff] %v8421_v8  ;;  %v8425_v59 = vmul.f32 %v13061_v54, %v8084_v33  ;;  %13070 = vst [vmem:[#allocation88_spill] sm:$0xff] %v8441_v35  ;;  %v13071_v8 = vld [vmem:[#allocation120_spill] sm:$0xff]  ;;  %v8461_v30 = vmul.f32 %v8084_v33, %v13079_v37  ;;  %v13081_v35 = vld [vmem:[#allocation126_spill] sm:$0xff] }
 0x339   :  { %v8445_v54 = vmul.f32 %v8084_v33, %v13071_v8  ;;  %13076 = vst [vmem:[#allocation90_spill] sm:$0xff] %v8453_v40  ;;  %13078 = vst [vmem:[#allocation96_spill] sm:$0xff] %v8457_v10  ;;  %v8465_v8 = vmul.f32 %v13081_v35, %v8084_v33  ;;  %v13087_v40 = vld [vmem:[#allocation136_spill] sm:$0xff]  ;;  %v13089_v10 = vld [vmem:[#allocation134_spill] sm:$0xff] }
 0x33a   :  { %13062 = vst [vmem:[#allocation80_spill] sm:$0xff] %v8425_v59  ;;  %v13073_v59 = vld [vmem:[#allocation118_spill] sm:$0xff]  ;;  %13080 = vst [vmem:[#allocation94_spill] sm:$0xff] %v8461_v30  ;;  %v8477_v4 = vmul.f32 %v8084_v33, %v13087_v40  ;;  %v8481_v37 = vmul.f32 %v13089_v10, %v8084_v33  ;;  %v13091_v30 = vld [vmem:[#allocation140_spill] sm:$0xff] }
 0x33b   :  { %13072 = vst [vmem:[#allocation86_spill] sm:$0xff] %v8445_v54  ;;  %v8449_v60 = vmul.f32 %v13073_v59, %v8084_v33  ;;  %13082 = vst [vmem:[#allocation100_spill] sm:$0xff] %v8465_v8  ;;  %v13083_v54 = vld [vmem:[#allocation132_spill] sm:$0xff]  ;;  %v8485_v35 = vmul.f32 %v8084_v33, %v13091_v30  ;;  %v13093_v8 = vld [vmem:[#allocation138_spill] sm:$0xff] }
 0x33c   :  { %v8469_v59 = vmul.f32 %v8084_v33, %v13083_v54  ;;  %13088 = vst [vmem:[#allocation102_spill] sm:$0xff] %v8477_v4  ;;  %13090 = vst [vmem:[#allocation108_spill] sm:$0xff] %v8481_v37  ;;  %v8489_v54 = vmul.f32 %v13093_v8, %v8084_v33  ;;  %v13099_v4 = vld [vmem:[#allocation148_spill] sm:$0xff]  ;;  %v13101_v37 = vld [vmem:[#allocation146_spill] sm:$0xff] }
 0x33d   :  { %13074 = vst [vmem:[#allocation92_spill] sm:$0xff] %v8449_v60  ;;  %v13085_v60 = vld [vmem:[#allocation130_spill] sm:$0xff]  ;;  %13092 = vst [vmem:[#allocation106_spill] sm:$0xff] %v8485_v35  ;;  %v8501_v10 = vmul.f32 %v8084_v33, %v13099_v4  ;;  %v8505_v30 = vmul.f32 %v13101_v37, %v8084_v33  ;;  %v13103_v35 = vld [vmem:[#allocation152_spill] sm:$0xff] }
 0x33e   :  { %13084 = vst [vmem:[#allocation98_spill] sm:$0xff] %v8469_v59  ;;  %v8473_v31 = vmul.f32 %v13085_v60, %v8084_v33  ;;  %13094 = vst [vmem:[#allocation112_spill] sm:$0xff] %v8489_v54  ;;  %v13095_v59 = vld [vmem:[#allocation144_spill] sm:$0xff]  ;;  %v8509_v8 = vmul.f32 %v8084_v33, %v13103_v35  ;;  %v13105_v54 = vld [vmem:[#allocation150_spill] sm:$0xff] }
 0x33f   :  { %v8493_v60 = vmul.f32 %v8084_v33, %v13095_v59  ;;  %13100 = vst [vmem:[#allocation114_spill] sm:$0xff] %v8501_v10  ;;  %13102 = vst [vmem:[#allocation120_spill] sm:$0xff] %v8505_v30  ;;  %v8513_v59 = vmul.f32 %v13105_v54, %v8084_v33  ;;  %v13111_v10 = vld [vmem:[#allocation160_spill] sm:$0xff]  ;;  %v13113_v30 = vld [vmem:[#allocation158_spill] sm:$0xff] }
 0x340   :  { %13086 = vst [vmem:[#allocation104_spill] sm:$0xff] %v8473_v31  ;;  %v13097_v31 = vld [vmem:[#allocation142_spill] sm:$0xff]  ;;  %13104 = vst [vmem:[#allocation118_spill] sm:$0xff] %v8509_v8  ;;  %v8525_v37 = vmul.f32 %v8084_v33, %v13111_v10  ;;  %v8529_v35 = vmul.f32 %v13113_v30, %v8084_v33  ;;  %v13115_v8 = vld [vmem:[#allocation164_spill] sm:$0xff] }
 0x341   :  { %13096 = vst [vmem:[#allocation110_spill] sm:$0xff] %v8493_v60  ;;  %v8497_v40 = vmul.f32 %v13097_v31, %v8084_v33  ;;  %13106 = vst [vmem:[#allocation124_spill] sm:$0xff] %v8513_v59  ;;  %v13107_v60 = vld [vmem:[#allocation156_spill] sm:$0xff]  ;;  %v8533_v54 = vmul.f32 %v8084_v33, %v13115_v8  ;;  %v13117_v59 = vld [vmem:[#allocation162_spill] sm:$0xff] }
 0x342   :  { %v8517_v31 = vmul.f32 %v8084_v33, %v13107_v60  ;;  %13112 = vst [vmem:[#allocation126_spill] sm:$0xff] %v8525_v37  ;;  %13114 = vst [vmem:[#allocation132_spill] sm:$0xff] %v8529_v35  ;;  %v8537_v60 = vmul.f32 %v13117_v59, %v8084_v33  ;;  %v13123_v37 = vld [vmem:[#allocation172_spill] sm:$0xff]  ;;  %v13125_v35 = vld [vmem:[#allocation170_spill] sm:$0xff] }
 0x343   :  { %13098 = vst [vmem:[#allocation116_spill] sm:$0xff] %v8497_v40  ;;  %v13109_v40 = vld [vmem:[#allocation154_spill] sm:$0xff]  ;;  %13116 = vst [vmem:[#allocation130_spill] sm:$0xff] %v8533_v54  ;;  %v8549_v30 = vmul.f32 %v8084_v33, %v13123_v37  ;;  %v8553_v8 = vmul.f32 %v13125_v35, %v8084_v33  ;;  %v13127_v54 = vld [vmem:[#allocation176_spill] sm:$0xff] }
 0x344   :  { %13108 = vst [vmem:[#allocation122_spill] sm:$0xff] %v8517_v31  ;;  %v8521_v4 = vmul.f32 %v13109_v40, %v8084_v33  ;;  %13118 = vst [vmem:[#allocation136_spill] sm:$0xff] %v8537_v60  ;;  %v13119_v31 = vld [vmem:[#allocation168_spill] sm:$0xff]  ;;  %v8557_v59 = vmul.f32 %v8084_v33, %v13127_v54  ;;  %v13129_v60 = vld [vmem:[#allocation174_spill] sm:$0xff] }
 0x345   :  { %v8541_v40 = vmul.f32 %v8084_v33, %v13119_v31  ;;  %13124 = vst [vmem:[#allocation138_spill] sm:$0xff] %v8549_v30  ;;  %13126 = vst [vmem:[#allocation144_spill] sm:$0xff] %v8553_v8  ;;  %v8561_v31 = vmul.f32 %v13129_v60, %v8084_v33  ;;  %v13135_v30 = vld [vmem:[#allocation184_spill] sm:$0xff]  ;;  %v13137_v8 = vld [vmem:[#allocation182_spill] sm:$0xff] }
 0x346   :  { %13110 = vst [vmem:[#allocation128_spill] sm:$0xff] %v8521_v4  ;;  %v13121_v4 = vld [vmem:[#allocation166_spill] sm:$0xff]  ;;  %13128 = vst [vmem:[#allocation142_spill] sm:$0xff] %v8557_v59  ;;  %v8573_v35 = vmul.f32 %v8084_v33, %v13135_v30  ;;  %v8577_v54 = vmul.f32 %v13137_v8, %v8084_v33  ;;  %v13139_v59 = vld [vmem:[#allocation188_spill] sm:$0xff] }
 0x347   :  { %13120 = vst [vmem:[#allocation134_spill] sm:$0xff] %v8541_v40  ;;  %v8545_v10 = vmul.f32 %v13121_v4, %v8084_v33  ;;  %13130 = vst [vmem:[#allocation148_spill] sm:$0xff] %v8561_v31  ;;  %v13131_v40 = vld [vmem:[#allocation180_spill] sm:$0xff]  ;;  %v8581_v60 = vmul.f32 %v8084_v33, %v13139_v59  ;;  %v13141_v31 = vld [vmem:[#allocation186_spill] sm:$0xff] }
 0x348   :  { %v8565_v4 = vmul.f32 %v8084_v33, %v13131_v40  ;;  %13136 = vst [vmem:[#allocation150_spill] sm:$0xff] %v8573_v35  ;;  %13138 = vst [vmem:[#allocation156_spill] sm:$0xff] %v8577_v54  ;;  %v8585_v40 = vmul.f32 %v13141_v31, %v8084_v33  ;;  %v13147_v35 = vld [vmem:[#allocation196_spill] sm:$0xff]  ;;  %v13149_v54 = vld [vmem:[#allocation194_spill] sm:$0xff] }
 0x349   :  { %13122 = vst [vmem:[#allocation140_spill] sm:$0xff] %v8545_v10  ;;  %v13133_v10 = vld [vmem:[#allocation178_spill] sm:$0xff]  ;;  %13140 = vst [vmem:[#allocation154_spill] sm:$0xff] %v8581_v60  ;;  %v8597_v8 = vmul.f32 %v8084_v33, %v13147_v35  ;;  %v8601_v59 = vmul.f32 %v13149_v54, %v8084_v33  ;;  %v13151_v60 = vld [vmem:[#allocation71_spill] sm:$0xff] }
 0x34a   :  { %13132 = vst [vmem:[#allocation146_spill] sm:$0xff] %v8565_v4  ;;  %v8569_v37 = vmul.f32 %v13133_v10, %v8084_v33  ;;  %13142 = vst [vmem:[#allocation160_spill] sm:$0xff] %v8585_v40  ;;  %v13143_v4 = vld [vmem:[#allocation192_spill] sm:$0xff]  ;;  %v8605_v31 = vmul.f32 %v8084_v33, %v13151_v60  ;;  %v13153_v40 = vld [vmem:[#allocation69_spill] sm:$0xff] }
 0x34b   :  { %v8589_v10 = vmul.f32 %v8084_v33, %v13143_v4  ;;  %13148 = vst [vmem:[#allocation162_spill] sm:$0xff] %v8597_v8  ;;  %13150 = vst [vmem:[#allocation168_spill] sm:$0xff] %v8601_v59  ;;  %v8609_v4 = vmul.f32 %v13153_v40, %v8084_v33  ;;  %v13159_v8 = vld [vmem:[#allocation79_spill] sm:$0xff]  ;;  %v13161_v59 = vld [vmem:[#allocation77_spill] sm:$0xff] }
 0x34c   :  { %13134 = vst [vmem:[#allocation152_spill] sm:$0xff] %v8569_v37  ;;  %v13145_v37 = vld [vmem:[#allocation190_spill] sm:$0xff]  ;;  %13152 = vst [vmem:[#allocation166_spill] sm:$0xff] %v8605_v31  ;;  %v8621_v54 = vmul.f32 %v8084_v33, %v13159_v8  ;;  %v8625_v60 = vmul.f32 %v13161_v59, %v8084_v33  ;;  %v13163_v31 = vld [vmem:[#allocation83_spill] sm:$0xff] }
 0x34d   :  { %13144 = vst [vmem:[#allocation158_spill] sm:$0xff] %v8589_v10  ;;  %v8593_v30 = vmul.f32 %v13145_v37, %v8084_v33  ;;  %13154 = vst [vmem:[#allocation172_spill] sm:$0xff] %v8609_v4  ;;  %v13155_v10 = vld [vmem:[#allocation75_spill] sm:$0xff]  ;;  %v8629_v40 = vmul.f32 %v8084_v33, %v13163_v31  ;;  %v13165_v4 = vld [vmem:[#allocation81_spill] sm:$0xff] }
 0x34e   :  { %v8613_v37 = vmul.f32 %v8084_v33, %v13155_v10  ;;  %13160 = vst [vmem:[#allocation174_spill] sm:$0xff] %v8621_v54  ;;  %13162 = vst [vmem:[#allocation180_spill] sm:$0xff] %v8625_v60  ;;  %v8633_v10 = vmul.f32 %v13165_v4, %v8084_v33  ;;  %v13171_v54 = vld [vmem:[#allocation91_spill] sm:$0xff]  ;;  %v13173_v60 = vld [vmem:[#allocation89_spill] sm:$0xff] }
 0x34f   :  { %13146 = vst [vmem:[#allocation164_spill] sm:$0xff] %v8593_v30  ;;  %v13157_v30 = vld [vmem:[#allocation73_spill] sm:$0xff]  ;;  %13164 = vst [vmem:[#allocation178_spill] sm:$0xff] %v8629_v40  ;;  %v8645_v59 = vmul.f32 %v8084_v33, %v13171_v54  ;;  %v8649_v31 = vmul.f32 %v13173_v60, %v8084_v33  ;;  %v13175_v40 = vld [vmem:[#allocation95_spill] sm:$0xff] }
 0x350   :  { %13156 = vst [vmem:[#allocation170_spill] sm:$0xff] %v8613_v37  ;;  %v8617_v35 = vmul.f32 %v13157_v30, %v8084_v33  ;;  %13166 = vst [vmem:[#allocation184_spill] sm:$0xff] %v8633_v10  ;;  %v13167_v37 = vld [vmem:[#allocation87_spill] sm:$0xff]  ;;  %v8653_v4 = vmul.f32 %v8084_v33, %v13175_v40  ;;  %v13177_v10 = vld [vmem:[#allocation93_spill] sm:$0xff] }
 0x351   :  { %v8637_v30 = vmul.f32 %v8084_v33, %v13167_v37  ;;  %13172 = vst [vmem:[#allocation186_spill] sm:$0xff] %v8645_v59  ;;  %13174 = vst [vmem:[#allocation192_spill] sm:$0xff] %v8649_v31  ;;  %v8657_v37 = vmul.f32 %v13177_v10, %v8084_v33  ;;  %v13183_v59 = vld [vmem:[#allocation103_spill] sm:$0xff]  ;;  %v13185_v31 = vld [vmem:[#allocation101_spill] sm:$0xff] }
 0x352   :  { %13158 = vst [vmem:[#allocation176_spill] sm:$0xff] %v8617_v35  ;;  %v13169_v35 = vld [vmem:[#allocation85_spill] sm:$0xff]  ;;  %13176 = vst [vmem:[#allocation190_spill] sm:$0xff] %v8653_v4  ;;  %v8669_v60 = vmul.f32 %v8084_v33, %v13183_v59  ;;  %v8673_v40 = vmul.f32 %v13185_v31, %v8084_v33  ;;  %v13187_v4 = vld [vmem:[#allocation107_spill] sm:$0xff] }
 0x353   :  { %13168 = vst [vmem:[#allocation182_spill] sm:$0xff] %v8637_v30  ;;  %v8641_v8 = vmul.f32 %v13169_v35, %v8084_v33  ;;  %13178 = vst [vmem:[#allocation196_spill] sm:$0xff] %v8657_v37  ;;  %v13179_v30 = vld [vmem:[#allocation99_spill] sm:$0xff]  ;;  %v8677_v10 = vmul.f32 %v8084_v33, %v13187_v4  ;;  %v13189_v37 = vld [vmem:[#allocation105_spill] sm:$0xff] }
 0x354   :  { %v8661_v35 = vmul.f32 %v8084_v33, %v13179_v30  ;;  %13184 = vst [vmem:[#allocation69_spill] sm:$0xff] %v8669_v60  ;;  %13186 = vst [vmem:[#allocation75_spill] sm:$0xff] %v8673_v40  ;;  %v8681_v30 = vmul.f32 %v13189_v37, %v8084_v33  ;;  %v13195_v60 = vld [vmem:[#allocation115_spill] sm:$0xff]  ;;  %v13197_v40 = vld [vmem:[#allocation113_spill] sm:$0xff] }
 0x355   :  { %13170 = vst [vmem:[#allocation188_spill] sm:$0xff] %v8641_v8  ;;  %v13181_v8 = vld [vmem:[#allocation97_spill] sm:$0xff]  ;;  %13188 = vst [vmem:[#allocation73_spill] sm:$0xff] %v8677_v10  ;;  %v8693_v31 = vmul.f32 %v8084_v33, %v13195_v60  ;;  %v8697_v4 = vmul.f32 %v13197_v40, %v8084_v33  ;;  %v13199_v10 = vld [vmem:[#allocation119_spill] sm:$0xff] }
 0x356   :  { %13180 = vst [vmem:[#allocation194_spill] sm:$0xff] %v8661_v35  ;;  %v8665_v54 = vmul.f32 %v13181_v8, %v8084_v33  ;;  %13190 = vst [vmem:[#allocation79_spill] sm:$0xff] %v8681_v30  ;;  %v13191_v35 = vld [vmem:[#allocation111_spill] sm:$0xff]  ;;  %v8701_v37 = vmul.f32 %v8084_v33, %v13199_v10  ;;  %v13201_v30 = vld [vmem:[#allocation117_spill] sm:$0xff] }
 0x357   :  { %v8685_v8 = vmul.f32 %v8084_v33, %v13191_v35  ;;  %13196 = vst [vmem:[#allocation81_spill] sm:$0xff] %v8693_v31  ;;  %13198 = vst [vmem:[#allocation87_spill] sm:$0xff] %v8697_v4  ;;  %v8705_v35 = vmul.f32 %v13201_v30, %v8084_v33  ;;  %v13207_v31 = vld [vmem:[#allocation127_spill] sm:$0xff]  ;;  %v13209_v4 = vld [vmem:[#allocation125_spill] sm:$0xff] }
 0x358   :  { %13182 = vst [vmem:[#allocation71_spill] sm:$0xff] %v8665_v54  ;;  %v13193_v54 = vld [vmem:[#allocation109_spill] sm:$0xff]  ;;  %13200 = vst [vmem:[#allocation85_spill] sm:$0xff] %v8701_v37  ;;  %v8717_v40 = vmul.f32 %v8084_v33, %v13207_v31  ;;  %v8721_v10 = vmul.f32 %v13209_v4, %v8084_v33  ;;  %v13211_v37 = vld [vmem:[#allocation131_spill] sm:$0xff] }
 0x359   :  { %13192 = vst [vmem:[#allocation77_spill] sm:$0xff] %v8685_v8  ;;  %v8689_v59 = vmul.f32 %v13193_v54, %v8084_v33  ;;  %13202 = vst [vmem:[#allocation91_spill] sm:$0xff] %v8705_v35  ;;  %v13203_v8 = vld [vmem:[#allocation123_spill] sm:$0xff]  ;;  %v8725_v30 = vmul.f32 %v8084_v33, %v13211_v37  ;;  %v13213_v35 = vld [vmem:[#allocation129_spill] sm:$0xff] }
 0x35a   :  { %v8709_v54 = vmul.f32 %v8084_v33, %v13203_v8  ;;  %13208 = vst [vmem:[#allocation93_spill] sm:$0xff] %v8717_v40  ;;  %13210 = vst [vmem:[#allocation99_spill] sm:$0xff] %v8721_v10  ;;  %v8729_v8 = vmul.f32 %v13213_v35, %v8084_v33  ;;  %v13219_v40 = vld [vmem:[#allocation139_spill] sm:$0xff]  ;;  %v13221_v10 = vld [vmem:[#allocation137_spill] sm:$0xff] }
 0x35b   :  { %13194 = vst [vmem:[#allocation83_spill] sm:$0xff] %v8689_v59  ;;  %v13205_v59 = vld [vmem:[#allocation121_spill] sm:$0xff]  ;;  %13212 = vst [vmem:[#allocation97_spill] sm:$0xff] %v8725_v30  ;;  %v8741_v4 = vmul.f32 %v8084_v33, %v13219_v40  ;;  %v8745_v37 = vmul.f32 %v13221_v10, %v8084_v33  ;;  %v13223_v30 = vld [vmem:[#allocation143_spill] sm:$0xff] }
 0x35c   :  { %13204 = vst [vmem:[#allocation89_spill] sm:$0xff] %v8709_v54  ;;  %v8713_v60 = vmul.f32 %v13205_v59, %v8084_v33  ;;  %13214 = vst [vmem:[#allocation103_spill] sm:$0xff] %v8729_v8  ;;  %v13215_v54 = vld [vmem:[#allocation135_spill] sm:$0xff]  ;;  %v8749_v35 = vmul.f32 %v8084_v33, %v13223_v30  ;;  %v13225_v8 = vld [vmem:[#allocation141_spill] sm:$0xff] }
 0x35d   :  { %v8733_v59 = vmul.f32 %v8084_v33, %v13215_v54  ;;  %13220 = vst [vmem:[#allocation105_spill] sm:$0xff] %v8741_v4  ;;  %13222 = vst [vmem:[#allocation111_spill] sm:$0xff] %v8745_v37  ;;  %v8753_v54 = vmul.f32 %v13225_v8, %v8084_v33  ;;  %v13231_v4 = vld [vmem:[#allocation151_spill] sm:$0xff]  ;;  %v13233_v37 = vld [vmem:[#allocation149_spill] sm:$0xff] }
 0x35e   :  { %13206 = vst [vmem:[#allocation95_spill] sm:$0xff] %v8713_v60  ;;  %v13217_v60 = vld [vmem:[#allocation133_spill] sm:$0xff]  ;;  %13224 = vst [vmem:[#allocation109_spill] sm:$0xff] %v8749_v35  ;;  %v8765_v10 = vmul.f32 %v8084_v33, %v13231_v4  ;;  %v8769_v30 = vmul.f32 %v13233_v37, %v8084_v33  ;;  %v13235_v35 = vld [vmem:[#allocation155_spill] sm:$0xff] }
 0x35f   :  { %13216 = vst [vmem:[#allocation101_spill] sm:$0xff] %v8733_v59  ;;  %v8737_v31 = vmul.f32 %v13217_v60, %v8084_v33  ;;  %13226 = vst [vmem:[#allocation115_spill] sm:$0xff] %v8753_v54  ;;  %v13227_v59 = vld [vmem:[#allocation147_spill] sm:$0xff]  ;;  %v8773_v8 = vmul.f32 %v8084_v33, %v13235_v35  ;;  %v13237_v54 = vld [vmem:[#allocation153_spill] sm:$0xff] }
 0x360   :  { %v8757_v60 = vmul.f32 %v8084_v33, %v13227_v59  ;;  %13232 = vst [vmem:[#allocation117_spill] sm:$0xff] %v8765_v10  ;;  %13234 = vst [vmem:[#allocation123_spill] sm:$0xff] %v8769_v30  ;;  %v8777_v59 = vmul.f32 %v13237_v54, %v8084_v33  ;;  %v13243_v10 = vld [vmem:[#allocation163_spill] sm:$0xff]  ;;  %v13245_v30 = vld [vmem:[#allocation161_spill] sm:$0xff] }
 0x361   :  { %13218 = vst [vmem:[#allocation107_spill] sm:$0xff] %v8737_v31  ;;  %v13229_v31 = vld [vmem:[#allocation145_spill] sm:$0xff]  ;;  %13236 = vst [vmem:[#allocation121_spill] sm:$0xff] %v8773_v8  ;;  %v8789_v37 = vmul.f32 %v8084_v33, %v13243_v10  ;;  %v8793_v35 = vmul.f32 %v13245_v30, %v8084_v33  ;;  %v13247_v8 = vld [vmem:[#allocation167_spill] sm:$0xff] }
 0x362   :  { %13228 = vst [vmem:[#allocation113_spill] sm:$0xff] %v8757_v60  ;;  %v8761_v40 = vmul.f32 %v13229_v31, %v8084_v33  ;;  %13238 = vst [vmem:[#allocation127_spill] sm:$0xff] %v8777_v59  ;;  %v13239_v60 = vld [vmem:[#allocation159_spill] sm:$0xff]  ;;  %v8797_v54 = vmul.f32 %v8084_v33, %v13247_v8  ;;  %v13249_v59 = vld [vmem:[#allocation165_spill] sm:$0xff] }
 0x363   :  { %v8781_v31 = vmul.f32 %v8084_v33, %v13239_v60  ;;  %13244 = vst [vmem:[#allocation129_spill] sm:$0xff] %v8789_v37  ;;  %13246 = vst [vmem:[#allocation135_spill] sm:$0xff] %v8793_v35  ;;  %v8801_v60 = vmul.f32 %v13249_v59, %v8084_v33  ;;  %v13255_v37 = vld [vmem:[#allocation175_spill] sm:$0xff]  ;;  %v13257_v35 = vld [vmem:[#allocation173_spill] sm:$0xff] }
 0x364   :  { %13230 = vst [vmem:[#allocation119_spill] sm:$0xff] %v8761_v40  ;;  %v13241_v40 = vld [vmem:[#allocation157_spill] sm:$0xff]  ;;  %13248 = vst [vmem:[#allocation133_spill] sm:$0xff] %v8797_v54  ;;  %v8813_v30 = vmul.f32 %v8084_v33, %v13255_v37  ;;  %v8817_v8 = vmul.f32 %v13257_v35, %v8084_v33  ;;  %v13259_v54 = vld [vmem:[#allocation179_spill] sm:$0xff] }
 0x365   :  { %13240 = vst [vmem:[#allocation125_spill] sm:$0xff] %v8781_v31  ;;  %v8785_v4 = vmul.f32 %v13241_v40, %v8084_v33  ;;  %13250 = vst [vmem:[#allocation139_spill] sm:$0xff] %v8801_v60  ;;  %v13251_v31 = vld [vmem:[#allocation171_spill] sm:$0xff]  ;;  %v8821_v59 = vmul.f32 %v8084_v33, %v13259_v54  ;;  %v13261_v60 = vld [vmem:[#allocation177_spill] sm:$0xff] }
 0x366   :  { %v8805_v40 = vmul.f32 %v8084_v33, %v13251_v31  ;;  %13256 = vst [vmem:[#allocation141_spill] sm:$0xff] %v8813_v30  ;;  %13258 = vst [vmem:[#allocation147_spill] sm:$0xff] %v8817_v8  ;;  %v8825_v31 = vmul.f32 %v13261_v60, %v8084_v33  ;;  %v13266_v30 = vld [vmem:[#allocation187_spill] sm:$0xff]  ;;  %v13267_v8 = vld [vmem:[#allocation185_spill] sm:$0xff] }
 0x367   :  { %13242 = vst [vmem:[#allocation131_spill] sm:$0xff] %v8785_v4  ;;  %v13253_v4 = vld [vmem:[#allocation169_spill] sm:$0xff]  ;;  %13260 = vst [vmem:[#allocation145_spill] sm:$0xff] %v8821_v59  ;;  %v8837_v35 = vmul.f32 %v8084_v33, %v13266_v30  ;;  %v8841_v54 = vmul.f32 %v13267_v8, %v8084_v33  ;;  %v13268_v59 = vld [vmem:[#allocation191_spill] sm:$0xff]  ;;  %v8857_v30 = vmul.f32 %v12889_v39, %v8084_v33 }
 0x368   :  { %13252 = vst [vmem:[#allocation137_spill] sm:$0xff] %v8805_v40  ;;  %v8809_v10 = vmul.f32 %v13253_v4, %v8084_v33  ;;  %13262 = vst [vmem:[#allocation151_spill] sm:$0xff] %v8825_v31  ;;  %v13263_v40 = vld [vmem:[#allocation183_spill] sm:$0xff]  ;;  %v8845_v60 = vmul.f32 %v8084_v33, %v13268_v59  ;;  %v13269_v31 = vld [vmem:[#allocation189_spill] sm:$0xff]  ;;  %v8861_v8 = vmul.f32 %v8084_v33, %v7570_v6 }
 0x369   :  { %v8829_v4 = vmul.f32 %v8084_v33, %v13263_v40  ;;  %v8849_v40 = vmul.f32 %v13269_v31, %v8084_v33  ;;  %v8865_v59 = vmul.f32 %v12890_v61, %v8084_v33  ;;  %v8869_v31 = vmul.f32 %v8084_v33, %v7580_v48 }
 0x36a   :  { %13254 = vst [vmem:[#allocation143_spill] sm:$0xff] %v8809_v10  ;;  %v13265_v10 = vld [vmem:[#allocation181_spill] sm:$0xff]  ;;  %v8877_v39 = vmul.f32 %v8084_v33, %v7590_v18  ;;  %v8881_v6 = vmul.f32 %v7583_v19, %v8084_v33  ;;  %v8885_v61 = vmul.f32 %v8084_v33, %v7600_v5  ;;  %v8889_v48 = vmul.f32 %v7593_v41, %v8084_v33 }
 0x36b   :  { %13264 = vst [vmem:[#allocation149_spill] sm:$0xff] %v8829_v4  ;;  %v8833_v37 = vmul.f32 %v13265_v10, %v8084_v33  ;;  %v13270_v4 = vld [vmem:[#allocation195_spill] sm:$0xff]  ;;  %v8897_v18 = vmul.f32 %v7603_v13, %v8084_v33  ;;  %v8901_v19 = vmul.f32 %v8084_v33, %v7620_v58  ;;  %v8905_v5 = vmul.f32 %v7613_v57, %v8084_v33 }
 0x36c   :  { %v8853_v10 = vmul.f32 %v8084_v33, %v13270_v4  ;;  %v8873_v4 = vmul.f32 %v7573_v45, %v8084_v33  ;;  %v8893_v45 = vmul.f32 %v8084_v33, %v7610_v27  ;;  %v8909_v41 = vmul.f32 %v8084_v33, %v7630_v21 }
 0x36d   :  { %v8913_v27 = vmul.f32 %v7623_v12, %v8084_v33  ;;  %v8917_v13 = vmul.f32 %v8084_v33, %v7640_v0  ;;  %v8921_v58 = vmul.f32 %v7633_v63, %v8084_v33  ;;  %v8925_v57 = vmul.f32 %v8084_v33, %v7650_v62 }
 0x36e   :  { %v8929_v21 = vmul.f32 %v7643_v49, %v8084_v33  ;;  %v8933_v12 = vmul.f32 %v8084_v33, %v7660_v22  ;;  %v8937_v0 = vmul.f32 %v7653_v36, %v8084_v33  ;;  %v8941_v63 = vmul.f32 %v8084_v33, %v7670_v50 }
 0x36f   :  { %v8945_v62 = vmul.f32 %v7663_v9, %v8084_v33  ;;  %v8949_v49 = vmul.f32 %v8084_v33, %v7680_v32  ;;  %v8953_v22 = vmul.f32 %v7673_v15, %v8084_v33  ;;  %v8957_v36 = vmul.f32 %v8084_v33, %v7690_v14 }
 0x370   :  { %v8961_v50 = vmul.f32 %v7683_v16, %v8084_v33  ;;  %v8965_v9 = vmul.f32 %v8084_v33, %v7700_v28  ;;  %v8969_v32 = vmul.f32 %v7693_v56, %v8084_v33  ;;  %v8973_v15 = vmul.f32 %v8084_v33, %v7710_v2 }
 0x371   :  { %v8977_v14 = vmul.f32 %v7703_v42, %v8084_v33  ;;  %v8981_v16 = vmul.f32 %v8084_v33, %v7720_v46  ;;  %v8985_v28 = vmul.f32 %v7713_v29, %v8084_v33  ;;  %v8989_v56 = vmul.f32 %v8084_v33, %v7730_v26 }
 0x372   :  { %v8993_v2 = vmul.f32 %v7723_v17, %v8084_v33  ;;  %v8997_v42 = vmul.f32 %v8084_v33, %v7740_v34  ;;  %v9001_v46 = vmul.f32 %v7733_v52, %v8084_v33  ;;  %v9005_v29 = vmul.f32 %v8084_v33, %v7750_v55 }
 0x373   :  { %13271 = vst [vmem:[#allocation155_spill] sm:$0xff] %v8985_v28  ;;  %13272 = vst [vmem:[#allocation153_spill] sm:$0xff] %v8989_v56  ;;  %v13277_v28 = vld [vmem:[#allocation198_spill] sm:$0xff]  ;;  %v13279_v56 = vld [vmem:[#allocation200_spill] sm:$0xff] }
 0x374   :  { %13273 = vst [vmem:[#allocation159_spill] sm:$0xff] %v8993_v2  ;;  %13274 = vst [vmem:[#allocation157_spill] sm:$0xff] %v8997_v42  ;;  %v9009_v26 = vmul.f32 %v13277_v28, %v8084_v33  ;;  %v9013_v17 = vmul.f32 %v8084_v33, %v13279_v56  ;;  %v13281_v2 = vld [vmem:[#allocation199_spill] sm:$0xff]  ;;  %v13283_v42 = vld [vmem:[#allocation202_spill] sm:$0xff] }
 0x375   :  { %13275 = vst [vmem:[#allocation163_spill] sm:$0xff] %v9001_v46  ;;  %13276 = vst [vmem:[#allocation161_spill] sm:$0xff] %v9005_v29  ;;  %v9017_v34 = vmul.f32 %v13281_v2, %v8084_v33  ;;  %v9021_v52 = vmul.f32 %v8084_v33, %v13283_v42  ;;  %v13285_v46 = vld [vmem:[#allocation201_spill] sm:$0xff]  ;;  %v13287_v29 = vld [vmem:[#allocation204_spill] sm:$0xff] }
 0x376   :  { %13278 = vst [vmem:[#allocation167_spill] sm:$0xff] %v9009_v26  ;;  %13280 = vst [vmem:[#allocation165_spill] sm:$0xff] %v9013_v17  ;;  %v9025_v55 = vmul.f32 %v13285_v46, %v8084_v33  ;;  %v9029_v28 = vmul.f32 %v8084_v33, %v13287_v29  ;;  %v13289_v26 = vld [vmem:[#allocation203_spill] sm:$0xff]  ;;  %v13291_v17 = vld [vmem:[#allocation206_spill] sm:$0xff] }
 0x377   :  { %13282 = vst [vmem:[#allocation171_spill] sm:$0xff] %v9017_v34  ;;  %13284 = vst [vmem:[#allocation169_spill] sm:$0xff] %v9021_v52  ;;  %v9033_v56 = vmul.f32 %v13289_v26, %v8084_v33  ;;  %v9037_v2 = vmul.f32 %v8084_v33, %v13291_v17  ;;  %v13293_v34 = vld [vmem:[#allocation205_spill] sm:$0xff]  ;;  %v13295_v52 = vld [vmem:[#allocation208_spill] sm:$0xff] }
 0x378   :  { %13286 = vst [vmem:[#allocation175_spill] sm:$0xff] %v9025_v55  ;;  %13288 = vst [vmem:[#allocation173_spill] sm:$0xff] %v9029_v28  ;;  %v9041_v42 = vmul.f32 %v13293_v34, %v8084_v33  ;;  %v9045_v46 = vmul.f32 %v8084_v33, %v13295_v52  ;;  %v13297_v55 = vld [vmem:[#allocation207_spill] sm:$0xff]  ;;  %v13299_v28 = vld [vmem:[#allocation210_spill] sm:$0xff] }
 0x379   :  { %13290 = vst [vmem:[#allocation179_spill] sm:$0xff] %v9033_v56  ;;  %13292 = vst [vmem:[#allocation177_spill] sm:$0xff] %v9037_v2  ;;  %v9049_v29 = vmul.f32 %v13297_v55, %v8084_v33  ;;  %v9053_v26 = vmul.f32 %v8084_v33, %v13299_v28  ;;  %v13301_v56 = vld [vmem:[#allocation209_spill] sm:$0xff]  ;;  %v13303_v2 = vld [vmem:[#allocation212_spill] sm:$0xff] }
 0x37a   :  { %13294 = vst [vmem:[#allocation183_spill] sm:$0xff] %v9041_v42  ;;  %13296 = vst [vmem:[#allocation181_spill] sm:$0xff] %v9045_v46  ;;  %v9057_v17 = vmul.f32 %v13301_v56, %v8084_v33  ;;  %v9061_v34 = vmul.f32 %v8084_v33, %v13303_v2  ;;  %v13305_v42 = vld [vmem:[#allocation211_spill] sm:$0xff]  ;;  %v13307_v46 = vld [vmem:[#allocation214_spill] sm:$0xff] }
 0x37b   :  { %13298 = vst [vmem:[#allocation187_spill] sm:$0xff] %v9049_v29  ;;  %13300 = vst [vmem:[#allocation185_spill] sm:$0xff] %v9053_v26  ;;  %v9065_v52 = vmul.f32 %v13305_v42, %v8084_v33  ;;  %v9069_v55 = vmul.f32 %v8084_v33, %v13307_v46  ;;  %v13309_v29 = vld [vmem:[#allocation213_spill] sm:$0xff]  ;;  %v13311_v26 = vld [vmem:[#allocation216_spill] sm:$0xff] }
 0x37c   :  { %13302 = vst [vmem:[#allocation191_spill] sm:$0xff] %v9057_v17  ;;  %13304 = vst [vmem:[#allocation189_spill] sm:$0xff] %v9061_v34  ;;  %v9073_v28 = vmul.f32 %v13309_v29, %v8084_v33  ;;  %v9077_v56 = vmul.f32 %v8084_v33, %v13311_v26  ;;  %v13313_v17 = vld [vmem:[#allocation215_spill] sm:$0xff]  ;;  %v13315_v34 = vld [vmem:[#allocation218_spill] sm:$0xff] }
 0x37d   :  { %13306 = vst [vmem:[#allocation195_spill] sm:$0xff] %v9065_v52  ;;  %13308 = vst [vmem:[#allocation198_spill] sm:$0xff] %v9069_v55  ;;  %v9081_v2 = vmul.f32 %v13313_v17, %v8084_v33  ;;  %v9085_v42 = vmul.f32 %v8084_v33, %v13315_v34  ;;  %v13316_v52 = vld [vmem:[#allocation217_spill] sm:$0xff]  ;;  %v13317_v55 = vld [vmem:[#allocation220_spill] sm:$0xff] }
 0x37e   :  { %13310 = vst [vmem:[#allocation200_spill] sm:$0xff] %v9073_v28  ;;  %13312 = vst [vmem:[#allocation199_spill] sm:$0xff] %v9077_v56  ;;  %v9089_v46 = vmul.f32 %v13316_v52, %v8084_v33  ;;  %v9093_v29 = vmul.f32 %v8084_v33, %v13317_v55  ;;  %v13318_v28 = vld [vmem:[#allocation219_spill] sm:$0xff]  ;;  %v13319_v56 = vld [vmem:[#allocation222_spill] sm:$0xff]  ;;  %v9109_v52 = vmul.f32 %v12906_v47, %v8084_v33 }
 0x37f   :  { %13314 = vst [vmem:[#allocation202_spill] sm:$0xff] %v9081_v2  ;;  %v9097_v26 = vmul.f32 %v13318_v28, %v8084_v33  ;;  %v9101_v17 = vmul.f32 %v8084_v33, %v13319_v56  ;;  %v13320_v2 = vld [vmem:[#allocation221_spill] sm:$0xff]  ;;  %v9113_v55 = vadd.f32 %v8088_v51, %v8093_v53  ;;  %v9117_v28 = vadd.f32 %v8088_v51, %v8097_v24 }
 0x380   :  { %v9105_v34 = vmul.f32 %v13320_v2, %v8084_v33  ;;  %13322 = vst [vmem:[#allocation204_spill] sm:$0xff] %v9109_v52  ;;  %v9121_v56 = vadd.f32 %v8088_v51, %v8101_v44  ;;  %v9125_v2 = vadd.f32 %v8088_v51, %v8105_v3  ;;  %v9129_v47 = vadd.f32 %v8088_v51, %v8109_v23  ;;  %v13328_v52 = vld [vmem:[#allocation197_spill] sm:$0xff] }
 0x381   :  { %v9133_v33 = vadd.f32 %v8088_v51, %v8113_v38  ;;  %v9137_v53 = vadd.f32 %v8088_v51, %v8117_v25  ;;  %v9141_v24 = vadd.f32 %v8088_v51, %v8121_v7  ;;  %v9145_v44 = vadd.f32 %v8088_v51, %v8125_v20  ;;  %v13326_v25 = vld [vmem:[#allocation193_spill] sm:$0xff] }
 0x382   :  { %13321 = vst [vmem:[#allocation201_spill] sm:$0xff] %v9105_v34  ;;  %v9149_v3 = vadd.f32 %v8088_v51, %v8129_v1  ;;  %v9153_v23 = vadd.f32 %v8088_v51, %v8133_v11  ;;  %v9157_v38 = vadd.f32 %v8088_v51, %v8137_v43  ;;  %v9161_v7 = vadd.f32 %v8088_v51, %v13326_v25  ;;  %v13330_v34 = vld [vmem:[#allocation223_spill] sm:$0xff] }
 0x383   :  { %v9165_v20 = vadd.f32 %v8088_v51, %v13328_v52  ;;  %v9169_v1 = vadd.f32 %v8088_v51, %v13330_v34  ;;  %vm3709_vm2 = vcmp.ge.f32.partialorder %v9113_v55, 0.0  ;;  %vm3710_vm3 = vcmp.ge.f32.partialorder %v9117_v28, 0.0 }
 0x384   :  { %13323 = vst [vmem:[#allocation203_spill] sm:$0xff] %v9149_v3  ;;  %13324 = vst [vmem:[#allocation206_spill] sm:$0xff] %v9153_v23  ;;  %v13332_v3 = vld [vmem:[#allocation6_spill] sm:$0xff]  ;;  %v13334_v23 = vld [vmem:[#allocation5_spill] sm:$0xff]  ;;  %vm3711_vm4 = vcmp.ge.f32.partialorder %v9121_v56, 0.0  ;;  %vm3712_vm5 = vcmp.ge.f32.partialorder %v9125_v2, 0.0 }
 0x385   :  { %13325 = vst [vmem:[#allocation205_spill] sm:$0xff] %v9157_v38  ;;  %13327 = vst [vmem:[#allocation208_spill] sm:$0xff] %v9161_v7  ;;  %v9173_v11 = vadd.f32 %v8088_v51, %v13332_v3  ;;  %v9177_v43 = vadd.f32 %v8088_v51, %v13334_v23  ;;  %v13336_v38 = vld [vmem:[#allocation8_spill] sm:$0xff]  ;;  %v13338_v7 = vld [vmem:[#allocation7_spill] sm:$0xff]  ;;  %vm3713_vm6 = vcmp.ge.f32.partialorder %v9129_v47, 0.0  ;;  %vm3714_vm7 = vcmp.ge.f32.partialorder %v9133_v33, 0.0 }
 0x386   :  { %13329 = vst [vmem:[#allocation207_spill] sm:$0xff] %v9165_v20  ;;  %13331 = vst [vmem:[#allocation210_spill] sm:$0xff] %v9169_v1  ;;  %v9181_v25 = vadd.f32 %v8088_v51, %v13336_v38  ;;  %v9185_v52 = vadd.f32 %v8088_v51, %v13338_v7  ;;  %v13340_v20 = vld [vmem:[#allocation10_spill] sm:$0xff]  ;;  %v13342_v1 = vld [vmem:[#allocation9_spill] sm:$0xff]  ;;  %vm3715_vm8 = vcmp.ge.f32.partialorder %v9137_v53, 0.0  ;;  %vm3716_vm9 = vcmp.ge.f32.partialorder %v9141_v24, 0.0 }
 0x387   :  { %13333 = vst [vmem:[#allocation209_spill] sm:$0xff] %v9173_v11  ;;  %13335 = vst [vmem:[#allocation212_spill] sm:$0xff] %v9177_v43  ;;  %v9189_v34 = vadd.f32 %v8088_v51, %v13340_v20  ;;  %v9193_v3 = vadd.f32 %v8088_v51, %v13342_v1  ;;  %v13344_v11 = vld [vmem:[#allocation12_spill] sm:$0xff]  ;;  %v13346_v43 = vld [vmem:[#allocation11_spill] sm:$0xff]  ;;  %vm3717_vm10 = vcmp.ge.f32.partialorder %v9145_v44, 0.0 }
 0x388   :  { %13337 = vst [vmem:[#allocation211_spill] sm:$0xff] %v9181_v25  ;;  %13339 = vst [vmem:[#allocation214_spill] sm:$0xff] %v9185_v52  ;;  %v9197_v23 = vadd.f32 %v8088_v51, %v13344_v11  ;;  %v9201_v38 = vadd.f32 %v8088_v51, %v13346_v43  ;;  %v13348_v25 = vld [vmem:[#allocation14_spill] sm:$0xff]  ;;  %v13350_v52 = vld [vmem:[#allocation13_spill] sm:$0xff] }
 0x389   :  { %13341 = vst [vmem:[#allocation213_spill] sm:$0xff] %v9189_v34  ;;  %13343 = vst [vmem:[#allocation216_spill] sm:$0xff] %v9193_v3  ;;  %v9205_v7 = vadd.f32 %v8088_v51, %v13348_v25  ;;  %v9209_v20 = vadd.f32 %v8088_v51, %v13350_v52  ;;  %v13352_v34 = vld [vmem:[#allocation16_spill] sm:$0xff]  ;;  %v13354_v3 = vld [vmem:[#allocation15_spill] sm:$0xff] }
 0x38a   :  { %13345 = vst [vmem:[#allocation215_spill] sm:$0xff] %v9197_v23  ;;  %13347 = vst [vmem:[#allocation218_spill] sm:$0xff] %v9201_v38  ;;  %v9213_v1 = vadd.f32 %v8088_v51, %v13352_v34  ;;  %v9217_v11 = vadd.f32 %v8088_v51, %v13354_v3  ;;  %v13356_v23 = vld [vmem:[#allocation18_spill] sm:$0xff]  ;;  %v13358_v38 = vld [vmem:[#allocation17_spill] sm:$0xff] }
 0x38b   :  { %13349 = vst [vmem:[#allocation217_spill] sm:$0xff] %v9205_v7  ;;  %13351 = vst [vmem:[#allocation220_spill] sm:$0xff] %v9209_v20  ;;  %v9221_v43 = vadd.f32 %v8088_v51, %v13356_v23  ;;  %v9225_v25 = vadd.f32 %v8088_v51, %v13358_v38  ;;  %v13360_v7 = vld [vmem:[#allocation20_spill] sm:$0xff]  ;;  %v13362_v20 = vld [vmem:[#allocation19_spill] sm:$0xff] }
 0x38c   :  { %13353 = vst [vmem:[#allocation219_spill] sm:$0xff] %v9213_v1  ;;  %13355 = vst [vmem:[#allocation222_spill] sm:$0xff] %v9217_v11  ;;  %v9229_v52 = vadd.f32 %v8088_v51, %v13360_v7  ;;  %v9233_v34 = vadd.f32 %v8088_v51, %v13362_v20  ;;  %v13364_v1 = vld [vmem:[#allocation22_spill] sm:$0xff]  ;;  %v13366_v11 = vld [vmem:[#allocation21_spill] sm:$0xff] }
 0x38d   :  { %13357 = vst [vmem:[#allocation221_spill] sm:$0xff] %v9221_v43  ;;  %13359 = vst [vmem:[#allocation193_spill] sm:$0xff] %v9225_v25  ;;  %v9237_v3 = vadd.f32 %v8088_v51, %v13364_v1  ;;  %v9241_v23 = vadd.f32 %v8088_v51, %v13366_v11  ;;  %v13368_v43 = vld [vmem:[#allocation24_spill] sm:$0xff]  ;;  %v13370_v25 = vld [vmem:[#allocation23_spill] sm:$0xff] }
 0x38e   :  { %13361 = vst [vmem:[#allocation197_spill] sm:$0xff] %v9229_v52  ;;  %13363 = vst [vmem:[#allocation223_spill] sm:$0xff] %v9233_v34  ;;  %v9245_v38 = vadd.f32 %v8088_v51, %v13368_v43  ;;  %v9249_v7 = vadd.f32 %v8088_v51, %v13370_v25  ;;  %v13372_v52 = vld [vmem:[#allocation26_spill] sm:$0xff]  ;;  %v13374_v34 = vld [vmem:[#allocation25_spill] sm:$0xff] }
 0x38f   :  { %13365 = vst [vmem:[#allocation6_spill] sm:$0xff] %v9237_v3  ;;  %13367 = vst [vmem:[#allocation5_spill] sm:$0xff] %v9241_v23  ;;  %v9253_v20 = vadd.f32 %v8088_v51, %v13372_v52  ;;  %v9257_v1 = vadd.f32 %v8088_v51, %v13374_v34  ;;  %v13376_v3 = vld [vmem:[#allocation28_spill] sm:$0xff]  ;;  %v13378_v23 = vld [vmem:[#allocation27_spill] sm:$0xff] }
 0x390   :  { %13369 = vst [vmem:[#allocation8_spill] sm:$0xff] %v9245_v38  ;;  %13371 = vst [vmem:[#allocation7_spill] sm:$0xff] %v9249_v7  ;;  %v9261_v11 = vadd.f32 %v8088_v51, %v13376_v3  ;;  %v9265_v43 = vadd.f32 %v8088_v51, %v13378_v23  ;;  %v13380_v38 = vld [vmem:[#allocation30_spill] sm:$0xff]  ;;  %v13382_v7 = vld [vmem:[#allocation29_spill] sm:$0xff] }
 0x391   :  { %13373 = vst [vmem:[#allocation10_spill] sm:$0xff] %v9253_v20  ;;  %13375 = vst [vmem:[#allocation9_spill] sm:$0xff] %v9257_v1  ;;  %v9269_v25 = vadd.f32 %v8088_v51, %v13380_v38  ;;  %v9273_v52 = vadd.f32 %v8088_v51, %v13382_v7  ;;  %v13384_v20 = vld [vmem:[#allocation32_spill] sm:$0xff]  ;;  %v13386_v1 = vld [vmem:[#allocation31_spill] sm:$0xff] }
 0x392   :  { %13377 = vst [vmem:[#allocation12_spill] sm:$0xff] %v9261_v11  ;;  %13379 = vst [vmem:[#allocation11_spill] sm:$0xff] %v9265_v43  ;;  %v9277_v34 = vadd.f32 %v8088_v51, %v13384_v20  ;;  %v9281_v3 = vadd.f32 %v8088_v51, %v13386_v1  ;;  %v13388_v11 = vld [vmem:[#allocation34_spill] sm:$0xff]  ;;  %v13390_v43 = vld [vmem:[#allocation33_spill] sm:$0xff] }
 0x393   :  { %13381 = vst [vmem:[#allocation14_spill] sm:$0xff] %v9269_v25  ;;  %13383 = vst [vmem:[#allocation13_spill] sm:$0xff] %v9273_v52  ;;  %v9285_v23 = vadd.f32 %v8088_v51, %v13388_v11  ;;  %v9289_v38 = vadd.f32 %v8088_v51, %v13390_v43  ;;  %v13392_v25 = vld [vmem:[#allocation36_spill] sm:$0xff]  ;;  %v13394_v52 = vld [vmem:[#allocation35_spill] sm:$0xff] }
 0x394   :  { %13385 = vst [vmem:[#allocation16_spill] sm:$0xff] %v9277_v34  ;;  %13387 = vst [vmem:[#allocation15_spill] sm:$0xff] %v9281_v3  ;;  %v9293_v7 = vadd.f32 %v8088_v51, %v13392_v25  ;;  %v9297_v20 = vadd.f32 %v8088_v51, %v13394_v52  ;;  %v13396_v34 = vld [vmem:[#allocation38_spill] sm:$0xff]  ;;  %v13398_v3 = vld [vmem:[#allocation37_spill] sm:$0xff] }
 0x395   :  { %13389 = vst [vmem:[#allocation18_spill] sm:$0xff] %v9285_v23  ;;  %13391 = vst [vmem:[#allocation17_spill] sm:$0xff] %v9289_v38  ;;  %v9301_v1 = vadd.f32 %v8088_v51, %v13396_v34  ;;  %v9305_v11 = vadd.f32 %v8088_v51, %v13398_v3  ;;  %v13400_v23 = vld [vmem:[#allocation40_spill] sm:$0xff]  ;;  %v13402_v38 = vld [vmem:[#allocation39_spill] sm:$0xff] }
 0x396   :  { %13393 = vst [vmem:[#allocation20_spill] sm:$0xff] %v9293_v7  ;;  %13395 = vst [vmem:[#allocation19_spill] sm:$0xff] %v9297_v20  ;;  %v9309_v43 = vadd.f32 %v8088_v51, %v13400_v23  ;;  %v9313_v25 = vadd.f32 %v8088_v51, %v13402_v38  ;;  %v13404_v7 = vld [vmem:[#allocation42_spill] sm:$0xff]  ;;  %v13406_v20 = vld [vmem:[#allocation41_spill] sm:$0xff] }
 0x397   :  { %13397 = vst [vmem:[#allocation22_spill] sm:$0xff] %v9301_v1  ;;  %13399 = vst [vmem:[#allocation21_spill] sm:$0xff] %v9305_v11  ;;  %v9317_v52 = vadd.f32 %v8088_v51, %v13404_v7  ;;  %v9321_v34 = vadd.f32 %v8088_v51, %v13406_v20  ;;  %v13408_v1 = vld [vmem:[#allocation44_spill] sm:$0xff]  ;;  %v13410_v11 = vld [vmem:[#allocation43_spill] sm:$0xff] }
 0x398   :  { %13401 = vst [vmem:[#allocation24_spill] sm:$0xff] %v9309_v43  ;;  %13403 = vst [vmem:[#allocation23_spill] sm:$0xff] %v9313_v25  ;;  %v9325_v3 = vadd.f32 %v8088_v51, %v13408_v1  ;;  %v9329_v23 = vadd.f32 %v8088_v51, %v13410_v11  ;;  %v13412_v43 = vld [vmem:[#allocation46_spill] sm:$0xff]  ;;  %v13414_v25 = vld [vmem:[#allocation45_spill] sm:$0xff] }
 0x399   :  { %13405 = vst [vmem:[#allocation26_spill] sm:$0xff] %v9317_v52  ;;  %13407 = vst [vmem:[#allocation25_spill] sm:$0xff] %v9321_v34  ;;  %v9333_v38 = vadd.f32 %v8088_v51, %v13412_v43  ;;  %v9337_v7 = vadd.f32 %v8088_v51, %v13414_v25  ;;  %v13416_v52 = vld [vmem:[#allocation48_spill] sm:$0xff]  ;;  %v13418_v34 = vld [vmem:[#allocation47_spill] sm:$0xff] }
 0x39a   :  { %13409 = vst [vmem:[#allocation28_spill] sm:$0xff] %v9325_v3  ;;  %13411 = vst [vmem:[#allocation27_spill] sm:$0xff] %v9329_v23  ;;  %v9341_v20 = vadd.f32 %v8088_v51, %v13416_v52  ;;  %v9345_v1 = vadd.f32 %v8088_v51, %v13418_v34  ;;  %v13420_v3 = vld [vmem:[#allocation50_spill] sm:$0xff]  ;;  %v13422_v23 = vld [vmem:[#allocation49_spill] sm:$0xff] }
 0x39b   :  { %13413 = vst [vmem:[#allocation30_spill] sm:$0xff] %v9333_v38  ;;  %13415 = vst [vmem:[#allocation29_spill] sm:$0xff] %v9337_v7  ;;  %v9349_v11 = vadd.f32 %v8088_v51, %v13420_v3  ;;  %v9353_v43 = vadd.f32 %v8088_v51, %v13422_v23  ;;  %v13424_v38 = vld [vmem:[#allocation52_spill] sm:$0xff]  ;;  %v13426_v7 = vld [vmem:[#allocation51_spill] sm:$0xff] }
 0x39c   :  { %13417 = vst [vmem:[#allocation32_spill] sm:$0xff] %v9341_v20  ;;  %13419 = vst [vmem:[#allocation31_spill] sm:$0xff] %v9345_v1  ;;  %v9357_v25 = vadd.f32 %v8088_v51, %v13424_v38  ;;  %v9361_v52 = vadd.f32 %v8088_v51, %v13426_v7  ;;  %v13428_v20 = vld [vmem:[#allocation54_spill] sm:$0xff]  ;;  %v13430_v1 = vld [vmem:[#allocation53_spill] sm:$0xff] }
 0x39d   :  { %13421 = vst [vmem:[#allocation34_spill] sm:$0xff] %v9349_v11  ;;  %13423 = vst [vmem:[#allocation33_spill] sm:$0xff] %v9353_v43  ;;  %v9365_v34 = vadd.f32 %v8088_v51, %v13428_v20  ;;  %v9369_v3 = vadd.f32 %v8088_v51, %v13430_v1  ;;  %v13432_v11 = vld [vmem:[#allocation56_spill] sm:$0xff]  ;;  %v13434_v43 = vld [vmem:[#allocation55_spill] sm:$0xff] }
 0x39e   :  { %13425 = vst [vmem:[#allocation36_spill] sm:$0xff] %v9357_v25  ;;  %13427 = vst [vmem:[#allocation35_spill] sm:$0xff] %v9361_v52  ;;  %v9373_v23 = vadd.f32 %v8088_v51, %v13432_v11  ;;  %v9377_v38 = vadd.f32 %v8088_v51, %v13434_v43  ;;  %v13436_v25 = vld [vmem:[#allocation58_spill] sm:$0xff]  ;;  %v13438_v52 = vld [vmem:[#allocation57_spill] sm:$0xff] }
 0x39f   :  { %13429 = vst [vmem:[#allocation38_spill] sm:$0xff] %v9365_v34  ;;  %13431 = vst [vmem:[#allocation37_spill] sm:$0xff] %v9369_v3  ;;  %v9381_v7 = vadd.f32 %v8088_v51, %v13436_v25  ;;  %v9385_v20 = vadd.f32 %v8088_v51, %v13438_v52  ;;  %v13440_v34 = vld [vmem:[#allocation60_spill] sm:$0xff]  ;;  %v13442_v3 = vld [vmem:[#allocation59_spill] sm:$0xff] }
 0x3a0   :  { %13433 = vst [vmem:[#allocation40_spill] sm:$0xff] %v9373_v23  ;;  %13435 = vst [vmem:[#allocation39_spill] sm:$0xff] %v9377_v38  ;;  %v9389_v1 = vadd.f32 %v8088_v51, %v13440_v34  ;;  %v9393_v11 = vadd.f32 %v8088_v51, %v13442_v3  ;;  %v13444_v23 = vld [vmem:[#allocation62_spill] sm:$0xff]  ;;  %v13446_v38 = vld [vmem:[#allocation61_spill] sm:$0xff] }
 0x3a1   :  { %13437 = vst [vmem:[#allocation42_spill] sm:$0xff] %v9381_v7  ;;  %13439 = vst [vmem:[#allocation41_spill] sm:$0xff] %v9385_v20  ;;  %v9397_v43 = vadd.f32 %v8088_v51, %v13444_v23  ;;  %v9401_v25 = vadd.f32 %v8088_v51, %v13446_v38  ;;  %v13448_v7 = vld [vmem:[#allocation64_spill] sm:$0xff]  ;;  %v13450_v20 = vld [vmem:[#allocation63_spill] sm:$0xff] }
 0x3a2   :  { %13441 = vst [vmem:[#allocation44_spill] sm:$0xff] %v9389_v1  ;;  %13443 = vst [vmem:[#allocation43_spill] sm:$0xff] %v9393_v11  ;;  %v9405_v52 = vadd.f32 %v8088_v51, %v13448_v7  ;;  %v9409_v34 = vadd.f32 %v8088_v51, %v13450_v20  ;;  %v13452_v1 = vld [vmem:[#allocation66_spill] sm:$0xff]  ;;  %v13454_v11 = vld [vmem:[#allocation65_spill] sm:$0xff] }
 0x3a3   :  { %13445 = vst [vmem:[#allocation46_spill] sm:$0xff] %v9397_v43  ;;  %13447 = vst [vmem:[#allocation45_spill] sm:$0xff] %v9401_v25  ;;  %v9413_v3 = vadd.f32 %v8088_v51, %v13452_v1  ;;  %v9417_v23 = vadd.f32 %v8088_v51, %v13454_v11  ;;  %v13456_v43 = vld [vmem:[#allocation68_spill] sm:$0xff]  ;;  %v13458_v25 = vld [vmem:[#allocation67_spill] sm:$0xff] }
 0x3a4   :  { %13449 = vst [vmem:[#allocation48_spill] sm:$0xff] %v9405_v52  ;;  %13451 = vst [vmem:[#allocation47_spill] sm:$0xff] %v9409_v34  ;;  %v9421_v38 = vadd.f32 %v8088_v51, %v13456_v43  ;;  %v9425_v7 = vadd.f32 %v8088_v51, %v13458_v25  ;;  %v13460_v52 = vld [vmem:[#allocation72_spill] sm:$0xff]  ;;  %v13462_v34 = vld [vmem:[#allocation70_spill] sm:$0xff] }
 0x3a5   :  { %13453 = vst [vmem:[#allocation50_spill] sm:$0xff] %v9413_v3  ;;  %13455 = vst [vmem:[#allocation49_spill] sm:$0xff] %v9417_v23  ;;  %v9429_v20 = vadd.f32 %v8088_v51, %v13460_v52  ;;  %v9433_v1 = vadd.f32 %v8088_v51, %v13462_v34  ;;  %v13464_v3 = vld [vmem:[#allocation76_spill] sm:$0xff]  ;;  %v13466_v23 = vld [vmem:[#allocation74_spill] sm:$0xff] }
 0x3a6   :  { %13457 = vst [vmem:[#allocation52_spill] sm:$0xff] %v9421_v38  ;;  %13459 = vst [vmem:[#allocation51_spill] sm:$0xff] %v9425_v7  ;;  %v9437_v11 = vadd.f32 %v8088_v51, %v13464_v3  ;;  %v9441_v43 = vadd.f32 %v8088_v51, %v13466_v23  ;;  %v13468_v38 = vld [vmem:[#allocation80_spill] sm:$0xff]  ;;  %v13470_v7 = vld [vmem:[#allocation78_spill] sm:$0xff] }
 0x3a7   :  { %13461 = vst [vmem:[#allocation54_spill] sm:$0xff] %v9429_v20  ;;  %13463 = vst [vmem:[#allocation53_spill] sm:$0xff] %v9433_v1  ;;  %v9445_v25 = vadd.f32 %v8088_v51, %v13468_v38  ;;  %v9449_v52 = vadd.f32 %v8088_v51, %v13470_v7  ;;  %v13472_v20 = vld [vmem:[#allocation84_spill] sm:$0xff]  ;;  %v13474_v1 = vld [vmem:[#allocation82_spill] sm:$0xff] }
 0x3a8   :  { %13465 = vst [vmem:[#allocation56_spill] sm:$0xff] %v9437_v11  ;;  %13467 = vst [vmem:[#allocation55_spill] sm:$0xff] %v9441_v43  ;;  %v9453_v34 = vadd.f32 %v8088_v51, %v13472_v20  ;;  %v9457_v3 = vadd.f32 %v8088_v51, %v13474_v1  ;;  %v13476_v11 = vld [vmem:[#allocation88_spill] sm:$0xff]  ;;  %v13478_v43 = vld [vmem:[#allocation86_spill] sm:$0xff] }
 0x3a9   :  { %13469 = vst [vmem:[#allocation58_spill] sm:$0xff] %v9445_v25  ;;  %13471 = vst [vmem:[#allocation57_spill] sm:$0xff] %v9449_v52  ;;  %v9461_v23 = vadd.f32 %v8088_v51, %v13476_v11  ;;  %v9465_v38 = vadd.f32 %v8088_v51, %v13478_v43  ;;  %v13480_v25 = vld [vmem:[#allocation92_spill] sm:$0xff]  ;;  %v13482_v52 = vld [vmem:[#allocation90_spill] sm:$0xff] }
 0x3aa   :  { %13473 = vst [vmem:[#allocation60_spill] sm:$0xff] %v9453_v34  ;;  %13475 = vst [vmem:[#allocation59_spill] sm:$0xff] %v9457_v3  ;;  %v9469_v7 = vadd.f32 %v8088_v51, %v13480_v25  ;;  %v9473_v20 = vadd.f32 %v8088_v51, %v13482_v52  ;;  %v13484_v34 = vld [vmem:[#allocation96_spill] sm:$0xff]  ;;  %v13486_v3 = vld [vmem:[#allocation94_spill] sm:$0xff] }
 0x3ab   :  { %13477 = vst [vmem:[#allocation62_spill] sm:$0xff] %v9461_v23  ;;  %13479 = vst [vmem:[#allocation61_spill] sm:$0xff] %v9465_v38  ;;  %v9477_v1 = vadd.f32 %v8088_v51, %v13484_v34  ;;  %v9481_v11 = vadd.f32 %v8088_v51, %v13486_v3  ;;  %v13488_v23 = vld [vmem:[#allocation100_spill] sm:$0xff]  ;;  %v13490_v38 = vld [vmem:[#allocation98_spill] sm:$0xff] }
 0x3ac   :  { %13481 = vst [vmem:[#allocation64_spill] sm:$0xff] %v9469_v7  ;;  %13483 = vst [vmem:[#allocation63_spill] sm:$0xff] %v9473_v20  ;;  %v9485_v43 = vadd.f32 %v8088_v51, %v13488_v23  ;;  %v9489_v25 = vadd.f32 %v8088_v51, %v13490_v38  ;;  %v13492_v7 = vld [vmem:[#allocation104_spill] sm:$0xff]  ;;  %v13494_v20 = vld [vmem:[#allocation102_spill] sm:$0xff] }
 0x3ad   :  { %13485 = vst [vmem:[#allocation66_spill] sm:$0xff] %v9477_v1  ;;  %13487 = vst [vmem:[#allocation65_spill] sm:$0xff] %v9481_v11  ;;  %v9493_v52 = vadd.f32 %v8088_v51, %v13492_v7  ;;  %v9497_v34 = vadd.f32 %v8088_v51, %v13494_v20  ;;  %v13496_v1 = vld [vmem:[#allocation108_spill] sm:$0xff]  ;;  %v13498_v11 = vld [vmem:[#allocation106_spill] sm:$0xff] }
 0x3ae   :  { %13489 = vst [vmem:[#allocation68_spill] sm:$0xff] %v9485_v43  ;;  %13491 = vst [vmem:[#allocation67_spill] sm:$0xff] %v9489_v25  ;;  %v9501_v3 = vadd.f32 %v8088_v51, %v13496_v1  ;;  %v9505_v23 = vadd.f32 %v8088_v51, %v13498_v11  ;;  %v13500_v43 = vld [vmem:[#allocation112_spill] sm:$0xff]  ;;  %v13502_v25 = vld [vmem:[#allocation110_spill] sm:$0xff] }
 0x3af   :  { %13493 = vst [vmem:[#allocation72_spill] sm:$0xff] %v9493_v52  ;;  %13495 = vst [vmem:[#allocation70_spill] sm:$0xff] %v9497_v34  ;;  %v9509_v38 = vadd.f32 %v8088_v51, %v13500_v43  ;;  %v9513_v7 = vadd.f32 %v8088_v51, %v13502_v25  ;;  %v13504_v52 = vld [vmem:[#allocation116_spill] sm:$0xff]  ;;  %v13506_v34 = vld [vmem:[#allocation114_spill] sm:$0xff] }
 0x3b0   :  { %13497 = vst [vmem:[#allocation76_spill] sm:$0xff] %v9501_v3  ;;  %13499 = vst [vmem:[#allocation74_spill] sm:$0xff] %v9505_v23  ;;  %v9517_v20 = vadd.f32 %v8088_v51, %v13504_v52  ;;  %v9521_v1 = vadd.f32 %v8088_v51, %v13506_v34  ;;  %v13508_v3 = vld [vmem:[#allocation120_spill] sm:$0xff]  ;;  %v13510_v23 = vld [vmem:[#allocation118_spill] sm:$0xff] }
 0x3b1   :  { %13501 = vst [vmem:[#allocation80_spill] sm:$0xff] %v9509_v38  ;;  %13503 = vst [vmem:[#allocation78_spill] sm:$0xff] %v9513_v7  ;;  %v9525_v11 = vadd.f32 %v8088_v51, %v13508_v3  ;;  %v9529_v43 = vadd.f32 %v8088_v51, %v13510_v23  ;;  %v13512_v38 = vld [vmem:[#allocation124_spill] sm:$0xff]  ;;  %v13514_v7 = vld [vmem:[#allocation122_spill] sm:$0xff] }
 0x3b2   :  { %13505 = vst [vmem:[#allocation84_spill] sm:$0xff] %v9517_v20  ;;  %13507 = vst [vmem:[#allocation82_spill] sm:$0xff] %v9521_v1  ;;  %v9533_v25 = vadd.f32 %v8088_v51, %v13512_v38  ;;  %v9537_v52 = vadd.f32 %v8088_v51, %v13514_v7  ;;  %v13516_v20 = vld [vmem:[#allocation128_spill] sm:$0xff]  ;;  %v13518_v1 = vld [vmem:[#allocation126_spill] sm:$0xff] }
 0x3b3   :  { %13509 = vst [vmem:[#allocation88_spill] sm:$0xff] %v9525_v11  ;;  %13511 = vst [vmem:[#allocation86_spill] sm:$0xff] %v9529_v43  ;;  %v9541_v34 = vadd.f32 %v8088_v51, %v13516_v20  ;;  %v9545_v3 = vadd.f32 %v8088_v51, %v13518_v1  ;;  %v13520_v11 = vld [vmem:[#allocation132_spill] sm:$0xff]  ;;  %v13522_v43 = vld [vmem:[#allocation130_spill] sm:$0xff] }
 0x3b4   :  { %13513 = vst [vmem:[#allocation92_spill] sm:$0xff] %v9533_v25  ;;  %13515 = vst [vmem:[#allocation90_spill] sm:$0xff] %v9537_v52  ;;  %v9549_v23 = vadd.f32 %v8088_v51, %v13520_v11  ;;  %v9553_v38 = vadd.f32 %v8088_v51, %v13522_v43  ;;  %v13524_v25 = vld [vmem:[#allocation136_spill] sm:$0xff]  ;;  %v13526_v52 = vld [vmem:[#allocation134_spill] sm:$0xff] }
 0x3b5   :  { %13517 = vst [vmem:[#allocation96_spill] sm:$0xff] %v9541_v34  ;;  %13519 = vst [vmem:[#allocation94_spill] sm:$0xff] %v9545_v3  ;;  %v9557_v7 = vadd.f32 %v8088_v51, %v13524_v25  ;;  %v9561_v20 = vadd.f32 %v8088_v51, %v13526_v52  ;;  %v13528_v34 = vld [vmem:[#allocation140_spill] sm:$0xff]  ;;  %v13530_v3 = vld [vmem:[#allocation138_spill] sm:$0xff] }
 0x3b6   :  { %13521 = vst [vmem:[#allocation100_spill] sm:$0xff] %v9549_v23  ;;  %13523 = vst [vmem:[#allocation98_spill] sm:$0xff] %v9553_v38  ;;  %v9565_v1 = vadd.f32 %v8088_v51, %v13528_v34  ;;  %v9569_v11 = vadd.f32 %v8088_v51, %v13530_v3  ;;  %v13532_v23 = vld [vmem:[#allocation144_spill] sm:$0xff]  ;;  %v13534_v38 = vld [vmem:[#allocation142_spill] sm:$0xff] }
 0x3b7   :  { %13525 = vst [vmem:[#allocation104_spill] sm:$0xff] %v9557_v7  ;;  %13527 = vst [vmem:[#allocation102_spill] sm:$0xff] %v9561_v20  ;;  %v9573_v43 = vadd.f32 %v8088_v51, %v13532_v23  ;;  %v9577_v25 = vadd.f32 %v8088_v51, %v13534_v38  ;;  %v13536_v7 = vld [vmem:[#allocation148_spill] sm:$0xff]  ;;  %v13538_v20 = vld [vmem:[#allocation146_spill] sm:$0xff] }
 0x3b8   :  { %13529 = vst [vmem:[#allocation108_spill] sm:$0xff] %v9565_v1  ;;  %13531 = vst [vmem:[#allocation106_spill] sm:$0xff] %v9569_v11  ;;  %v9581_v52 = vadd.f32 %v8088_v51, %v13536_v7  ;;  %v9585_v34 = vadd.f32 %v8088_v51, %v13538_v20  ;;  %v13540_v1 = vld [vmem:[#allocation152_spill] sm:$0xff]  ;;  %v13542_v11 = vld [vmem:[#allocation150_spill] sm:$0xff] }
 0x3b9   :  { %13533 = vst [vmem:[#allocation112_spill] sm:$0xff] %v9573_v43  ;;  %13535 = vst [vmem:[#allocation110_spill] sm:$0xff] %v9577_v25  ;;  %v9589_v3 = vadd.f32 %v8088_v51, %v13540_v1  ;;  %v9593_v23 = vadd.f32 %v8088_v51, %v13542_v11  ;;  %v13544_v43 = vld [vmem:[#allocation156_spill] sm:$0xff]  ;;  %v13546_v25 = vld [vmem:[#allocation154_spill] sm:$0xff] }
 0x3ba   :  { %13537 = vst [vmem:[#allocation116_spill] sm:$0xff] %v9581_v52  ;;  %13539 = vst [vmem:[#allocation114_spill] sm:$0xff] %v9585_v34  ;;  %v9597_v38 = vadd.f32 %v8088_v51, %v13544_v43  ;;  %v9601_v7 = vadd.f32 %v8088_v51, %v13546_v25  ;;  %v13548_v52 = vld [vmem:[#allocation160_spill] sm:$0xff]  ;;  %v13550_v34 = vld [vmem:[#allocation158_spill] sm:$0xff] }
 0x3bb   :  { %13541 = vst [vmem:[#allocation120_spill] sm:$0xff] %v9589_v3  ;;  %13543 = vst [vmem:[#allocation118_spill] sm:$0xff] %v9593_v23  ;;  %v9605_v20 = vadd.f32 %v8088_v51, %v13548_v52  ;;  %v9609_v1 = vadd.f32 %v8088_v51, %v13550_v34  ;;  %v13552_v3 = vld [vmem:[#allocation164_spill] sm:$0xff]  ;;  %v13554_v23 = vld [vmem:[#allocation162_spill] sm:$0xff] }
 0x3bc   :  { %13545 = vst [vmem:[#allocation124_spill] sm:$0xff] %v9597_v38  ;;  %13547 = vst [vmem:[#allocation122_spill] sm:$0xff] %v9601_v7  ;;  %v9613_v11 = vadd.f32 %v8088_v51, %v13552_v3  ;;  %v9617_v43 = vadd.f32 %v8088_v51, %v13554_v23  ;;  %v13556_v38 = vld [vmem:[#allocation168_spill] sm:$0xff]  ;;  %v13558_v7 = vld [vmem:[#allocation166_spill] sm:$0xff] }
 0x3bd   :  { %13549 = vst [vmem:[#allocation128_spill] sm:$0xff] %v9605_v20  ;;  %13551 = vst [vmem:[#allocation126_spill] sm:$0xff] %v9609_v1  ;;  %v9621_v25 = vadd.f32 %v8088_v51, %v13556_v38  ;;  %v9625_v52 = vadd.f32 %v8088_v51, %v13558_v7  ;;  %v13560_v20 = vld [vmem:[#allocation172_spill] sm:$0xff]  ;;  %v13562_v1 = vld [vmem:[#allocation170_spill] sm:$0xff] }
 0x3be   :  { %13553 = vst [vmem:[#allocation132_spill] sm:$0xff] %v9613_v11  ;;  %13555 = vst [vmem:[#allocation130_spill] sm:$0xff] %v9617_v43  ;;  %v9629_v34 = vadd.f32 %v8088_v51, %v13560_v20  ;;  %v9633_v3 = vadd.f32 %v8088_v51, %v13562_v1  ;;  %v13564_v11 = vld [vmem:[#allocation176_spill] sm:$0xff]  ;;  %v13566_v43 = vld [vmem:[#allocation174_spill] sm:$0xff] }
 0x3bf   :  { %13557 = vst [vmem:[#allocation136_spill] sm:$0xff] %v9621_v25  ;;  %13559 = vst [vmem:[#allocation134_spill] sm:$0xff] %v9625_v52  ;;  %v9637_v23 = vadd.f32 %v8088_v51, %v13564_v11  ;;  %v9641_v38 = vadd.f32 %v8088_v51, %v13566_v43  ;;  %v13568_v25 = vld [vmem:[#allocation180_spill] sm:$0xff]  ;;  %v13570_v52 = vld [vmem:[#allocation178_spill] sm:$0xff] }
 0x3c0   :  { %13561 = vst [vmem:[#allocation140_spill] sm:$0xff] %v9629_v34  ;;  %13563 = vst [vmem:[#allocation138_spill] sm:$0xff] %v9633_v3  ;;  %v9645_v7 = vadd.f32 %v8088_v51, %v13568_v25  ;;  %v9649_v20 = vadd.f32 %v8088_v51, %v13570_v52  ;;  %v13572_v34 = vld [vmem:[#allocation184_spill] sm:$0xff]  ;;  %v13574_v3 = vld [vmem:[#allocation182_spill] sm:$0xff] }
 0x3c1   :  { %13565 = vst [vmem:[#allocation144_spill] sm:$0xff] %v9637_v23  ;;  %13567 = vst [vmem:[#allocation142_spill] sm:$0xff] %v9641_v38  ;;  %v9653_v1 = vadd.f32 %v8088_v51, %v13572_v34  ;;  %v9657_v11 = vadd.f32 %v8088_v51, %v13574_v3  ;;  %v13576_v23 = vld [vmem:[#allocation188_spill] sm:$0xff]  ;;  %v13578_v38 = vld [vmem:[#allocation186_spill] sm:$0xff] }
 0x3c2   :  { %13569 = vst [vmem:[#allocation148_spill] sm:$0xff] %v9645_v7  ;;  %13571 = vst [vmem:[#allocation146_spill] sm:$0xff] %v9649_v20  ;;  %v9661_v43 = vadd.f32 %v8088_v51, %v13576_v23  ;;  %v9665_v25 = vadd.f32 %v8088_v51, %v13578_v38  ;;  %v13580_v7 = vld [vmem:[#allocation192_spill] sm:$0xff]  ;;  %v13582_v20 = vld [vmem:[#allocation190_spill] sm:$0xff] }
 0x3c3   :  { %13573 = vst [vmem:[#allocation152_spill] sm:$0xff] %v9653_v1  ;;  %13575 = vst [vmem:[#allocation150_spill] sm:$0xff] %v9657_v11  ;;  %v9669_v52 = vadd.f32 %v8088_v51, %v13580_v7  ;;  %v9673_v34 = vadd.f32 %v8088_v51, %v13582_v20  ;;  %v13584_v1 = vld [vmem:[#allocation196_spill] sm:$0xff]  ;;  %v13586_v11 = vld [vmem:[#allocation194_spill] sm:$0xff] }
 0x3c4   :  { %13577 = vst [vmem:[#allocation156_spill] sm:$0xff] %v9661_v43  ;;  %13579 = vst [vmem:[#allocation154_spill] sm:$0xff] %v9665_v25  ;;  %v9677_v3 = vadd.f32 %v8088_v51, %v13584_v1  ;;  %v9681_v23 = vadd.f32 %v8088_v51, %v13586_v11  ;;  %v13588_v43 = vld [vmem:[#allocation71_spill] sm:$0xff]  ;;  %v13590_v25 = vld [vmem:[#allocation69_spill] sm:$0xff] }
 0x3c5   :  { %13581 = vst [vmem:[#allocation160_spill] sm:$0xff] %v9669_v52  ;;  %13583 = vst [vmem:[#allocation158_spill] sm:$0xff] %v9673_v34  ;;  %v9685_v38 = vadd.f32 %v8088_v51, %v13588_v43  ;;  %v9689_v7 = vadd.f32 %v8088_v51, %v13590_v25  ;;  %v13592_v52 = vld [vmem:[#allocation75_spill] sm:$0xff]  ;;  %v13594_v34 = vld [vmem:[#allocation73_spill] sm:$0xff] }
 0x3c6   :  { %13585 = vst [vmem:[#allocation164_spill] sm:$0xff] %v9677_v3  ;;  %13587 = vst [vmem:[#allocation162_spill] sm:$0xff] %v9681_v23  ;;  %v9693_v20 = vadd.f32 %v8088_v51, %v13592_v52  ;;  %v9697_v1 = vadd.f32 %v8088_v51, %v13594_v34  ;;  %v13596_v3 = vld [vmem:[#allocation79_spill] sm:$0xff]  ;;  %v13598_v23 = vld [vmem:[#allocation77_spill] sm:$0xff] }
 0x3c7   :  { %13589 = vst [vmem:[#allocation168_spill] sm:$0xff] %v9685_v38  ;;  %13591 = vst [vmem:[#allocation166_spill] sm:$0xff] %v9689_v7  ;;  %v9701_v11 = vadd.f32 %v8088_v51, %v13596_v3  ;;  %v9705_v43 = vadd.f32 %v8088_v51, %v13598_v23  ;;  %v13600_v38 = vld [vmem:[#allocation83_spill] sm:$0xff]  ;;  %v13602_v7 = vld [vmem:[#allocation81_spill] sm:$0xff] }
 0x3c8   :  { %13593 = vst [vmem:[#allocation172_spill] sm:$0xff] %v9693_v20  ;;  %13595 = vst [vmem:[#allocation170_spill] sm:$0xff] %v9697_v1  ;;  %v9709_v25 = vadd.f32 %v8088_v51, %v13600_v38  ;;  %v9713_v52 = vadd.f32 %v8088_v51, %v13602_v7  ;;  %v13604_v20 = vld [vmem:[#allocation87_spill] sm:$0xff]  ;;  %v13606_v1 = vld [vmem:[#allocation85_spill] sm:$0xff] }
 0x3c9   :  { %13597 = vst [vmem:[#allocation176_spill] sm:$0xff] %v9701_v11  ;;  %13599 = vst [vmem:[#allocation174_spill] sm:$0xff] %v9705_v43  ;;  %v9717_v34 = vadd.f32 %v8088_v51, %v13604_v20  ;;  %v9721_v3 = vadd.f32 %v8088_v51, %v13606_v1  ;;  %v13608_v11 = vld [vmem:[#allocation91_spill] sm:$0xff]  ;;  %v13610_v43 = vld [vmem:[#allocation89_spill] sm:$0xff] }
 0x3ca   :  { %13601 = vst [vmem:[#allocation180_spill] sm:$0xff] %v9709_v25  ;;  %13603 = vst [vmem:[#allocation178_spill] sm:$0xff] %v9713_v52  ;;  %v9725_v23 = vadd.f32 %v8088_v51, %v13608_v11  ;;  %v9729_v38 = vadd.f32 %v8088_v51, %v13610_v43  ;;  %v13612_v25 = vld [vmem:[#allocation95_spill] sm:$0xff]  ;;  %v13614_v52 = vld [vmem:[#allocation93_spill] sm:$0xff] }
 0x3cb   :  { %13605 = vst [vmem:[#allocation184_spill] sm:$0xff] %v9717_v34  ;;  %13607 = vst [vmem:[#allocation182_spill] sm:$0xff] %v9721_v3  ;;  %v9733_v7 = vadd.f32 %v8088_v51, %v13612_v25  ;;  %v9737_v20 = vadd.f32 %v8088_v51, %v13614_v52  ;;  %v13616_v34 = vld [vmem:[#allocation99_spill] sm:$0xff]  ;;  %v13618_v3 = vld [vmem:[#allocation97_spill] sm:$0xff] }
 0x3cc   :  { %13609 = vst [vmem:[#allocation188_spill] sm:$0xff] %v9725_v23  ;;  %13611 = vst [vmem:[#allocation186_spill] sm:$0xff] %v9729_v38  ;;  %v9741_v1 = vadd.f32 %v8088_v51, %v13616_v34  ;;  %v9745_v11 = vadd.f32 %v8088_v51, %v13618_v3  ;;  %v13620_v23 = vld [vmem:[#allocation103_spill] sm:$0xff]  ;;  %v13622_v38 = vld [vmem:[#allocation101_spill] sm:$0xff] }
 0x3cd   :  { %13613 = vst [vmem:[#allocation192_spill] sm:$0xff] %v9733_v7  ;;  %13615 = vst [vmem:[#allocation190_spill] sm:$0xff] %v9737_v20  ;;  %v9749_v43 = vadd.f32 %v8088_v51, %v13620_v23  ;;  %v9753_v25 = vadd.f32 %v8088_v51, %v13622_v38  ;;  %v13624_v7 = vld [vmem:[#allocation107_spill] sm:$0xff]  ;;  %v13626_v20 = vld [vmem:[#allocation105_spill] sm:$0xff] }
 0x3ce   :  { %13617 = vst [vmem:[#allocation196_spill] sm:$0xff] %v9741_v1  ;;  %13619 = vst [vmem:[#allocation194_spill] sm:$0xff] %v9745_v11  ;;  %v9757_v52 = vadd.f32 %v8088_v51, %v13624_v7  ;;  %v9761_v34 = vadd.f32 %v8088_v51, %v13626_v20  ;;  %v13628_v1 = vld [vmem:[#allocation111_spill] sm:$0xff]  ;;  %v13630_v11 = vld [vmem:[#allocation109_spill] sm:$0xff] }
 0x3cf   :  { %13621 = vst [vmem:[#allocation71_spill] sm:$0xff] %v9749_v43  ;;  %13623 = vst [vmem:[#allocation69_spill] sm:$0xff] %v9753_v25  ;;  %v9765_v3 = vadd.f32 %v8088_v51, %v13628_v1  ;;  %v9769_v23 = vadd.f32 %v8088_v51, %v13630_v11  ;;  %v13632_v43 = vld [vmem:[#allocation115_spill] sm:$0xff]  ;;  %v13634_v25 = vld [vmem:[#allocation113_spill] sm:$0xff] }
 0x3d0   :  { %13625 = vst [vmem:[#allocation75_spill] sm:$0xff] %v9757_v52  ;;  %13627 = vst [vmem:[#allocation73_spill] sm:$0xff] %v9761_v34  ;;  %v9773_v38 = vadd.f32 %v8088_v51, %v13632_v43  ;;  %v9777_v7 = vadd.f32 %v8088_v51, %v13634_v25  ;;  %v13636_v52 = vld [vmem:[#allocation119_spill] sm:$0xff]  ;;  %v13638_v34 = vld [vmem:[#allocation117_spill] sm:$0xff] }
 0x3d1   :  { %13629 = vst [vmem:[#allocation79_spill] sm:$0xff] %v9765_v3  ;;  %13631 = vst [vmem:[#allocation77_spill] sm:$0xff] %v9769_v23  ;;  %v9781_v20 = vadd.f32 %v8088_v51, %v13636_v52  ;;  %v9785_v1 = vadd.f32 %v8088_v51, %v13638_v34  ;;  %v13640_v3 = vld [vmem:[#allocation123_spill] sm:$0xff]  ;;  %v13642_v23 = vld [vmem:[#allocation121_spill] sm:$0xff] }
 0x3d2   :  { %13633 = vst [vmem:[#allocation83_spill] sm:$0xff] %v9773_v38  ;;  %13635 = vst [vmem:[#allocation81_spill] sm:$0xff] %v9777_v7  ;;  %v9789_v11 = vadd.f32 %v8088_v51, %v13640_v3  ;;  %v9793_v43 = vadd.f32 %v8088_v51, %v13642_v23  ;;  %v13644_v38 = vld [vmem:[#allocation127_spill] sm:$0xff]  ;;  %v13646_v7 = vld [vmem:[#allocation125_spill] sm:$0xff] }
 0x3d3   :  { %13637 = vst [vmem:[#allocation87_spill] sm:$0xff] %v9781_v20  ;;  %13639 = vst [vmem:[#allocation85_spill] sm:$0xff] %v9785_v1  ;;  %v9797_v25 = vadd.f32 %v8088_v51, %v13644_v38  ;;  %v9801_v52 = vadd.f32 %v8088_v51, %v13646_v7  ;;  %v13648_v20 = vld [vmem:[#allocation131_spill] sm:$0xff]  ;;  %v13650_v1 = vld [vmem:[#allocation129_spill] sm:$0xff] }
 0x3d4   :  { %13641 = vst [vmem:[#allocation91_spill] sm:$0xff] %v9789_v11  ;;  %13643 = vst [vmem:[#allocation89_spill] sm:$0xff] %v9793_v43  ;;  %v9805_v34 = vadd.f32 %v8088_v51, %v13648_v20  ;;  %v9809_v3 = vadd.f32 %v8088_v51, %v13650_v1  ;;  %v13652_v11 = vld [vmem:[#allocation135_spill] sm:$0xff]  ;;  %v13654_v43 = vld [vmem:[#allocation133_spill] sm:$0xff] }
 0x3d5   :  { %13645 = vst [vmem:[#allocation95_spill] sm:$0xff] %v9797_v25  ;;  %13647 = vst [vmem:[#allocation93_spill] sm:$0xff] %v9801_v52  ;;  %v9813_v23 = vadd.f32 %v8088_v51, %v13652_v11  ;;  %v9817_v38 = vadd.f32 %v8088_v51, %v13654_v43  ;;  %v13656_v25 = vld [vmem:[#allocation139_spill] sm:$0xff]  ;;  %v13658_v52 = vld [vmem:[#allocation137_spill] sm:$0xff] }
 0x3d6   :  { %13649 = vst [vmem:[#allocation99_spill] sm:$0xff] %v9805_v34  ;;  %13651 = vst [vmem:[#allocation97_spill] sm:$0xff] %v9809_v3  ;;  %v9821_v7 = vadd.f32 %v8088_v51, %v13656_v25  ;;  %v9825_v20 = vadd.f32 %v8088_v51, %v13658_v52  ;;  %v13660_v34 = vld [vmem:[#allocation143_spill] sm:$0xff]  ;;  %v13662_v3 = vld [vmem:[#allocation141_spill] sm:$0xff] }
 0x3d7   :  { %13653 = vst [vmem:[#allocation103_spill] sm:$0xff] %v9813_v23  ;;  %13655 = vst [vmem:[#allocation101_spill] sm:$0xff] %v9817_v38  ;;  %v9829_v1 = vadd.f32 %v8088_v51, %v13660_v34  ;;  %v9833_v11 = vadd.f32 %v8088_v51, %v13662_v3  ;;  %v13664_v23 = vld [vmem:[#allocation147_spill] sm:$0xff]  ;;  %v13666_v38 = vld [vmem:[#allocation145_spill] sm:$0xff]  ;;  %v9853_v3 = vadd.f32 %v8088_v51, %v8833_v37 }
 0x3d8   :  { %13657 = vst [vmem:[#allocation107_spill] sm:$0xff] %v9821_v7  ;;  %13659 = vst [vmem:[#allocation105_spill] sm:$0xff] %v9825_v20  ;;  %v9837_v43 = vadd.f32 %v8088_v51, %v13664_v23  ;;  %v9841_v25 = vadd.f32 %v8088_v51, %v13666_v38  ;;  %v13668_v7 = vld [vmem:[#allocation151_spill] sm:$0xff]  ;;  %v13670_v20 = vld [vmem:[#allocation149_spill] sm:$0xff]  ;;  %v9857_v23 = vadd.f32 %v8088_v51, %v8837_v35 }
 0x3d9   :  { %13661 = vst [vmem:[#allocation111_spill] sm:$0xff] %v9829_v1  ;;  %13663 = vst [vmem:[#allocation109_spill] sm:$0xff] %v9833_v11  ;;  %v9845_v52 = vadd.f32 %v8088_v51, %v13668_v7  ;;  %v9849_v34 = vadd.f32 %v8088_v51, %v13670_v20  ;;  %v9861_v38 = vadd.f32 %v8088_v51, %v8841_v54 }
 0x3da   :  { %13665 = vst [vmem:[#allocation115_spill] sm:$0xff] %v9837_v43  ;;  %13667 = vst [vmem:[#allocation113_spill] sm:$0xff] %v9841_v25  ;;  %v9865_v7 = vadd.f32 %v8088_v51, %v8845_v60  ;;  %v9869_v20 = vadd.f32 %v8088_v51, %v8849_v40  ;;  %v9873_v37 = vadd.f32 %v8088_v51, %v8853_v10  ;;  %v13803_v25 = vld [vmem:[#allocation11_spill] sm:$0xff] }
 0x3db   :  { %13669 = vst [vmem:[#allocation119_spill] sm:$0xff] %v9845_v52  ;;  %13671 = vst [vmem:[#allocation117_spill] sm:$0xff] %v9849_v34  ;;  %v9877_v35 = vadd.f32 %v8088_v51, %v8857_v30  ;;  %v9881_v54 = vadd.f32 %v8088_v51, %v8861_v8  ;;  %v9885_v60 = vadd.f32 %v8088_v51, %v8865_v59  ;;  %v10274_v43 = vmul.f32 0.1, %v13803_v25 }
 0x3dc   :  { %13672 = vst [vmem:[#allocation123_spill] sm:$0xff] %v9853_v3  ;;  %13673 = vst [vmem:[#allocation121_spill] sm:$0xff] %v9857_v23  ;;  %v9889_v40 = vadd.f32 %v8088_v51, %v8869_v31  ;;  %v9893_v10 = vadd.f32 %v8088_v51, %v8873_v4  ;;  %v9897_v30 = vadd.f32 %v8088_v51, %v8877_v39  ;;  %v13797_v23 = vld [vmem:[#allocation10_spill] sm:$0xff] }
 0x3dd   :  { %13674 = vst [vmem:[#allocation127_spill] sm:$0xff] %v9861_v38  ;;  %13675 = vst [vmem:[#allocation125_spill] sm:$0xff] %v9865_v7  ;;  %v9901_v8 = vadd.f32 %v8088_v51, %v8881_v6  ;;  %v9905_v59 = vadd.f32 %v8088_v51, %v8885_v61  ;;  %v9909_v31 = vadd.f32 %v8088_v51, %v8889_v48  ;;  %v10261_v3 = vmul.f32 0.1, %v13797_v23 }
 0x3de   :  { %13676 = vst [vmem:[#allocation131_spill] sm:$0xff] %v9869_v20  ;;  %13677 = vst [vmem:[#allocation129_spill] sm:$0xff] %v9873_v37  ;;  %v9913_v4 = vadd.f32 %v8088_v51, %v8893_v45  ;;  %v9917_v39 = vadd.f32 %v8088_v51, %v8897_v18  ;;  %v9921_v6 = vadd.f32 %v8088_v51, %v8901_v19  ;;  %v13792_v37 = vld [vmem:[#allocation5_spill] sm:$0xff] }
 0x3df   :  { %13678 = vst [vmem:[#allocation135_spill] sm:$0xff] %v9877_v35  ;;  %13679 = vst [vmem:[#allocation133_spill] sm:$0xff] %v9881_v54  ;;  %v9925_v61 = vadd.f32 %v8088_v51, %v8905_v5  ;;  %v9929_v48 = vadd.f32 %v8088_v51, %v8909_v41  ;;  %v9933_v45 = vadd.f32 %v8088_v51, %v8913_v27  ;;  %v10248_v20 = vmul.f32 0.1, %v13792_v37 }
 0x3e0   :  { %13680 = vst [vmem:[#allocation139_spill] sm:$0xff] %v9885_v60  ;;  %13681 = vst [vmem:[#allocation137_spill] sm:$0xff] %v9889_v40  ;;  %v9937_v18 = vadd.f32 %v8088_v51, %v8917_v13  ;;  %v9941_v19 = vadd.f32 %v8088_v51, %v8921_v58  ;;  %v9945_v5 = vadd.f32 %v8088_v51, %v8925_v57  ;;  %v13789_v40 = vld [vmem:[#allocation197_spill] sm:$0xff] }
 0x3e1   :  { %13682 = vst [vmem:[#allocation143_spill] sm:$0xff] %v9893_v10  ;;  %13683 = vst [vmem:[#allocation141_spill] sm:$0xff] %v9897_v30  ;;  %v9949_v41 = vadd.f32 %v8088_v51, %v8929_v21  ;;  %v9953_v27 = vadd.f32 %v8088_v51, %v8933_v12  ;;  %v9957_v13 = vadd.f32 %v8088_v51, %v8937_v0  ;;  %v10235_v60 = vmul.f32 0.1, %v13789_v40 }
 0x3e2   :  { %13684 = vst [vmem:[#allocation147_spill] sm:$0xff] %v9901_v8  ;;  %13685 = vst [vmem:[#allocation145_spill] sm:$0xff] %v9905_v59  ;;  %v9961_v58 = vadd.f32 %v8088_v51, %v8941_v63  ;;  %v9965_v57 = vadd.f32 %v8088_v51, %v8945_v62  ;;  %v9969_v21 = vadd.f32 %v8088_v51, %v8949_v49  ;;  %v13786_v59 = vld [vmem:[#allocation222_spill] sm:$0xff] }
 0x3e3   :  { %13686 = vst [vmem:[#allocation151_spill] sm:$0xff] %v9909_v31  ;;  %13687 = vst [vmem:[#allocation149_spill] sm:$0xff] %v9913_v4  ;;  %v9973_v12 = vadd.f32 %v8088_v51, %v8953_v22  ;;  %v9977_v0 = vadd.f32 %v8088_v51, %v8957_v36  ;;  %v9981_v63 = vadd.f32 %v8088_v51, %v8961_v50  ;;  %v10222_v8 = vmul.f32 0.1, %v13786_v59 }
 0x3e4   :  { %13688 = vst [vmem:[#allocation224_spill] sm:$0xff] %v9917_v39  ;;  %13689 = vst [vmem:[#allocation225_spill] sm:$0xff] %v9921_v6  ;;  %v9985_v62 = vadd.f32 %v8088_v51, %v8965_v9  ;;  %v9989_v49 = vadd.f32 %v8088_v51, %v8969_v32  ;;  %v9993_v22 = vadd.f32 %v8088_v51, %v8973_v15  ;;  %v13783_v6 = vld [vmem:[#allocation217_spill] sm:$0xff] }
 0x3e5   :  { %13690 = vst [vmem:[#allocation226_spill] sm:$0xff] %v9925_v61  ;;  %13691 = vst [vmem:[#allocation227_spill] sm:$0xff] %v9929_v48  ;;  %v9997_v36 = vadd.f32 %v8088_v51, %v8977_v14  ;;  %v10001_v50 = vadd.f32 %v8088_v51, %v8981_v16  ;;  %v10209_v39 = vmul.f32 0.1, %v13783_v6 }
 0x3e6   :  { %13692 = vst [vmem:[#allocation228_spill] sm:$0xff] %v9933_v45  ;;  %13693 = vst [vmem:[#allocation229_spill] sm:$0xff] %v9937_v18  ;;  %v13780_v18 = vld [vmem:[#allocation216_spill] sm:$0xff] }
 0x3e7   :  { %13694 = vst [vmem:[#allocation230_spill] sm:$0xff] %v9941_v19  ;;  %13695 = vst [vmem:[#allocation231_spill] sm:$0xff] %v9945_v5  ;;  %v10196_v45 = vmul.f32 0.1, %v13780_v18 }
 0x3e8   :  { %13696 = vst [vmem:[#allocation232_spill] sm:$0xff] %v9949_v41  ;;  %13697 = vst [vmem:[#allocation233_spill] sm:$0xff] %v9953_v27  ;;  %v13777_v27 = vld [vmem:[#allocation211_spill] sm:$0xff] }
 0x3e9   :  { %13698 = vst [vmem:[#allocation234_spill] sm:$0xff] %v9957_v13  ;;  %13699 = vst [vmem:[#allocation235_spill] sm:$0xff] %v9961_v58  ;;  %v10183_v41 = vmul.f32 0.1, %v13777_v27 }
 0x3ea   :  { %13700 = vst [vmem:[#allocation236_spill] sm:$0xff] %v9965_v57  ;;  %13701 = vst [vmem:[#allocation237_spill] sm:$0xff] %v9969_v21 }
 0x3eb   :  { %13702 = vst [vmem:[#allocation238_spill] sm:$0xff] %v9973_v12  ;;  %13703 = vst [vmem:[#allocation239_spill] sm:$0xff] %v9977_v0  ;;  %v13773_v12 = vld [vmem:[#allocation207_spill] sm:$0xff] }
 0x3ec   :  { %13704 = vst [vmem:[#allocation240_spill] sm:$0xff] %v9981_v63  ;;  %13705 = vst [vmem:[#allocation241_spill] sm:$0xff] %v9985_v62  ;;  %v13710_v63 = vld [vmem:[#allocation155_spill] sm:$0xff]  ;;  %v13712_v62 = vld [vmem:[#allocation153_spill] sm:$0xff]  ;;  %vm3722_vm15 = vcmp.ge.f32.partialorder %v13773_v12, 0.0 }
 0x3ed   :  { %13706 = vst [vmem:[#allocation242_spill] sm:$0xff] %v9989_v49  ;;  %13707 = vst [vmem:[#allocation243_spill] sm:$0xff] %v9993_v22  ;;  %v10005_v9 = vadd.f32 %v8088_v51, %v13710_v63  ;;  %v10009_v32 = vadd.f32 %v8088_v51, %v13712_v62  ;;  %v13714_v49 = vld [vmem:[#allocation159_spill] sm:$0xff]  ;;  %v13716_v22 = vld [vmem:[#allocation157_spill] sm:$0xff] }
 0x3ee   :  { %13708 = vst [vmem:[#allocation244_spill] sm:$0xff] %v9997_v36  ;;  %13709 = vst [vmem:[#allocation245_spill] sm:$0xff] %v10001_v50  ;;  %v10013_v15 = vadd.f32 %v8088_v51, %v13714_v49  ;;  %v10017_v14 = vadd.f32 %v8088_v51, %v13716_v22  ;;  %v13718_v36 = vld [vmem:[#allocation163_spill] sm:$0xff]  ;;  %v13720_v50 = vld [vmem:[#allocation161_spill] sm:$0xff] }
 0x3ef   :  { %13711 = vst [vmem:[#allocation155_spill] sm:$0xff] %v10005_v9  ;;  %13713 = vst [vmem:[#allocation153_spill] sm:$0xff] %v10009_v32  ;;  %v10021_v16 = vadd.f32 %v8088_v51, %v13718_v36  ;;  %v10025_v63 = vadd.f32 %v8088_v51, %v13720_v50  ;;  %v13722_v9 = vld [vmem:[#allocation167_spill] sm:$0xff]  ;;  %v13724_v32 = vld [vmem:[#allocation165_spill] sm:$0xff] }
 0x3f0   :  { %13715 = vst [vmem:[#allocation159_spill] sm:$0xff] %v10013_v15  ;;  %13717 = vst [vmem:[#allocation157_spill] sm:$0xff] %v10017_v14  ;;  %v10029_v62 = vadd.f32 %v8088_v51, %v13722_v9  ;;  %v10033_v49 = vadd.f32 %v8088_v51, %v13724_v32  ;;  %v13726_v15 = vld [vmem:[#allocation171_spill] sm:$0xff]  ;;  %v13728_v14 = vld [vmem:[#allocation169_spill] sm:$0xff] }
 0x3f1   :  { %13719 = vst [vmem:[#allocation163_spill] sm:$0xff] %v10021_v16  ;;  %13721 = vst [vmem:[#allocation161_spill] sm:$0xff] %v10025_v63  ;;  %v10037_v22 = vadd.f32 %v8088_v51, %v13726_v15  ;;  %v10041_v36 = vadd.f32 %v8088_v51, %v13728_v14  ;;  %v13730_v16 = vld [vmem:[#allocation175_spill] sm:$0xff]  ;;  %v13732_v63 = vld [vmem:[#allocation173_spill] sm:$0xff] }
 0x3f2   :  { %13723 = vst [vmem:[#allocation167_spill] sm:$0xff] %v10029_v62  ;;  %13725 = vst [vmem:[#allocation165_spill] sm:$0xff] %v10033_v49  ;;  %v10045_v50 = vadd.f32 %v8088_v51, %v13730_v16  ;;  %v10049_v9 = vadd.f32 %v8088_v51, %v13732_v63  ;;  %v13734_v62 = vld [vmem:[#allocation179_spill] sm:$0xff]  ;;  %v13736_v49 = vld [vmem:[#allocation177_spill] sm:$0xff] }
 0x3f3   :  { %13727 = vst [vmem:[#allocation171_spill] sm:$0xff] %v10037_v22  ;;  %13729 = vst [vmem:[#allocation169_spill] sm:$0xff] %v10041_v36  ;;  %v10053_v32 = vadd.f32 %v8088_v51, %v13734_v62  ;;  %v10057_v15 = vadd.f32 %v8088_v51, %v13736_v49  ;;  %v13738_v22 = vld [vmem:[#allocation183_spill] sm:$0xff]  ;;  %v13740_v36 = vld [vmem:[#allocation181_spill] sm:$0xff] }
 0x3f4   :  { %13731 = vst [vmem:[#allocation175_spill] sm:$0xff] %v10045_v50  ;;  %13733 = vst [vmem:[#allocation173_spill] sm:$0xff] %v10049_v9  ;;  %v10061_v14 = vadd.f32 %v8088_v51, %v13738_v22  ;;  %v10065_v16 = vadd.f32 %v8088_v51, %v13740_v36  ;;  %v13742_v50 = vld [vmem:[#allocation187_spill] sm:$0xff]  ;;  %v13744_v9 = vld [vmem:[#allocation185_spill] sm:$0xff] }
 0x3f5   :  { %13735 = vst [vmem:[#allocation179_spill] sm:$0xff] %v10053_v32  ;;  %13737 = vst [vmem:[#allocation177_spill] sm:$0xff] %v10057_v15  ;;  %v10069_v63 = vadd.f32 %v8088_v51, %v13742_v50  ;;  %v10073_v62 = vadd.f32 %v8088_v51, %v13744_v9  ;;  %v13746_v32 = vld [vmem:[#allocation191_spill] sm:$0xff]  ;;  %v13748_v15 = vld [vmem:[#allocation189_spill] sm:$0xff] }
 0x3f6   :  { %13739 = vst [vmem:[#allocation183_spill] sm:$0xff] %v10061_v14  ;;  %13741 = vst [vmem:[#allocation181_spill] sm:$0xff] %v10065_v16  ;;  %v10077_v49 = vadd.f32 %v8088_v51, %v13746_v32  ;;  %v10081_v22 = vadd.f32 %v8088_v51, %v13748_v15  ;;  %v13750_v14 = vld [vmem:[#allocation195_spill] sm:$0xff]  ;;  %v13752_v16 = vld [vmem:[#allocation198_spill] sm:$0xff] }
 0x3f7   :  { %13743 = vst [vmem:[#allocation187_spill] sm:$0xff] %v10069_v63  ;;  %13745 = vst [vmem:[#allocation185_spill] sm:$0xff] %v10073_v62  ;;  %v10085_v36 = vadd.f32 %v8088_v51, %v13750_v14  ;;  %v10089_v50 = vadd.f32 %v8088_v51, %v13752_v16  ;;  %v13754_v63 = vld [vmem:[#allocation200_spill] sm:$0xff]  ;;  %v13756_v62 = vld [vmem:[#allocation199_spill] sm:$0xff]  ;;  %v10105_v14 = vadd.f32 %v8088_v51, %v9085_v42 }
 0x3f8   :  { %13747 = vst [vmem:[#allocation191_spill] sm:$0xff] %v10077_v49  ;;  %13749 = vst [vmem:[#allocation189_spill] sm:$0xff] %v10081_v22  ;;  %v10093_v9 = vadd.f32 %v8088_v51, %v13754_v63  ;;  %v10097_v32 = vadd.f32 %v8088_v51, %v13756_v62  ;;  %v13758_v49 = vld [vmem:[#allocation202_spill] sm:$0xff]  ;;  %v10109_v16 = vadd.f32 %v8088_v51, %v9089_v46  ;;  %v13765_v42 = vld [vmem:[#allocation201_spill] sm:$0xff] }
 0x3f9   :  { %13751 = vst [vmem:[#allocation195_spill] sm:$0xff] %v10085_v36  ;;  %13753 = vst [vmem:[#allocation198_spill] sm:$0xff] %v10089_v50  ;;  %v10101_v15 = vadd.f32 %v8088_v51, %v13758_v49  ;;  %v10113_v63 = vadd.f32 %v8088_v51, %v9093_v29  ;;  %v10117_v62 = vadd.f32 %v8088_v51, %v9097_v26  ;;  %v13767_v29 = vld [vmem:[#allocation203_spill] sm:$0xff]  ;;  %v3965_v26 = vmul.f32 0.1, %v9113_v55 }
 0x3fa   :  { %13755 = vst [vmem:[#allocation200_spill] sm:$0xff] %v10093_v9  ;;  %13757 = vst [vmem:[#allocation199_spill] sm:$0xff] %v10097_v32  ;;  %v10121_v49 = vadd.f32 %v8088_v51, %v9101_v17  ;;  %v10134_v46 = vadd.f32 %v8088_v51, %v13765_v42  ;;  %vm3718_vm11 = vcmp.ge.f32.partialorder %v13767_v29, 0.0  ;;  %v3966_v17 = vmul.f32 0.1, %v9117_v28 }
 0x3fb   :  { %13759 = vst [vmem:[#allocation202_spill] sm:$0xff] %v10101_v15  ;;  %13760 = vst [vmem:[#allocation246_spill] sm:$0xff] %v10105_v14  ;;  %v3968_v14 = vmul.f32 0.1, %v9125_v2  ;;  %v3969_v15 = vmul.f32 0.1, %v9129_v47 }
 0x3fc   :  { %13761 = vst [vmem:[#allocation247_spill] sm:$0xff] %v10109_v16  ;;  %13762 = vst [vmem:[#allocation248_spill] sm:$0xff] %v10113_v63  ;;  %v13770_v16 = vld [vmem:[#allocation206_spill] sm:$0xff]  ;;  %v3970_v42 = vmul.f32 0.1, %v9133_v33  ;;  %v4222_v0 = vsel %vm3710_vm3, %v9117_v28, %v3966_v17  ;;  %v13775_v28 = vld [vmem:[#allocation209_spill] sm:$0xff] }
 0x3fd   :  { %13763 = vst [vmem:[#allocation249_spill] sm:$0xff] %v10117_v62  ;;  %13764 = vst [vmem:[#allocation250_spill] sm:$0xff] %v10121_v49  ;;  %v3967_v49 = vmul.f32 0.1, %v9121_v56  ;;  %v13768_v62 = vld [vmem:[#allocation204_spill] sm:$0xff]  ;;  %vm3719_vm12 = vcmp.ge.f32.partialorder %v13770_v16, 0.0  ;;  %v4224_v5 = vsel %vm3712_vm5, %v9125_v2, %v3968_v14  ;;  %v4225_v48 = vsel %vm3713_vm6, %v9129_v47, %v3969_v15 }
 0x3fe   :  { %13766 = vst [vmem:[#allocation201_spill] sm:$0xff] %v10134_v46  ;;  %v10142_v63 = vadd.f32 %v8088_v51, %v13768_v62  ;;  %v13771_v46 = vld [vmem:[#allocation205_spill] sm:$0xff]  ;;  %v3971_v32 = vmul.f32 0.1, %v9137_v53  ;;  %v3972_v9 = vmul.f32 0.1, %v9141_v24  ;;  %v4221_v51 = vsel %vm3709_vm2, %v9113_v55, %v3965_v26 }
 0x3ff   :  { %vm3720_vm13 = vcmp.ge.f32.partialorder %v13771_v46, 0.0  ;;  %v3973_v50 = vmul.f32 0.1, %v9145_v44  ;;  %v13772_v62 = vld [vmem:[#allocation208_spill] sm:$0xff]  ;;  %v3975_v36 = vmul.f32 0.1, %v13770_v16  ;;  %v4223_v58 = vsel %vm3711_vm4, %v9121_v56, %v3967_v49 }
 0x400   :  { %13769 = vst [vmem:[#allocation203_spill] sm:$0xff] %v10142_v63  ;;  %vm3721_vm14 = vcmp.ge.f32.partialorder %v13772_v62, 0.0  ;;  %v3974_v63 = vmul.f32 0.1, %v13767_v29  ;;  %v3976_v22 = vmul.f32 0.1, %v13771_v46  ;;  %v4226_v4 = vsel %vm3714_vm7, %v9133_v33, %v3970_v42 }
 0x401   :  { %4477 = vst [vmem:[#allocation2] sm:$0xff] %v4221_v51  ;;  %v10164_v21 = vmul.f32 0.1, %v13772_v62  ;;  %v10167_v55 = vmul.f32 0.1, %v13773_v12  ;;  %v13774_v26 = vld [vmem:[#allocation210_spill] sm:$0xff]  ;;  %v4227_v30 = vsel %vm3715_vm8, %v9137_v53, %v3971_v32  ;;  %v4228_v54 = vsel %vm3716_vm9, %v9141_v24, %v3972_v9 }
 0x402   :  { %v10170_v57 = vmul.f32 0.1, %v13774_v26  ;;  %4478 = vst [vmem:[#allocation2 + $0x8] sm:$0xff] %v4222_v0  ;;  %vm3723_vm0 = vcmp.ge.f32.partialorder %v13774_v26, 0.0  ;;  %v10177_v17 = vmul.f32 0.1, %v13775_v28  ;;  %v4229_v7 = vsel %vm3717_vm10, %v9145_v44, %v3973_v50 }
 0x403   :  { %v13776_v51 = vld [vmem:[#allocation212_spill] sm:$0xff]  ;;  %4479 = vst [vmem:[#allocation2 + $0x10] sm:$0xff] %v4223_v58  ;;  %vm3724_vm1 = vcmp.ge.f32.partialorder %v13775_v28, 0.0  ;;  %v13778_v56 = vld [vmem:[#allocation214_spill] sm:$0xff]  ;;  %v13779_v49 = vld [vmem:[#allocation213_spill] sm:$0xff]  ;;  %vm3726_vm3 = vcmp.ge.f32.partialorder %v13777_v27, 0.0  ;;  %v4230_v34 = vsel %vm3718_vm11, %v13767_v29, %v3974_v63  ;;  %v4231_v11 = vsel %vm3719_vm12, %v13770_v16, %v3975_v36 }
 0x404   :  { %v10180_v13 = vmul.f32 0.1, %v13776_v51  ;;  %v10190_v0 = vmul.f32 0.1, %v13778_v56  ;;  %v10193_v19 = vmul.f32 0.1, %v13779_v49 }
 0x405   :  { %4480 = vst [vmem:[#allocation2 + $0x18] sm:$0xff] %v4224_v5  ;;  %vm3725_vm2 = vcmp.ge.f32.partialorder %v13776_v51, 0.0  ;;  %v13781_v2 = vld [vmem:[#allocation215_spill] sm:$0xff]  ;;  %v13782_v14 = vld [vmem:[#allocation218_spill] sm:$0xff]  ;;  %4481 = vst [vmem:[#allocation2 + $0x20] sm:$0xff] %v4225_v48  ;;  %vm3727_vm4 = vcmp.ge.f32.partialorder %v13778_v56, 0.0 }
 0x406   :  { %v10203_v58 = vmul.f32 0.1, %v13781_v2  ;;  %v10206_v61 = vmul.f32 0.1, %v13782_v14  ;;  %v13784_v47 = vld [vmem:[#allocation220_spill] sm:$0xff]  ;;  %v13785_v15 = vld [vmem:[#allocation219_spill] sm:$0xff] }
 0x407   :  { %v10216_v5 = vmul.f32 0.1, %v13784_v47  ;;  %v10219_v31 = vmul.f32 0.1, %v13785_v15  ;;  %4482 = vst [vmem:[#allocation2 + $0x28] sm:$0xff] %v4226_v4  ;;  %v13787_v33 = vld [vmem:[#allocation221_spill] sm:$0xff] }
 0x408   :  { %v10229_v48 = vmul.f32 0.1, %v13787_v33  ;;  %v13788_v42 = vld [vmem:[#allocation193_spill] sm:$0xff]  ;;  %4483 = vst [vmem:[#allocation2 + $0x30] sm:$0xff] %v4227_v30  ;;  %vm3728_vm5 = vcmp.ge.f32.partialorder %v13779_v49, 0.0  ;;  %v13790_v53 = vld [vmem:[#allocation223_spill] sm:$0xff] }
 0x409   :  { %v10232_v10 = vmul.f32 0.1, %v13788_v42  ;;  %v10242_v4 = vmul.f32 0.1, %v13790_v53  ;;  %v13791_v32 = vld [vmem:[#allocation6_spill] sm:$0xff]  ;;  %4484 = vst [vmem:[#allocation2 + $0x38] sm:$0xff] %v4228_v54 }
 0x40a   :  { %v10245_v35 = vmul.f32 0.1, %v13791_v32  ;;  %vm3729_vm6 = vcmp.ge.f32.partialorder %v13780_v18, 0.0  ;;  %v13793_v24 = vld [vmem:[#allocation8_spill] sm:$0xff]  ;;  %v13795_v9 = vld [vmem:[#allocation7_spill] sm:$0xff]  ;;  %13798 = vst [vmem:[#allocation205_spill] sm:$0xff] %v10261_v3 }
 0x40b   :  { %v10255_v30 = vmul.f32 0.1, %v13793_v24  ;;  %v10258_v38 = vmul.f32 0.1, %v13795_v9  ;;  %4485 = vst [vmem:[#allocation2 + $0x40] sm:$0xff] %v4229_v7  ;;  %vm3730_vm7 = vcmp.ge.f32.partialorder %v13781_v2, 0.0 }
 0x40c   :  { %v13799_v44 = vld [vmem:[#allocation9_spill] sm:$0xff]  ;;  %v13801_v50 = vld [vmem:[#allocation12_spill] sm:$0xff]  ;;  %13804 = vst [vmem:[#allocation210_spill] sm:$0xff] %v10274_v43  ;;  %4486 = vst [vmem:[#allocation2 + $0x48] sm:$0xff] %v4230_v34  ;;  %vm3731_vm8 = vcmp.ge.f32.partialorder %v13782_v14, 0.0  ;;  %v4232_v43 = vsel %vm3720_vm13, %v13771_v46, %v3976_v22  ;;  %vm3732_vm9 = vcmp.ge.f32.partialorder %v13783_v6, 0.0 }
 0x40d   :  { %13794 = vst [vmem:[#allocation204_spill] sm:$0xff] %v10255_v30  ;;  %13796 = vst [vmem:[#allocation206_spill] sm:$0xff] %v10258_v38  ;;  %v10268_v54 = vmul.f32 0.1, %v13799_v44  ;;  %v10271_v52 = vmul.f32 0.1, %v13801_v50 }
 0x40e   :  { %v13805_v63 = vld [vmem:[#allocation14_spill] sm:$0xff]  ;;  %v13807_v29 = vld [vmem:[#allocation13_spill] sm:$0xff]  ;;  %4487 = vst [vmem:[#allocation2 + $0x50] sm:$0xff] %v4231_v11  ;;  %v13811_v36 = vld [vmem:[#allocation15_spill] sm:$0xff]  ;;  %vm3733_vm10 = vcmp.ge.f32.partialorder %v13784_v47, 0.0  ;;  %vm3734_vm11 = vcmp.ge.f32.partialorder %v13785_v15, 0.0 }
 0x40f   :  { %13800 = vst [vmem:[#allocation208_spill] sm:$0xff] %v10268_v54  ;;  %13802 = vst [vmem:[#allocation207_spill] sm:$0xff] %v10271_v52  ;;  %v10281_v7 = vmul.f32 0.1, %v13805_v63  ;;  %v10284_v1 = vmul.f32 0.1, %v13807_v29 }
 0x410   :  { %v13809_v54 = vld [vmem:[#allocation16_spill] sm:$0xff]  ;;  %v10294_v34 = vmul.f32 0.1, %v13811_v36  ;;  %v13813_v16 = vld [vmem:[#allocation18_spill] sm:$0xff]  ;;  %4488 = vst [vmem:[#allocation2 + $0x58] sm:$0xff] %v4232_v43  ;;  %v13819_v46 = vld [vmem:[#allocation19_spill] sm:$0xff] }
 0x411   :  { %13806 = vst [vmem:[#allocation209_spill] sm:$0xff] %v10281_v7  ;;  %13808 = vst [vmem:[#allocation212_spill] sm:$0xff] %v10284_v1  ;;  %v10287_v3 = vmul.f32 0.1, %v13809_v54  ;;  %v10297_v52 = vmul.f32 0.1, %v13813_v16 }
 0x412   :  { %13812 = vst [vmem:[#allocation214_spill] sm:$0xff] %v10294_v34  ;;  %v13815_v7 = vld [vmem:[#allocation17_spill] sm:$0xff]  ;;  %v13817_v11 = vld [vmem:[#allocation20_spill] sm:$0xff]  ;;  %v10311_v1 = vmul.f32 0.1, %v13819_v46  ;;  %v13821_v34 = vld [vmem:[#allocation22_spill] sm:$0xff] }
 0x413   :  { %13810 = vst [vmem:[#allocation211_spill] sm:$0xff] %v10287_v3  ;;  %13814 = vst [vmem:[#allocation213_spill] sm:$0xff] %v10297_v52  ;;  %v10300_v38 = vmul.f32 0.1, %v13815_v7  ;;  %v4233_v3 = vsel %vm3721_vm14, %v13772_v62, %v10164_v21  ;;  %v10308_v22 = vmul.f32 0.1, %v13817_v11 }
 0x414   :  { %13820 = vst [vmem:[#allocation218_spill] sm:$0xff] %v10311_v1  ;;  %v10314_v30 = vmul.f32 0.1, %v13821_v34  ;;  %4489 = vst [vmem:[#allocation2 + $0x60] sm:$0xff] %v4233_v3  ;;  %v13823_v43 = vld [vmem:[#allocation21_spill] sm:$0xff]  ;;  %v13825_v62 = vld [vmem:[#allocation24_spill] sm:$0xff] }
 0x415   :  { %13816 = vst [vmem:[#allocation216_spill] sm:$0xff] %v10300_v38  ;;  %13818 = vst [vmem:[#allocation215_spill] sm:$0xff] %v10308_v22  ;;  %v4234_v38 = vsel %vm3722_vm15, %v13773_v12, %v10167_v55  ;;  %v10322_v21 = vmul.f32 0.1, %v13823_v43  ;;  %v10325_v52 = vmul.f32 0.1, %v13825_v62 }
 0x416   :  { %13822 = vst [vmem:[#allocation217_spill] sm:$0xff] %v10314_v30  ;;  %v13827_v22 = vld [vmem:[#allocation23_spill] sm:$0xff]  ;;  %v4235_v30 = vsel %vm3723_vm0, %v13774_v26, %v10170_v57  ;;  %4490 = vst [vmem:[#allocation2 + $0x68] sm:$0xff] %v4234_v38  ;;  %vm3735_vm12 = vcmp.ge.f32.partialorder %v13786_v59, 0.0  ;;  %v13829_v3 = vld [vmem:[#allocation26_spill] sm:$0xff]  ;;  %vm3736_vm13 = vcmp.ge.f32.partialorder %v13787_v33, 0.0 }
 0x417   :  { %13824 = vst [vmem:[#allocation220_spill] sm:$0xff] %v10322_v21  ;;  %13826 = vst [vmem:[#allocation219_spill] sm:$0xff] %v10325_v52  ;;  %v10328_v46 = vmul.f32 0.1, %v13827_v22  ;;  %v10336_v12 = vmul.f32 0.1, %v13829_v3 }
 0x418   :  { %v13831_v55 = vld [vmem:[#allocation25_spill] sm:$0xff]  ;;  %v13833_v21 = vld [vmem:[#allocation28_spill] sm:$0xff]  ;;  %4491 = vst [vmem:[#allocation2 + $0x70] sm:$0xff] %v4235_v30  ;;  %v13835_v38 = vld [vmem:[#allocation27_spill] sm:$0xff]  ;;  %vm3737_vm14 = vcmp.ge.f32.partialorder %v13788_v42, 0.0  ;;  %vm3738_vm15 = vcmp.ge.f32.partialorder %v13789_v40, 0.0 }
 0x419   :  { %13828 = vst [vmem:[#allocation222_spill] sm:$0xff] %v10328_v46  ;;  %13830 = vst [vmem:[#allocation221_spill] sm:$0xff] %v10336_v12  ;;  %v10339_v1 = vmul.f32 0.1, %v13831_v55  ;;  %v10342_v62 = vmul.f32 0.1, %v13833_v21  ;;  %v4236_v46 = vsel %vm3724_vm1, %v13775_v28, %v10177_v17 }
 0x41a   :  { %v10350_v57 = vmul.f32 0.1, %v13835_v38  ;;  %v13837_v26 = vld [vmem:[#allocation30_spill] sm:$0xff]  ;;  %v13839_v12 = vld [vmem:[#allocation29_spill] sm:$0xff]  ;;  %4492 = vst [vmem:[#allocation2 + $0x78] sm:$0xff] %v4236_v46  ;;  %v13841_v28 = vld [vmem:[#allocation32_spill] sm:$0xff] }
 0x41b   :  { %13832 = vst [vmem:[#allocation193_spill] sm:$0xff] %v10339_v1  ;;  %13834 = vst [vmem:[#allocation197_spill] sm:$0xff] %v10342_v62  ;;  %v10353_v52 = vmul.f32 0.1, %v13837_v26  ;;  %v10356_v55 = vmul.f32 0.1, %v13839_v12  ;;  %v4237_v62 = vsel %vm3725_vm2, %v13776_v51, %v10180_v13 }
 0x41c   :  { %13836 = vst [vmem:[#allocation223_spill] sm:$0xff] %v10350_v57  ;;  %v10364_v17 = vmul.f32 0.1, %v13841_v28  ;;  %v13843_v30 = vld [vmem:[#allocation31_spill] sm:$0xff]  ;;  %v13845_v57 = vld [vmem:[#allocation34_spill] sm:$0xff]  ;;  %4493 = vst [vmem:[#allocation2 + $0x80] sm:$0xff] %v4237_v62 }
 0x41d   :  { %13838 = vst [vmem:[#allocation6_spill] sm:$0xff] %v10353_v52  ;;  %13840 = vst [vmem:[#allocation5_spill] sm:$0xff] %v10356_v55  ;;  %v10367_v1 = vmul.f32 0.1, %v13843_v30  ;;  %v10370_v26 = vmul.f32 0.1, %v13845_v57  ;;  %v4238_v55 = vsel %vm3726_vm3, %v13777_v27, %v10183_v41 }
 0x41e   :  { %13842 = vst [vmem:[#allocation8_spill] sm:$0xff] %v10364_v17  ;;  %v13847_v13 = vld [vmem:[#allocation33_spill] sm:$0xff]  ;;  %v13849_v46 = vld [vmem:[#allocation36_spill] sm:$0xff]  ;;  %v13851_v17 = vld [vmem:[#allocation35_spill] sm:$0xff]  ;;  %vm3739_vm0 = vcmp.ge.f32.partialorder %v13790_v53, 0.0  ;;  %vm3740_vm1 = vcmp.ge.f32.partialorder %v13791_v32, 0.0 }
 0x41f   :  { %13844 = vst [vmem:[#allocation7_spill] sm:$0xff] %v10367_v1  ;;  %13846 = vst [vmem:[#allocation10_spill] sm:$0xff] %v10370_v26  ;;  %v10378_v51 = vmul.f32 0.1, %v13847_v13  ;;  %v10381_v52 = vmul.f32 0.1, %v13849_v46  ;;  %v4239_v26 = vsel %vm3727_vm4, %v13778_v56, %v10190_v0 }
 0x420   :  { %v10384_v30 = vmul.f32 0.1, %v13851_v17  ;;  %4494 = vst [vmem:[#allocation2 + $0x88] sm:$0xff] %v4238_v55  ;;  %v13853_v41 = vld [vmem:[#allocation38_spill] sm:$0xff]  ;;  %v13855_v62 = vld [vmem:[#allocation37_spill] sm:$0xff]  ;;  %4495 = vst [vmem:[#allocation2 + $0x90] sm:$0xff] %v4239_v26 }
 0x421   :  { %13848 = vst [vmem:[#allocation9_spill] sm:$0xff] %v10378_v51  ;;  %13850 = vst [vmem:[#allocation12_spill] sm:$0xff] %v10381_v52  ;;  %v10392_v27 = vmul.f32 0.1, %v13853_v41  ;;  %v10395_v1 = vmul.f32 0.1, %v13855_v62 }
 0x422   :  { %13852 = vst [vmem:[#allocation11_spill] sm:$0xff] %v10384_v30  ;;  %v13857_v51 = vld [vmem:[#allocation40_spill] sm:$0xff]  ;;  %v4240_v30 = vsel %vm3728_vm5, %v13779_v49, %v10193_v19  ;;  %v13859_v56 = vld [vmem:[#allocation39_spill] sm:$0xff]  ;;  %v13861_v55 = vld [vmem:[#allocation42_spill] sm:$0xff]  ;;  %vm3741_vm2 = vcmp.ge.f32.partialorder %v13792_v37, 0.0  ;;  %vm3742_vm3 = vcmp.ge.f32.partialorder %v13793_v24, 0.0 }
 0x423   :  { %13854 = vst [vmem:[#allocation14_spill] sm:$0xff] %v10392_v27  ;;  %13856 = vst [vmem:[#allocation13_spill] sm:$0xff] %v10395_v1  ;;  %v10398_v46 = vmul.f32 0.1, %v13857_v51  ;;  %v10406_v0 = vmul.f32 0.1, %v13859_v56 }
 0x424   :  { %v10409_v52 = vmul.f32 0.1, %v13861_v55  ;;  %v13863_v27 = vld [vmem:[#allocation41_spill] sm:$0xff]  ;;  %4496 = vst [vmem:[#allocation2 + $0x98] sm:$0xff] %v4240_v30  ;;  %v13865_v19 = vld [vmem:[#allocation44_spill] sm:$0xff]  ;;  %v13867_v26 = vld [vmem:[#allocation43_spill] sm:$0xff] }
 0x425   :  { %13858 = vst [vmem:[#allocation16_spill] sm:$0xff] %v10398_v46  ;;  %13860 = vst [vmem:[#allocation15_spill] sm:$0xff] %v10406_v0  ;;  %v10412_v62 = vmul.f32 0.1, %v13863_v27  ;;  %v4241_v46 = vsel %vm3729_vm6, %v13780_v18, %v10196_v45  ;;  %v10420_v49 = vmul.f32 0.1, %v13865_v19 }
 0x426   :  { %13862 = vst [vmem:[#allocation18_spill] sm:$0xff] %v10409_v52  ;;  %v10423_v1 = vmul.f32 0.1, %v13867_v26  ;;  %v13869_v0 = vld [vmem:[#allocation46_spill] sm:$0xff]  ;;  %4497 = vst [vmem:[#allocation2 + $0xa0] sm:$0xff] %v4241_v46  ;;  %v13871_v45 = vld [vmem:[#allocation45_spill] sm:$0xff] }
 0x427   :  { %13864 = vst [vmem:[#allocation17_spill] sm:$0xff] %v10412_v62  ;;  %13866 = vst [vmem:[#allocation20_spill] sm:$0xff] %v10420_v49  ;;  %v10426_v55 = vmul.f32 0.1, %v13869_v0  ;;  %v4242_v62 = vsel %vm3730_vm7, %v13781_v2, %v10203_v58  ;;  %v10434_v18 = vmul.f32 0.1, %v13871_v45 }
 0x428   :  { %13868 = vst [vmem:[#allocation22_spill] sm:$0xff] %v10423_v1  ;;  %v13873_v30 = vld [vmem:[#allocation48_spill] sm:$0xff]  ;;  %v13875_v49 = vld [vmem:[#allocation47_spill] sm:$0xff]  ;;  %4498 = vst [vmem:[#allocation2 + $0xa8] sm:$0xff] %v4242_v62  ;;  %vm3743_vm4 = vcmp.ge.f32.partialorder %v13795_v9, 0.0  ;;  %vm3744_vm5 = vcmp.ge.f32.partialorder %v13797_v23, 0.0 }
 0x429   :  { %13870 = vst [vmem:[#allocation21_spill] sm:$0xff] %v10426_v55  ;;  %13872 = vst [vmem:[#allocation23_spill] sm:$0xff] %v10434_v18  ;;  %v10437_v52 = vmul.f32 0.1, %v13873_v30  ;;  %v10440_v26 = vmul.f32 0.1, %v13875_v49  ;;  %v4243_v55 = vsel %vm3731_vm8, %v13782_v14, %v10206_v61 }
 0x42a   :  { %v13877_v2 = vld [vmem:[#allocation50_spill] sm:$0xff]  ;;  %v13879_v46 = vld [vmem:[#allocation49_spill] sm:$0xff]  ;;  %v13881_v18 = vld [vmem:[#allocation52_spill] sm:$0xff]  ;;  %4499 = vst [vmem:[#allocation2 + $0xb0] sm:$0xff] %v4243_v55  ;;  %vm3745_vm6 = vcmp.ge.f32.partialorder %v13799_v44, 0.0  ;;  %vm3746_vm7 = vcmp.ge.f32.partialorder %v13801_v50, 0.0 }
 0x42b   :  { %13874 = vst [vmem:[#allocation26_spill] sm:$0xff] %v10437_v52  ;;  %13876 = vst [vmem:[#allocation28_spill] sm:$0xff] %v10440_v26  ;;  %v10448_v58 = vmul.f32 0.1, %v13877_v2  ;;  %v10451_v1 = vmul.f32 0.1, %v13879_v46  ;;  %v4244_v26 = vsel %vm3732_vm9, %v13783_v6, %v10209_v39 }
 0x42c   :  { %v10454_v30 = vmul.f32 0.1, %v13881_v18  ;;  %v13883_v61 = vld [vmem:[#allocation51_spill] sm:$0xff]  ;;  %v13885_v62 = vld [vmem:[#allocation54_spill] sm:$0xff]  ;;  %4500 = vst [vmem:[#allocation2 + $0xb8] sm:$0xff] %v4244_v26  ;;  %v13889_v39 = vld [vmem:[#allocation56_spill] sm:$0xff] }
 0x42d   :  { %13878 = vst [vmem:[#allocation27_spill] sm:$0xff] %v10448_v58  ;;  %13880 = vst [vmem:[#allocation29_spill] sm:$0xff] %v10451_v1  ;;  %v10462_v14 = vmul.f32 0.1, %v13883_v61  ;;  %v10465_v52 = vmul.f32 0.1, %v13885_v62 }
 0x42e   :  { %13882 = vst [vmem:[#allocation32_spill] sm:$0xff] %v10454_v30  ;;  %v13887_v58 = vld [vmem:[#allocation53_spill] sm:$0xff]  ;;  %v4245_v30 = vsel %vm3733_vm10, %v13784_v47, %v10216_v5  ;;  %v10476_v6 = vmul.f32 0.1, %v13889_v39  ;;  %v13891_v55 = vld [vmem:[#allocation55_spill] sm:$0xff]  ;;  %v13897_v26 = vld [vmem:[#allocation60_spill] sm:$0xff] }
 0x42f   :  { %13884 = vst [vmem:[#allocation34_spill] sm:$0xff] %v10462_v14  ;;  %13886 = vst [vmem:[#allocation33_spill] sm:$0xff] %v10465_v52  ;;  %v10468_v46 = vmul.f32 0.1, %v13887_v58  ;;  %v10479_v1 = vmul.f32 0.1, %v13891_v55 }
 0x430   :  { %13890 = vst [vmem:[#allocation38_spill] sm:$0xff] %v10476_v6  ;;  %v13893_v14 = vld [vmem:[#allocation58_spill] sm:$0xff]  ;;  %4501 = vst [vmem:[#allocation2 + $0xc0] sm:$0xff] %v4245_v30  ;;  %v13895_v47 = vld [vmem:[#allocation57_spill] sm:$0xff]  ;;  %v10493_v52 = vmul.f32 0.1, %v13897_v26 }
 0x431   :  { %13888 = vst [vmem:[#allocation35_spill] sm:$0xff] %v10468_v46  ;;  %13892 = vst [vmem:[#allocation40_spill] sm:$0xff] %v10479_v1  ;;  %v10482_v62 = vmul.f32 0.1, %v13893_v14  ;;  %v4246_v46 = vsel %vm3734_vm11, %v13785_v15, %v10219_v31  ;;  %v10490_v5 = vmul.f32 0.1, %v13895_v47 }
 0x432   :  { %13898 = vst [vmem:[#allocation44_spill] sm:$0xff] %v10493_v52  ;;  %v13899_v6 = vld [vmem:[#allocation59_spill] sm:$0xff]  ;;  %4502 = vst [vmem:[#allocation2 + $0xc8] sm:$0xff] %v4246_v46  ;;  %vm3747_vm8 = vcmp.ge.f32.partialorder %v13803_v25, 0.0  ;;  %v13901_v31 = vld [vmem:[#allocation62_spill] sm:$0xff]  ;;  %vm3748_vm9 = vcmp.ge.f32.partialorder %v13805_v63, 0.0 }
 0x433   :  { %13894 = vst [vmem:[#allocation39_spill] sm:$0xff] %v10482_v62  ;;  %13896 = vst [vmem:[#allocation41_spill] sm:$0xff] %v10490_v5  ;;  %v10496_v55 = vmul.f32 0.1, %v13899_v6  ;;  %v4247_v62 = vsel %vm3735_vm12, %v13786_v59, %v10222_v8  ;;  %v10504_v15 = vmul.f32 0.1, %v13901_v31 }
 0x434   :  { %v13903_v30 = vld [vmem:[#allocation61_spill] sm:$0xff]  ;;  %v13905_v5 = vld [vmem:[#allocation64_spill] sm:$0xff]  ;;  %4503 = vst [vmem:[#allocation2 + $0xd0] sm:$0xff] %v4247_v62  ;;  %v13907_v8 = vld [vmem:[#allocation63_spill] sm:$0xff]  ;;  %vm3749_vm10 = vcmp.ge.f32.partialorder %v13807_v29, 0.0  ;;  %vm3750_vm11 = vcmp.ge.f32.partialorder %v13809_v54, 0.0 }
 0x435   :  { %13900 = vst [vmem:[#allocation46_spill] sm:$0xff] %v10496_v55  ;;  %13902 = vst [vmem:[#allocation45_spill] sm:$0xff] %v10504_v15  ;;  %v10507_v1 = vmul.f32 0.1, %v13903_v30  ;;  %v10510_v26 = vmul.f32 0.1, %v13905_v5  ;;  %v4248_v55 = vsel %vm3736_vm13, %v13787_v33, %v10229_v48 }
 0x436   :  { %v10518_v59 = vmul.f32 0.1, %v13907_v8  ;;  %v13909_v46 = vld [vmem:[#allocation66_spill] sm:$0xff]  ;;  %v13911_v15 = vld [vmem:[#allocation65_spill] sm:$0xff]  ;;  %4504 = vst [vmem:[#allocation2 + $0xd8] sm:$0xff] %v4248_v55  ;;  %v13913_v33 = vld [vmem:[#allocation68_spill] sm:$0xff] }
 0x437   :  { %13904 = vst [vmem:[#allocation47_spill] sm:$0xff] %v10507_v1  ;;  %13906 = vst [vmem:[#allocation50_spill] sm:$0xff] %v10510_v26  ;;  %v10521_v52 = vmul.f32 0.1, %v13909_v46  ;;  %v10524_v30 = vmul.f32 0.1, %v13911_v15  ;;  %v4249_v26 = vsel %vm3737_vm14, %v13788_v42, %v10232_v10 }
 0x438   :  { %13908 = vst [vmem:[#allocation52_spill] sm:$0xff] %v10518_v59  ;;  %v10532_v48 = vmul.f32 0.1, %v13913_v33  ;;  %v13915_v62 = vld [vmem:[#allocation67_spill] sm:$0xff]  ;;  %v13917_v59 = vld [vmem:[#allocation72_spill] sm:$0xff]  ;;  %4505 = vst [vmem:[#allocation2 + $0xe0] sm:$0xff] %v4249_v26 }
 0x439   :  { %13910 = vst [vmem:[#allocation51_spill] sm:$0xff] %v10521_v52  ;;  %13912 = vst [vmem:[#allocation53_spill] sm:$0xff] %v10524_v30  ;;  %v10535_v1 = vmul.f32 0.1, %v13915_v62  ;;  %v10538_v46 = vmul.f32 0.1, %v13917_v59  ;;  %v4250_v30 = vsel %vm3738_vm15, %v13789_v40, %v10235_v60 }
 0x43a   :  { %13914 = vst [vmem:[#allocation56_spill] sm:$0xff] %v10532_v48  ;;  %v13919_v10 = vld [vmem:[#allocation70_spill] sm:$0xff]  ;;  %v13921_v55 = vld [vmem:[#allocation76_spill] sm:$0xff]  ;;  %4506 = vst [vmem:[#allocation2 + $0xe8] sm:$0xff] %v4250_v30  ;;  %vm3751_vm12 = vcmp.ge.f32.partialorder %v13811_v36, 0.0  ;;  %vm3752_vm13 = vcmp.ge.f32.partialorder %v13813_v16, 0.0 }
 0x43b   :  { %13916 = vst [vmem:[#allocation58_spill] sm:$0xff] %v10535_v1  ;;  %13918 = vst [vmem:[#allocation57_spill] sm:$0xff] %v10538_v46  ;;  %v10546_v42 = vmul.f32 0.1, %v13919_v10  ;;  %v10549_v52 = vmul.f32 0.1, %v13921_v55  ;;  %v4251_v46 = vsel %vm3739_vm0, %v13790_v53, %v10242_v4 }
 0x43c   :  { %v13923_v48 = vld [vmem:[#allocation74_spill] sm:$0xff]  ;;  %v13925_v60 = vld [vmem:[#allocation80_spill] sm:$0xff]  ;;  %4507 = vst [vmem:[#allocation2 + $0xf0] sm:$0xff] %v4251_v46  ;;  %vm3753_vm14 = vcmp.ge.f32.partialorder %v13815_v7, 0.0  ;;  %vm3754_vm15 = vcmp.ge.f32.partialorder %v13817_v11, 0.0 }
 0x43d   :  { %13920 = vst [vmem:[#allocation59_spill] sm:$0xff] %v10546_v42  ;;  %13922 = vst [vmem:[#allocation62_spill] sm:$0xff] %v10549_v52  ;;  %v10552_v62 = vmul.f32 0.1, %v13923_v48  ;;  %v10560_v40 = vmul.f32 0.1, %v13925_v60 }
 0x43e   :  { %v13927_v26 = vld [vmem:[#allocation78_spill] sm:$0xff]  ;;  %v13929_v42 = vld [vmem:[#allocation84_spill] sm:$0xff] }
 0x43f   :  { %13924 = vst [vmem:[#allocation64_spill] sm:$0xff] %v10552_v62  ;;  %13926 = vst [vmem:[#allocation63_spill] sm:$0xff] %v10560_v40  ;;  %v10563_v1 = vmul.f32 0.1, %v13927_v26  ;;  %v10566_v55 = vmul.f32 0.1, %v13929_v42  ;;  %v4252_v62 = vsel %vm3740_vm1, %v13791_v32, %v10245_v35 }
 0x440   :  { %v13931_v53 = vld [vmem:[#allocation82_spill] sm:$0xff]  ;;  %v13933_v30 = vld [vmem:[#allocation88_spill] sm:$0xff]  ;;  %4508 = vst [vmem:[#allocation2 + $0xf8] sm:$0xff] %v4252_v62  ;;  %vm3756_vm1 = vcmp.ge.f32.partialorder %v13821_v34, 0.0 }
 0x441   :  { %13928 = vst [vmem:[#allocation65_spill] sm:$0xff] %v10563_v1  ;;  %13930 = vst [vmem:[#allocation68_spill] sm:$0xff] %v10566_v55  ;;  %v10574_v4 = vmul.f32 0.1, %v13931_v53  ;;  %v10577_v52 = vmul.f32 0.1, %v13933_v30  ;;  %v4253_v55 = vsel %vm3741_vm2, %v13792_v37, %v10248_v20 }
 0x442   :  { %v13935_v40 = vld [vmem:[#allocation86_spill] sm:$0xff]  ;;  %v13937_v35 = vld [vmem:[#allocation92_spill] sm:$0xff]  ;;  %4509 = vst [vmem:[#allocation2 + $0x100] sm:$0xff] %v4253_v55  ;;  %vm3757_vm2 = vcmp.ge.f32.partialorder %v13823_v43, 0.0 }
 0x443   :  { %13932 = vst [vmem:[#allocation72_spill] sm:$0xff] %v10574_v4  ;;  %13934 = vst [vmem:[#allocation70_spill] sm:$0xff] %v10577_v52  ;;  %v10580_v26 = vmul.f32 0.1, %v13935_v40  ;;  %v10588_v32 = vmul.f32 0.1, %v13937_v35 }
 0x444   :  { %v13939_v46 = vld [vmem:[#allocation90_spill] sm:$0xff]  ;;  %v13941_v4 = vld [vmem:[#allocation96_spill] sm:$0xff] }
 0x445   :  { %13936 = vst [vmem:[#allocation74_spill] sm:$0xff] %v10580_v26  ;;  %13938 = vst [vmem:[#allocation80_spill] sm:$0xff] %v10588_v32  ;;  %v10591_v1 = vmul.f32 0.1, %v13939_v46  ;;  %v10594_v30 = vmul.f32 0.1, %v13941_v4 }
 0x446   :  { %v13943_v52 = vld [vmem:[#allocation204_spill] sm:$0xff]  ;;  %v13944_v20 = vld [vmem:[#allocation94_spill] sm:$0xff]  ;;  %v13951_v4 = vld [vmem:[#allocation19_spill] sm:$0xff] }
 0x447   :  { %13940 = vst [vmem:[#allocation84_spill] sm:$0xff] %v10591_v1  ;;  %13942 = vst [vmem:[#allocation82_spill] sm:$0xff] %v10594_v30  ;;  %v4254_v26 = vsel %vm3742_vm3, %v13793_v24, %v13943_v52  ;;  %v10602_v37 = vmul.f32 0.1, %v13944_v20  ;;  %v13946_v62 = vld [vmem:[#allocation100_spill] sm:$0xff]  ;;  %v13948_v32 = vld [vmem:[#allocation98_spill] sm:$0xff] }
 0x448   :  { %v10605_v35 = vmul.f32 0.1, %v13946_v62  ;;  %v10608_v46 = vmul.f32 0.1, %v13948_v32  ;;  %v13950_v1 = vld [vmem:[#allocation206_spill] sm:$0xff]  ;;  %4510 = vst [vmem:[#allocation2 + $0x108] sm:$0xff] %v4254_v26 }
 0x449   :  { %13945 = vst [vmem:[#allocation86_spill] sm:$0xff] %v10602_v37  ;;  %v4255_v30 = vsel %vm3743_vm4, %v13795_v9, %v13950_v1  ;;  %vm3755_vm0 = vcmp.ge.f32.partialorder %v13951_v4, 0.0  ;;  %v13952_v52 = vld [vmem:[#allocation104_spill] sm:$0xff]  ;;  %v13954_v55 = vld [vmem:[#allocation102_spill] sm:$0xff]  ;;  %vm3759_vm4 = vcmp.ge.f32.partialorder %v13827_v22, 0.0 }
 0x44a   :  { %13947 = vst [vmem:[#allocation204_spill] sm:$0xff] %v10605_v35  ;;  %13949 = vst [vmem:[#allocation98_spill] sm:$0xff] %v10608_v46  ;;  %v10616_v24 = vmul.f32 0.1, %v13952_v52  ;;  %v10619_v20 = vmul.f32 0.1, %v13954_v55 }
 0x44b   :  { %v13956_v37 = vld [vmem:[#allocation108_spill] sm:$0xff]  ;;  %v13958_v35 = vld [vmem:[#allocation205_spill] sm:$0xff]  ;;  %4511 = vst [vmem:[#allocation2 + $0x110] sm:$0xff] %v4255_v30  ;;  %v13959_v1 = vld [vmem:[#allocation106_spill] sm:$0xff] }
 0x44c   :  { %13953 = vst [vmem:[#allocation206_spill] sm:$0xff] %v10616_v24  ;;  %13955 = vst [vmem:[#allocation19_spill] sm:$0xff] %v10619_v20  ;;  %v10622_v62 = vmul.f32 0.1, %v13956_v37  ;;  %v4256_v46 = vsel %vm3744_vm5, %v13797_v23, %v13958_v35  ;;  %v10630_v9 = vmul.f32 0.1, %v13959_v1 }
 0x44d   :  { %v13961_v26 = vld [vmem:[#allocation112_spill] sm:$0xff]  ;;  %v13963_v24 = vld [vmem:[#allocation110_spill] sm:$0xff]  ;;  %4512 = vst [vmem:[#allocation2 + $0x118] sm:$0xff] %v4256_v46  ;;  %vm3760_vm5 = vcmp.ge.f32.partialorder %v13829_v3, 0.0 }
 0x44e   :  { %13957 = vst [vmem:[#allocation108_spill] sm:$0xff] %v10622_v62  ;;  %13960 = vst [vmem:[#allocation205_spill] sm:$0xff] %v10630_v9  ;;  %v10633_v52 = vmul.f32 0.1, %v13961_v26  ;;  %v10636_v55 = vmul.f32 0.1, %v13963_v24 }
 0x44f   :  { %v13965_v20 = vld [vmem:[#allocation208_spill] sm:$0xff]  ;;  %v13968_v35 = vld [vmem:[#allocation114_spill] sm:$0xff] }
 0x450   :  { %13962 = vst [vmem:[#allocation251_spill] sm:$0xff] %v10633_v52  ;;  %13964 = vst [vmem:[#allocation252_spill] sm:$0xff] %v10636_v55  ;;  %v4257_v62 = vsel %vm3745_vm6, %v13799_v44, %v13965_v20  ;;  %v13966_v23 = vld [vmem:[#allocation116_spill] sm:$0xff]  ;;  %v10647_v1 = vmul.f32 0.1, %v13968_v35  ;;  %v13972_v52 = vld [vmem:[#allocation207_spill] sm:$0xff] }
 0x451   :  { %v10644_v30 = vmul.f32 0.1, %v13966_v23  ;;  %v13970_v9 = vld [vmem:[#allocation120_spill] sm:$0xff]  ;;  %v4258_v55 = vsel %vm3746_vm7, %v13801_v50, %v13972_v52  ;;  %4513 = vst [vmem:[#allocation2 + $0x120] sm:$0xff] %v4257_v62  ;;  %v13974_v44 = vld [vmem:[#allocation118_spill] sm:$0xff]  ;;  %vm3762_vm7 = vcmp.ge.f32.partialorder %v13833_v21, 0.0 }
 0x452   :  { %13969 = vst [vmem:[#allocation253_spill] sm:$0xff] %v10647_v1  ;;  %v10650_v26 = vmul.f32 0.1, %v13970_v9  ;;  %v13973_v24 = vld [vmem:[#allocation24_spill] sm:$0xff]  ;;  %v10658_v46 = vmul.f32 0.1, %v13974_v44 }
 0x453   :  { %13967 = vst [vmem:[#allocation208_spill] sm:$0xff] %v10644_v30  ;;  %vm3758_vm3 = vcmp.ge.f32.partialorder %v13973_v24, 0.0  ;;  %v13976_v20 = vld [vmem:[#allocation124_spill] sm:$0xff]  ;;  %v13978_v30 = vld [vmem:[#allocation122_spill] sm:$0xff]  ;;  %4514 = vst [vmem:[#allocation2 + $0x128] sm:$0xff] %v4258_v55 }
 0x454   :  { %13971 = vst [vmem:[#allocation120_spill] sm:$0xff] %v10650_v26  ;;  %13975 = vst [vmem:[#allocation207_spill] sm:$0xff] %v10658_v46  ;;  %v10661_v23 = vmul.f32 0.1, %v13976_v20  ;;  %v10664_v35 = vmul.f32 0.1, %v13978_v30 }
 0x455   :  { %v13980_v1 = vld [vmem:[#allocation210_spill] sm:$0xff]  ;;  %v13981_v50 = vld [vmem:[#allocation128_spill] sm:$0xff] }
 0x456   :  { %13977 = vst [vmem:[#allocation24_spill] sm:$0xff] %v10661_v23  ;;  %13979 = vst [vmem:[#allocation254_spill] sm:$0xff] %v10664_v35  ;;  %v4259_v26 = vsel %vm3747_vm8, %v13803_v25, %v13980_v1  ;;  %v10672_v62 = vmul.f32 0.1, %v13981_v50  ;;  %v13983_v52 = vld [vmem:[#allocation126_spill] sm:$0xff]  ;;  %v13985_v46 = vld [vmem:[#allocation132_spill] sm:$0xff] }
 0x457   :  { %v10675_v44 = vmul.f32 0.1, %v13983_v52  ;;  %v10678_v20 = vmul.f32 0.1, %v13985_v46  ;;  %v13987_v23 = vld [vmem:[#allocation209_spill] sm:$0xff]  ;;  %4515 = vst [vmem:[#allocation2 + $0x130] sm:$0xff] %v4259_v26 }
 0x458   :  { %13982 = vst [vmem:[#allocation210_spill] sm:$0xff] %v10672_v62  ;;  %v4260_v35 = vsel %vm3748_vm9, %v13805_v63, %v13987_v23  ;;  %v13988_v25 = vld [vmem:[#allocation130_spill] sm:$0xff]  ;;  %v13990_v1 = vld [vmem:[#allocation136_spill] sm:$0xff]  ;;  %v13995_v46 = vld [vmem:[#allocation25_spill] sm:$0xff]  ;;  %vm3763_vm8 = vcmp.ge.f32.partialorder %v13835_v38, 0.0 }
 0x459   :  { %13984 = vst [vmem:[#allocation255_spill] sm:$0xff] %v10675_v44  ;;  %13986 = vst [vmem:[#allocation256_spill] sm:$0xff] %v10678_v20  ;;  %v10686_v55 = vmul.f32 0.1, %v13988_v25  ;;  %v10689_v50 = vmul.f32 0.1, %v13990_v1 }
 0x45a   :  { %v13992_v62 = vld [vmem:[#allocation134_spill] sm:$0xff]  ;;  %v13994_v44 = vld [vmem:[#allocation212_spill] sm:$0xff]  ;;  %4516 = vst [vmem:[#allocation2 + $0x138] sm:$0xff] %v4260_v35  ;;  %vm3761_vm6 = vcmp.ge.f32.partialorder %v13995_v46, 0.0 }
 0x45b   :  { %13989 = vst [vmem:[#allocation209_spill] sm:$0xff] %v10686_v55  ;;  %13991 = vst [vmem:[#allocation257_spill] sm:$0xff] %v10689_v50  ;;  %v10692_v52 = vmul.f32 0.1, %v13992_v62  ;;  %v4261_v20 = vsel %vm3749_vm10, %v13807_v29, %v13994_v44  ;;  %v13996_v63 = vld [vmem:[#allocation140_spill] sm:$0xff]  ;;  %v13998_v23 = vld [vmem:[#allocation138_spill] sm:$0xff] }
 0x45c   :  { %v10700_v26 = vmul.f32 0.1, %v13996_v63  ;;  %v10703_v25 = vmul.f32 0.1, %v13998_v23  ;;  %v14000_v55 = vld [vmem:[#allocation144_spill] sm:$0xff]  ;;  %v14002_v50 = vld [vmem:[#allocation211_spill] sm:$0xff] }
 0x45d   :  { %13993 = vst [vmem:[#allocation134_spill] sm:$0xff] %v10692_v52  ;;  %v10706_v1 = vmul.f32 0.1, %v14000_v55  ;;  %v4262_v52 = vsel %vm3750_vm11, %v13809_v54, %v14002_v50  ;;  %4517 = vst [vmem:[#allocation2 + $0x140] sm:$0xff] %v4261_v20  ;;  %v14003_v29 = vld [vmem:[#allocation142_spill] sm:$0xff]  ;;  %v14005_v44 = vld [vmem:[#allocation148_spill] sm:$0xff] }
 0x45e   :  { %13997 = vst [vmem:[#allocation212_spill] sm:$0xff] %v10700_v26  ;;  %13999 = vst [vmem:[#allocation25_spill] sm:$0xff] %v10703_v25  ;;  %v10714_v35 = vmul.f32 0.1, %v14003_v29  ;;  %v10717_v63 = vmul.f32 0.1, %v14005_v44 }
 0x45f   :  { %14001 = vst [vmem:[#allocation144_spill] sm:$0xff] %v10706_v1  ;;  %v14007_v26 = vld [vmem:[#allocation146_spill] sm:$0xff]  ;;  %4518 = vst [vmem:[#allocation2 + $0x148] sm:$0xff] %v4262_v52  ;;  %v14010_v54 = vld [vmem:[#allocation152_spill] sm:$0xff]  ;;  %vm3765_vm10 = vcmp.ge.f32.partialorder %v13839_v12, 0.0  ;;  %vm3766_vm11 = vcmp.ge.f32.partialorder %v13841_v28, 0.0 }
 0x460   :  { %14004 = vst [vmem:[#allocation211_spill] sm:$0xff] %v10714_v35  ;;  %14006 = vst [vmem:[#allocation258_spill] sm:$0xff] %v10717_v63  ;;  %v10720_v23 = vmul.f32 0.1, %v14007_v26  ;;  %v14009_v25 = vld [vmem:[#allocation214_spill] sm:$0xff]  ;;  %v14014_v35 = vld [vmem:[#allocation156_spill] sm:$0xff] }
 0x461   :  { %v4263_v1 = vsel %vm3751_vm12, %v13811_v36, %v14009_v25  ;;  %v10728_v20 = vmul.f32 0.1, %v14010_v54  ;;  %v14012_v50 = vld [vmem:[#allocation150_spill] sm:$0xff]  ;;  %v10734_v44 = vmul.f32 0.1, %v14014_v35  ;;  %v14016_v63 = vld [vmem:[#allocation213_spill] sm:$0xff] }
 0x462   :  { %14008 = vst [vmem:[#allocation259_spill] sm:$0xff] %v10720_v23  ;;  %v10731_v29 = vmul.f32 0.1, %v14012_v50  ;;  %v4264_v23 = vsel %vm3752_vm13, %v13813_v16, %v14016_v63  ;;  %4519 = vst [vmem:[#allocation2 + $0x150] sm:$0xff] %v4263_v1  ;;  %v14017_v26 = vld [vmem:[#allocation30_spill] sm:$0xff]  ;;  %v14020_v25 = vld [vmem:[#allocation160_spill] sm:$0xff] }
 0x463   :  { %14011 = vst [vmem:[#allocation214_spill] sm:$0xff] %v10728_v20  ;;  %14015 = vst [vmem:[#allocation156_spill] sm:$0xff] %v10734_v44  ;;  %vm3764_vm9 = vcmp.ge.f32.partialorder %v14017_v26, 0.0  ;;  %v14018_v36 = vld [vmem:[#allocation154_spill] sm:$0xff]  ;;  %v10745_v54 = vmul.f32 0.1, %v14020_v25 }
 0x464   :  { %14013 = vst [vmem:[#allocation260_spill] sm:$0xff] %v10731_v29  ;;  %v10742_v52 = vmul.f32 0.1, %v14018_v36  ;;  %v14022_v20 = vld [vmem:[#allocation158_spill] sm:$0xff]  ;;  %v14024_v29 = vld [vmem:[#allocation216_spill] sm:$0xff]  ;;  %4520 = vst [vmem:[#allocation2 + $0x158] sm:$0xff] %v4264_v23 }
 0x465   :  { %14021 = vst [vmem:[#allocation30_spill] sm:$0xff] %v10745_v54  ;;  %v10748_v50 = vmul.f32 0.1, %v14022_v20  ;;  %v4265_v44 = vsel %vm3753_vm14, %v13815_v7, %v14024_v29  ;;  %v14025_v16 = vld [vmem:[#allocation164_spill] sm:$0xff]  ;;  %v14027_v63 = vld [vmem:[#allocation162_spill] sm:$0xff]  ;;  %v14031_v54 = vld [vmem:[#allocation215_spill] sm:$0xff] }
 0x466   :  { %14019 = vst [vmem:[#allocation213_spill] sm:$0xff] %v10742_v52  ;;  %v10756_v1 = vmul.f32 0.1, %v14025_v16  ;;  %v10759_v36 = vmul.f32 0.1, %v14027_v63  ;;  %v14029_v52 = vld [vmem:[#allocation168_spill] sm:$0xff] }
 0x467   :  { %14023 = vst [vmem:[#allocation158_spill] sm:$0xff] %v10748_v50  ;;  %v10762_v25 = vmul.f32 0.1, %v14029_v52  ;;  %v4266_v50 = vsel %vm3754_vm15, %v13817_v11, %v14031_v54  ;;  %4521 = vst [vmem:[#allocation2 + $0x160] sm:$0xff] %v4265_v44  ;;  %v14032_v7 = vld [vmem:[#allocation166_spill] sm:$0xff]  ;;  %v14034_v29 = vld [vmem:[#allocation172_spill] sm:$0xff] }
 0x468   :  { %14026 = vst [vmem:[#allocation216_spill] sm:$0xff] %v10756_v1  ;;  %14028 = vst [vmem:[#allocation261_spill] sm:$0xff] %v10759_v36  ;;  %v10770_v23 = vmul.f32 0.1, %v14032_v7  ;;  %v10773_v16 = vmul.f32 0.1, %v14034_v29 }
 0x469   :  { %14030 = vst [vmem:[#allocation262_spill] sm:$0xff] %v10762_v25  ;;  %v14036_v1 = vld [vmem:[#allocation170_spill] sm:$0xff]  ;;  %4522 = vst [vmem:[#allocation2 + $0x168] sm:$0xff] %v4266_v50  ;;  %v14039_v52 = vld [vmem:[#allocation31_spill] sm:$0xff]  ;;  %vm3768_vm13 = vcmp.ge.f32.partialorder %v13845_v57, 0.0  ;;  %vm3769_vm14 = vcmp.ge.f32.partialorder %v13847_v13, 0.0 }
 0x46a   :  { %14033 = vst [vmem:[#allocation215_spill] sm:$0xff] %v10770_v23  ;;  %14035 = vst [vmem:[#allocation263_spill] sm:$0xff] %v10773_v16  ;;  %v10776_v63 = vmul.f32 0.1, %v14036_v1  ;;  %v14038_v36 = vld [vmem:[#allocation218_spill] sm:$0xff]  ;;  %vm3767_vm12 = vcmp.ge.f32.partialorder %v14039_v52, 0.0 }
 0x46b   :  { %v4267_v25 = vsel %vm3755_vm0, %v13951_v4, %v14038_v36  ;;  %v14040_v11 = vld [vmem:[#allocation176_spill] sm:$0xff]  ;;  %v14042_v54 = vld [vmem:[#allocation174_spill] sm:$0xff]  ;;  %v14046_v16 = vld [vmem:[#allocation217_spill] sm:$0xff]  ;;  %vm3771_vm0 = vcmp.ge.f32.partialorder %v13851_v17, 0.0 }
 0x46c   :  { %14037 = vst [vmem:[#allocation170_spill] sm:$0xff] %v10776_v63  ;;  %v10784_v44 = vmul.f32 0.1, %v14040_v11  ;;  %v10787_v7 = vmul.f32 0.1, %v14042_v54  ;;  %v14044_v23 = vld [vmem:[#allocation180_spill] sm:$0xff]  ;;  %v4268_v63 = vsel %vm3756_vm1, %v13821_v34, %v14046_v16 }
 0x46d   :  { %v10790_v29 = vmul.f32 0.1, %v14044_v23  ;;  %4523 = vst [vmem:[#allocation2 + $0x170] sm:$0xff] %v4267_v25  ;;  %v14047_v4 = vld [vmem:[#allocation178_spill] sm:$0xff]  ;;  %v14049_v36 = vld [vmem:[#allocation184_spill] sm:$0xff]  ;;  %4524 = vst [vmem:[#allocation2 + $0x178] sm:$0xff] %v4268_v63 }
 0x46e   :  { %14041 = vst [vmem:[#allocation218_spill] sm:$0xff] %v10784_v44  ;;  %14043 = vst [vmem:[#allocation31_spill] sm:$0xff] %v10787_v7  ;;  %v10798_v50 = vmul.f32 0.1, %v14047_v4  ;;  %v10801_v11 = vmul.f32 0.1, %v14049_v36 }
 0x46f   :  { %14045 = vst [vmem:[#allocation180_spill] sm:$0xff] %v10790_v29  ;;  %v14051_v44 = vld [vmem:[#allocation182_spill] sm:$0xff]  ;;  %v14053_v7 = vld [vmem:[#allocation220_spill] sm:$0xff]  ;;  %vm3772_vm1 = vcmp.ge.f32.partialorder %v13853_v41, 0.0 }
 0x470   :  { %14048 = vst [vmem:[#allocation217_spill] sm:$0xff] %v10798_v50  ;;  %14050 = vst [vmem:[#allocation264_spill] sm:$0xff] %v10801_v11  ;;  %v10804_v54 = vmul.f32 0.1, %v14051_v44  ;;  %v4269_v29 = vsel %vm3757_vm2, %v13823_v43, %v14053_v7  ;;  %v14054_v34 = vld [vmem:[#allocation188_spill] sm:$0xff]  ;;  %v14056_v16 = vld [vmem:[#allocation186_spill] sm:$0xff] }
 0x471   :  { %v10812_v25 = vmul.f32 0.1, %v14054_v34  ;;  %v10815_v4 = vmul.f32 0.1, %v14056_v16  ;;  %v14058_v50 = vld [vmem:[#allocation192_spill] sm:$0xff]  ;;  %v14060_v11 = vld [vmem:[#allocation219_spill] sm:$0xff] }
 0x472   :  { %14052 = vst [vmem:[#allocation265_spill] sm:$0xff] %v10804_v54  ;;  %v10818_v36 = vmul.f32 0.1, %v14058_v50  ;;  %v4270_v54 = vsel %vm3758_vm3, %v13973_v24, %v14060_v11  ;;  %4525 = vst [vmem:[#allocation2 + $0x180] sm:$0xff] %v4269_v29  ;;  %v14061_v44 = vld [vmem:[#allocation36_spill] sm:$0xff]  ;;  %v14062_v43 = vld [vmem:[#allocation190_spill] sm:$0xff] }
 0x473   :  { %14055 = vst [vmem:[#allocation220_spill] sm:$0xff] %v10812_v25  ;;  %14057 = vst [vmem:[#allocation266_spill] sm:$0xff] %v10815_v4  ;;  %vm3770_vm15 = vcmp.ge.f32.partialorder %v14061_v44, 0.0  ;;  %v10826_v63 = vmul.f32 0.1, %v14062_v43  ;;  %v14064_v7 = vld [vmem:[#allocation196_spill] sm:$0xff] }
 0x474   :  { %14059 = vst [vmem:[#allocation192_spill] sm:$0xff] %v10818_v36  ;;  %v10829_v34 = vmul.f32 0.1, %v14064_v7  ;;  %v14066_v25 = vld [vmem:[#allocation194_spill] sm:$0xff]  ;;  %4526 = vst [vmem:[#allocation2 + $0x188] sm:$0xff] %v4270_v54  ;;  %v14069_v24 = vld [vmem:[#allocation71_spill] sm:$0xff] }
 0x475   :  { %14063 = vst [vmem:[#allocation219_spill] sm:$0xff] %v10826_v63  ;;  %v10832_v16 = vmul.f32 0.1, %v14066_v25  ;;  %v14068_v4 = vld [vmem:[#allocation222_spill] sm:$0xff]  ;;  %v10840_v29 = vmul.f32 0.1, %v14069_v24 }
 0x476   :  { %14065 = vst [vmem:[#allocation36_spill] sm:$0xff] %v10829_v34  ;;  %v4271_v36 = vsel %vm3759_vm4, %v13827_v22, %v14068_v4  ;;  %v14071_v11 = vld [vmem:[#allocation69_spill] sm:$0xff]  ;;  %v14073_v63 = vld [vmem:[#allocation75_spill] sm:$0xff]  ;;  %vm3774_vm3 = vcmp.ge.f32.partialorder %v13857_v51, 0.0  ;;  %vm3775_vm4 = vcmp.ge.f32.partialorder %v13859_v56, 0.0  ;;  %v14324_v30 = vld [vmem:[#allocation40_spill] sm:$0xff] }
 0x477   :  { %14067 = vst [vmem:[#allocation194_spill] sm:$0xff] %v10832_v16  ;;  %14070 = vst [vmem:[#allocation222_spill] sm:$0xff] %v10840_v29  ;;  %v10843_v43 = vmul.f32 0.1, %v14071_v11  ;;  %v10846_v7 = vmul.f32 0.1, %v14073_v63 }
 0x478   :  { %v14075_v34 = vld [vmem:[#allocation221_spill] sm:$0xff]  ;;  %4527 = vst [vmem:[#allocation2 + $0x190] sm:$0xff] %v4271_v36  ;;  %v14078_v4 = vld [vmem:[#allocation79_spill] sm:$0xff] }
 0x479   :  { %14072 = vst [vmem:[#allocation267_spill] sm:$0xff] %v10843_v43  ;;  %14074 = vst [vmem:[#allocation268_spill] sm:$0xff] %v10846_v7  ;;  %v4272_v16 = vsel %vm3760_vm5, %v13829_v3, %v14075_v34  ;;  %v14076_v22 = vld [vmem:[#allocation73_spill] sm:$0xff]  ;;  %v10857_v24 = vmul.f32 0.1, %v14078_v4  ;;  %v14084_v3 = vld [vmem:[#allocation83_spill] sm:$0xff] }
 0x47a   :  { %v10854_v54 = vmul.f32 0.1, %v14076_v22  ;;  %v14080_v29 = vld [vmem:[#allocation77_spill] sm:$0xff]  ;;  %4528 = vst [vmem:[#allocation2 + $0x198] sm:$0xff] %v4272_v16  ;;  %v10868_v36 = vmul.f32 0.1, %v14084_v3 }
 0x47b   :  { %14079 = vst [vmem:[#allocation269_spill] sm:$0xff] %v10857_v24  ;;  %v10860_v11 = vmul.f32 0.1, %v14080_v29  ;;  %v14082_v43 = vld [vmem:[#allocation193_spill] sm:$0xff] }
 0x47c   :  { %14077 = vst [vmem:[#allocation221_spill] sm:$0xff] %v10854_v54  ;;  %v4273_v7 = vsel %vm3761_vm6, %v13995_v46, %v14082_v43  ;;  %v14083_v63 = vld [vmem:[#allocation37_spill] sm:$0xff]  ;;  %14085 = vst [vmem:[#allocation193_spill] sm:$0xff] %v10868_v36  ;;  %v14088_v54 = vld [vmem:[#allocation87_spill] sm:$0xff]  ;;  %vm3777_vm6 = vcmp.ge.f32.partialorder %v13863_v27, 0.0 }
 0x47d   :  { %14081 = vst [vmem:[#allocation77_spill] sm:$0xff] %v10860_v11  ;;  %vm3773_vm2 = vcmp.ge.f32.partialorder %v14083_v63, 0.0  ;;  %v14086_v34 = vld [vmem:[#allocation81_spill] sm:$0xff]  ;;  %v10874_v4 = vmul.f32 0.1, %v14088_v54  ;;  %4529 = vst [vmem:[#allocation2 + $0x1a0] sm:$0xff] %v4273_v7 }
 0x47e   :  { %v10871_v22 = vmul.f32 0.1, %v14086_v34  ;;  %v14090_v24 = vld [vmem:[#allocation197_spill] sm:$0xff]  ;;  %v14093_v43 = vld [vmem:[#allocation91_spill] sm:$0xff] }
 0x47f   :  { %14089 = vst [vmem:[#allocation270_spill] sm:$0xff] %v10874_v4  ;;  %v4274_v11 = vsel %vm3762_vm7, %v13833_v21, %v14090_v24  ;;  %v14091_v46 = vld [vmem:[#allocation85_spill] sm:$0xff]  ;;  %v10885_v3 = vmul.f32 0.1, %v14093_v43  ;;  %v14098_v21 = vld [vmem:[#allocation95_spill] sm:$0xff]  ;;  %vm3778_vm7 = vcmp.ge.f32.partialorder %v13865_v19, 0.0 }
 0x480   :  { %14087 = vst [vmem:[#allocation37_spill] sm:$0xff] %v10871_v22  ;;  %v10882_v16 = vmul.f32 0.1, %v14091_v46  ;;  %v14095_v36 = vld [vmem:[#allocation89_spill] sm:$0xff]  ;;  %v14097_v22 = vld [vmem:[#allocation223_spill] sm:$0xff]  ;;  %4530 = vst [vmem:[#allocation2 + $0x1a8] sm:$0xff] %v4274_v11 }
 0x481   :  { %14094 = vst [vmem:[#allocation271_spill] sm:$0xff] %v10885_v3  ;;  %v10888_v34 = vmul.f32 0.1, %v14095_v36  ;;  %v4275_v4 = vsel %vm3763_vm8, %v13835_v38, %v14097_v22  ;;  %v10896_v7 = vmul.f32 0.1, %v14098_v21  ;;  %v14100_v24 = vld [vmem:[#allocation93_spill] sm:$0xff] }
 0x482   :  { %14092 = vst [vmem:[#allocation197_spill] sm:$0xff] %v10882_v16  ;;  %v10899_v46 = vmul.f32 0.1, %v14100_v24  ;;  %v14102_v16 = vld [vmem:[#allocation99_spill] sm:$0xff]  ;;  %v14104_v3 = vld [vmem:[#allocation6_spill] sm:$0xff]  ;;  %4531 = vst [vmem:[#allocation2 + $0x1b0] sm:$0xff] %v4275_v4 }
 0x483   :  { %14096 = vst [vmem:[#allocation272_spill] sm:$0xff] %v10888_v34  ;;  %14099 = vst [vmem:[#allocation223_spill] sm:$0xff] %v10896_v7  ;;  %v10902_v43 = vmul.f32 0.1, %v14102_v16  ;;  %v4276_v34 = vsel %vm3764_vm9, %v14017_v26, %v14104_v3  ;;  %v14105_v36 = vld [vmem:[#allocation42_spill] sm:$0xff]  ;;  %v14106_v38 = vld [vmem:[#allocation97_spill] sm:$0xff] }
 0x484   :  { %14101 = vst [vmem:[#allocation273_spill] sm:$0xff] %v10899_v46  ;;  %vm3776_vm5 = vcmp.ge.f32.partialorder %v14105_v36, 0.0  ;;  %v10910_v11 = vmul.f32 0.1, %v14106_v38  ;;  %v14108_v22 = vld [vmem:[#allocation103_spill] sm:$0xff]  ;;  %v14110_v7 = vld [vmem:[#allocation101_spill] sm:$0xff] }
 0x485   :  { %14103 = vst [vmem:[#allocation274_spill] sm:$0xff] %v10902_v43  ;;  %v10913_v21 = vmul.f32 0.1, %v14108_v22  ;;  %v10916_v24 = vmul.f32 0.1, %v14110_v7  ;;  %v14112_v46 = vld [vmem:[#allocation5_spill] sm:$0xff] }
 0x486   :  { %14107 = vst [vmem:[#allocation6_spill] sm:$0xff] %v10910_v11  ;;  %v4277_v43 = vsel %vm3765_vm10, %v13839_v12, %v14112_v46  ;;  %4532 = vst [vmem:[#allocation2 + $0x1b8] sm:$0xff] %v4276_v34  ;;  %v14113_v26 = vld [vmem:[#allocation107_spill] sm:$0xff]  ;;  %v14115_v3 = vld [vmem:[#allocation105_spill] sm:$0xff]  ;;  %vm3780_vm9 = vcmp.ge.f32.partialorder %v13869_v0, 0.0  ;;  %vm3781_vm10 = vcmp.ge.f32.partialorder %v13871_v45, 0.0 }
 0x487   :  { %14109 = vst [vmem:[#allocation42_spill] sm:$0xff] %v10913_v21  ;;  %14111 = vst [vmem:[#allocation275_spill] sm:$0xff] %v10916_v24  ;;  %v10924_v4 = vmul.f32 0.1, %v14113_v26  ;;  %v10927_v38 = vmul.f32 0.1, %v14115_v3 }
 0x488   :  { %v14117_v11 = vld [vmem:[#allocation111_spill] sm:$0xff]  ;;  %v14119_v21 = vld [vmem:[#allocation8_spill] sm:$0xff]  ;;  %4533 = vst [vmem:[#allocation2 + $0x1c0] sm:$0xff] %v4277_v43  ;;  %v14120_v12 = vld [vmem:[#allocation109_spill] sm:$0xff] }
 0x489   :  { %14114 = vst [vmem:[#allocation5_spill] sm:$0xff] %v10924_v4  ;;  %14116 = vst [vmem:[#allocation276_spill] sm:$0xff] %v10927_v38  ;;  %v10930_v22 = vmul.f32 0.1, %v14117_v11  ;;  %v4278_v24 = vsel %vm3766_vm11, %v13841_v28, %v14119_v21  ;;  %v10938_v34 = vmul.f32 0.1, %v14120_v12 }
 0x48a   :  { %v14122_v46 = vld [vmem:[#allocation115_spill] sm:$0xff]  ;;  %v14124_v4 = vld [vmem:[#allocation113_spill] sm:$0xff]  ;;  %4534 = vst [vmem:[#allocation2 + $0x1c8] sm:$0xff] %v4278_v24  ;;  %v14313_v7 = vld [vmem:[#allocation38_spill] sm:$0xff] }
 0x48b   :  { %14118 = vst [vmem:[#allocation277_spill] sm:$0xff] %v10930_v22  ;;  %14121 = vst [vmem:[#allocation8_spill] sm:$0xff] %v10938_v34  ;;  %v10941_v26 = vmul.f32 0.1, %v14122_v46  ;;  %v10944_v3 = vmul.f32 0.1, %v14124_v4 }
 0x48c   :  { %v14126_v38 = vld [vmem:[#allocation7_spill] sm:$0xff]  ;;  %v14130_v21 = vld [vmem:[#allocation117_spill] sm:$0xff]  ;;  %v14316_v16 = vld [vmem:[#allocation132_spill] sm:$0xff] }
 0x48d   :  { %14123 = vst [vmem:[#allocation278_spill] sm:$0xff] %v10941_v26  ;;  %14125 = vst [vmem:[#allocation279_spill] sm:$0xff] %v10944_v3  ;;  %v4279_v22 = vsel %vm3767_vm12, %v14039_v52, %v14126_v38  ;;  %v14127_v11 = vld [vmem:[#allocation43_spill] sm:$0xff]  ;;  %v10955_v12 = vmul.f32 0.1, %v14130_v21  ;;  %v14134_v26 = vld [vmem:[#allocation10_spill] sm:$0xff] }
 0x48e   :  { %vm3779_vm8 = vcmp.ge.f32.partialorder %v14127_v11, 0.0  ;;  %v14128_v28 = vld [vmem:[#allocation119_spill] sm:$0xff]  ;;  %v4280_v3 = vsel %vm3768_vm13, %v13845_v57, %v14134_v26  ;;  %4535 = vst [vmem:[#allocation2 + $0x1d0] sm:$0xff] %v4279_v22  ;;  %v14135_v52 = vld [vmem:[#allocation121_spill] sm:$0xff]  ;;  %vm3783_vm12 = vcmp.ge.f32.partialorder %v13875_v49, 0.0  ;;  %vm3784_vm13 = vcmp.ge.f32.partialorder %v13877_v2, 0.0 }
 0x48f   :  { %v10952_v43 = vmul.f32 0.1, %v14128_v28  ;;  %14131 = vst [vmem:[#allocation43_spill] sm:$0xff] %v10955_v12  ;;  %v14132_v34 = vld [vmem:[#allocation123_spill] sm:$0xff]  ;;  %v10966_v24 = vmul.f32 0.1, %v14135_v52 }
 0x490   :  { %v10958_v46 = vmul.f32 0.1, %v14132_v34  ;;  %v14137_v38 = vld [vmem:[#allocation127_spill] sm:$0xff]  ;;  %v14141_v12 = vld [vmem:[#allocation9_spill] sm:$0xff]  ;;  %4536 = vst [vmem:[#allocation2 + $0x1d8] sm:$0xff] %v4280_v3 }
 0x491   :  { %14129 = vst [vmem:[#allocation7_spill] sm:$0xff] %v10952_v43  ;;  %14136 = vst [vmem:[#allocation10_spill] sm:$0xff] %v10966_v24  ;;  %v10969_v28 = vmul.f32 0.1, %v14137_v38  ;;  %v14139_v43 = vld [vmem:[#allocation125_spill] sm:$0xff]  ;;  %v14142_v57 = vld [vmem:[#allocation131_spill] sm:$0xff] }
 0x492   :  { %14133 = vst [vmem:[#allocation280_spill] sm:$0xff] %v10958_v46  ;;  %v10972_v21 = vmul.f32 0.1, %v14139_v43  ;;  %v4281_v46 = vsel %vm3769_vm14, %v13847_v13, %v14141_v12  ;;  %v10980_v22 = vmul.f32 0.1, %v14142_v57  ;;  %v14144_v26 = vld [vmem:[#allocation129_spill] sm:$0xff] }
 0x493   :  { %14138 = vst [vmem:[#allocation281_spill] sm:$0xff] %v10969_v28  ;;  %v10983_v52 = vmul.f32 0.1, %v14144_v26  ;;  %v14146_v24 = vld [vmem:[#allocation135_spill] sm:$0xff]  ;;  %v14148_v28 = vld [vmem:[#allocation12_spill] sm:$0xff]  ;;  %4537 = vst [vmem:[#allocation2 + $0x1e0] sm:$0xff] %v4281_v46 }
 0x494   :  { %14140 = vst [vmem:[#allocation282_spill] sm:$0xff] %v10972_v21  ;;  %14143 = vst [vmem:[#allocation9_spill] sm:$0xff] %v10980_v22  ;;  %v10986_v38 = vmul.f32 0.1, %v14146_v24  ;;  %v4282_v21 = vsel %vm3770_vm15, %v14061_v44, %v14148_v28  ;;  %v14149_v43 = vld [vmem:[#allocation48_spill] sm:$0xff]  ;;  %v14150_v13 = vld [vmem:[#allocation133_spill] sm:$0xff] }
 0x495   :  { %14145 = vst [vmem:[#allocation283_spill] sm:$0xff] %v10983_v52  ;;  %vm3782_vm11 = vcmp.ge.f32.partialorder %v14149_v43, 0.0  ;;  %v10994_v3 = vmul.f32 0.1, %v14150_v13  ;;  %v14152_v12 = vld [vmem:[#allocation139_spill] sm:$0xff]  ;;  %v14154_v22 = vld [vmem:[#allocation137_spill] sm:$0xff] }
 0x496   :  { %14147 = vst [vmem:[#allocation284_spill] sm:$0xff] %v10986_v38  ;;  %v10997_v57 = vmul.f32 0.1, %v14152_v12  ;;  %v11000_v26 = vmul.f32 0.1, %v14154_v22  ;;  %v14156_v52 = vld [vmem:[#allocation11_spill] sm:$0xff] }
 0x497   :  { %14151 = vst [vmem:[#allocation12_spill] sm:$0xff] %v10994_v3  ;;  %v4283_v38 = vsel %vm3771_vm0, %v13851_v17, %v14156_v52  ;;  %4538 = vst [vmem:[#allocation2 + $0x1e8] sm:$0xff] %v4282_v21  ;;  %v14157_v44 = vld [vmem:[#allocation143_spill] sm:$0xff]  ;;  %v14159_v28 = vld [vmem:[#allocation141_spill] sm:$0xff]  ;;  %vm3786_vm15 = vcmp.ge.f32.partialorder %v13881_v18, 0.0  ;;  %vm3787_vm0 = vcmp.ge.f32.partialorder %v13883_v61, 0.0 }
 0x498   :  { %14153 = vst [vmem:[#allocation48_spill] sm:$0xff] %v10997_v57  ;;  %14155 = vst [vmem:[#allocation285_spill] sm:$0xff] %v11000_v26  ;;  %v11008_v46 = vmul.f32 0.1, %v14157_v44  ;;  %v11011_v13 = vmul.f32 0.1, %v14159_v28 }
 0x499   :  { %v14161_v3 = vld [vmem:[#allocation147_spill] sm:$0xff]  ;;  %v14163_v57 = vld [vmem:[#allocation14_spill] sm:$0xff]  ;;  %4539 = vst [vmem:[#allocation2 + $0x1f0] sm:$0xff] %v4283_v38  ;;  %v14164_v17 = vld [vmem:[#allocation145_spill] sm:$0xff] }
 0x49a   :  { %14158 = vst [vmem:[#allocation11_spill] sm:$0xff] %v11008_v46  ;;  %14160 = vst [vmem:[#allocation286_spill] sm:$0xff] %v11011_v13  ;;  %v11014_v12 = vmul.f32 0.1, %v14161_v3  ;;  %v4284_v26 = vsel %vm3772_vm1, %v13853_v41, %v14163_v57  ;;  %v11022_v21 = vmul.f32 0.1, %v14164_v17 }
 0x49b   :  { %v14166_v52 = vld [vmem:[#allocation151_spill] sm:$0xff]  ;;  %v14168_v46 = vld [vmem:[#allocation149_spill] sm:$0xff]  ;;  %4540 = vst [vmem:[#allocation2 + $0x1f8] sm:$0xff] %v4284_v26  ;;  %v14172_v41 = vld [vmem:[#allocation224_spill] sm:$0xff] }
 0x49c   :  { %14162 = vst [vmem:[#allocation287_spill] sm:$0xff] %v11014_v12  ;;  %14165 = vst [vmem:[#allocation14_spill] sm:$0xff] %v11022_v21  ;;  %v11025_v44 = vmul.f32 0.1, %v14166_v52  ;;  %v11028_v28 = vmul.f32 0.1, %v14168_v46 }
 0x49d   :  { %v14170_v13 = vld [vmem:[#allocation13_spill] sm:$0xff]  ;;  %v11036_v38 = vmul.f32 0.1, %v14172_v41  ;;  %v14176_v21 = vld [vmem:[#allocation226_spill] sm:$0xff]  ;;  %v14296_v24 = vld [vmem:[#allocation116_spill] sm:$0xff] }
 0x49e   :  { %14167 = vst [vmem:[#allocation288_spill] sm:$0xff] %v11025_v44  ;;  %14169 = vst [vmem:[#allocation289_spill] sm:$0xff] %v11028_v28  ;;  %v4285_v12 = vsel %vm3773_vm2, %v14083_v63, %v14170_v13  ;;  %v14171_v3 = vld [vmem:[#allocation49_spill] sm:$0xff]  ;;  %v11042_v52 = vmul.f32 0.1, %v14176_v21  ;;  %v14178_v44 = vld [vmem:[#allocation16_spill] sm:$0xff] }
 0x49f   :  { %vm3785_vm14 = vcmp.ge.f32.partialorder %v14171_v3, 0.0  ;;  %14173 = vst [vmem:[#allocation13_spill] sm:$0xff] %v11036_v38  ;;  %v14174_v57 = vld [vmem:[#allocation225_spill] sm:$0xff]  ;;  %v4286_v28 = vsel %vm3774_vm3, %v13857_v51, %v14178_v44  ;;  %4541 = vst [vmem:[#allocation2 + $0x200] sm:$0xff] %v4285_v12  ;;  %v14179_v63 = vld [vmem:[#allocation227_spill] sm:$0xff]  ;;  %vm3789_vm2 = vcmp.ge.f32.partialorder %v13887_v58, 0.0 }
 0x4a0   :  { %v11039_v17 = vmul.f32 0.1, %v14174_v57  ;;  %14177 = vst [vmem:[#allocation290_spill] sm:$0xff] %v11042_v52  ;;  %v11050_v26 = vmul.f32 0.1, %v14179_v63  ;;  %v14181_v13 = vld [vmem:[#allocation228_spill] sm:$0xff] }
 0x4a1   :  { %v11053_v41 = vmul.f32 0.1, %v14181_v13  ;;  %v14183_v38 = vld [vmem:[#allocation229_spill] sm:$0xff]  ;;  %4542 = vst [vmem:[#allocation2 + $0x208] sm:$0xff] %v4286_v28  ;;  %v14186_v51 = vld [vmem:[#allocation230_spill] sm:$0xff]  ;;  %v14188_v44 = vld [vmem:[#allocation231_spill] sm:$0xff] }
 0x4a2   :  { %14175 = vst [vmem:[#allocation49_spill] sm:$0xff] %v11039_v17  ;;  %14180 = vst [vmem:[#allocation16_spill] sm:$0xff] %v11050_v26  ;;  %v11056_v57 = vmul.f32 0.1, %v14183_v38  ;;  %v14185_v17 = vld [vmem:[#allocation15_spill] sm:$0xff]  ;;  %v14190_v26 = vld [vmem:[#allocation232_spill] sm:$0xff] }
 0x4a3   :  { %14182 = vst [vmem:[#allocation291_spill] sm:$0xff] %v11053_v41  ;;  %v4287_v52 = vsel %vm3775_vm4, %v13859_v56, %v14185_v17  ;;  %v11064_v12 = vmul.f32 0.1, %v14186_v51  ;;  %v11067_v63 = vmul.f32 0.1, %v14188_v44  ;;  %v14192_v41 = vld [vmem:[#allocation18_spill] sm:$0xff] }
 0x4a4   :  { %14184 = vst [vmem:[#allocation292_spill] sm:$0xff] %v11056_v57  ;;  %v11070_v13 = vmul.f32 0.1, %v14190_v26  ;;  %v4288_v57 = vsel %vm3776_vm5, %v14105_v36, %v14192_v41  ;;  %4543 = vst [vmem:[#allocation2 + $0x210] sm:$0xff] %v4287_v52  ;;  %v14193_v38 = vld [vmem:[#allocation54_spill] sm:$0xff]  ;;  %v14194_v56 = vld [vmem:[#allocation233_spill] sm:$0xff] }
 0x4a5   :  { %14187 = vst [vmem:[#allocation15_spill] sm:$0xff] %v11064_v12  ;;  %14189 = vst [vmem:[#allocation293_spill] sm:$0xff] %v11067_v63  ;;  %vm3788_vm1 = vcmp.ge.f32.partialorder %v14193_v38, 0.0  ;;  %v11078_v28 = vmul.f32 0.1, %v14194_v56  ;;  %v14196_v17 = vld [vmem:[#allocation234_spill] sm:$0xff] }
 0x4a6   :  { %14191 = vst [vmem:[#allocation294_spill] sm:$0xff] %v11070_v13  ;;  %v11081_v51 = vmul.f32 0.1, %v14196_v17  ;;  %v14198_v12 = vld [vmem:[#allocation235_spill] sm:$0xff]  ;;  %v14200_v63 = vld [vmem:[#allocation17_spill] sm:$0xff]  ;;  %4544 = vst [vmem:[#allocation2 + $0x218] sm:$0xff] %v4288_v57 }
 0x4a7   :  { %14195 = vst [vmem:[#allocation18_spill] sm:$0xff] %v11078_v28  ;;  %v11084_v44 = vmul.f32 0.1, %v14198_v12  ;;  %v4289_v13 = vsel %vm3777_vm6, %v13863_v27, %v14200_v63  ;;  %v14201_v36 = vld [vmem:[#allocation236_spill] sm:$0xff]  ;;  %v14203_v41 = vld [vmem:[#allocation237_spill] sm:$0xff]  ;;  %v14205_v28 = vld [vmem:[#allocation238_spill] sm:$0xff] }
 0x4a8   :  { %14197 = vst [vmem:[#allocation54_spill] sm:$0xff] %v11081_v51  ;;  %v11092_v52 = vmul.f32 0.1, %v14201_v36  ;;  %v11095_v56 = vmul.f32 0.1, %v14203_v41  ;;  %v14207_v51 = vld [vmem:[#allocation20_spill] sm:$0xff] }
 0x4a9   :  { %14199 = vst [vmem:[#allocation295_spill] sm:$0xff] %v11084_v44  ;;  %v11098_v17 = vmul.f32 0.1, %v14205_v28  ;;  %v4290_v44 = vsel %vm3778_vm7, %v13865_v19, %v14207_v51  ;;  %4545 = vst [vmem:[#allocation2 + $0x220] sm:$0xff] %v4289_v13  ;;  %vm3790_vm3 = vcmp.ge.f32.partialorder %v13889_v39, 0.0  ;;  %v14208_v27 = vld [vmem:[#allocation239_spill] sm:$0xff] }
 0x4aa   :  { %14202 = vst [vmem:[#allocation17_spill] sm:$0xff] %v11092_v52  ;;  %14204 = vst [vmem:[#allocation296_spill] sm:$0xff] %v11095_v56  ;;  %v11106_v57 = vmul.f32 0.1, %v14208_v27  ;;  %v14210_v63 = vld [vmem:[#allocation240_spill] sm:$0xff]  ;;  %v14212_v52 = vld [vmem:[#allocation241_spill] sm:$0xff] }
 0x4ab   :  { %14206 = vst [vmem:[#allocation297_spill] sm:$0xff] %v11098_v17  ;;  %v11109_v36 = vmul.f32 0.1, %v14210_v63  ;;  %v11112_v41 = vmul.f32 0.1, %v14212_v52  ;;  %v14214_v56 = vld [vmem:[#allocation22_spill] sm:$0xff] }
 0x4ac   :  { %14209 = vst [vmem:[#allocation20_spill] sm:$0xff] %v11106_v57  ;;  %v4291_v17 = vsel %vm3779_vm8, %v14127_v11, %v14214_v56  ;;  %4546 = vst [vmem:[#allocation2 + $0x228] sm:$0xff] %v4290_v44  ;;  %v14215_v28 = vld [vmem:[#allocation55_spill] sm:$0xff]  ;;  %v14216_v19 = vld [vmem:[#allocation242_spill] sm:$0xff]  ;;  %vm3792_vm5 = vcmp.ge.f32.partialorder %v13893_v14, 0.0  ;;  %vm14334_vm6 = vcmp.ge.f32.partialorder %v13899_v6, 0.0 }
 0x4ad   :  { %14211 = vst [vmem:[#allocation298_spill] sm:$0xff] %v11109_v36  ;;  %14213 = vst [vmem:[#allocation299_spill] sm:$0xff] %v11112_v41  ;;  %vm3791_vm4 = vcmp.ge.f32.partialorder %v14215_v28, 0.0  ;;  %v11120_v13 = vmul.f32 0.1, %v14216_v19  ;;  %v14218_v51 = vld [vmem:[#allocation243_spill] sm:$0xff] }
 0x4ae   :  { %v11123_v27 = vmul.f32 0.1, %v14218_v51  ;;  %v14220_v57 = vld [vmem:[#allocation244_spill] sm:$0xff]  ;;  %v14222_v36 = vld [vmem:[#allocation21_spill] sm:$0xff]  ;;  %4547 = vst [vmem:[#allocation2 + $0x230] sm:$0xff] %v4291_v17  ;;  %v14230_v51 = vld [vmem:[#allocation23_spill] sm:$0xff] }
 0x4af   :  { %14217 = vst [vmem:[#allocation22_spill] sm:$0xff] %v11120_v13  ;;  %v11126_v63 = vmul.f32 0.1, %v14220_v57  ;;  %v4292_v41 = vsel %vm3780_vm9, %v13869_v0, %v14222_v36  ;;  %v14223_v11 = vld [vmem:[#allocation60_spill] sm:$0xff]  ;;  %v14224_v44 = vld [vmem:[#allocation245_spill] sm:$0xff]  ;;  %v4293_v0 = vsel %vm3781_vm10, %v13871_v45, %v14230_v51  ;;  %vm3796_vm9 = vcmp.ge.f32.partialorder %v13901_v31, 0.0 }
 0x4b0   :  { %14219 = vst [vmem:[#allocation55_spill] sm:$0xff] %v11123_v27  ;;  %v11137_v56 = vmul.f32 0.1, %v14224_v44  ;;  %v14226_v27 = vld [vmem:[#allocation155_spill] sm:$0xff]  ;;  %4548 = vst [vmem:[#allocation2 + $0x238] sm:$0xff] %v4292_v41  ;;  %v14231_v17 = vld [vmem:[#allocation61_spill] sm:$0xff] }
 0x4b1   :  { %14221 = vst [vmem:[#allocation300_spill] sm:$0xff] %v11126_v63  ;;  %v11140_v13 = vmul.f32 0.1, %v14226_v27  ;;  %v14228_v63 = vld [vmem:[#allocation153_spill] sm:$0xff]  ;;  %v14232_v36 = vld [vmem:[#allocation159_spill] sm:$0xff]  ;;  %v14238_v44 = vld [vmem:[#allocation26_spill] sm:$0xff] }
 0x4b2   :  { %14225 = vst [vmem:[#allocation21_spill] sm:$0xff] %v11137_v56  ;;  %v11143_v57 = vmul.f32 0.1, %v14228_v63  ;;  %v11154_v56 = vmul.f32 0.1, %v14232_v36  ;;  %v4294_v45 = vsel %vm3782_vm11, %v14149_v43, %v14238_v44  ;;  %4549 = vst [vmem:[#allocation2 + $0x240] sm:$0xff] %v4293_v0 }
 0x4b3   :  { %14227 = vst [vmem:[#allocation60_spill] sm:$0xff] %v11140_v13  ;;  %v14234_v13 = vld [vmem:[#allocation157_spill] sm:$0xff]  ;;  %v14239_v41 = vld [vmem:[#allocation66_spill] sm:$0xff]  ;;  %v14240_v51 = vld [vmem:[#allocation67_spill] sm:$0xff]  ;;  %vm3804_vm11 = vcmp.ge.f32.partialorder %v13917_v59, 0.0  ;;  %vm3840_vm7 = vcmp.ge.f32.partialorder %v14000_v55, 0.0 }
 0x4b4   :  { %14229 = vst [vmem:[#allocation301_spill] sm:$0xff] %v11143_v57  ;;  %14233 = vst [vmem:[#allocation23_spill] sm:$0xff] %v11154_v56  ;;  %v11157_v63 = vmul.f32 0.1, %v14234_v13  ;;  %v14236_v57 = vld [vmem:[#allocation163_spill] sm:$0xff]  ;;  %vm3800_vm10 = vcmp.ge.f32.partialorder %v14239_v41, 0.0 }
 0x4b5   :  { %v11160_v27 = vmul.f32 0.1, %v14236_v57  ;;  %v14241_v56 = vld [vmem:[#allocation161_spill] sm:$0xff]  ;;  %v14247_v19 = vld [vmem:[#allocation28_spill] sm:$0xff]  ;;  %4550 = vst [vmem:[#allocation2 + $0x248] sm:$0xff] %v4294_v45  ;;  %v14249_v0 = vld [vmem:[#allocation171_spill] sm:$0xff] }
 0x4b6   :  { %14235 = vst [vmem:[#allocation61_spill] sm:$0xff] %v11157_v63  ;;  %v11171_v13 = vmul.f32 0.1, %v14241_v56  ;;  %v14243_v63 = vld [vmem:[#allocation167_spill] sm:$0xff]  ;;  %v4295_v43 = vsel %vm3783_vm12, %v13875_v49, %v14247_v19  ;;  %v14248_v44 = vld [vmem:[#allocation76_spill] sm:$0xff]  ;;  %vm3808_vm12 = vcmp.ge.f32.partialorder %v13925_v60, 0.0 }
 0x4b7   :  { %14237 = vst [vmem:[#allocation302_spill] sm:$0xff] %v11160_v27  ;;  %v11174_v57 = vmul.f32 0.1, %v14243_v63  ;;  %v14245_v27 = vld [vmem:[#allocation165_spill] sm:$0xff]  ;;  %v14255_v56 = vld [vmem:[#allocation27_spill] sm:$0xff]  ;;  %4551 = vst [vmem:[#allocation2 + $0x250] sm:$0xff] %v4295_v43 }
 0x4b8   :  { %14242 = vst [vmem:[#allocation26_spill] sm:$0xff] %v11171_v13  ;;  %v11177_v36 = vmul.f32 0.1, %v14245_v27  ;;  %v11188_v13 = vmul.f32 0.1, %v14249_v0  ;;  %v4296_v49 = vsel %vm3784_vm13, %v13877_v2, %v14255_v56  ;;  %v14256_v19 = vld [vmem:[#allocation78_spill] sm:$0xff] }
 0x4b9   :  { %14244 = vst [vmem:[#allocation66_spill] sm:$0xff] %v11174_v57  ;;  %v14251_v57 = vld [vmem:[#allocation169_spill] sm:$0xff]  ;;  %4552 = vst [vmem:[#allocation2 + $0x258] sm:$0xff] %v4296_v49  ;;  %v14264_v56 = vld [vmem:[#allocation88_spill] sm:$0xff] }
 0x4ba   :  { %14246 = vst [vmem:[#allocation67_spill] sm:$0xff] %v11177_v36  ;;  %14250 = vst [vmem:[#allocation28_spill] sm:$0xff] %v11188_v13  ;;  %v11191_v27 = vmul.f32 0.1, %v14251_v57  ;;  %v14253_v36 = vld [vmem:[#allocation175_spill] sm:$0xff]  ;;  %v14257_v45 = vld [vmem:[#allocation173_spill] sm:$0xff] }
 0x4bb   :  { %v11194_v63 = vmul.f32 0.1, %v14253_v36  ;;  %v11205_v13 = vmul.f32 0.1, %v14257_v45  ;;  %v14263_v0 = vld [vmem:[#allocation29_spill] sm:$0xff]  ;;  %vm3812_vm13 = vcmp.ge.f32.partialorder %v14264_v56, 0.0 }
 0x4bc   :  { %14252 = vst [vmem:[#allocation76_spill] sm:$0xff] %v11191_v27  ;;  %v14259_v27 = vld [vmem:[#allocation179_spill] sm:$0xff]  ;;  %v4297_v2 = vsel %vm3785_vm14, %v14171_v3, %v14263_v0  ;;  %v14265_v43 = vld [vmem:[#allocation92_spill] sm:$0xff]  ;;  %v14266_v45 = vld [vmem:[#allocation90_spill] sm:$0xff] }
 0x4bd   :  { %14254 = vst [vmem:[#allocation303_spill] sm:$0xff] %v11194_v63  ;;  %14258 = vst [vmem:[#allocation27_spill] sm:$0xff] %v11205_v13  ;;  %v11208_v36 = vmul.f32 0.1, %v14259_v27  ;;  %v14261_v63 = vld [vmem:[#allocation177_spill] sm:$0xff]  ;;  %v14267_v13 = vld [vmem:[#allocation183_spill] sm:$0xff] }
 0x4be   :  { %v11211_v57 = vmul.f32 0.1, %v14261_v63  ;;  %v11222_v27 = vmul.f32 0.1, %v14267_v13  ;;  %v14273_v12 = vld [vmem:[#allocation32_spill] sm:$0xff]  ;;  %4553 = vst [vmem:[#allocation2 + $0x260] sm:$0xff] %v4297_v2 }
 0x4bf   :  { %14260 = vst [vmem:[#allocation78_spill] sm:$0xff] %v11208_v36  ;;  %v14269_v36 = vld [vmem:[#allocation181_spill] sm:$0xff]  ;;  %v4298_v3 = vsel %vm3786_vm15, %v13881_v18, %v14273_v12  ;;  %v14274_v0 = vld [vmem:[#allocation96_spill] sm:$0xff]  ;;  %v14275_v49 = vld [vmem:[#allocation94_spill] sm:$0xff] }
 0x4c0   :  { %14262 = vst [vmem:[#allocation304_spill] sm:$0xff] %v11211_v57  ;;  %14268 = vst [vmem:[#allocation29_spill] sm:$0xff] %v11222_v27  ;;  %v11225_v63 = vmul.f32 0.1, %v14269_v36  ;;  %v14271_v57 = vld [vmem:[#allocation187_spill] sm:$0xff]  ;;  %vm3816_vm14 = vcmp.ge.f32.partialorder %v14274_v0, 0.0 }
 0x4c1   :  { %v11228_v52 = vmul.f32 0.1, %v14271_v57  ;;  %v14276_v26 = vld [vmem:[#allocation100_spill] sm:$0xff]  ;;  %v14277_v27 = vld [vmem:[#allocation185_spill] sm:$0xff]  ;;  %v14283_v21 = vld [vmem:[#allocation34_spill] sm:$0xff]  ;;  %4554 = vst [vmem:[#allocation2 + $0x268] sm:$0xff] %v4298_v3 }
 0x4c2   :  { %14270 = vst [vmem:[#allocation88_spill] sm:$0xff] %v11225_v63  ;;  %v11239_v36 = vmul.f32 0.1, %v14277_v27  ;;  %v14279_v63 = vld [vmem:[#allocation191_spill] sm:$0xff]  ;;  %v4299_v18 = vsel %vm3787_vm0, %v13883_v61, %v14283_v21  ;;  %v14284_v12 = vld [vmem:[#allocation104_spill] sm:$0xff]  ;;  %v14285_v2 = vld [vmem:[#allocation102_spill] sm:$0xff] }
 0x4c3   :  { %14272 = vst [vmem:[#allocation92_spill] sm:$0xff] %v11228_v52  ;;  %v11242_v57 = vmul.f32 0.1, %v14279_v63  ;;  %v14281_v52 = vld [vmem:[#allocation189_spill] sm:$0xff]  ;;  %vm3820_vm15 = vcmp.ge.f32.partialorder %v14284_v12, 0.0  ;;  %v14286_v27 = vld [vmem:[#allocation106_spill] sm:$0xff] }
 0x4c4   :  { %14278 = vst [vmem:[#allocation90_spill] sm:$0xff] %v11239_v36  ;;  %v11245_v13 = vmul.f32 0.1, %v14281_v52  ;;  %v14287_v36 = vld [vmem:[#allocation195_spill] sm:$0xff]  ;;  %v14293_v22 = vld [vmem:[#allocation33_spill] sm:$0xff]  ;;  %4555 = vst [vmem:[#allocation2 + $0x270] sm:$0xff] %v4299_v18 }
 0x4c5   :  { %14280 = vst [vmem:[#allocation32_spill] sm:$0xff] %v11242_v57  ;;  %v11256_v63 = vmul.f32 0.1, %v14287_v36  ;;  %v14289_v57 = vld [vmem:[#allocation198_spill] sm:$0xff]  ;;  %v4300_v61 = vsel %vm3788_vm1, %v14193_v38, %v14293_v22  ;;  %v14294_v21 = vld [vmem:[#allocation112_spill] sm:$0xff]  ;;  %v14304_v4 = vld [vmem:[#allocation35_spill] sm:$0xff] }
 0x4c6   :  { %14282 = vst [vmem:[#allocation96_spill] sm:$0xff] %v11245_v13  ;;  %v11259_v52 = vmul.f32 0.1, %v14289_v57  ;;  %v14291_v13 = vld [vmem:[#allocation200_spill] sm:$0xff]  ;;  %vm3824_vm0 = vcmp.ge.f32.partialorder %v14294_v21, 0.0  ;;  %v14295_v3 = vld [vmem:[#allocation110_spill] sm:$0xff]  ;;  %v4301_v22 = vsel %vm3789_vm2, %v13887_v58, %v14304_v4  ;;  %v4302_v58 = vsel %vm3790_vm3, %v13889_v39, %v14313_v7 }
 0x4c7   :  { %14288 = vst [vmem:[#allocation94_spill] sm:$0xff] %v11256_v63  ;;  %v11262_v46 = vmul.f32 0.1, %v14291_v13  ;;  %v14297_v36 = vld [vmem:[#allocation114_spill] sm:$0xff]  ;;  %v14298_v63 = vld [vmem:[#allocation199_spill] sm:$0xff]  ;;  %4556 = vst [vmem:[#allocation2 + $0x278] sm:$0xff] %v4300_v61  ;;  %v4303_v39 = vsel %vm3791_vm4, %v14215_v28, %v14324_v30 }
 0x4c8   :  { %14290 = vst [vmem:[#allocation100_spill] sm:$0xff] %v11259_v52  ;;  %v11273_v57 = vmul.f32 0.1, %v14298_v63  ;;  %v14300_v52 = vld [vmem:[#allocation202_spill] sm:$0xff]  ;;  %vm3828_vm1 = vcmp.ge.f32.partialorder %v13970_v9, 0.0  ;;  %v14306_v18 = vld [vmem:[#allocation124_spill] sm:$0xff] }
 0x4c9   :  { %14292 = vst [vmem:[#allocation34_spill] sm:$0xff] %v11262_v46  ;;  %v11276_v13 = vmul.f32 0.1, %v14300_v52  ;;  %v14302_v46 = vld [vmem:[#allocation246_spill] sm:$0xff]  ;;  %4557 = vst [vmem:[#allocation2 + $0x280] sm:$0xff] %v4301_v22  ;;  %v14314_v4 = vld [vmem:[#allocation128_spill] sm:$0xff] }
 0x4ca   :  { %14299 = vst [vmem:[#allocation104_spill] sm:$0xff] %v11273_v57  ;;  %v11279_v34 = vmul.f32 0.1, %v14302_v46  ;;  %v14305_v38 = vld [vmem:[#allocation118_spill] sm:$0xff]  ;;  %v14307_v57 = vld [vmem:[#allocation247_spill] sm:$0xff]  ;;  %4558 = vst [vmem:[#allocation2 + $0x288] sm:$0xff] %v4302_v58 }
 0x4cb   :  { %14301 = vst [vmem:[#allocation102_spill] sm:$0xff] %v11276_v13  ;;  %v11290_v52 = vmul.f32 0.1, %v14307_v57  ;;  %v14309_v13 = vld [vmem:[#allocation248_spill] sm:$0xff]  ;;  %v14315_v61 = vld [vmem:[#allocation126_spill] sm:$0xff]  ;;  %vm14330_vm2 = vcmp.ge.f32.partialorder %v13895_v47, 0.0 }
 0x4cc   :  { %14303 = vst [vmem:[#allocation106_spill] sm:$0xff] %v11279_v34  ;;  %v11293_v46 = vmul.f32 0.1, %v14309_v13  ;;  %v14311_v34 = vld [vmem:[#allocation249_spill] sm:$0xff]  ;;  %v14317_v57 = vld [vmem:[#allocation130_spill] sm:$0xff]  ;;  %v14325_v7 = vld [vmem:[#allocation136_spill] sm:$0xff] }
 0x4cd   :  { %14308 = vst [vmem:[#allocation33_spill] sm:$0xff] %v11290_v52  ;;  %v11296_v63 = vmul.f32 0.1, %v14311_v34  ;;  %v14318_v52 = vld [vmem:[#allocation250_spill] sm:$0xff]  ;;  %v14326_v22 = vld [vmem:[#allocation140_spill] sm:$0xff]  ;;  %vm14332_vm4 = vcmp.ge.f32.partialorder %v14223_v11, 0.0 }
 0x4ce   :  { %14310 = vst [vmem:[#allocation112_spill] sm:$0xff] %v11293_v46  ;;  %v11307_v13 = vmul.f32 0.1, %v14318_v52  ;;  %v14320_v46 = vld [vmem:[#allocation201_spill] sm:$0xff]  ;;  %v14331_v30 = vld [vmem:[#allocation44_spill] sm:$0xff]  ;;  %v14333_v58 = vld [vmem:[#allocation46_spill] sm:$0xff] }
 0x4cf   :  { %14312 = vst [vmem:[#allocation110_spill] sm:$0xff] %v11296_v63  ;;  %v11310_v34 = vmul.f32 0.1, %v14320_v46  ;;  %v14322_v63 = vld [vmem:[#allocation203_spill] sm:$0xff]  ;;  %v4306_v28 = vsel %vm14332_vm4, %v14223_v11, %v14331_v30  ;;  %v4307_v46 = vsel %vm14334_vm6, %v13899_v6, %v14333_v58  ;;  %4559 = vst [vmem:[#allocation2 + $0x290] sm:$0xff] %v4303_v39  ;;  %v14335_v52 = vld [vmem:[#allocation142_spill] sm:$0xff] }
 0x4d0   :  { %14319 = vst [vmem:[#allocation116_spill] sm:$0xff] %v11307_v13  ;;  %v11313_v54 = vmul.f32 0.1, %v14322_v63  ;;  %v14328_v13 = vld [vmem:[#allocation39_spill] sm:$0xff]  ;;  %v14341_v6 = vld [vmem:[#allocation50_spill] sm:$0xff]  ;;  %vm14342_vm6 = vcmp.ge.f32.partialorder %v13905_v5, 0.0 }
 0x4d1   :  { %14321 = vst [vmem:[#allocation114_spill] sm:$0xff] %v11310_v34  ;;  %v4304_v34 = vsel %vm3792_vm5, %v13893_v14, %v14328_v13  ;;  %vm3841_vm5 = vcmp.ge.f32.partialorder %v14335_v52, 0.0  ;;  %v14336_v14 = vld [vmem:[#allocation148_spill] sm:$0xff]  ;;  %v14339_v11 = vld [vmem:[#allocation47_spill] sm:$0xff]  ;;  %v4310_v39 = vsel %vm14342_vm6, %v13905_v5, %v14341_v6  ;;  %vm14344_vm4 = vcmp.ge.f32.partialorder %v13907_v8, 0.0  ;;  %4562 = vst [vmem:[#allocation2 + $0x2a8] sm:$0xff] %v4306_v28 }
 0x4d2   :  { %14323 = vst [vmem:[#allocation35_spill] sm:$0xff] %v11313_v54  ;;  %v14329_v54 = vld [vmem:[#allocation41_spill] sm:$0xff]  ;;  %v14343_v58 = vld [vmem:[#allocation52_spill] sm:$0xff]  ;;  %4560 = vst [vmem:[#allocation2 + $0x298] sm:$0xff] %v4304_v34  ;;  %vm14350_vm6 = vcmp.ge.f32.partialorder %v13911_v15, 0.0 }
 0x4d3   :  { %v4305_v63 = vsel %vm14330_vm2, %v13895_v47, %v14329_v54  ;;  %v14338_v47 = vld [vmem:[#allocation45_spill] sm:$0xff]  ;;  %vm14340_vm2 = vcmp.ge.f32.partialorder %v14231_v17, 0.0  ;;  %v4311_v13 = vsel %vm14344_vm4, %v13907_v8, %v14343_v58  ;;  %4563 = vst [vmem:[#allocation2 + $0x2b0] sm:$0xff] %v4307_v46  ;;  %v14351_v34 = vld [vmem:[#allocation56_spill] sm:$0xff]  ;;  %vm14352_vm4 = vcmp.ge.f32.partialorder %v13913_v33, 0.0  ;;  %4566 = vst [vmem:[#allocation2 + $0x2c8] sm:$0xff] %v4310_v39 }
 0x4d4   :  { %v4308_v54 = vsel %vm3796_vm9, %v13901_v31, %v14338_v47  ;;  %v4309_v30 = vsel %vm14340_vm2, %v14231_v17, %v14339_v11  ;;  %4561 = vst [vmem:[#allocation2 + $0x2a0] sm:$0xff] %v4305_v63  ;;  %v14345_v31 = vld [vmem:[#allocation152_spill] sm:$0xff]  ;;  %v14346_v47 = vld [vmem:[#allocation150_spill] sm:$0xff]  ;;  %v14348_v11 = vld [vmem:[#allocation51_spill] sm:$0xff]  ;;  %v4314_v46 = vsel %vm14352_vm4, %v13913_v33, %v14351_v34  ;;  %vm14354_vm2 = vcmp.ge.f32.partialorder %v14240_v51, 0.0 }
 0x4d5   :  { %vm3844_vm9 = vcmp.ge.f32.partialorder %v14345_v31, 0.0  ;;  %v14347_v17 = vld [vmem:[#allocation154_spill] sm:$0xff]  ;;  %v4312_v5 = vsel %vm3800_vm10, %v14239_v41, %v14348_v11  ;;  %v14349_v6 = vld [vmem:[#allocation53_spill] sm:$0xff]  ;;  %4564 = vst [vmem:[#allocation2 + $0x2b8] sm:$0xff] %v4308_v54  ;;  %4565 = vst [vmem:[#allocation2 + $0x2c0] sm:$0xff] %v4309_v30  ;;  %vm14362_vm4 = vcmp.ge.f32.partialorder %v14248_v44, 0.0 }
 0x4d6   :  { %v4313_v8 = vsel %vm14350_vm6, %v13911_v15, %v14349_v6  ;;  %v14353_v63 = vld [vmem:[#allocation58_spill] sm:$0xff]  ;;  %4567 = vst [vmem:[#allocation2 + $0x2d0] sm:$0xff] %v4311_v13  ;;  %v14355_v41 = vld [vmem:[#allocation160_spill] sm:$0xff]  ;;  %v14358_v11 = vld [vmem:[#allocation57_spill] sm:$0xff]  ;;  %vm14364_vm6 = vcmp.ge.f32.partialorder %v13923_v48, 0.0 }
 0x4d7   :  { %v4315_v28 = vsel %vm14354_vm2, %v14240_v51, %v14353_v63  ;;  %vm3848_vm10 = vcmp.ge.f32.partialorder %v14355_v41, 0.0  ;;  %v14356_v58 = vld [vmem:[#allocation164_spill] sm:$0xff]  ;;  %v14357_v15 = vld [vmem:[#allocation162_spill] sm:$0xff]  ;;  %v4316_v33 = vsel %vm3804_vm11, %v13917_v59, %v14358_v11  ;;  %v14359_v6 = vld [vmem:[#allocation59_spill] sm:$0xff]  ;;  %vm14360_vm2 = vcmp.ge.f32.partialorder %v13919_v10, 0.0  ;;  %4568 = vst [vmem:[#allocation2 + $0x2d8] sm:$0xff] %v4312_v5 }
 0x4d8   :  { %v4317_v51 = vsel %vm14360_vm2, %v13919_v10, %v14359_v6  ;;  %v14361_v54 = vld [vmem:[#allocation62_spill] sm:$0xff]  ;;  %v14363_v30 = vld [vmem:[#allocation64_spill] sm:$0xff]  ;;  %4569 = vst [vmem:[#allocation2 + $0x2e0] sm:$0xff] %v4313_v8  ;;  %4570 = vst [vmem:[#allocation2 + $0x2e8] sm:$0xff] %v4314_v46  ;;  %vm14374_vm2 = vcmp.ge.f32.partialorder %v13931_v53, 0.0 }
 0x4d9   :  { %v4318_v13 = vsel %vm14362_vm4, %v14248_v44, %v14361_v54  ;;  %v4319_v39 = vsel %vm14364_vm6, %v13923_v48, %v14363_v30  ;;  %4571 = vst [vmem:[#allocation2 + $0x2f0] sm:$0xff] %v4315_v28  ;;  %v14365_v59 = vld [vmem:[#allocation168_spill] sm:$0xff]  ;;  %v14366_v34 = vld [vmem:[#allocation166_spill] sm:$0xff]  ;;  %v14368_v10 = vld [vmem:[#allocation63_spill] sm:$0xff]  ;;  %vm14370_vm6 = vcmp.ge.f32.partialorder %v14256_v19, 0.0  ;;  %vm14372_vm4 = vcmp.ge.f32.partialorder %v13929_v42, 0.0 }
 0x4da   :  { %vm3852_vm11 = vcmp.ge.f32.partialorder %v14365_v59, 0.0  ;;  %v14367_v63 = vld [vmem:[#allocation172_spill] sm:$0xff]  ;;  %v4320_v44 = vsel %vm3808_vm12, %v13925_v60, %v14368_v10  ;;  %v14369_v11 = vld [vmem:[#allocation65_spill] sm:$0xff]  ;;  %4572 = vst [vmem:[#allocation2 + $0x2f8] sm:$0xff] %v4316_v33  ;;  %4573 = vst [vmem:[#allocation2 + $0x300] sm:$0xff] %v4317_v51 }
 0x4db   :  { %v4321_v48 = vsel %vm14370_vm6, %v14256_v19, %v14369_v11  ;;  %v14371_v5 = vld [vmem:[#allocation68_spill] sm:$0xff]  ;;  %4574 = vst [vmem:[#allocation2 + $0x308] sm:$0xff] %v4318_v13  ;;  %4575 = vst [vmem:[#allocation2 + $0x310] sm:$0xff] %v4319_v39  ;;  %v14376_v6 = vld [vmem:[#allocation174_spill] sm:$0xff]  ;;  %vm14384_vm6 = vcmp.ge.f32.partialorder %v14266_v45, 0.0 }
 0x4dc   :  { %v4322_v8 = vsel %vm14372_vm4, %v13929_v42, %v14371_v5  ;;  %v14373_v46 = vld [vmem:[#allocation72_spill] sm:$0xff]  ;;  %v14377_v19 = vld [vmem:[#allocation178_spill] sm:$0xff]  ;;  %vm14382_vm4 = vcmp.ge.f32.partialorder %v14265_v43, 0.0  ;;  %4576 = vst [vmem:[#allocation2 + $0x318] sm:$0xff] %v4320_v44  ;;  %4577 = vst [vmem:[#allocation2 + $0x320] sm:$0xff] %v4321_v48 }
 0x4dd   :  { %v4323_v28 = vsel %vm14374_vm2, %v13931_v53, %v14373_v46  ;;  %v14375_v60 = vld [vmem:[#allocation176_spill] sm:$0xff]  ;;  %v14378_v54 = vld [vmem:[#allocation70_spill] sm:$0xff]  ;;  %vm14380_vm2 = vcmp.ge.f32.partialorder %v13935_v40, 0.0  ;;  %4578 = vst [vmem:[#allocation2 + $0x328] sm:$0xff] %v4322_v8 }
 0x4de   :  { %vm3856_vm12 = vcmp.ge.f32.partialorder %v14375_v60, 0.0  ;;  %v4324_v42 = vsel %vm3812_vm13, %v14264_v56, %v14378_v54  ;;  %v14379_v30 = vld [vmem:[#allocation74_spill] sm:$0xff]  ;;  %v14381_v33 = vld [vmem:[#allocation80_spill] sm:$0xff]  ;;  %4579 = vst [vmem:[#allocation2 + $0x330] sm:$0xff] %v4323_v28 }
 0x4df   :  { %v4325_v53 = vsel %vm14380_vm2, %v13935_v40, %v14379_v30  ;;  %v4326_v51 = vsel %vm14382_vm4, %v14265_v43, %v14381_v33  ;;  %v14383_v13 = vld [vmem:[#allocation84_spill] sm:$0xff]  ;;  %v14386_v10 = vld [vmem:[#allocation182_spill] sm:$0xff]  ;;  %vm14393_vm4 = vcmp.ge.f32.partialorder %v14276_v26, 0.0  ;;  %vm14395_vm2 = vcmp.ge.f32.partialorder %v13948_v32, 0.0  ;;  %4580 = vst [vmem:[#allocation2 + $0x338] sm:$0xff] %v4324_v42  ;;  %v14399_v30 = vld [vmem:[#allocation19_spill] sm:$0xff] }
 0x4e0   :  { %v4327_v39 = vsel %vm14384_vm6, %v14266_v45, %v14383_v13  ;;  %v14385_v56 = vld [vmem:[#allocation184_spill] sm:$0xff]  ;;  %v14388_v40 = vld [vmem:[#allocation186_spill] sm:$0xff]  ;;  %vm14391_vm6 = vcmp.ge.f32.partialorder %v14275_v49, 0.0  ;;  %4581 = vst [vmem:[#allocation2 + $0x340] sm:$0xff] %v4325_v53  ;;  %4582 = vst [vmem:[#allocation2 + $0x348] sm:$0xff] %v4326_v51 }
 0x4e1   :  { %vm3860_vm13 = vcmp.ge.f32.partialorder %v14385_v56, 0.0  ;;  %v14387_v11 = vld [vmem:[#allocation188_spill] sm:$0xff]  ;;  %v14389_v5 = vld [vmem:[#allocation82_spill] sm:$0xff]  ;;  %4583 = vst [vmem:[#allocation2 + $0x350] sm:$0xff] %v4327_v39  ;;  %v14403_v33 = vld [vmem:[#allocation205_spill] sm:$0xff] }
 0x4e2   :  { %v4328_v43 = vsel %vm3816_vm14, %v14274_v0, %v14389_v5  ;;  %v14390_v46 = vld [vmem:[#allocation86_spill] sm:$0xff]  ;;  %v14392_v44 = vld [vmem:[#allocation204_spill] sm:$0xff]  ;;  %vm3864_vm14 = vcmp.ge.f32.partialorder %v14058_v50, 0.0  ;;  %v14406_v13 = vld [vmem:[#allocation69_spill] sm:$0xff] }
 0x4e3   :  { %v4329_v45 = vsel %vm14391_vm6, %v14275_v49, %v14390_v46  ;;  %v4330_v48 = vsel %vm14393_vm4, %v14276_v26, %v14392_v44  ;;  %v14394_v8 = vld [vmem:[#allocation98_spill] sm:$0xff]  ;;  %v14397_v54 = vld [vmem:[#allocation196_spill] sm:$0xff]  ;;  %vm14402_vm4 = vcmp.ge.f32.partialorder %v13956_v37, 0.0  ;;  %vm14404_vm6 = vcmp.ge.f32.partialorder %v14286_v27, 0.0  ;;  %4584 = vst [vmem:[#allocation2 + $0x358] sm:$0xff] %v4328_v43  ;;  %v14407_v39 = vld [vmem:[#allocation75_spill] sm:$0xff] }
 0x4e4   :  { %v4331_v28 = vsel %vm14395_vm2, %v13948_v32, %v14394_v8  ;;  %v14396_v0 = vld [vmem:[#allocation190_spill] sm:$0xff]  ;;  %vm14400_vm2 = vcmp.ge.f32.partialorder %v14285_v2, 0.0  ;;  %v14401_v42 = vld [vmem:[#allocation108_spill] sm:$0xff]  ;;  %v4335_v51 = vsel %vm14404_vm6, %v14286_v27, %v14403_v33  ;;  %4585 = vst [vmem:[#allocation2 + $0x360] sm:$0xff] %v4329_v45  ;;  %4586 = vst [vmem:[#allocation2 + $0x368] sm:$0xff] %v4330_v48  ;;  %vm14411_vm6 = vcmp.ge.f32.partialorder %v14295_v3, 0.0 }
 0x4e5   :  { %v14398_v49 = vld [vmem:[#allocation206_spill] sm:$0xff]  ;;  %v4333_v32 = vsel %vm14400_vm2, %v14285_v2, %v14399_v30  ;;  %v4334_v53 = vsel %vm14402_vm4, %v13956_v37, %v14401_v42  ;;  %4587 = vst [vmem:[#allocation2 + $0x370] sm:$0xff] %v4331_v28  ;;  %v14408_v2 = vld [vmem:[#allocation73_spill] sm:$0xff]  ;;  %v14409_v5 = vld [vmem:[#allocation251_spill] sm:$0xff]  ;;  %vm14413_vm4 = vcmp.ge.f32.partialorder %v14296_v24, 0.0  ;;  %vm14415_vm2 = vcmp.ge.f32.partialorder %v14297_v36, 0.0 }
 0x4e6   :  { %v4332_v26 = vsel %vm3820_vm15, %v14284_v12, %v14398_v49  ;;  %v14405_v12 = vld [vmem:[#allocation71_spill] sm:$0xff]  ;;  %v4336_v37 = vsel %vm3824_vm0, %v14294_v21, %v14409_v5  ;;  %v14410_v46 = vld [vmem:[#allocation252_spill] sm:$0xff]  ;;  %v14414_v44 = vld [vmem:[#allocation253_spill] sm:$0xff]  ;;  %4589 = vst [vmem:[#allocation2 + $0x380] sm:$0xff] %v4333_v32 }
 0x4e7   :  { %vm3868_vm15 = vcmp.ge.f32.partialorder %v14405_v12, 0.0  ;;  %v4337_v27 = vsel %vm14411_vm6, %v14295_v3, %v14410_v46  ;;  %v14412_v43 = vld [vmem:[#allocation208_spill] sm:$0xff]  ;;  %v4339_v48 = vsel %vm14415_vm2, %v14297_v36, %v14414_v44  ;;  %4588 = vst [vmem:[#allocation2 + $0x378] sm:$0xff] %v4332_v26  ;;  %4590 = vst [vmem:[#allocation2 + $0x388] sm:$0xff] %v4334_v53  ;;  %v14416_v21 = vld [vmem:[#allocation79_spill] sm:$0xff]  ;;  %vm14421_vm2 = vcmp.ge.f32.partialorder %v14305_v38, 0.0 }
 0x4e8   :  { %v4338_v45 = vsel %vm14413_vm4, %v14296_v24, %v14412_v43  ;;  %4591 = vst [vmem:[#allocation2 + $0x390] sm:$0xff] %v4335_v51  ;;  %vm3872_vm0 = vcmp.ge.f32.partialorder %v14416_v21, 0.0  ;;  %v14417_v8 = vld [vmem:[#allocation83_spill] sm:$0xff]  ;;  %v14418_v3 = vld [vmem:[#allocation81_spill] sm:$0xff]  ;;  %v14419_v28 = vld [vmem:[#allocation120_spill] sm:$0xff]  ;;  %vm14423_vm4 = vcmp.ge.f32.partialorder %v14306_v18, 0.0 }
 0x4e9   :  { %v4340_v24 = vsel %vm3828_vm1, %v13970_v9, %v14419_v28  ;;  %v14420_v49 = vld [vmem:[#allocation207_spill] sm:$0xff]  ;;  %v14422_v26 = vld [vmem:[#allocation24_spill] sm:$0xff]  ;;  %v14424_v32 = vld [vmem:[#allocation254_spill] sm:$0xff]  ;;  %4592 = vst [vmem:[#allocation2 + $0x398] sm:$0xff] %v4336_v37  ;;  %vm14436_vm1 = vcmp.ge.f32.partialorder %v14316_v16, 0.0 }
 0x4ea   :  { %v4341_v36 = vsel %vm14421_vm2, %v14305_v38, %v14420_v49  ;;  %v4342_v30 = vsel %vm14423_vm4, %v14306_v18, %v14422_v26  ;;  %v14425_v42 = vld [vmem:[#allocation122_spill] sm:$0xff]  ;;  %4593 = vst [vmem:[#allocation2 + $0x3a0] sm:$0xff] %v4337_v27  ;;  %4594 = vst [vmem:[#allocation2 + $0x3a8] sm:$0xff] %v4338_v45  ;;  %v14427_v9 = vld [vmem:[#allocation87_spill] sm:$0xff]  ;;  %vm14432_vm4 = vcmp.ge.f32.partialorder %v14314_v4, 0.0  ;;  %vm14438_vm2 = vcmp.ge.f32.partialorder %v14317_v57, 0.0 }
 0x4eb   :  { %vm14426_vm6 = vcmp.ge.f32.partialorder %v14425_v42, 0.0  ;;  %4595 = vst [vmem:[#allocation2 + $0x3b0] sm:$0xff] %v4339_v48  ;;  %v14428_v33 = vld [vmem:[#allocation85_spill] sm:$0xff]  ;;  %v14429_v51 = vld [vmem:[#allocation91_spill] sm:$0xff]  ;;  %v14431_v5 = vld [vmem:[#allocation210_spill] sm:$0xff] }
 0x4ec   :  { %v4343_v53 = vsel %vm14426_vm6, %v14425_v42, %v14424_v32  ;;  %v14430_v38 = vld [vmem:[#allocation89_spill] sm:$0xff]  ;;  %v4344_v18 = vsel %vm14432_vm4, %v14314_v4, %v14431_v5  ;;  %v14433_v46 = vld [vmem:[#allocation255_spill] sm:$0xff]  ;;  %vm14434_vm6 = vcmp.ge.f32.partialorder %v14315_v61, 0.0  ;;  %v14435_v27 = vld [vmem:[#allocation256_spill] sm:$0xff]  ;;  %4596 = vst [vmem:[#allocation2 + $0x3b8] sm:$0xff] %v4340_v24  ;;  %vm14448_vm4 = vcmp.ge.f32.partialorder %v14326_v22, 0.0 }
 0x4ed   :  { %v4345_v37 = vsel %vm14434_vm6, %v14315_v61, %v14433_v46  ;;  %v4346_v43 = vsel %vm14436_vm1, %v14316_v16, %v14435_v27  ;;  %v14437_v45 = vld [vmem:[#allocation209_spill] sm:$0xff]  ;;  %4597 = vst [vmem:[#allocation2 + $0x3c0] sm:$0xff] %v4341_v36  ;;  %4598 = vst [vmem:[#allocation2 + $0x3c8] sm:$0xff] %v4342_v30  ;;  %v14439_v4 = vld [vmem:[#allocation95_spill] sm:$0xff]  ;;  %vm14444_vm1 = vcmp.ge.f32.partialorder %v14325_v7, 0.0 }
 0x4ee   :  { %v4347_v44 = vsel %vm14438_vm2, %v14317_v57, %v14437_v45  ;;  %4599 = vst [vmem:[#allocation2 + $0x3d0] sm:$0xff] %v4343_v53  ;;  %v14440_v48 = vld [vmem:[#allocation93_spill] sm:$0xff]  ;;  %v14441_v28 = vld [vmem:[#allocation99_spill] sm:$0xff]  ;;  %v14445_v26 = vld [vmem:[#allocation134_spill] sm:$0xff]  ;;  %vm14446_vm2 = vcmp.ge.f32.partialorder %v13992_v62, 0.0 }
 0x4ef   :  { %v14442_v61 = vld [vmem:[#allocation97_spill] sm:$0xff]  ;;  %v4349_v57 = vsel %vm14446_vm2, %v13992_v62, %v14445_v26  ;;  %v14447_v24 = vld [vmem:[#allocation212_spill] sm:$0xff]  ;;  %v14450_v32 = vld [vmem:[#allocation138_spill] sm:$0xff]  ;;  %4600 = vst [vmem:[#allocation2 + $0x3d8] sm:$0xff] %v4344_v18 }
 0x4f0   :  { %v14443_v49 = vld [vmem:[#allocation257_spill] sm:$0xff]  ;;  %v4350_v36 = vsel %vm14448_vm4, %v14326_v22, %v14447_v24  ;;  %vm14451_vm6 = vcmp.ge.f32.partialorder %v14450_v32, 0.0  ;;  %4601 = vst [vmem:[#allocation2 + $0x3e0] sm:$0xff] %v4345_v37  ;;  %4602 = vst [vmem:[#allocation2 + $0x3e8] sm:$0xff] %v4346_v43  ;;  %v14454_v5 = vld [vmem:[#allocation107_spill] sm:$0xff]  ;;  %vm14459_vm4 = vcmp.ge.f32.partialorder %v14336_v14, 0.0 }
 0x4f1   :  { %v4348_v16 = vsel %vm14444_vm1, %v14325_v7, %v14443_v49  ;;  %v14449_v30 = vld [vmem:[#allocation25_spill] sm:$0xff]  ;;  %4603 = vst [vmem:[#allocation2 + $0x3f0] sm:$0xff] %v4347_v44  ;;  %v14452_v7 = vld [vmem:[#allocation103_spill] sm:$0xff]  ;;  %v14456_v46 = vld [vmem:[#allocation144_spill] sm:$0xff] }
 0x4f2   :  { %v4351_v42 = vsel %vm14451_vm6, %v14450_v32, %v14449_v30  ;;  %vm3884_vm1 = vcmp.ge.f32.partialorder %v14452_v7, 0.0  ;;  %v14453_v53 = vld [vmem:[#allocation101_spill] sm:$0xff]  ;;  %v4352_v22 = vsel %vm3840_vm7, %v14000_v55, %v14456_v46  ;;  %v14457_v27 = vld [vmem:[#allocation211_spill] sm:$0xff]  ;;  %v14458_v37 = vld [vmem:[#allocation258_spill] sm:$0xff]  ;;  %4604 = vst [vmem:[#allocation2 + $0x3f8] sm:$0xff] %v4348_v16 }
 0x4f3   :  { %vm3885_vm3 = vcmp.ge.f32.partialorder %v14453_v53, 0.0  ;;  %v14455_v62 = vld [vmem:[#allocation105_spill] sm:$0xff]  ;;  %v4353_v18 = vsel %vm3841_vm5, %v14335_v52, %v14457_v27  ;;  %v4354_v43 = vsel %vm14459_vm4, %v14336_v14, %v14458_v37  ;;  %v14460_v45 = vld [vmem:[#allocation259_spill] sm:$0xff]  ;;  %v14461_v44 = vld [vmem:[#allocation146_spill] sm:$0xff]  ;;  %4605 = vst [vmem:[#allocation2 + $0x400] sm:$0xff] %v4349_v57  ;;  %vm14469_vm4 = vcmp.ge.f32.partialorder %v14346_v47, 0.0 }
 0x4f4   :  { %vm14462_vm6 = vcmp.ge.f32.partialorder %v14461_v44, 0.0  ;;  %4606 = vst [vmem:[#allocation2 + $0x408] sm:$0xff] %v4350_v36  ;;  %4607 = vst [vmem:[#allocation2 + $0x410] sm:$0xff] %v4351_v42  ;;  %v14463_v55 = vld [vmem:[#allocation111_spill] sm:$0xff]  ;;  %v14464_v26 = vld [vmem:[#allocation109_spill] sm:$0xff]  ;;  %vm14473_vm5 = vcmp.ge.f32.partialorder %v14347_v17, 0.0 }
 0x4f5   :  { %v4355_v49 = vsel %vm14462_vm6, %v14461_v44, %v14460_v45  ;;  %vm3888_vm7 = vcmp.ge.f32.partialorder %v14463_v55, 0.0  ;;  %v14465_v24 = vld [vmem:[#allocation115_spill] sm:$0xff]  ;;  %v14466_v52 = vld [vmem:[#allocation113_spill] sm:$0xff]  ;;  %v14467_v30 = vld [vmem:[#allocation214_spill] sm:$0xff]  ;;  %vm14471_vm6 = vcmp.ge.f32.partialorder %v14014_v35, 0.0  ;;  %4608 = vst [vmem:[#allocation2 + $0x418] sm:$0xff] %v4352_v22 }
 0x4f6   :  { %v4356_v14 = vsel %vm3844_vm9, %v14345_v31, %v14467_v30  ;;  %v14468_v32 = vld [vmem:[#allocation260_spill] sm:$0xff]  ;;  %v14472_v42 = vld [vmem:[#allocation213_spill] sm:$0xff]  ;;  %4609 = vst [vmem:[#allocation2 + $0x420] sm:$0xff] %v4353_v18  ;;  %4610 = vst [vmem:[#allocation2 + $0x428] sm:$0xff] %v4354_v43 }
 0x4f7   :  { %v4357_v16 = vsel %vm14469_vm4, %v14346_v47, %v14468_v32  ;;  %v14470_v57 = vld [vmem:[#allocation156_spill] sm:$0xff]  ;;  %v4359_v46 = vsel %vm14473_vm5, %v14347_v17, %v14472_v42  ;;  %4611 = vst [vmem:[#allocation2 + $0x430] sm:$0xff] %v4355_v49  ;;  %v14474_v31 = vld [vmem:[#allocation119_spill] sm:$0xff]  ;;  %v14475_v27 = vld [vmem:[#allocation117_spill] sm:$0xff]  ;;  %vm14480_vm5 = vcmp.ge.f32.partialorder %v14022_v20, 0.0  ;;  %vm14484_vm4 = vcmp.ge.f32.partialorder %v14357_v15, 0.0 }
 0x4f8   :  { %v4358_v36 = vsel %vm14471_vm6, %v14014_v35, %v14470_v57  ;;  %vm3892_vm9 = vcmp.ge.f32.partialorder %v14474_v31, 0.0  ;;  %v14476_v37 = vld [vmem:[#allocation123_spill] sm:$0xff]  ;;  %v14477_v47 = vld [vmem:[#allocation121_spill] sm:$0xff]  ;;  %v14478_v45 = vld [vmem:[#allocation30_spill] sm:$0xff]  ;;  %vm14482_vm6 = vcmp.ge.f32.partialorder %v14356_v58, 0.0  ;;  %4612 = vst [vmem:[#allocation2 + $0x438] sm:$0xff] %v4356_v14 }
 0x4f9   :  { %v4360_v35 = vsel %vm3848_vm10, %v14355_v41, %v14478_v45  ;;  %v14479_v44 = vld [vmem:[#allocation158_spill] sm:$0xff]  ;;  %v14481_v22 = vld [vmem:[#allocation216_spill] sm:$0xff]  ;;  %v14483_v43 = vld [vmem:[#allocation261_spill] sm:$0xff]  ;;  %4613 = vst [vmem:[#allocation2 + $0x440] sm:$0xff] %v4357_v16 }
 0x4fa   :  { %v4361_v17 = vsel %vm14480_vm5, %v14022_v20, %v14479_v44  ;;  %v4362_v18 = vsel %vm14482_vm6, %v14356_v58, %v14481_v22  ;;  %v4363_v49 = vsel %vm14484_vm4, %v14357_v15, %v14483_v43  ;;  %4614 = vst [vmem:[#allocation2 + $0x448] sm:$0xff] %v4358_v36  ;;  %4615 = vst [vmem:[#allocation2 + $0x450] sm:$0xff] %v4359_v46  ;;  %v14485_v41 = vld [vmem:[#allocation127_spill] sm:$0xff]  ;;  %v14486_v30 = vld [vmem:[#allocation125_spill] sm:$0xff]  ;;  %vm14491_vm4 = vcmp.ge.f32.partialorder %v14366_v34, 0.0 }
 0x4fb   :  { %vm3896_vm10 = vcmp.ge.f32.partialorder %v14485_v41, 0.0  ;;  %v14487_v32 = vld [vmem:[#allocation131_spill] sm:$0xff]  ;;  %v14488_v20 = vld [vmem:[#allocation129_spill] sm:$0xff]  ;;  %v14489_v57 = vld [vmem:[#allocation262_spill] sm:$0xff]  ;;  %vm14493_vm6 = vcmp.ge.f32.partialorder %v14367_v63, 0.0  ;;  %vm14495_vm5 = vcmp.ge.f32.partialorder %v14036_v1, 0.0 }
 0x4fc   :  { %v4364_v58 = vsel %vm3852_vm11, %v14365_v59, %v14489_v57  ;;  %v14490_v42 = vld [vmem:[#allocation215_spill] sm:$0xff]  ;;  %v14494_v36 = vld [vmem:[#allocation170_spill] sm:$0xff]  ;;  %4616 = vst [vmem:[#allocation2 + $0x458] sm:$0xff] %v4360_v35  ;;  %4617 = vst [vmem:[#allocation2 + $0x460] sm:$0xff] %v4361_v17 }
 0x4fd   :  { %v4365_v15 = vsel %vm14491_vm4, %v14366_v34, %v14490_v42  ;;  %v14492_v14 = vld [vmem:[#allocation263_spill] sm:$0xff]  ;;  %v4367_v46 = vsel %vm14495_vm5, %v14036_v1, %v14494_v36  ;;  %4618 = vst [vmem:[#allocation2 + $0x468] sm:$0xff] %v4362_v18  ;;  %4619 = vst [vmem:[#allocation2 + $0x470] sm:$0xff] %v4363_v49  ;;  %v14497_v45 = vld [vmem:[#allocation133_spill] sm:$0xff]  ;;  %vm14502_vm5 = vcmp.ge.f32.partialorder %v14376_v6, 0.0  ;;  %vm14506_vm4 = vcmp.ge.f32.partialorder %v14377_v19, 0.0 }
 0x4fe   :  { %v4366_v16 = vsel %vm14493_vm6, %v14367_v63, %v14492_v14  ;;  %v14496_v59 = vld [vmem:[#allocation135_spill] sm:$0xff]  ;;  %v14499_v34 = vld [vmem:[#allocation137_spill] sm:$0xff]  ;;  %v14500_v22 = vld [vmem:[#allocation218_spill] sm:$0xff]  ;;  %vm14504_vm6 = vcmp.ge.f32.partialorder %v14044_v23, 0.0  ;;  %4620 = vst [vmem:[#allocation2 + $0x478] sm:$0xff] %v4364_v58 }
 0x4ff   :  { %vm3900_vm11 = vcmp.ge.f32.partialorder %v14496_v59, 0.0  ;;  %v14498_v44 = vld [vmem:[#allocation139_spill] sm:$0xff]  ;;  %v4368_v63 = vsel %vm3856_vm12, %v14375_v60, %v14500_v22  ;;  %v14503_v35 = vld [vmem:[#allocation180_spill] sm:$0xff]  ;;  %v14505_v18 = vld [vmem:[#allocation217_spill] sm:$0xff]  ;;  %4621 = vst [vmem:[#allocation2 + $0x480] sm:$0xff] %v4365_v15 }
 0x500   :  { %v14501_v43 = vld [vmem:[#allocation31_spill] sm:$0xff]  ;;  %v4370_v17 = vsel %vm14504_vm6, %v14044_v23, %v14503_v35  ;;  %v4371_v49 = vsel %vm14506_vm4, %v14377_v19, %v14505_v18  ;;  %4622 = vst [vmem:[#allocation2 + $0x488] sm:$0xff] %v4366_v16  ;;  %4623 = vst [vmem:[#allocation2 + $0x490] sm:$0xff] %v4367_v46  ;;  %v14508_v57 = vld [vmem:[#allocation141_spill] sm:$0xff]  ;;  %vm14513_vm4 = vcmp.ge.f32.partialorder %v14386_v10, 0.0  ;;  %vm14515_vm6 = vcmp.ge.f32.partialorder %v14387_v11, 0.0 }
 0x501   :  { %v4369_v1 = vsel %vm14502_vm5, %v14376_v6, %v14501_v43  ;;  %v14507_v60 = vld [vmem:[#allocation143_spill] sm:$0xff]  ;;  %v14510_v6 = vld [vmem:[#allocation145_spill] sm:$0xff]  ;;  %v14511_v14 = vld [vmem:[#allocation264_spill] sm:$0xff]  ;;  %vm14517_vm5 = vcmp.ge.f32.partialorder %v14388_v40, 0.0  ;;  %4624 = vst [vmem:[#allocation2 + $0x498] sm:$0xff] %v4368_v63 }
 0x502   :  { %vm3904_vm12 = vcmp.ge.f32.partialorder %v14507_v60, 0.0  ;;  %v14509_v42 = vld [vmem:[#allocation147_spill] sm:$0xff]  ;;  %v4372_v23 = vsel %vm3860_vm13, %v14385_v56, %v14511_v14  ;;  %v14512_v36 = vld [vmem:[#allocation265_spill] sm:$0xff]  ;;  %v14514_v58 = vld [vmem:[#allocation220_spill] sm:$0xff]  ;;  %4625 = vst [vmem:[#allocation2 + $0x4a0] sm:$0xff] %v4369_v1 }
 0x503   :  { %v4373_v19 = vsel %vm14513_vm4, %v14386_v10, %v14512_v36  ;;  %v4374_v15 = vsel %vm14515_vm6, %v14387_v11, %v14514_v58  ;;  %v14516_v16 = vld [vmem:[#allocation266_spill] sm:$0xff]  ;;  %4626 = vst [vmem:[#allocation2 + $0x4a8] sm:$0xff] %v4370_v17  ;;  %4627 = vst [vmem:[#allocation2 + $0x4b0] sm:$0xff] %v4371_v49  ;;  %v14518_v56 = vld [vmem:[#allocation151_spill] sm:$0xff]  ;;  %vm14526_vm6 = vcmp.ge.f32.partialorder %v14397_v54, 0.0  ;;  %vm14528_vm4 = vcmp.ge.f32.partialorder %v14066_v25, 0.0 }
 0x504   :  { %v4375_v46 = vsel %vm14517_vm5, %v14388_v40, %v14516_v16  ;;  %vm3908_vm13 = vcmp.ge.f32.partialorder %v14518_v56, 0.0  ;;  %v14519_v22 = vld [vmem:[#allocation149_spill] sm:$0xff]  ;;  %v14520_v43 = vld [vmem:[#allocation224_spill] sm:$0xff]  ;;  %v14523_v18 = vld [vmem:[#allocation219_spill] sm:$0xff]  ;;  %vm14524_vm5 = vcmp.ge.f32.partialorder %v14396_v0, 0.0  ;;  %4628 = vst [vmem:[#allocation2 + $0x4b8] sm:$0xff] %v4372_v23 }
 0x505   :  { %v14521_v10 = vld [vmem:[#allocation225_spill] sm:$0xff]  ;;  %v14522_v35 = vld [vmem:[#allocation192_spill] sm:$0xff]  ;;  %v4377_v40 = vsel %vm14524_vm5, %v14396_v0, %v14523_v18  ;;  %v14527_v17 = vld [vmem:[#allocation194_spill] sm:$0xff]  ;;  %4629 = vst [vmem:[#allocation2 + $0x4c0] sm:$0xff] %v4373_v19  ;;  %vm14539_vm5 = vcmp.ge.f32.partialorder %v14408_v2, 0.0 }
 0x506   :  { %v4376_v11 = vsel %vm3864_vm14, %v14058_v50, %v14522_v35  ;;  %v14525_v63 = vld [vmem:[#allocation36_spill] sm:$0xff]  ;;  %v4379_v49 = vsel %vm14528_vm4, %v14066_v25, %v14527_v17  ;;  %4630 = vst [vmem:[#allocation2 + $0x4c8] sm:$0xff] %v4374_v15  ;;  %4631 = vst [vmem:[#allocation2 + $0x4d0] sm:$0xff] %v4375_v46  ;;  %v14529_v50 = vld [vmem:[#allocation226_spill] sm:$0xff]  ;;  %vm14535_vm4 = vcmp.ge.f32.partialorder %v14406_v13, 0.0 }
 0x507   :  { %v4378_v1 = vsel %vm14526_vm6, %v14397_v54, %v14525_v63  ;;  %vm3912_vm14 = vcmp.ge.f32.partialorder %v14529_v50, 0.0  ;;  %v14530_v14 = vld [vmem:[#allocation227_spill] sm:$0xff]  ;;  %v14531_v36 = vld [vmem:[#allocation228_spill] sm:$0xff]  ;;  %v14532_v0 = vld [vmem:[#allocation229_spill] sm:$0xff]  ;;  %vm14537_vm6 = vcmp.ge.f32.partialorder %v14407_v39, 0.0  ;;  %4632 = vst [vmem:[#allocation2 + $0x4d8] sm:$0xff] %v4376_v11 }
 0x508   :  { %v14533_v58 = vld [vmem:[#allocation222_spill] sm:$0xff]  ;;  %v14534_v16 = vld [vmem:[#allocation267_spill] sm:$0xff]  ;;  %v14536_v23 = vld [vmem:[#allocation268_spill] sm:$0xff]  ;;  %4633 = vst [vmem:[#allocation2 + $0x4e0] sm:$0xff] %v4377_v40 }
 0x509   :  { %v4380_v54 = vsel %vm3868_vm15, %v14405_v12, %v14533_v58  ;;  %v4381_v25 = vsel %vm14535_vm4, %v14406_v13, %v14534_v16  ;;  %v4382_v19 = vsel %vm14537_vm6, %v14407_v39, %v14536_v23  ;;  %v14538_v15 = vld [vmem:[#allocation221_spill] sm:$0xff]  ;;  %4634 = vst [vmem:[#allocation2 + $0x4e8] sm:$0xff] %v4378_v1  ;;  %4635 = vst [vmem:[#allocation2 + $0x4f0] sm:$0xff] %v4379_v49  ;;  %v14540_v12 = vld [vmem:[#allocation230_spill] sm:$0xff]  ;;  %vm14548_vm6 = vcmp.ge.f32.partialorder %v14417_v8, 0.0 }
 0x50a   :  { %v4383_v46 = vsel %vm14539_vm5, %v14408_v2, %v14538_v15  ;;  %vm3916_vm15 = vcmp.ge.f32.partialorder %v14540_v12, 0.0  ;;  %v14541_v35 = vld [vmem:[#allocation231_spill] sm:$0xff]  ;;  %v14542_v18 = vld [vmem:[#allocation232_spill] sm:$0xff]  ;;  %v14543_v13 = vld [vmem:[#allocation233_spill] sm:$0xff]  ;;  %vm14546_vm5 = vcmp.ge.f32.partialorder %v14080_v29, 0.0  ;;  %vm14550_vm4 = vcmp.ge.f32.partialorder %v14418_v3, 0.0 }
 0x50b   :  { %v14544_v63 = vld [vmem:[#allocation269_spill] sm:$0xff]  ;;  %4636 = vst [vmem:[#allocation2 + $0x4f8] sm:$0xff] %v4380_v54  ;;  %4637 = vst [vmem:[#allocation2 + $0x500] sm:$0xff] %v4381_v25  ;;  %v14552_v58 = vld [vmem:[#allocation235_spill] sm:$0xff] }
 0x50c   :  { %v4384_v39 = vsel %vm3872_vm0, %v14416_v21, %v14544_v63  ;;  %v14545_v17 = vld [vmem:[#allocation77_spill] sm:$0xff]  ;;  %4638 = vst [vmem:[#allocation2 + $0x508] sm:$0xff] %v4382_v19  ;;  %4639 = vst [vmem:[#allocation2 + $0x510] sm:$0xff] %v4383_v46  ;;  %v14551_v21 = vld [vmem:[#allocation234_spill] sm:$0xff]  ;;  %vm14560_vm0 = vcmp.ge.f32.partialorder %v14429_v51, 0.0 }
 0x50d   :  { %v4385_v2 = vsel %vm14546_vm5, %v14080_v29, %v14545_v17  ;;  %v14547_v11 = vld [vmem:[#allocation193_spill] sm:$0xff]  ;;  %v14553_v16 = vld [vmem:[#allocation236_spill] sm:$0xff]  ;;  %v14555_v23 = vld [vmem:[#allocation270_spill] sm:$0xff]  ;;  %vm14562_vm5 = vcmp.ge.f32.partialorder %v14430_v38, 0.0  ;;  %4640 = vst [vmem:[#allocation2 + $0x518] sm:$0xff] %v4384_v39 }
 0x50e   :  { %v4386_v40 = vsel %vm14548_vm6, %v14417_v8, %v14547_v11  ;;  %v14549_v1 = vld [vmem:[#allocation37_spill] sm:$0xff]  ;;  %vm14556_vm6 = vcmp.ge.f32.partialorder %v14427_v9, 0.0  ;;  %v14559_v54 = vld [vmem:[#allocation271_spill] sm:$0xff]  ;;  %v14561_v19 = vld [vmem:[#allocation272_spill] sm:$0xff]  ;;  %4641 = vst [vmem:[#allocation2 + $0x520] sm:$0xff] %v4385_v2 }
 0x50f   :  { %v4387_v49 = vsel %vm14550_vm4, %v14418_v3, %v14549_v1  ;;  %v14554_v29 = vld [vmem:[#allocation237_spill] sm:$0xff]  ;;  %v4388_v8 = vsel %vm14556_vm6, %v14427_v9, %v14555_v23  ;;  %vm14558_vm4 = vcmp.ge.f32.partialorder %v14428_v33, 0.0  ;;  %v4390_v25 = vsel %vm14560_vm0, %v14429_v51, %v14559_v54  ;;  %4642 = vst [vmem:[#allocation2 + $0x528] sm:$0xff] %v4386_v40  ;;  %v14563_v9 = vld [vmem:[#allocation238_spill] sm:$0xff]  ;;  %v14564_v63 = vld [vmem:[#allocation239_spill] sm:$0xff] }
 0x510   :  { %v14557_v15 = vld [vmem:[#allocation197_spill] sm:$0xff]  ;;  %v4391_v46 = vsel %vm14562_vm5, %v14430_v38, %v14561_v19  ;;  %4643 = vst [vmem:[#allocation2 + $0x530] sm:$0xff] %v4387_v49  ;;  %v14565_v17 = vld [vmem:[#allocation240_spill] sm:$0xff]  ;;  %v14567_v11 = vld [vmem:[#allocation223_spill] sm:$0xff]  ;;  %vm14568_vm0 = vcmp.ge.f32.partialorder %v14439_v4, 0.0  ;;  %vm14570_vm5 = vcmp.ge.f32.partialorder %v14440_v48, 0.0 }
 0x511   :  { %v4389_v3 = vsel %vm14558_vm4, %v14428_v33, %v14557_v15  ;;  %v14566_v33 = vld [vmem:[#allocation241_spill] sm:$0xff]  ;;  %v4392_v51 = vsel %vm14568_vm0, %v14439_v4, %v14567_v11  ;;  %v14571_v39 = vld [vmem:[#allocation274_spill] sm:$0xff]  ;;  %vm14572_vm6 = vcmp.ge.f32.partialorder %v14441_v28, 0.0  ;;  %vm14574_vm4 = vcmp.ge.f32.partialorder %v14442_v61, 0.0  ;;  %4644 = vst [vmem:[#allocation2 + $0x538] sm:$0xff] %v4388_v8  ;;  %4646 = vst [vmem:[#allocation2 + $0x548] sm:$0xff] %v4390_v25 }
 0x512   :  { %v14569_v1 = vld [vmem:[#allocation273_spill] sm:$0xff]  ;;  %v4394_v2 = vsel %vm14572_vm6, %v14441_v28, %v14571_v39  ;;  %v14573_v40 = vld [vmem:[#allocation6_spill] sm:$0xff]  ;;  %4645 = vst [vmem:[#allocation2 + $0x540] sm:$0xff] %v4389_v3  ;;  %4647 = vst [vmem:[#allocation2 + $0x550] sm:$0xff] %v4391_v46  ;;  %vm14582_vm6 = vcmp.ge.f32.partialorder %v14454_v5, 0.0 }
 0x513   :  { %v4393_v38 = vsel %vm14570_vm5, %v14440_v48, %v14569_v1  ;;  %v4395_v49 = vsel %vm14574_vm4, %v14442_v61, %v14573_v40  ;;  %v14575_v4 = vld [vmem:[#allocation242_spill] sm:$0xff]  ;;  %v14576_v23 = vld [vmem:[#allocation243_spill] sm:$0xff]  ;;  %v14577_v15 = vld [vmem:[#allocation244_spill] sm:$0xff]  ;;  %vm14584_vm4 = vcmp.ge.f32.partialorder %v14455_v62, 0.0  ;;  %4648 = vst [vmem:[#allocation2 + $0x558] sm:$0xff] %v4392_v51 }
 0x514   :  { %vm3928_vm0 = vcmp.ge.f32.partialorder %v14575_v4, 0.0  ;;  %vm3929_vm8 = vcmp.ge.f32.partialorder %v14576_v23, 0.0  ;;  %v14578_v48 = vld [vmem:[#allocation245_spill] sm:$0xff]  ;;  %v14579_v54 = vld [vmem:[#allocation42_spill] sm:$0xff]  ;;  %v14580_v19 = vld [vmem:[#allocation275_spill] sm:$0xff]  ;;  %4649 = vst [vmem:[#allocation2 + $0x560] sm:$0xff] %v4393_v38 }
 0x515   :  { %v4396_v28 = vsel %vm3884_vm1, %v14452_v7, %v14579_v54  ;;  %v4397_v61 = vsel %vm3885_vm3, %v14453_v53, %v14580_v19  ;;  %v14581_v8 = vld [vmem:[#allocation5_spill] sm:$0xff]  ;;  %v14583_v25 = vld [vmem:[#allocation276_spill] sm:$0xff]  ;;  %4650 = vst [vmem:[#allocation2 + $0x568] sm:$0xff] %v4394_v2  ;;  %4651 = vst [vmem:[#allocation2 + $0x570] sm:$0xff] %v4395_v49  ;;  %vm14595_vm3 = vcmp.ge.f32.partialorder %v14466_v52, 0.0 }
 0x516   :  { %v4398_v3 = vsel %vm14582_vm6, %v14454_v5, %v14581_v8  ;;  %v4399_v46 = vsel %vm14584_vm4, %v14455_v62, %v14583_v25  ;;  %v14585_v7 = vld [vmem:[#allocation155_spill] sm:$0xff]  ;;  %v14586_v11 = vld [vmem:[#allocation153_spill] sm:$0xff]  ;;  %v14590_v40 = vld [vmem:[#allocation8_spill] sm:$0xff]  ;;  %vm14591_vm6 = vcmp.ge.f32.partialorder %v14464_v26, 0.0  ;;  %vm14593_vm4 = vcmp.ge.f32.partialorder %v14465_v24, 0.0  ;;  %4652 = vst [vmem:[#allocation2 + $0x578] sm:$0xff] %v4396_v28 }
 0x517   :  { %vm3932_vm1 = vcmp.ge.f32.partialorder %v14585_v7, 0.0  ;;  %v14587_v1 = vld [vmem:[#allocation159_spill] sm:$0xff]  ;;  %v14588_v53 = vld [vmem:[#allocation157_spill] sm:$0xff]  ;;  %v4401_v62 = vsel %vm14591_vm6, %v14464_v26, %v14590_v40  ;;  %v14592_v51 = vld [vmem:[#allocation278_spill] sm:$0xff]  ;;  %4653 = vst [vmem:[#allocation2 + $0x580] sm:$0xff] %v4397_v61  ;;  %vm14606_vm6 = vcmp.ge.f32.partialorder %v14477_v47, 0.0 }
 0x518   :  { %v14589_v39 = vld [vmem:[#allocation277_spill] sm:$0xff]  ;;  %v4402_v38 = vsel %vm14593_vm4, %v14465_v24, %v14592_v51  ;;  %v14594_v2 = vld [vmem:[#allocation279_spill] sm:$0xff]  ;;  %4654 = vst [vmem:[#allocation2 + $0x588] sm:$0xff] %v4398_v3  ;;  %4655 = vst [vmem:[#allocation2 + $0x590] sm:$0xff] %v4399_v46  ;;  %vm14604_vm4 = vcmp.ge.f32.partialorder %v14476_v37, 0.0 }
 0x519   :  { %v4400_v5 = vsel %vm3888_vm7, %v14463_v55, %v14589_v39  ;;  %v4403_v49 = vsel %vm14595_vm3, %v14466_v52, %v14594_v2  ;;  %v14596_v55 = vld [vmem:[#allocation163_spill] sm:$0xff]  ;;  %v14597_v54 = vld [vmem:[#allocation161_spill] sm:$0xff]  ;;  %vm14602_vm3 = vcmp.ge.f32.partialorder %v14475_v27, 0.0  ;;  %v14603_v28 = vld [vmem:[#allocation280_spill] sm:$0xff]  ;;  %4657 = vst [vmem:[#allocation2 + $0x5a0] sm:$0xff] %v4401_v62 }
 0x51a   :  { %vm3936_vm7 = vcmp.ge.f32.partialorder %v14596_v55, 0.0  ;;  %v14598_v19 = vld [vmem:[#allocation167_spill] sm:$0xff]  ;;  %v14599_v26 = vld [vmem:[#allocation165_spill] sm:$0xff]  ;;  %v4406_v61 = vsel %vm14604_vm4, %v14476_v37, %v14603_v28  ;;  %v14605_v3 = vld [vmem:[#allocation10_spill] sm:$0xff]  ;;  %4656 = vst [vmem:[#allocation2 + $0x598] sm:$0xff] %v4400_v5  ;;  %vm14615_vm4 = vcmp.ge.f32.partialorder %v14487_v32, 0.0 }
 0x51b   :  { %v14600_v8 = vld [vmem:[#allocation7_spill] sm:$0xff]  ;;  %v4407_v46 = vsel %vm14606_vm6, %v14477_v47, %v14605_v3  ;;  %4658 = vst [vmem:[#allocation2 + $0x5a8] sm:$0xff] %v4402_v38  ;;  %4659 = vst [vmem:[#allocation2 + $0x5b0] sm:$0xff] %v4403_v49  ;;  %v14608_v39 = vld [vmem:[#allocation169_spill] sm:$0xff]  ;;  %vm14613_vm6 = vcmp.ge.f32.partialorder %v14486_v30, 0.0 }
 0x51c   :  { %v4404_v24 = vsel %vm3892_vm9, %v14474_v31, %v14600_v8  ;;  %v14601_v25 = vld [vmem:[#allocation43_spill] sm:$0xff]  ;;  %v14611_v51 = vld [vmem:[#allocation281_spill] sm:$0xff]  ;;  %v14612_v2 = vld [vmem:[#allocation282_spill] sm:$0xff]  ;;  %4662 = vst [vmem:[#allocation2 + $0x5c8] sm:$0xff] %v4406_v61 }
 0x51d   :  { %v4405_v52 = vsel %vm14602_vm3, %v14475_v27, %v14601_v25  ;;  %v14607_v31 = vld [vmem:[#allocation171_spill] sm:$0xff]  ;;  %v14610_v27 = vld [vmem:[#allocation173_spill] sm:$0xff]  ;;  %v4408_v37 = vsel %vm3896_vm10, %v14485_v41, %v14611_v51  ;;  %v4409_v47 = vsel %vm14613_vm6, %v14486_v30, %v14612_v2  ;;  %vm14617_vm3 = vcmp.ge.f32.partialorder %v14488_v20, 0.0  ;;  %4660 = vst [vmem:[#allocation2 + $0x5b8] sm:$0xff] %v4404_v24  ;;  %4663 = vst [vmem:[#allocation2 + $0x5d0] sm:$0xff] %v4407_v46 }
 0x51e   :  { %vm3940_vm9 = vcmp.ge.f32.partialorder %v14607_v31, 0.0  ;;  %v14609_v40 = vld [vmem:[#allocation175_spill] sm:$0xff]  ;;  %v14614_v5 = vld [vmem:[#allocation9_spill] sm:$0xff]  ;;  %4661 = vst [vmem:[#allocation2 + $0x5c0] sm:$0xff] %v4405_v52  ;;  %v14622_v28 = vld [vmem:[#allocation284_spill] sm:$0xff]  ;;  %vm14628_vm6 = vcmp.ge.f32.partialorder %v14499_v34, 0.0 }
 0x51f   :  { %v4410_v62 = vsel %vm14615_vm4, %v14487_v32, %v14614_v5  ;;  %v14616_v38 = vld [vmem:[#allocation283_spill] sm:$0xff]  ;;  %v14619_v8 = vld [vmem:[#allocation177_spill] sm:$0xff]  ;;  %v4412_v32 = vsel %vm3900_vm11, %v14496_v59, %v14622_v28  ;;  %v14623_v3 = vld [vmem:[#allocation12_spill] sm:$0xff]  ;;  %vm14626_vm4 = vcmp.ge.f32.partialorder %v14498_v44, 0.0  ;;  %4664 = vst [vmem:[#allocation2 + $0x5d8] sm:$0xff] %v4408_v37 }
 0x520   :  { %v4411_v49 = vsel %vm14617_vm3, %v14488_v20, %v14616_v38  ;;  %v14618_v41 = vld [vmem:[#allocation179_spill] sm:$0xff]  ;;  %v14621_v30 = vld [vmem:[#allocation181_spill] sm:$0xff]  ;;  %vm14624_vm3 = vcmp.ge.f32.partialorder %v14497_v45, 0.0  ;;  %v14625_v24 = vld [vmem:[#allocation48_spill] sm:$0xff]  ;;  %4665 = vst [vmem:[#allocation2 + $0x5e0] sm:$0xff] %v4409_v47 }
 0x521   :  { %vm3944_vm10 = vcmp.ge.f32.partialorder %v14618_v41, 0.0  ;;  %v14620_v25 = vld [vmem:[#allocation183_spill] sm:$0xff]  ;;  %v4413_v20 = vsel %vm14624_vm3, %v14497_v45, %v14623_v3  ;;  %v4414_v52 = vsel %vm14626_vm4, %v14498_v44, %v14625_v24  ;;  %v14627_v61 = vld [vmem:[#allocation285_spill] sm:$0xff]  ;;  %4666 = vst [vmem:[#allocation2 + $0x5e8] sm:$0xff] %v4410_v62  ;;  %4667 = vst [vmem:[#allocation2 + $0x5f0] sm:$0xff] %v4411_v49  ;;  %vm14637_vm4 = vcmp.ge.f32.partialorder %v14509_v42, 0.0 }
 0x522   :  { %v4415_v46 = vsel %vm14628_vm6, %v14499_v34, %v14627_v61  ;;  %v14629_v59 = vld [vmem:[#allocation187_spill] sm:$0xff]  ;;  %v14630_v51 = vld [vmem:[#allocation185_spill] sm:$0xff]  ;;  %v14634_v38 = vld [vmem:[#allocation286_spill] sm:$0xff]  ;;  %vm14635_vm6 = vcmp.ge.f32.partialorder %v14508_v57, 0.0  ;;  %vm14639_vm3 = vcmp.ge.f32.partialorder %v14510_v6, 0.0  ;;  %4668 = vst [vmem:[#allocation2 + $0x5f8] sm:$0xff] %v4412_v32 }
 0x523   :  { %vm3948_vm11 = vcmp.ge.f32.partialorder %v14629_v59, 0.0  ;;  %v14631_v2 = vld [vmem:[#allocation191_spill] sm:$0xff]  ;;  %v14632_v45 = vld [vmem:[#allocation189_spill] sm:$0xff]  ;;  %v4417_v34 = vsel %vm14635_vm6, %v14508_v57, %v14634_v38  ;;  %v14638_v62 = vld [vmem:[#allocation14_spill] sm:$0xff]  ;;  %4669 = vst [vmem:[#allocation2 + $0x600] sm:$0xff] %v4413_v20  ;;  %vm14650_vm6 = vcmp.ge.f32.partialorder %v14521_v10, 0.0 }
 0x524   :  { %v14633_v5 = vld [vmem:[#allocation11_spill] sm:$0xff]  ;;  %v4419_v49 = vsel %vm14639_vm3, %v14510_v6, %v14638_v62  ;;  %4670 = vst [vmem:[#allocation2 + $0x608] sm:$0xff] %v4414_v52  ;;  %4671 = vst [vmem:[#allocation2 + $0x610] sm:$0xff] %v4415_v46  ;;  %v14641_v28 = vld [vmem:[#allocation198_spill] sm:$0xff]  ;;  %vm14646_vm3 = vcmp.ge.f32.partialorder %v14519_v22, 0.0 }
 0x525   :  { %v4416_v44 = vsel %vm3904_vm12, %v14507_v60, %v14633_v5  ;;  %v14636_v37 = vld [vmem:[#allocation287_spill] sm:$0xff]  ;;  %v14642_v3 = vld [vmem:[#allocation200_spill] sm:$0xff]  ;;  %v14645_v61 = vld [vmem:[#allocation289_spill] sm:$0xff]  ;;  %4673 = vst [vmem:[#allocation2 + $0x620] sm:$0xff] %v4417_v34 }
 0x526   :  { %v4418_v47 = vsel %vm14637_vm4, %v14509_v42, %v14636_v37  ;;  %v14640_v60 = vld [vmem:[#allocation195_spill] sm:$0xff]  ;;  %v14644_v24 = vld [vmem:[#allocation288_spill] sm:$0xff]  ;;  %v4421_v6 = vsel %vm14646_vm3, %v14519_v22, %v14645_v61  ;;  %v14647_v32 = vld [vmem:[#allocation13_spill] sm:$0xff]  ;;  %vm14648_vm4 = vcmp.ge.f32.partialorder %v14520_v43, 0.0  ;;  %4672 = vst [vmem:[#allocation2 + $0x618] sm:$0xff] %v4416_v44  ;;  %vm14661_vm3 = vcmp.ge.f32.partialorder %v14532_v0, 0.0 }
 0x527   :  { %vm3952_vm12 = vcmp.ge.f32.partialorder %v14640_v60, 0.0  ;;  %v14643_v57 = vld [vmem:[#allocation199_spill] sm:$0xff]  ;;  %v4420_v42 = vsel %vm3908_vm13, %v14518_v56, %v14644_v24  ;;  %v4422_v20 = vsel %vm14648_vm4, %v14520_v43, %v14647_v32  ;;  %v14649_v52 = vld [vmem:[#allocation49_spill] sm:$0xff]  ;;  %4674 = vst [vmem:[#allocation2 + $0x628] sm:$0xff] %v4418_v47  ;;  %4675 = vst [vmem:[#allocation2 + $0x630] sm:$0xff] %v4419_v49  ;;  %vm14659_vm4 = vcmp.ge.f32.partialorder %v14531_v36, 0.0 }
 0x528   :  { %v4423_v46 = vsel %vm14650_vm6, %v14521_v10, %v14649_v52  ;;  %v14651_v56 = vld [vmem:[#allocation202_spill] sm:$0xff]  ;;  %v14653_v38 = vld [vmem:[#allocation247_spill] sm:$0xff]  ;;  %v14654_v22 = vld [vmem:[#allocation248_spill] sm:$0xff]  ;;  %vm14657_vm6 = vcmp.ge.f32.partialorder %v14530_v14, 0.0  ;;  %4676 = vst [vmem:[#allocation2 + $0x638] sm:$0xff] %v4420_v42 }
 0x529   :  { %vm3956_vm13 = vcmp.ge.f32.partialorder %v14651_v56, 0.0  ;;  %v14652_v5 = vld [vmem:[#allocation246_spill] sm:$0xff]  ;;  %v14656_v62 = vld [vmem:[#allocation16_spill] sm:$0xff]  ;;  %v14658_v44 = vld [vmem:[#allocation291_spill] sm:$0xff]  ;;  %4677 = vst [vmem:[#allocation2 + $0x640] sm:$0xff] %v4421_v6 }
 0x52a   :  { %v14655_v37 = vld [vmem:[#allocation290_spill] sm:$0xff]  ;;  %v4425_v10 = vsel %vm14657_vm6, %v14530_v14, %v14656_v62  ;;  %v4426_v34 = vsel %vm14659_vm4, %v14531_v36, %v14658_v44  ;;  %v14660_v47 = vld [vmem:[#allocation292_spill] sm:$0xff]  ;;  %4678 = vst [vmem:[#allocation2 + $0x648] sm:$0xff] %v4422_v20  ;;  %4679 = vst [vmem:[#allocation2 + $0x650] sm:$0xff] %v4423_v46  ;;  %vm14670_vm4 = vcmp.ge.f32.partialorder %v14542_v18, 0.0  ;;  %vm14672_vm6 = vcmp.ge.f32.partialorder %v14543_v13, 0.0 }
 0x52b   :  { %v4424_v43 = vsel %vm3912_vm14, %v14529_v50, %v14655_v37  ;;  %v4427_v49 = vsel %vm14661_vm3, %v14532_v0, %v14660_v47  ;;  %v14662_v50 = vld [vmem:[#allocation249_spill] sm:$0xff]  ;;  %v14663_v24 = vld [vmem:[#allocation250_spill] sm:$0xff]  ;;  %v14665_v14 = vld [vmem:[#allocation203_spill] sm:$0xff]  ;;  %vm14668_vm3 = vcmp.ge.f32.partialorder %v14541_v35, 0.0  ;;  %4681 = vst [vmem:[#allocation2 + $0x660] sm:$0xff] %v4425_v10 }
 0x52c   :  { %vm3960_vm14 = vcmp.ge.f32.partialorder %v14662_v50, 0.0  ;;  %vm3961_vm5 = vcmp.ge.f32.partialorder %v14663_v24, 0.0  ;;  %v14664_v61 = vld [vmem:[#allocation201_spill] sm:$0xff]  ;;  %vm3964_vm2 = vcmp.ge.f32.partialorder %v14665_v14, 0.0  ;;  %v14666_v32 = vld [vmem:[#allocation15_spill] sm:$0xff]  ;;  %v14669_v42 = vld [vmem:[#allocation294_spill] sm:$0xff] }
 0x52d   :  { %v4428_v36 = vsel %vm3916_vm15, %v14540_v12, %v14666_v32  ;;  %v14667_v52 = vld [vmem:[#allocation293_spill] sm:$0xff]  ;;  %v4430_v6 = vsel %vm14670_vm4, %v14542_v18, %v14669_v42  ;;  %v14671_v20 = vld [vmem:[#allocation18_spill] sm:$0xff]  ;;  %4680 = vst [vmem:[#allocation2 + $0x658] sm:$0xff] %v4424_v43  ;;  %4682 = vst [vmem:[#allocation2 + $0x668] sm:$0xff] %v4426_v34  ;;  %vm14674_vm15 = vcmp.ge.f32.partialorder %v14551_v21, 0.0  ;;  %vm14678_vm4 = vcmp.ge.f32.partialorder %v14553_v16, 0.0 }
 0x52e   :  { %v4429_v0 = vsel %vm14668_vm3, %v14541_v35, %v14667_v52  ;;  %v4431_v46 = vsel %vm14672_vm6, %v14543_v13, %v14671_v20  ;;  %4683 = vst [vmem:[#allocation2 + $0x670] sm:$0xff] %v4427_v49  ;;  %v14673_v12 = vld [vmem:[#allocation54_spill] sm:$0xff]  ;;  %v14675_v35 = vld [vmem:[#allocation295_spill] sm:$0xff]  ;;  %vm14676_vm3 = vcmp.ge.f32.partialorder %v14552_v58, 0.0  ;;  %v14677_v18 = vld [vmem:[#allocation17_spill] sm:$0xff]  ;;  %vm14680_vm6 = vcmp.ge.f32.partialorder %v14554_v29, 0.0 }
 0x52f   :  { %v4432_v37 = vsel %vm14674_vm15, %v14551_v21, %v14673_v12  ;;  %v4433_v62 = vsel %vm14676_vm3, %v14552_v58, %v14675_v35  ;;  %v4434_v44 = vsel %vm14678_vm4, %v14553_v16, %v14677_v18  ;;  %v14679_v13 = vld [vmem:[#allocation296_spill] sm:$0xff]  ;;  %4684 = vst [vmem:[#allocation2 + $0x678] sm:$0xff] %v4428_v36  ;;  %4685 = vst [vmem:[#allocation2 + $0x680] sm:$0xff] %v4429_v0  ;;  %v14681_v21 = vld [vmem:[#allocation297_spill] sm:$0xff]  ;;  %vm14682_vm15 = vcmp.ge.f32.partialorder %v14563_v9, 0.0 }
 0x530   :  { %v4435_v43 = vsel %vm14680_vm6, %v14554_v29, %v14679_v13  ;;  %4686 = vst [vmem:[#allocation2 + $0x688] sm:$0xff] %v4430_v6  ;;  %4687 = vst [vmem:[#allocation2 + $0x690] sm:$0xff] %v4431_v46  ;;  %v4436_v10 = vsel %vm14682_vm15, %v14563_v9, %v14681_v21  ;;  %v14683_v58 = vld [vmem:[#allocation20_spill] sm:$0xff]  ;;  %vm14684_vm3 = vcmp.ge.f32.partialorder %v14564_v63, 0.0  ;;  %v14685_v16 = vld [vmem:[#allocation298_spill] sm:$0xff]  ;;  %vm14686_vm4 = vcmp.ge.f32.partialorder %v14565_v17, 0.0 }
 0x531   :  { %v4437_v34 = vsel %vm14684_vm3, %v14564_v63, %v14683_v58  ;;  %v4438_v47 = vsel %vm14686_vm4, %v14565_v17, %v14685_v16  ;;  %v14687_v29 = vld [vmem:[#allocation299_spill] sm:$0xff]  ;;  %vm14688_vm6 = vcmp.ge.f32.partialorder %v14566_v33, 0.0  ;;  %4688 = vst [vmem:[#allocation2 + $0x698] sm:$0xff] %v4432_v37  ;;  %4689 = vst [vmem:[#allocation2 + $0x6a0] sm:$0xff] %v4433_v62  ;;  %v14689_v9 = vld [vmem:[#allocation22_spill] sm:$0xff]  ;;  %vm14692_vm15 = vcmp.ge.f32.partialorder %v14577_v15, 0.0 }
 0x532   :  { %v4439_v49 = vsel %vm14688_vm6, %v14566_v33, %v14687_v29  ;;  %4690 = vst [vmem:[#allocation2 + $0x6a8] sm:$0xff] %v4434_v44  ;;  %4691 = vst [vmem:[#allocation2 + $0x6b0] sm:$0xff] %v4435_v43  ;;  %v4440_v32 = vsel %vm3928_vm0, %v14575_v4, %v14689_v9  ;;  %v14690_v63 = vld [vmem:[#allocation55_spill] sm:$0xff]  ;;  %v14691_v17 = vld [vmem:[#allocation300_spill] sm:$0xff]  ;;  %vm14694_vm3 = vcmp.ge.f32.partialorder %v14578_v48, 0.0  ;;  %vm14699_vm0 = vcmp.ge.f32.partialorder %v14587_v1, 0.0 }
 0x533   :  { %v4441_v36 = vsel %vm3929_vm8, %v14576_v23, %v14690_v63  ;;  %v4442_v52 = vsel %vm14692_vm15, %v14577_v15, %v14691_v17  ;;  %v14693_v33 = vld [vmem:[#allocation21_spill] sm:$0xff]  ;;  %4692 = vst [vmem:[#allocation2 + $0x6b8] sm:$0xff] %v4436_v10  ;;  %4693 = vst [vmem:[#allocation2 + $0x6c0] sm:$0xff] %v4437_v34  ;;  %v14695_v4 = vld [vmem:[#allocation60_spill] sm:$0xff]  ;;  %vm14697_vm8 = vcmp.ge.f32.partialorder %v14586_v11, 0.0  ;;  %vm14701_vm4 = vcmp.ge.f32.partialorder %v14588_v53, 0.0 }
 0x534   :  { %v4443_v0 = vsel %vm14694_vm3, %v14578_v48, %v14693_v33  ;;  %4694 = vst [vmem:[#allocation2 + $0x6c8] sm:$0xff] %v4438_v47  ;;  %4695 = vst [vmem:[#allocation2 + $0x6d0] sm:$0xff] %v4439_v49  ;;  %v4444_v42 = vsel %vm3932_vm1, %v14585_v7, %v14695_v4  ;;  %v14696_v23 = vld [vmem:[#allocation301_spill] sm:$0xff]  ;;  %v14698_v15 = vld [vmem:[#allocation23_spill] sm:$0xff]  ;;  %vm14704_vm1 = vcmp.ge.f32.partialorder %v14597_v54, 0.0  ;;  %vm14706_vm6 = vcmp.ge.f32.partialorder %v14598_v19, 0.0 }
 0x535   :  { %v4445_v6 = vsel %vm14697_vm8, %v14586_v11, %v14696_v23  ;;  %v4446_v20 = vsel %vm14699_vm0, %v14587_v1, %v14698_v15  ;;  %v14700_v48 = vld [vmem:[#allocation61_spill] sm:$0xff]  ;;  %4696 = vst [vmem:[#allocation2 + $0x6d8] sm:$0xff] %v4440_v32  ;;  %4697 = vst [vmem:[#allocation2 + $0x6e0] sm:$0xff] %v4441_v36  ;;  %v14702_v7 = vld [vmem:[#allocation302_spill] sm:$0xff]  ;;  %vm14708_vm15 = vcmp.ge.f32.partialorder %v14599_v26, 0.0  ;;  %vm14713_vm3 = vcmp.ge.f32.partialorder %v14609_v40, 0.0 }
 0x536   :  { %v4447_v46 = vsel %vm14701_vm4, %v14588_v53, %v14700_v48  ;;  %4698 = vst [vmem:[#allocation2 + $0x6e8] sm:$0xff] %v4442_v52  ;;  %4699 = vst [vmem:[#allocation2 + $0x6f0] sm:$0xff] %v4443_v0  ;;  %v4448_v12 = vsel %vm3936_vm7, %v14596_v55, %v14702_v7  ;;  %v14703_v11 = vld [vmem:[#allocation26_spill] sm:$0xff]  ;;  %v14707_v53 = vld [vmem:[#allocation67_spill] sm:$0xff]  ;;  %vm14711_vm7 = vcmp.ge.f32.partialorder %v14608_v39, 0.0  ;;  %vm14715_vm8 = vcmp.ge.f32.partialorder %v14610_v27, 0.0 }
 0x537   :  { %v4449_v37 = vsel %vm14704_vm1, %v14597_v54, %v14703_v11  ;;  %v14705_v1 = vld [vmem:[#allocation66_spill] sm:$0xff]  ;;  %v4451_v62 = vsel %vm14708_vm15, %v14599_v26, %v14707_v53  ;;  %4700 = vst [vmem:[#allocation2 + $0x6f8] sm:$0xff] %v4444_v42  ;;  %4701 = vst [vmem:[#allocation2 + $0x700] sm:$0xff] %v4445_v6  ;;  %v14709_v55 = vld [vmem:[#allocation28_spill] sm:$0xff]  ;;  %vm14720_vm0 = vcmp.ge.f32.partialorder %v14620_v25, 0.0  ;;  %vm14722_vm4 = vcmp.ge.f32.partialorder %v14621_v30, 0.0 }
 0x538   :  { %v4450_v35 = vsel %vm14706_vm6, %v14598_v19, %v14705_v1  ;;  %4702 = vst [vmem:[#allocation2 + $0x708] sm:$0xff] %v4446_v20  ;;  %4703 = vst [vmem:[#allocation2 + $0x710] sm:$0xff] %v4447_v46  ;;  %v4452_v18 = vsel %vm3940_vm9, %v14607_v31, %v14709_v55  ;;  %v14710_v54 = vld [vmem:[#allocation76_spill] sm:$0xff]  ;;  %v14712_v19 = vld [vmem:[#allocation303_spill] sm:$0xff]  ;;  %vm14718_vm9 = vcmp.ge.f32.partialorder %v14619_v8, 0.0  ;;  %vm14727_vm1 = vcmp.ge.f32.partialorder %v14631_v2, 0.0 }
 0x539   :  { %v4453_v44 = vsel %vm14711_vm7, %v14608_v39, %v14710_v54  ;;  %v4454_v13 = vsel %vm14713_vm3, %v14609_v40, %v14712_v19  ;;  %v14714_v26 = vld [vmem:[#allocation27_spill] sm:$0xff]  ;;  %4704 = vst [vmem:[#allocation2 + $0x718] sm:$0xff] %v4448_v12  ;;  %4705 = vst [vmem:[#allocation2 + $0x720] sm:$0xff] %v4449_v37  ;;  %v14716_v31 = vld [vmem:[#allocation78_spill] sm:$0xff]  ;;  %vm14729_vm6 = vcmp.ge.f32.partialorder %v14632_v45, 0.0  ;;  %vm14734_vm15 = vcmp.ge.f32.partialorder %v14642_v3, 0.0 }
 0x53a   :  { %v4455_v43 = vsel %vm14715_vm8, %v14610_v27, %v14714_v26  ;;  %4706 = vst [vmem:[#allocation2 + $0x728] sm:$0xff] %v4450_v35  ;;  %4707 = vst [vmem:[#allocation2 + $0x730] sm:$0xff] %v4451_v62  ;;  %v4456_v39 = vsel %vm3944_vm10, %v14618_v41, %v14716_v31  ;;  %v14717_v21 = vld [vmem:[#allocation304_spill] sm:$0xff]  ;;  %v14719_v10 = vld [vmem:[#allocation29_spill] sm:$0xff]  ;;  %vm14725_vm10 = vcmp.ge.f32.partialorder %v14630_v51, 0.0  ;;  %vm14736_vm7 = vcmp.ge.f32.partialorder %v14643_v57, 0.0 }
 0x53b   :  { %v4457_v40 = vsel %vm14718_vm9, %v14619_v8, %v14717_v21  ;;  %v4458_v27 = vsel %vm14720_vm0, %v14620_v25, %v14719_v10  ;;  %v14721_v58 = vld [vmem:[#allocation88_spill] sm:$0xff]  ;;  %4708 = vst [vmem:[#allocation2 + $0x738] sm:$0xff] %v4452_v18  ;;  %4709 = vst [vmem:[#allocation2 + $0x740] sm:$0xff] %v4453_v44  ;;  %v14724_v8 = vld [vmem:[#allocation90_spill] sm:$0xff]  ;;  %vm14741_vm3 = vcmp.ge.f32.partialorder %v14653_v38, 0.0  ;;  %vm14743_vm8 = vcmp.ge.f32.partialorder %v14654_v22, 0.0 }
 0x53c   :  { %v4459_v34 = vsel %vm14722_vm4, %v14621_v30, %v14721_v58  ;;  %4710 = vst [vmem:[#allocation2 + $0x748] sm:$0xff] %v4454_v13  ;;  %4711 = vst [vmem:[#allocation2 + $0x750] sm:$0xff] %v4455_v43  ;;  %v14723_v41 = vld [vmem:[#allocation92_spill] sm:$0xff]  ;;  %v4461_v47 = vsel %vm14725_vm10, %v14630_v51, %v14724_v8  ;;  %v14738_v17 = vld [vmem:[#allocation106_spill] sm:$0xff] }
 0x53d   :  { %v4460_v16 = vsel %vm3948_vm11, %v14629_v59, %v14723_v41  ;;  %v14726_v25 = vld [vmem:[#allocation32_spill] sm:$0xff]  ;;  %4712 = vst [vmem:[#allocation2 + $0x758] sm:$0xff] %v4456_v39  ;;  %4713 = vst [vmem:[#allocation2 + $0x760] sm:$0xff] %v4457_v40  ;;  %v14730_v59 = vld [vmem:[#allocation94_spill] sm:$0xff]  ;;  %vm14732_vm11 = vcmp.ge.f32.partialorder %v14641_v28, 0.0 }
 0x53e   :  { %v4462_v29 = vsel %vm14727_vm1, %v14631_v2, %v14726_v25  ;;  %v14728_v30 = vld [vmem:[#allocation96_spill] sm:$0xff]  ;;  %4714 = vst [vmem:[#allocation2 + $0x768] sm:$0xff] %v4458_v27  ;;  %4715 = vst [vmem:[#allocation2 + $0x770] sm:$0xff] %v4459_v34  ;;  %v4464_v9 = vsel %vm3952_vm12, %v14640_v60, %v14730_v59  ;;  %v14733_v2 = vld [vmem:[#allocation34_spill] sm:$0xff]  ;;  %vm14739_vm12 = vcmp.ge.f32.partialorder %v14652_v5, 0.0 }
 0x53f   :  { %v4463_v49 = vsel %vm14729_vm6, %v14632_v45, %v14728_v30  ;;  %v14731_v51 = vld [vmem:[#allocation100_spill] sm:$0xff]  ;;  %v4466_v63 = vsel %vm14734_vm15, %v14642_v3, %v14733_v2  ;;  %4716 = vst [vmem:[#allocation2 + $0x778] sm:$0xff] %v4460_v16  ;;  %4717 = vst [vmem:[#allocation2 + $0x780] sm:$0xff] %v4461_v47  ;;  %v14737_v60 = vld [vmem:[#allocation102_spill] sm:$0xff]  ;;  %v4469_v3 = vsel %vm14739_vm12, %v14652_v5, %v14738_v17 }
 0x540   :  { %v4465_v32 = vsel %vm14732_vm11, %v14641_v28, %v14731_v51  ;;  %v14735_v45 = vld [vmem:[#allocation104_spill] sm:$0xff]  ;;  %4718 = vst [vmem:[#allocation2 + $0x788] sm:$0xff] %v4462_v29  ;;  %4719 = vst [vmem:[#allocation2 + $0x790] sm:$0xff] %v4463_v49  ;;  %v4468_v28 = vsel %vm3956_vm13, %v14651_v56, %v14737_v60  ;;  %v14740_v52 = vld [vmem:[#allocation33_spill] sm:$0xff]  ;;  %vm14747_vm13 = vcmp.ge.f32.partialorder %v14664_v61, 0.0 }
 0x541   :  { %v4467_v36 = vsel %vm14736_vm7, %v14643_v57, %v14735_v45  ;;  %v4470_v57 = vsel %vm14741_vm3, %v14653_v38, %v14740_v52  ;;  %v14742_v33 = vld [vmem:[#allocation112_spill] sm:$0xff]  ;;  %4720 = vst [vmem:[#allocation2 + $0x798] sm:$0xff] %v4464_v9  ;;  %4721 = vst [vmem:[#allocation2 + $0x7a0] sm:$0xff] %v4465_v32  ;;  %v14744_v56 = vld [vmem:[#allocation110_spill] sm:$0xff] }
 0x542   :  { %v4471_v0 = vsel %vm14743_vm8, %v14654_v22, %v14742_v33  ;;  %4722 = vst [vmem:[#allocation2 + $0x7a8] sm:$0xff] %v4466_v63  ;;  %4723 = vst [vmem:[#allocation2 + $0x7b0] sm:$0xff] %v4467_v36  ;;  %v4472_v5 = vsel %vm3960_vm14, %v14662_v50, %v14744_v56  ;;  %v14745_v4 = vld [vmem:[#allocation116_spill] sm:$0xff]  ;;  %v14746_v42 = vld [vmem:[#allocation114_spill] sm:$0xff] }
 0x543   :  { %v4473_v38 = vsel %vm3961_vm5, %v14663_v24, %v14745_v4  ;;  %v4474_v22 = vsel %vm14747_vm13, %v14664_v61, %v14746_v42  ;;  %v14748_v23 = vld [vmem:[#allocation35_spill] sm:$0xff]  ;;  %4724 = vst [vmem:[#allocation2 + $0x7b8] sm:$0xff] %v4468_v28  ;;  %4725 = vst [vmem:[#allocation2 + $0x7c0] sm:$0xff] %v4469_v3 }
 0x544   :  { %v4476_v6 = vsel %vm3964_vm2, %v14665_v14, %v14748_v23  ;;  %4726 = vst [vmem:[#allocation2 + $0x7c8] sm:$0xff] %v4470_v57  ;;  %4727 = vst [vmem:[#allocation2 + $0x7d0] sm:$0xff] %v4471_v0 }
 0x545   :  { %4728 = vst [vmem:[#allocation2 + $0x7d8] sm:$0xff] %v4472_v5  ;;  %4729 = vst [vmem:[#allocation2 + $0x7e0] sm:$0xff] %v4473_v38 }
 0x546   :  { %4730 = vst [vmem:[#allocation2 + $0x7e8] sm:$0xff] %v4474_v22  ;;  %4732 = vst [vmem:[#allocation2 + $0x7f8] sm:$0xff] %v4476_v6 }
 0x547   :  { %5709 = shalt.err (!%p5706_p4)
}
 0x548   :  { %s5710_s10 = scalar_lea.hbm %s12158_s4, 32768 }
 0x549   :  { %p5711_p5 = scmp.ne.s32.totalorder %s12158_s4, %s5710_s10  ;;  %p5714_p6 = scmp.lt.u32.totalorder %s5710_s10, %s12158_s4 }
 0x54b   :  { %p5716_p7 = pnand %p5714_p6, %p5711_p5 }
 0x54d   :  { %5719 = shalt.err (!%p5716_p7)
}
 0x54e   :  { %s5723_s14 = smov 128   ;;  %s5724_s15 = smov 8  }
 0x54f   :  { %4744 = dma.vmem_to_hbm [thread:$0]  %s12103_s3, 32768, %s12158_s4, [#allocation3], %s5723_s14, %s5723_s14, %s5724_s15  }
 0x550   :  { %5720 = dma.done.wait [#allocation3], 32768  }
 0x551   :  { %5721 = vsyncadd [#allocation3], 4294934528 }
 0x552   :  { %4748 = vsyncpa [#allocation3], 1 }

</bundles_post_ra>
